<compile_context>
chip_gen: v7x
topology: tpu7x:2x2x1
jax: 0.10.0
libtpu: 0.0.40
codegen_flags: <defaults>
</compile_context>

<pallas_src>
import functools
import itertools

import jax
import jax.numpy as jnp
from jax import lax
from jax.experimental import pallas as pl
from jax.experimental.pallas import tpu as pltpu


def _round_up(x, m):
    return ((x + m - 1) // m) * m


# ---------------------------------------------------------------------------
# Fused Pallas kernel: 3x (dilated 3x3x3 conv + InstanceNorm3d + ReLU), per sample
# ---------------------------------------------------------------------------
def _fused_stack_kernel(mask_ref, x_ref, w_ref, b_ref, g_ref, bt_ref, o_ref,
                        buf_a, buf_b, slab_ref, acc_ref, *,
                        tap_starts, wr_start, l_pad, c_pad, n_valid, eps):
    # mask_ref : (1, l_pad)            1.0 at valid (central) output columns
    # x_ref    : (c_pad, p_buf)        zero-halo padded input volume (one sample)
    # w_ref    : (3, c_pad, 27*c_pad)  per-layer im2col weight matrices
    # b/g/bt   : (3, c_pad, 1)         per-layer conv-bias / IN-gamma / IN-beta
    # o_ref    : (c_pad, p_buf)        output volume on the shared padded grid
    # buf_a/b  : (c_pad, p_buf)        VMEM ping-pong buffers for intermediates
    # slab_ref : (27*c_pad, l_pad)     im2col slab (taps folded into K)
    # acc_ref  : (c_pad, l_pad)        conv accumulator (VMEM scratch)

    # Zero the ping-pong buffers so the halo of every intermediate is exactly
    # the zero padding the next layer expects.
    buf_a[...] = jnp.zeros_like(buf_a)
    buf_b[...] = jnp.zeros_like(buf_b)

    m = mask_ref[...]                       # (1, l_pad), lane-dense
    inv_n = 1.0 / float(n_valid)

    srcs = (x_ref, buf_a, buf_b)
    dsts = (buf_a, buf_b, o_ref)
    for layer in range(3):                  # static, unrolled
        in_ref, out_ref = srcs[layer], dsts[layer]

        # im2col: stack the 27 dilated-shifted views along the contraction axis.
        for t, st in enumerate(tap_starts[layer]):
            slab_ref[t * c_pad:(t + 1) * c_pad, :] = in_ref[:, pl.ds(st, l_pad)]

        # single big-K matmul: (c_pad, 27*c_pad) @ (27*c_pad, l_pad) + bias
        acc_ref[...] = (jnp.dot(w_ref[layer], slab_ref[...],
                                preferred_element_type=jnp.float32)
                        + b_ref[layer])

        # masked InstanceNorm3d (biased variance over the D*H*W valid columns)
        a = acc_ref[...]                                        # (c_pad, l_pad)
        mean = jnp.sum(a * m, axis=1, keepdims=True) * inv_n    # (c_pad, 1)
        cent = (a - mean) * m
        var = jnp.sum(cent * cent, axis=1, keepdims=True) * inv_n
        y = (a - mean) * lax.rsqrt(var + eps)
        y = y * g_ref[layer] + bt_ref[layer]                    # affine
        y = jnp.maximum(y, 0.0) * m                             # ReLU + zero halo

        out_ref[:, pl.ds(wr_start, l_pad)] = y                  # 128-aligned store


def stack_dilated_block(x_ncdhw, layers, *, eps=1e-5):
    """StackDilatedBlock.forward (short_cut=False).  x: (N, C, D, H, W) f32."""
    assert len(layers) == 3
    N, Cin, D, H, W = x_ncdhw.shape
    dils = [int(d) for (_w, _b, _g, _bt, d) in layers]
    M = max(dils)                                   # shared halo >= every dilation

    c_all = [Cin] + [w.shape[0] for (w, *_rest) in layers]
    C_pad = _round_up(max(c_all), 8)
    Cout = layers[-1][0].shape[0]

    Dp, Hp, Wp = D + 2 * M, H + 2 * M, W + 2 * M
    HpWp = Hp * Wp
    P = Dp * HpWp                                   # shared padded grid, flattened
    S = HpWp + Wp + 1
    pmin = M * S                                    # first central flat index
    L = (D - 1) * HpWp + (H - 1) * Wp + W           # contiguous output window
    Lp = _round_up(L, 128)
    F = (-pmin) % 128                               # front pad -> 128-aligned store
    wr_start = F + pmin                             # multiple of 128
    p_buf = _round_up(max(F + P, wr_start + M * S + Lp), 128)

    # ---- host-side packing (done once for the whole fused block) -------------
    xp = jnp.pad(x_ncdhw.astype(jnp.float32),
                 ((0, 0), (0, C_pad - Cin), (M, M), (M, M), (M, M)))
    xflat = xp.reshape(N, C_pad, P)
    xflat = jnp.pad(xflat, ((0, 0), (0, 0), (F, p_buf - F - P)))

    w2d_list, b_list, g_list, bt_list, tap_starts = [], [], [], [], []
    for (w, b, g, bt, d) in layers:
        co, ci = w.shape[0], w.shape[1]
        wt = jnp.transpose(w, (0, 2, 3, 4, 1)).reshape(co, 27, ci)
        wt = jnp.pad(wt, ((0, C_pad - co), (0, 0), (0, C_pad - ci)))
        w2d_list.append(wt.reshape(C_pad, 27 * C_pad))

        def _col(v):
            return jnp.pad(v, (0, C_pad - v.shape[0])).reshape(C_pad, 1)
        b_list.append(_col(b))
        g_list.append(_col(g))
        bt_list.append(_col(bt))

        d = int(d)
        tap_starts.append(tuple(
            wr_start + (kd - 1) * d * HpWp + (kh - 1) * d * Wp + (kw - 1) * d
            for kd, kh, kw in itertools.product(range(3), repeat=3)))

    w_all = jnp.stack(w2d_list)                     # (3, C_pad, 27*C_pad)
    b_all = jnp.stack(b_list)                       # (3, C_pad, 1)
    g_all = jnp.stack(g_list)
    bt_all = jnp.stack(bt_list)

    # validity mask over the contiguous output window (lane-dense, shared by all
    # layers because they all live on the same padded grid)
    q = pmin + jnp.arange(Lp)
    z = q // HpWp
    r = q % HpWp
    yy = r // Wp
    xx = r % Wp
    mask = (((z >= M) & (z < M + D) & (yy >= M) & (yy < M + H)
             & (xx >= M) & (xx < M + W)).astype(jnp.float32).reshape(1, Lp))

    kern = functools.partial(
        _fused_stack_kernel, tap_starts=tuple(tap_starts), wr_start=wr_start,
        l_pad=Lp, c_pad=C_pad, n_valid=D * H * W, eps=eps)

    flops = 2 * N * D * H * W * 27 * sum(
        w.shape[1] * w.shape[0] for (w, *_rest) in layers)
    bytes_accessed = 4 * (2 * N * C_pad * p_buf + w_all.size + b_all.size
                          + g_all.size + bt_all.size + mask.size)

    out = pl.pallas_call(
        kern,
        out_shape=jax.ShapeDtypeStruct((N, C_pad, p_buf), jnp.float32),
        grid_spec=pltpu.PrefetchScalarGridSpec(
            num_scalar_prefetch=0,
            grid=(N,),
            in_specs=[
                pl.BlockSpec((1, Lp), lambda n: (0, 0)),
                pl.BlockSpec((None, C_pad, p_buf), lambda n: (n, 0, 0)),
                pl.BlockSpec((3, C_pad, 27 * C_pad), lambda n: (0, 0, 0)),
                pl.BlockSpec((3, C_pad, 1), lambda n: (0, 0, 0)),
                pl.BlockSpec((3, C_pad, 1), lambda n: (0, 0, 0)),
                pl.BlockSpec((3, C_pad, 1), lambda n: (0, 0, 0)),
            ],
            out_specs=pl.BlockSpec((None, C_pad, p_buf), lambda n: (n, 0, 0)),
            scratch_shapes=[
                pltpu.VMEM((C_pad, p_buf), jnp.float32),      # ping
                pltpu.VMEM((C_pad, p_buf), jnp.float32),      # pong
                pltpu.VMEM((27 * C_pad, Lp), jnp.float32),    # im2col slab
                pltpu.VMEM((C_pad, Lp), jnp.float32),         # conv accumulator
            ]),
        compiler_params=pltpu.CompilerParams(
            dimension_semantics=("parallel",),
            vmem_limit_bytes=32 * 1024 * 1024),
        cost_estimate=pl.CostEstimate(
            flops=flops, transcendentals=N * 3 * C_pad,
            bytes_accessed=bytes_accessed),
    )(mask, xflat, w_all, b_all, g_all, bt_all)

    # shared-grid flattened -> (Dp, Hp, Wp) -> crop the valid center
    out_vol = out[:, :Cout, F:F + P].reshape(N, Cout, Dp, Hp, Wp)
    return out_vol[:, :, M:M + D, M:M + H, M:M + W]


# ---------------------------------------------------------------------------
# Pure-JAX reference (NCDHW, mirrors the PyTorch module semantics)
# ---------------------------------------------------------------------------
def ref_forward(x_ncdhw, layers):
    out = x_ncdhw
    for (w, b, g, bt, d) in layers:
        out = lax.conv_general_dilated(
            out, w, window_strides=(1, 1, 1), padding=[(d, d)] * 3,
            rhs_dilation=(d, d, d),
            dimension_numbers=('NCDHW', 'OIDHW', 'NCDHW'))
        out = out + b[None, :, None, None, None]
        mean = jnp.mean(out, axis=(2, 3, 4), keepdims=True)
        var = jnp.var(out, axis=(2, 3, 4), keepdims=True)
        out = (out - mean) * lax.rsqrt(var + 1e-5)
        out = out * g[None, :, None, None, None] + bt[None, :, None, None, None]
        out = jnp.maximum(out, 0.0)
    return out


def init_layer(key, cin, cout):
    k1, k2, k3, k4 = jax.random.split(key, 4)
    fan_in = cin * 27
    w = jax.random.normal(k1, (cout, cin, 3, 3, 3), jnp.float32) / jnp.sqrt(fan_in)
    b = 0.1 * jax.random.normal(k2, (cout,), jnp.float32)
    g = 1.0 + 0.1 * jax.random.normal(k3, (cout,), jnp.float32)
    bt = 0.1 * jax.random.normal(k4, (cout,), jnp.float32)
    return w, b, g, bt


if __name__ == "__main__":
    key = jax.random.PRNGKey(0)
    kx, k0, k1, k2 = jax.random.split(key, 4)

    N, Cin, Cout = 2, 4, 8
    D = H = W = 8
    dilations = (1, 2, 3)

    # module input in PyTorch layout NCDHW
    x_ncdhw = jax.random.normal(kx, (N, Cin, D, H, W), jnp.float32)

    # deterministic parameters for the three DilatedConvNormNonlin sub-blocks
    layers = [
        init_layer(k0, Cin, Cout) + (dilations[0],),
        init_layer(k1, Cout, Cout) + (dilations[1],),
        init_layer(k2, Cout, Cout) + (dilations[2],),
    ]

    out = jax.block_until_ready(stack_dilated_block(x_ncdhw, layers))

    # correctness check against pure-JAX reference
    ref = jax.block_until_ready(ref_forward(x_ncdhw, layers))
    err = float(jnp.max(jnp.abs(out - ref)))
    assert out.shape == (N, Cout, D, H, W), out.shape
    assert err < 2e-3, f"max abs error {err}"

    print("KERNEL_OK")
</pallas_src>

<mosaic_0001>
module attributes {stable_mosaic.version = 11 : i64} {
  func.func @_fused_stack_kernel(%arg0: i32, %arg1: memref<1x1536xf32, #tpu.memory_space<vmem>>, %arg2: memref<1x8x2816xf32, #tpu.memory_space<vmem>>, %arg3: memref<3x8x216xf32, #tpu.memory_space<vmem>>, %arg4: memref<3x8x1xf32, #tpu.memory_space<vmem>>, %arg5: memref<3x8x1xf32, #tpu.memory_space<vmem>>, %arg6: memref<3x8x1xf32, #tpu.memory_space<vmem>>, %arg7: memref<1x8x2816xf32, #tpu.memory_space<vmem>>, %arg8: memref<8x2816xf32, #tpu.memory_space<vmem>>, %arg9: memref<8x2816xf32, #tpu.memory_space<vmem>>, %arg10: memref<216x1536xf32, #tpu.memory_space<vmem>>, %arg11: memref<8x1536xf32, #tpu.memory_space<vmem>>) attributes {dimension_semantics = [#tpu.dimension_semantics<parallel>], iteration_bounds = array<i64: 2>, scalar_prefetch = 0 : i64, scratch_operands = 4 : i64, tpu.core_type = #tpu.core_type<tc>, window_params = [{pipeline_mode = #tpu.pipeline_mode<synchronous>, transform_indices = @transform_0, window_bounds = array<i64: 1, 1536>}, {transform_indices = @transform_1, window_bounds = array<i64: 1, 8, 2816>}, {pipeline_mode = #tpu.pipeline_mode<synchronous>, transform_indices = @transform_2, window_bounds = array<i64: 3, 8, 216>}, {pipeline_mode = #tpu.pipeline_mode<synchronous>, transform_indices = @transform_3, window_bounds = array<i64: 3, 8, 1>}, {pipeline_mode = #tpu.pipeline_mode<synchronous>, transform_indices = @transform_4, window_bounds = array<i64: 3, 8, 1>}, {pipeline_mode = #tpu.pipeline_mode<synchronous>, transform_indices = @transform_5, window_bounds = array<i64: 3, 8, 1>}, {transform_indices = @transform_6, window_bounds = array<i64: 1, 8, 2816>}]} {
    %cst = arith.constant 0.000000e+00 : f32
    %0 = vector.broadcast %cst : f32 to vector<8x2816xf32>
    %c0 = arith.constant 0 : index
    %c0_0 = arith.constant 0 : index
    %1 = vector.load %arg8[%c0, %c0_0] : memref<8x2816xf32, #tpu.memory_space<vmem>>, vector<8x2816xf32>
    tpu.vector_store %arg8[%c0, %c0_0], %0 {strides = array<i32>} : memref<8x2816xf32, #tpu.memory_space<vmem>>, vector<8x2816xf32>,
    %cst_1 = arith.constant 0.000000e+00 : f32
    %2 = vector.broadcast %cst_1 : f32 to vector<8x2816xf32>
    %c0_2 = arith.constant 0 : index
    %c0_3 = arith.constant 0 : index
    %3 = vector.load %arg9[%c0_2, %c0_3] : memref<8x2816xf32, #tpu.memory_space<vmem>>, vector<8x2816xf32>
    tpu.vector_store %arg9[%c0_2, %c0_3], %2 {strides = array<i32>} : memref<8x2816xf32, #tpu.memory_space<vmem>>, vector<8x2816xf32>,
    %c0_4 = arith.constant 0 : index
    %c0_5 = arith.constant 0 : index
    %4 = vector.load %arg1[%c0_4, %c0_5] : memref<1x1536xf32, #tpu.memory_space<vmem>>, vector<1x1536xf32>
    %c0_6 = arith.constant 0 : index
    %c0_7 = arith.constant 0 : index
    %c429 = arith.constant 429 : index
    %5 = vector.load %arg2[%c0_6, %c0_7, %c429] : memref<1x8x2816xf32, #tpu.memory_space<vmem>>, vector<1x8x1536xf32>
    %6 = vector.shape_cast %5 : vector<1x8x1536xf32> to vector<8x1536xf32>
    %c0_8 = arith.constant 0 : index
    %c0_9 = arith.constant 0 : index
    %7 = vector.load %arg10[%c0_8, %c0_9] : memref<216x1536xf32, #tpu.memory_space<vmem>>, vector<8x1536xf32>
    tpu.vector_store %arg10[%c0_8, %c0_9], %6 {strides = array<i32>} : memref<216x1536xf32, #tpu.memory_space<vmem>>, vector<8x1536xf32>,
    %c0_10 = arith.constant 0 : index
    %c0_11 = arith.constant 0 : index
    %c430 = arith.constant 430 : index
    %8 = vector.load %arg2[%c0_10, %c0_11, %c430] : memref<1x8x2816xf32, #tpu.memory_space<vmem>>, vector<1x8x1536xf32>
    %9 = vector.shape_cast %8 : vector<1x8x1536xf32> to vector<8x1536xf32>
    %c8 = arith.constant 8 : index
    %c0_12 = arith.constant 0 : index
    %10 = vector.load %arg10[%c8, %c0_12] : memref<216x1536xf32, #tpu.memory_space<vmem>>, vector<8x1536xf32>
    tpu.vector_store %arg10[%c8, %c0_12], %9 {strides = array<i32>} : memref<216x1536xf32, #tpu.memory_space<vmem>>, vector<8x1536xf32>,
    %c0_13 = arith.constant 0 : index
    %c0_14 = arith.constant 0 : index
    %c431 = arith.constant 431 : index
    %11 = vector.load %arg2[%c0_13, %c0_14, %c431] : memref<1x8x2816xf32, #tpu.memory_space<vmem>>, vector<1x8x1536xf32>
    %12 = vector.shape_cast %11 : vector<1x8x1536xf32> to vector<8x1536xf32>
    %c16 = arith.constant 16 : index
    %c0_15 = arith.constant 0 : index
    %13 = vector.load %arg10[%c16, %c0_15] : memref<216x1536xf32, #tpu.memory_space<vmem>>, vector<8x1536xf32>
    tpu.vector_store %arg10[%c16, %c0_15], %12 {strides = array<i32>} : memref<216x1536xf32, #tpu.memory_space<vmem>>, vector<8x1536xf32>,
    %c0_16 = arith.constant 0 : index
    %c0_17 = arith.constant 0 : index
    %c443 = arith.constant 443 : index
    %14 = vector.load %arg2[%c0_16, %c0_17, %c443] : memref<1x8x2816xf32, #tpu.memory_space<vmem>>, vector<1x8x1536xf32>
    %15 = vector.shape_cast %14 : vector<1x8x1536xf32> to vector<8x1536xf32>
    %c24 = arith.constant 24 : index
    %c0_18 = arith.constant 0 : index
    %16 = vector.load %arg10[%c24, %c0_18] : memref<216x1536xf32, #tpu.memory_space<vmem>>, vector<8x1536xf32>
    tpu.vector_store %arg10[%c24, %c0_18], %15 {strides = array<i32>} : memref<216x1536xf32, #tpu.memory_space<vmem>>, vector<8x1536xf32>,
    %c0_19 = arith.constant 0 : index
    %c0_20 = arith.constant 0 : index
    %c444 = arith.constant 444 : index
    %17 = vector.load %arg2[%c0_19, %c0_20, %c444] : memref<1x8x2816xf32, #tpu.memory_space<vmem>>, vector<1x8x1536xf32>
    %18 = vector.shape_cast %17 : vector<1x8x1536xf32> to vector<8x1536xf32>
    %c32 = arith.constant 32 : index
    %c0_21 = arith.constant 0 : index
    %19 = vector.load %arg10[%c32, %c0_21] : memref<216x1536xf32, #tpu.memory_space<vmem>>, vector<8x1536xf32>
    tpu.vector_store %arg10[%c32, %c0_21], %18 {strides = array<i32>} : memref<216x1536xf32, #tpu.memory_space<vmem>>, vector<8x1536xf32>,
    %c0_22 = arith.constant 0 : index
    %c0_23 = arith.constant 0 : index
    %c445 = arith.constant 445 : index
    %20 = vector.load %arg2[%c0_22, %c0_23, %c445] : memref<1x8x2816xf32, #tpu.memory_space<vmem>>, vector<1x8x1536xf32>
    %21 = vector.shape_cast %20 : vector<1x8x1536xf32> to vector<8x1536xf32>
    %c40 = arith.constant 40 : index
    %c0_24 = arith.constant 0 : index
    %22 = vector.load %arg10[%c40, %c0_24] : memref<216x1536xf32, #tpu.memory_space<vmem>>, vector<8x1536xf32>
    tpu.vector_store %arg10[%c40, %c0_24], %21 {strides = array<i32>} : memref<216x1536xf32, #tpu.memory_space<vmem>>, vector<8x1536xf32>,
    %c0_25 = arith.constant 0 : index
    %c0_26 = arith.constant 0 : index
    %c457 = arith.constant 457 : index
    %23 = vector.load %arg2[%c0_25, %c0_26, %c457] : memref<1x8x2816xf32, #tpu.memory_space<vmem>>, vector<1x8x1536xf32>
    %24 = vector.shape_cast %23 : vector<1x8x1536xf32> to vector<8x1536xf32>
    %c48 = arith.constant 48 : index
    %c0_27 = arith.constant 0 : index
    %25 = vector.load %arg10[%c48, %c0_27] : memref<216x1536xf32, #tpu.memory_space<vmem>>, vector<8x1536xf32>
    tpu.vector_store %arg10[%c48, %c0_27], %24 {strides = array<i32>} : memref<216x1536xf32, #tpu.memory_space<vmem>>, vector<8x1536xf32>,
    %c0_28 = arith.constant 0 : index
    %c0_29 = arith.constant 0 : index
    %c458 = arith.constant 458 : index
    %26 = vector.load %arg2[%c0_28, %c0_29, %c458] : memref<1x8x2816xf32, #tpu.memory_space<vmem>>, vector<1x8x1536xf32>
    %27 = vector.shape_cast %26 : vector<1x8x1536xf32> to vector<8x1536xf32>
    %c56 = arith.constant 56 : index
    %c0_30 = arith.constant 0 : index
    %28 = vector.load %arg10[%c56, %c0_30] : memref<216x1536xf32, #tpu.memory_space<vmem>>, vector<8x1536xf32>
    tpu.vector_store %arg10[%c56, %c0_30], %27 {strides = array<i32>} : memref<216x1536xf32, #tpu.memory_space<vmem>>, vector<8x1536xf32>,
    %c0_31 = arith.constant 0 : index
    %c0_32 = arith.constant 0 : index
    %c459 = arith.constant 459 : index
    %29 = vector.load %arg2[%c0_31, %c0_32, %c459] : memref<1x8x2816xf32, #tpu.memory_space<vmem>>, vector<1x8x1536xf32>
    %30 = vector.shape_cast %29 : vector<1x8x1536xf32> to vector<8x1536xf32>
    %c64 = arith.constant 64 : index
    %c0_33 = arith.constant 0 : index
    %31 = vector.load %arg10[%c64, %c0_33] : memref<216x1536xf32, #tpu.memory_space<vmem>>, vector<8x1536xf32>
    tpu.vector_store %arg10[%c64, %c0_33], %30 {strides = array<i32>} : memref<216x1536xf32, #tpu.memory_space<vmem>>, vector<8x1536xf32>,
    %c0_34 = arith.constant 0 : index
    %c0_35 = arith.constant 0 : index
    %c625 = arith.constant 625 : index
    %32 = vector.load %arg2[%c0_34, %c0_35, %c625] : memref<1x8x2816xf32, #tpu.memory_space<vmem>>, vector<1x8x1536xf32>
    %33 = vector.shape_cast %32 : vector<1x8x1536xf32> to vector<8x1536xf32>
    %c72 = arith.constant 72 : index
    %c0_36 = arith.constant 0 : index
    %34 = vector.load %arg10[%c72, %c0_36] : memref<216x1536xf32, #tpu.memory_space<vmem>>, vector<8x1536xf32>
    tpu.vector_store %arg10[%c72, %c0_36], %33 {strides = array<i32>} : memref<216x1536xf32, #tpu.memory_space<vmem>>, vector<8x1536xf32>,
    %c0_37 = arith.constant 0 : index
    %c0_38 = arith.constant 0 : index
    %c626 = arith.constant 626 : index
    %35 = vector.load %arg2[%c0_37, %c0_38, %c626] : memref<1x8x2816xf32, #tpu.memory_space<vmem>>, vector<1x8x1536xf32>
    %36 = vector.shape_cast %35 : vector<1x8x1536xf32> to vector<8x1536xf32>
    %c80 = arith.constant 80 : index
    %c0_39 = arith.constant 0 : index
    %37 = vector.load %arg10[%c80, %c0_39] : memref<216x1536xf32, #tpu.memory_space<vmem>>, vector<8x1536xf32>
    tpu.vector_store %arg10[%c80, %c0_39], %36 {strides = array<i32>} : memref<216x1536xf32, #tpu.memory_space<vmem>>, vector<8x1536xf32>,
    %c0_40 = arith.constant 0 : index
    %c0_41 = arith.constant 0 : index
    %c627 = arith.constant 627 : index
    %38 = vector.load %arg2[%c0_40, %c0_41, %c627] : memref<1x8x2816xf32, #tpu.memory_space<vmem>>, vector<1x8x1536xf32>
    %39 = vector.shape_cast %38 : vector<1x8x1536xf32> to vector<8x1536xf32>
    %c88 = arith.constant 88 : index
    %c0_42 = arith.constant 0 : index
    %40 = vector.load %arg10[%c88, %c0_42] : memref<216x1536xf32, #tpu.memory_space<vmem>>, vector<8x1536xf32>
    tpu.vector_store %arg10[%c88, %c0_42], %39 {strides = array<i32>} : memref<216x1536xf32, #tpu.memory_space<vmem>>, vector<8x1536xf32>,
    %c0_43 = arith.constant 0 : index
    %c0_44 = arith.constant 0 : index
    %c639 = arith.constant 639 : index
    %41 = vector.load %arg2[%c0_43, %c0_44, %c639] : memref<1x8x2816xf32, #tpu.memory_space<vmem>>, vector<1x8x1536xf32>
    %42 = vector.shape_cast %41 : vector<1x8x1536xf32> to vector<8x1536xf32>
    %c96 = arith.constant 96 : index
    %c0_45 = arith.constant 0 : index
    %43 = vector.load %arg10[%c96, %c0_45] : memref<216x1536xf32, #tpu.memory_space<vmem>>, vector<8x1536xf32>
    tpu.vector_store %arg10[%c96, %c0_45], %42 {strides = array<i32>} : memref<216x1536xf32, #tpu.memory_space<vmem>>, vector<8x1536xf32>,
    %c0_46 = arith.constant 0 : index
    %c0_47 = arith.constant 0 : index
    %c640 = arith.constant 640 : index
    %44 = vector.load %arg2[%c0_46, %c0_47, %c640] : memref<1x8x2816xf32, #tpu.memory_space<vmem>>, vector<1x8x1536xf32>
    %45 = vector.shape_cast %44 : vector<1x8x1536xf32> to vector<8x1536xf32>
    %c104 = arith.constant 104 : index
    %c0_48 = arith.constant 0 : index
    %46 = vector.load %arg10[%c104, %c0_48] : memref<216x1536xf32, #tpu.memory_space<vmem>>, vector<8x1536xf32>
    tpu.vector_store %arg10[%c104, %c0_48], %45 {strides = array<i32>} : memref<216x1536xf32, #tpu.memory_space<vmem>>, vector<8x1536xf32>,
    %c0_49 = arith.constant 0 : index
    %c0_50 = arith.constant 0 : index
    %c641 = arith.constant 641 : index
    %47 = vector.load %arg2[%c0_49, %c0_50, %c641] : memref<1x8x2816xf32, #tpu.memory_space<vmem>>, vector<1x8x1536xf32>
    %48 = vector.shape_cast %47 : vector<1x8x1536xf32> to vector<8x1536xf32>
    %c112 = arith.constant 112 : index
    %c0_51 = arith.constant 0 : index
    %49 = vector.load %arg10[%c112, %c0_51] : memref<216x1536xf32, #tpu.memory_space<vmem>>, vector<8x1536xf32>
    tpu.vector_store %arg10[%c112, %c0_51], %48 {strides = array<i32>} : memref<216x1536xf32, #tpu.memory_space<vmem>>, vector<8x1536xf32>,
    %c0_52 = arith.constant 0 : index
    %c0_53 = arith.constant 0 : index
    %c653 = arith.constant 653 : index
    %50 = vector.load %arg2[%c0_52, %c0_53, %c653] : memref<1x8x2816xf32, #tpu.memory_space<vmem>>, vector<1x8x1536xf32>
    %51 = vector.shape_cast %50 : vector<1x8x1536xf32> to vector<8x1536xf32>
    %c120 = arith.constant 120 : index
    %c0_54 = arith.constant 0 : index
    %52 = vector.load %arg10[%c120, %c0_54] : memref<216x1536xf32, #tpu.memory_space<vmem>>, vector<8x1536xf32>
    tpu.vector_store %arg10[%c120, %c0_54], %51 {strides = array<i32>} : memref<216x1536xf32, #tpu.memory_space<vmem>>, vector<8x1536xf32>,
    %c0_55 = arith.constant 0 : index
    %c0_56 = arith.constant 0 : index
    %c654 = arith.constant 654 : index
    %53 = vector.load %arg2[%c0_55, %c0_56, %c654] : memref<1x8x2816xf32, #tpu.memory_space<vmem>>, vector<1x8x1536xf32>
    %54 = vector.shape_cast %53 : vector<1x8x1536xf32> to vector<8x1536xf32>
    %c128 = arith.constant 128 : index
    %c0_57 = arith.constant 0 : index
    %55 = vector.load %arg10[%c128, %c0_57] : memref<216x1536xf32, #tpu.memory_space<vmem>>, vector<8x1536xf32>
    tpu.vector_store %arg10[%c128, %c0_57], %54 {strides = array<i32>} : memref<216x1536xf32, #tpu.memory_space<vmem>>, vector<8x1536xf32>,
    %c0_58 = arith.constant 0 : index
    %c0_59 = arith.constant 0 : index
    %c655 = arith.constant 655 : index
    %56 = vector.load %arg2[%c0_58, %c0_59, %c655] : memref<1x8x2816xf32, #tpu.memory_space<vmem>>, vector<1x8x1536xf32>
    %57 = vector.shape_cast %56 : vector<1x8x1536xf32> to vector<8x1536xf32>
    %c136 = arith.constant 136 : index
    %c0_60 = arith.constant 0 : index
    %58 = vector.load %arg10[%c136, %c0_60] : memref<216x1536xf32, #tpu.memory_space<vmem>>, vector<8x1536xf32>
    tpu.vector_store %arg10[%c136, %c0_60], %57 {strides = array<i32>} : memref<216x1536xf32, #tpu.memory_space<vmem>>, vector<8x1536xf32>,
    %c0_61 = arith.constant 0 : index
    %c0_62 = arith.constant 0 : index
    %c821 = arith.constant 821 : index
    %59 = vector.load %arg2[%c0_61, %c0_62, %c821] : memref<1x8x2816xf32, #tpu.memory_space<vmem>>, vector<1x8x1536xf32>
    %60 = vector.shape_cast %59 : vector<1x8x1536xf32> to vector<8x1536xf32>
    %c144 = arith.constant 144 : index
    %c0_63 = arith.constant 0 : index
    %61 = vector.load %arg10[%c144, %c0_63] : memref<216x1536xf32, #tpu.memory_space<vmem>>, vector<8x1536xf32>
    tpu.vector_store %arg10[%c144, %c0_63], %60 {strides = array<i32>} : memref<216x1536xf32, #tpu.memory_space<vmem>>, vector<8x1536xf32>,
    %c0_64 = arith.constant 0 : index
    %c0_65 = arith.constant 0 : index
    %c822 = arith.constant 822 : index
    %62 = vector.load %arg2[%c0_64, %c0_65, %c822] : memref<1x8x2816xf32, #tpu.memory_space<vmem>>, vector<1x8x1536xf32>
    %63 = vector.shape_cast %62 : vector<1x8x1536xf32> to vector<8x1536xf32>
    %c152 = arith.constant 152 : index
    %c0_66 = arith.constant 0 : index
    %64 = vector.load %arg10[%c152, %c0_66] : memref<216x1536xf32, #tpu.memory_space<vmem>>, vector<8x1536xf32>
    tpu.vector_store %arg10[%c152, %c0_66], %63 {strides = array<i32>} : memref<216x1536xf32, #tpu.memory_space<vmem>>, vector<8x1536xf32>,
    %c0_67 = arith.constant 0 : index
    %c0_68 = arith.constant 0 : index
    %c823 = arith.constant 823 : index
    %65 = vector.load %arg2[%c0_67, %c0_68, %c823] : memref<1x8x2816xf32, #tpu.memory_space<vmem>>, vector<1x8x1536xf32>
    %66 = vector.shape_cast %65 : vector<1x8x1536xf32> to vector<8x1536xf32>
    %c160 = arith.constant 160 : index
    %c0_69 = arith.constant 0 : index
    %67 = vector.load %arg10[%c160, %c0_69] : memref<216x1536xf32, #tpu.memory_space<vmem>>, vector<8x1536xf32>
    tpu.vector_store %arg10[%c160, %c0_69], %66 {strides = array<i32>} : memref<216x1536xf32, #tpu.memory_space<vmem>>, vector<8x1536xf32>,
    %c0_70 = arith.constant 0 : index
    %c0_71 = arith.constant 0 : index
    %c835 = arith.constant 835 : index
    %68 = vector.load %arg2[%c0_70, %c0_71, %c835] : memref<1x8x2816xf32, #tpu.memory_space<vmem>>, vector<1x8x1536xf32>
    %69 = vector.shape_cast %68 : vector<1x8x1536xf32> to vector<8x1536xf32>
    %c168 = arith.constant 168 : index
    %c0_72 = arith.constant 0 : index
    %70 = vector.load %arg10[%c168, %c0_72] : memref<216x1536xf32, #tpu.memory_space<vmem>>, vector<8x1536xf32>
    tpu.vector_store %arg10[%c168, %c0_72], %69 {strides = array<i32>} : memref<216x1536xf32, #tpu.memory_space<vmem>>, vector<8x1536xf32>,
    %c0_73 = arith.constant 0 : index
    %c0_74 = arith.constant 0 : index
    %c836 = arith.constant 836 : index
    %71 = vector.load %arg2[%c0_73, %c0_74, %c836] : memref<1x8x2816xf32, #tpu.memory_space<vmem>>, vector<1x8x1536xf32>
    %72 = vector.shape_cast %71 : vector<1x8x1536xf32> to vector<8x1536xf32>
    %c176 = arith.constant 176 : index
    %c0_75 = arith.constant 0 : index
    %73 = vector.load %arg10[%c176, %c0_75] : memref<216x1536xf32, #tpu.memory_space<vmem>>, vector<8x1536xf32>
    tpu.vector_store %arg10[%c176, %c0_75], %72 {strides = array<i32>} : memref<216x1536xf32, #tpu.memory_space<vmem>>, vector<8x1536xf32>,
    %c0_76 = arith.constant 0 : index
    %c0_77 = arith.constant 0 : index
    %c837 = arith.constant 837 : index
    %74 = vector.load %arg2[%c0_76, %c0_77, %c837] : memref<1x8x2816xf32, #tpu.memory_space<vmem>>, vector<1x8x1536xf32>
    %75 = vector.shape_cast %74 : vector<1x8x1536xf32> to vector<8x1536xf32>
    %c184 = arith.constant 184 : index
    %c0_78 = arith.constant 0 : index
    %76 = vector.load %arg10[%c184, %c0_78] : memref<216x1536xf32, #tpu.memory_space<vmem>>, vector<8x1536xf32>
    tpu.vector_store %arg10[%c184, %c0_78], %75 {strides = array<i32>} : memref<216x1536xf32, #tpu.memory_space<vmem>>, vector<8x1536xf32>,
    %c0_79 = arith.constant 0 : index
    %c0_80 = arith.constant 0 : index
    %c849 = arith.constant 849 : index
    %77 = vector.load %arg2[%c0_79, %c0_80, %c849] : memref<1x8x2816xf32, #tpu.memory_space<vmem>>, vector<1x8x1536xf32>
    %78 = vector.shape_cast %77 : vector<1x8x1536xf32> to vector<8x1536xf32>
    %c192 = arith.constant 192 : index
    %c0_81 = arith.constant 0 : index
    %79 = vector.load %arg10[%c192, %c0_81] : memref<216x1536xf32, #tpu.memory_space<vmem>>, vector<8x1536xf32>
    tpu.vector_store %arg10[%c192, %c0_81], %78 {strides = array<i32>} : memref<216x1536xf32, #tpu.memory_space<vmem>>, vector<8x1536xf32>,
    %c0_82 = arith.constant 0 : index
    %c0_83 = arith.constant 0 : index
    %c850 = arith.constant 850 : index
    %80 = vector.load %arg2[%c0_82, %c0_83, %c850] : memref<1x8x2816xf32, #tpu.memory_space<vmem>>, vector<1x8x1536xf32>
    %81 = vector.shape_cast %80 : vector<1x8x1536xf32> to vector<8x1536xf32>
    %c200 = arith.constant 200 : index
    %c0_84 = arith.constant 0 : index
    %82 = vector.load %arg10[%c200, %c0_84] : memref<216x1536xf32, #tpu.memory_space<vmem>>, vector<8x1536xf32>
    tpu.vector_store %arg10[%c200, %c0_84], %81 {strides = array<i32>} : memref<216x1536xf32, #tpu.memory_space<vmem>>, vector<8x1536xf32>,
    %c0_85 = arith.constant 0 : index
    %c0_86 = arith.constant 0 : index
    %c851 = arith.constant 851 : index
    %83 = vector.load %arg2[%c0_85, %c0_86, %c851] : memref<1x8x2816xf32, #tpu.memory_space<vmem>>, vector<1x8x1536xf32>
    %84 = vector.shape_cast %83 : vector<1x8x1536xf32> to vector<8x1536xf32>
    %c208 = arith.constant 208 : index
    %c0_87 = arith.constant 0 : index
    %85 = vector.load %arg10[%c208, %c0_87] : memref<216x1536xf32, #tpu.memory_space<vmem>>, vector<8x1536xf32>
    tpu.vector_store %arg10[%c208, %c0_87], %84 {strides = array<i32>} : memref<216x1536xf32, #tpu.memory_space<vmem>>, vector<8x1536xf32>,
    %c0_88 = arith.constant 0 : index
    %c0_89 = arith.constant 0 : index
    %c0_90 = arith.constant 0 : index
    %86 = vector.load %arg3[%c0_88, %c0_89, %c0_90] : memref<3x8x216xf32, #tpu.memory_space<vmem>>, vector<1x8x216xf32>
    %87 = vector.shape_cast %86 : vector<1x8x216xf32> to vector<8x216xf32>
    %c0_91 = arith.constant 0 : index
    %c0_92 = arith.constant 0 : index
    %88 = vector.load %arg10[%c0_91, %c0_92] : memref<216x1536xf32, #tpu.memory_space<vmem>>, vector<216x1536xf32>
    %cst_93 = arith.constant dense<0.000000e+00> : vector<8x1536xf32>
    %89 = tpu.matmul %87, %88, %cst_93 {dimension_numbers = #tpu.dot_dimension_numbers<[1], [0], [0], [1], [0, 0, 1, 1], [], []>} : vector<8x216xf32>, vector<216x1536xf32>, vector<8x1536xf32> -> vector<8x1536xf32>
    %c0_94 = arith.constant 0 : index
    %c0_95 = arith.constant 0 : index
    %c0_96 = arith.constant 0 : index
    %90 = vector.load %arg4[%c0_94, %c0_95, %c0_96] : memref<3x8x1xf32, #tpu.memory_space<vmem>>, vector<1x8x1xf32>
    %91 = vector.shape_cast %90 : vector<1x8x1xf32> to vector<8x1xf32>
    %92 = vector.broadcast %91 : vector<8x1xf32> to vector<8x1536xf32>
    %93 = arith.addf %89, %92 : vector<8x1536xf32>
    %c0_97 = arith.constant 0 : index
    %c0_98 = arith.constant 0 : index
    %94 = vector.load %arg11[%c0_97, %c0_98] : memref<8x1536xf32, #tpu.memory_space<vmem>>, vector<8x1536xf32>
    tpu.vector_store %arg11[%c0_97, %c0_98], %93 {strides = array<i32>} : memref<8x1536xf32, #tpu.memory_space<vmem>>, vector<8x1536xf32>,
    %c0_99 = arith.constant 0 : index
    %c0_100 = arith.constant 0 : index
    %95 = vector.load %arg11[%c0_99, %c0_100] : memref<8x1536xf32, #tpu.memory_space<vmem>>, vector<8x1536xf32>
    %96 = vector.broadcast %4 : vector<1x1536xf32> to vector<8x1536xf32>
    %97 = arith.mulf %95, %96 : vector<8x1536xf32>
    %cst_101 = arith.constant dense<0.000000e+00> : vector<8xf32>
    %98 = vector.multi_reduction <add>, %97, %cst_101 [1] : vector<8x1536xf32> to vector<8xf32>
    %99 = vector.shape_cast %98 : vector<8xf32> to vector<8x1xf32>
    %cst_102 = arith.constant 0.001953125 : f32
    %100 = vector.broadcast %cst_102 : f32 to vector<8x1xf32>
    %101 = arith.mulf %99, %100 : vector<8x1xf32>
    %102 = vector.broadcast %101 : vector<8x1xf32> to vector<8x1536xf32>
    %103 = arith.subf %95, %102 : vector<8x1536xf32>
    %104 = vector.broadcast %4 : vector<1x1536xf32> to vector<8x1536xf32>
    %105 = arith.mulf %103, %104 : vector<8x1536xf32>
    %106 = arith.mulf %105, %105 : vector<8x1536xf32>
    %cst_103 = arith.constant dense<0.000000e+00> : vector<8xf32>
    %107 = vector.multi_reduction <add>, %106, %cst_103 [1] : vector<8x1536xf32> to vector<8xf32>
    %108 = vector.shape_cast %107 : vector<8xf32> to vector<8x1xf32>
    %cst_104 = arith.constant 0.001953125 : f32
    %109 = vector.broadcast %cst_104 : f32 to vector<8x1xf32>
    %110 = arith.mulf %108, %109 : vector<8x1xf32>
    %111 = vector.broadcast %101 : vector<8x1xf32> to vector<8x1536xf32>
    %112 = arith.subf %95, %111 : vector<8x1536xf32>
    %cst_105 = arith.constant 9.99999974E-6 : f32
    %113 = vector.broadcast %cst_105 : f32 to vector<8x1xf32>
    %114 = arith.addf %110, %113 : vector<8x1xf32>
    %115 = math.rsqrt %114 : vector<8x1xf32>
    %116 = vector.broadcast %115 : vector<8x1xf32> to vector<8x1536xf32>
    %117 = arith.mulf %112, %116 : vector<8x1536xf32>
    %c0_106 = arith.constant 0 : index
    %c0_107 = arith.constant 0 : index
    %c0_108 = arith.constant 0 : index
    %118 = vector.load %arg5[%c0_106, %c0_107, %c0_108] : memref<3x8x1xf32, #tpu.memory_space<vmem>>, vector<1x8x1xf32>
    %119 = vector.shape_cast %118 : vector<1x8x1xf32> to vector<8x1xf32>
    %120 = vector.broadcast %119 : vector<8x1xf32> to vector<8x1536xf32>
    %121 = arith.mulf %117, %120 : vector<8x1536xf32>
    %c0_109 = arith.constant 0 : index
    %c0_110 = arith.constant 0 : index
    %c0_111 = arith.constant 0 : index
    %122 = vector.load %arg6[%c0_109, %c0_110, %c0_111] : memref<3x8x1xf32, #tpu.memory_space<vmem>>, vector<1x8x1xf32>
    %123 = vector.shape_cast %122 : vector<1x8x1xf32> to vector<8x1xf32>
    %124 = vector.broadcast %123 : vector<8x1xf32> to vector<8x1536xf32>
    %125 = arith.addf %121, %124 : vector<8x1536xf32>
    %cst_112 = arith.constant 0.000000e+00 : f32
    %126 = vector.broadcast %cst_112 : f32 to vector<8x1536xf32>
    %127 = arith.maximumf %125, %126 : vector<8x1536xf32>
    %128 = vector.broadcast %4 : vector<1x1536xf32> to vector<8x1536xf32>
    %129 = arith.mulf %127, %128 : vector<8x1536xf32>
    %c0_113 = arith.constant 0 : index
    %c640_114 = arith.constant 640 : index
    %130 = vector.load %arg8[%c0_113, %c640_114] : memref<8x2816xf32, #tpu.memory_space<vmem>>, vector<8x1536xf32>
    tpu.vector_store %arg8[%c0_113, %c640_114], %129 {strides = array<i32>} : memref<8x2816xf32, #tpu.memory_space<vmem>>, vector<8x1536xf32>,
    %c0_115 = arith.constant 0 : index
    %c218 = arith.constant 218 : index
    %131 = vector.load %arg8[%c0_115, %c218] : memref<8x2816xf32, #tpu.memory_space<vmem>>, vector<8x1536xf32>
    %c0_116 = arith.constant 0 : index
    %c0_117 = arith.constant 0 : index
    %132 = vector.load %arg10[%c0_116, %c0_117] : memref<216x1536xf32, #tpu.memory_space<vmem>>, vector<8x1536xf32>
    tpu.vector_store %arg10[%c0_116, %c0_117], %131 {strides = array<i32>} : memref<216x1536xf32, #tpu.memory_space<vmem>>, vector<8x1536xf32>,
    %c0_118 = arith.constant 0 : index
    %c220 = arith.constant 220 : index
    %133 = vector.load %arg8[%c0_118, %c220] : memref<8x2816xf32, #tpu.memory_space<vmem>>, vector<8x1536xf32>
    %c8_119 = arith.constant 8 : index
    %c0_120 = arith.constant 0 : index
    %134 = vector.load %arg10[%c8_119, %c0_120] : memref<216x1536xf32, #tpu.memory_space<vmem>>, vector<8x1536xf32>
    tpu.vector_store %arg10[%c8_119, %c0_120], %133 {strides = array<i32>} : memref<216x1536xf32, #tpu.memory_space<vmem>>, vector<8x1536xf32>,
    %c0_121 = arith.constant 0 : index
    %c222 = arith.constant 222 : index
    %135 = vector.load %arg8[%c0_121, %c222] : memref<8x2816xf32, #tpu.memory_space<vmem>>, vector<8x1536xf32>
    %c16_122 = arith.constant 16 : index
    %c0_123 = arith.constant 0 : index
    %136 = vector.load %arg10[%c16_122, %c0_123] : memref<216x1536xf32, #tpu.memory_space<vmem>>, vector<8x1536xf32>
    tpu.vector_store %arg10[%c16_122, %c0_123], %135 {strides = array<i32>} : memref<216x1536xf32, #tpu.memory_space<vmem>>, vector<8x1536xf32>,
    %c0_124 = arith.constant 0 : index
    %c246 = arith.constant 246 : index
    %137 = vector.load %arg8[%c0_124, %c246] : memref<8x2816xf32, #tpu.memory_space<vmem>>, vector<8x1536xf32>
    %c24_125 = arith.constant 24 : index
    %c0_126 = arith.constant 0 : index
    %138 = vector.load %arg10[%c24_125, %c0_126] : memref<216x1536xf32, #tpu.memory_space<vmem>>, vector<8x1536xf32>
    tpu.vector_store %arg10[%c24_125, %c0_126], %137 {strides = array<i32>} : memref<216x1536xf32, #tpu.memory_space<vmem>>, vector<8x1536xf32>,
    %c0_127 = arith.constant 0 : index
    %c248 = arith.constant 248 : index
    %139 = vector.load %arg8[%c0_127, %c248] : memref<8x2816xf32, #tpu.memory_space<vmem>>, vector<8x1536xf32>
    %c32_128 = arith.constant 32 : index
    %c0_129 = arith.constant 0 : index
    %140 = vector.load %arg10[%c32_128, %c0_129] : memref<216x1536xf32, #tpu.memory_space<vmem>>, vector<8x1536xf32>
    tpu.vector_store %arg10[%c32_128, %c0_129], %139 {strides = array<i32>} : memref<216x1536xf32, #tpu.memory_space<vmem>>, vector<8x1536xf32>,
    %c0_130 = arith.constant 0 : index
    %c250 = arith.constant 250 : index
    %141 = vector.load %arg8[%c0_130, %c250] : memref<8x2816xf32, #tpu.memory_space<vmem>>, vector<8x1536xf32>
    %c40_131 = arith.constant 40 : index
    %c0_132 = arith.constant 0 : index
    %142 = vector.load %arg10[%c40_131, %c0_132] : memref<216x1536xf32, #tpu.memory_space<vmem>>, vector<8x1536xf32>
    tpu.vector_store %arg10[%c40_131, %c0_132], %141 {strides = array<i32>} : memref<216x1536xf32, #tpu.memory_space<vmem>>, vector<8x1536xf32>,
    %c0_133 = arith.constant 0 : index
    %c274 = arith.constant 274 : index
    %143 = vector.load %arg8[%c0_133, %c274] : memref<8x2816xf32, #tpu.memory_space<vmem>>, vector<8x1536xf32>
    %c48_134 = arith.constant 48 : index
    %c0_135 = arith.constant 0 : index
    %144 = vector.load %arg10[%c48_134, %c0_135] : memref<216x1536xf32, #tpu.memory_space<vmem>>, vector<8x1536xf32>
    tpu.vector_store %arg10[%c48_134, %c0_135], %143 {strides = array<i32>} : memref<216x1536xf32, #tpu.memory_space<vmem>>, vector<8x1536xf32>,
    %c0_136 = arith.constant 0 : index
    %c276 = arith.constant 276 : index
    %145 = vector.load %arg8[%c0_136, %c276] : memref<8x2816xf32, #tpu.memory_space<vmem>>, vector<8x1536xf32>
    %c56_137 = arith.constant 56 : index
    %c0_138 = arith.constant 0 : index
    %146 = vector.load %arg10[%c56_137, %c0_138] : memref<216x1536xf32, #tpu.memory_space<vmem>>, vector<8x1536xf32>
    tpu.vector_store %arg10[%c56_137, %c0_138], %145 {strides = array<i32>} : memref<216x1536xf32, #tpu.memory_space<vmem>>, vector<8x1536xf32>,
    %c0_139 = arith.constant 0 : index
    %c278 = arith.constant 278 : index
    %147 = vector.load %arg8[%c0_139, %c278] : memref<8x2816xf32, #tpu.memory_space<vmem>>, vector<8x1536xf32>
    %c64_140 = arith.constant 64 : index
    %c0_141 = arith.constant 0 : index
    %148 = vector.load %arg10[%c64_140, %c0_141] : memref<216x1536xf32, #tpu.memory_space<vmem>>, vector<8x1536xf32>
    tpu.vector_store %arg10[%c64_140, %c0_141], %147 {strides = array<i32>} : memref<216x1536xf32, #tpu.memory_space<vmem>>, vector<8x1536xf32>,
    %c0_142 = arith.constant 0 : index
    %c610 = arith.constant 610 : index
    %149 = vector.load %arg8[%c0_142, %c610] : memref<8x2816xf32, #tpu.memory_space<vmem>>, vector<8x1536xf32>
    %c72_143 = arith.constant 72 : index
    %c0_144 = arith.constant 0 : index
    %150 = vector.load %arg10[%c72_143, %c0_144] : memref<216x1536xf32, #tpu.memory_space<vmem>>, vector<8x1536xf32>
    tpu.vector_store %arg10[%c72_143, %c0_144], %149 {strides = array<i32>} : memref<216x1536xf32, #tpu.memory_space<vmem>>, vector<8x1536xf32>,
    %c0_145 = arith.constant 0 : index
    %c612 = arith.constant 612 : index
    %151 = vector.load %arg8[%c0_145, %c612] : memref<8x2816xf32, #tpu.memory_space<vmem>>, vector<8x1536xf32>
    %c80_146 = arith.constant 80 : index
    %c0_147 = arith.constant 0 : index
    %152 = vector.load %arg10[%c80_146, %c0_147] : memref<216x1536xf32, #tpu.memory_space<vmem>>, vector<8x1536xf32>
    tpu.vector_store %arg10[%c80_146, %c0_147], %151 {strides = array<i32>} : memref<216x1536xf32, #tpu.memory_space<vmem>>, vector<8x1536xf32>,
    %c0_148 = arith.constant 0 : index
    %c614 = arith.constant 614 : index
    %153 = vector.load %arg8[%c0_148, %c614] : memref<8x2816xf32, #tpu.memory_space<vmem>>, vector<8x1536xf32>
    %c88_149 = arith.constant 88 : index
    %c0_150 = arith.constant 0 : index
    %154 = vector.load %arg10[%c88_149, %c0_150] : memref<216x1536xf32, #tpu.memory_space<vmem>>, vector<8x1536xf32>
    tpu.vector_store %arg10[%c88_149, %c0_150], %153 {strides = array<i32>} : memref<216x1536xf32, #tpu.memory_space<vmem>>, vector<8x1536xf32>,
    %c0_151 = arith.constant 0 : index
    %c638 = arith.constant 638 : index
    %155 = vector.load %arg8[%c0_151, %c638] : memref<8x2816xf32, #tpu.memory_space<vmem>>, vector<8x1536xf32>
    %c96_152 = arith.constant 96 : index
    %c0_153 = arith.constant 0 : index
    %156 = vector.load %arg10[%c96_152, %c0_153] : memref<216x1536xf32, #tpu.memory_space<vmem>>, vector<8x1536xf32>
    tpu.vector_store %arg10[%c96_152, %c0_153], %155 {strides = array<i32>} : memref<216x1536xf32, #tpu.memory_space<vmem>>, vector<8x1536xf32>,
    %c0_154 = arith.constant 0 : index
    %c640_155 = arith.constant 640 : index
    %157 = vector.load %arg8[%c0_154, %c640_155] : memref<8x2816xf32, #tpu.memory_space<vmem>>, vector<8x1536xf32>
    %c104_156 = arith.constant 104 : index
    %c0_157 = arith.constant 0 : index
    %158 = vector.load %arg10[%c104_156, %c0_157] : memref<216x1536xf32, #tpu.memory_space<vmem>>, vector<8x1536xf32>
    tpu.vector_store %arg10[%c104_156, %c0_157], %157 {strides = array<i32>} : memref<216x1536xf32, #tpu.memory_space<vmem>>, vector<8x1536xf32>,
    %c0_158 = arith.constant 0 : index
    %c642 = arith.constant 642 : index
    %159 = vector.load %arg8[%c0_158, %c642] : memref<8x2816xf32, #tpu.memory_space<vmem>>, vector<8x1536xf32>
    %c112_159 = arith.constant 112 : index
    %c0_160 = arith.constant 0 : index
    %160 = vector.load %arg10[%c112_159, %c0_160] : memref<216x1536xf32, #tpu.memory_space<vmem>>, vector<8x1536xf32>
    tpu.vector_store %arg10[%c112_159, %c0_160], %159 {strides = array<i32>} : memref<216x1536xf32, #tpu.memory_space<vmem>>, vector<8x1536xf32>,
    %c0_161 = arith.constant 0 : index
    %c666 = arith.constant 666 : index
    %161 = vector.load %arg8[%c0_161, %c666] : memref<8x2816xf32, #tpu.memory_space<vmem>>, vector<8x1536xf32>
    %c120_162 = arith.constant 120 : index
    %c0_163 = arith.constant 0 : index
    %162 = vector.load %arg10[%c120_162, %c0_163] : memref<216x1536xf32, #tpu.memory_space<vmem>>, vector<8x1536xf32>
    tpu.vector_store %arg10[%c120_162, %c0_163], %161 {strides = array<i32>} : memref<216x1536xf32, #tpu.memory_space<vmem>>, vector<8x1536xf32>,
    %c0_164 = arith.constant 0 : index
    %c668 = arith.constant 668 : index
    %163 = vector.load %arg8[%c0_164, %c668] : memref<8x2816xf32, #tpu.memory_space<vmem>>, vector<8x1536xf32>
    %c128_165 = arith.constant 128 : index
    %c0_166 = arith.constant 0 : index
    %164 = vector.load %arg10[%c128_165, %c0_166] : memref<216x1536xf32, #tpu.memory_space<vmem>>, vector<8x1536xf32>
    tpu.vector_store %arg10[%c128_165, %c0_166], %163 {strides = array<i32>} : memref<216x1536xf32, #tpu.memory_space<vmem>>, vector<8x1536xf32>,
    %c0_167 = arith.constant 0 : index
    %c670 = arith.constant 670 : index
    %165 = vector.load %arg8[%c0_167, %c670] : memref<8x2816xf32, #tpu.memory_space<vmem>>, vector<8x1536xf32>
    %c136_168 = arith.constant 136 : index
    %c0_169 = arith.constant 0 : index
    %166 = vector.load %arg10[%c136_168, %c0_169] : memref<216x1536xf32, #tpu.memory_space<vmem>>, vector<8x1536xf32>
    tpu.vector_store %arg10[%c136_168, %c0_169], %165 {strides = array<i32>} : memref<216x1536xf32, #tpu.memory_space<vmem>>, vector<8x1536xf32>,
    %c0_170 = arith.constant 0 : index
    %c1002 = arith.constant 1002 : index
    %167 = vector.load %arg8[%c0_170, %c1002] : memref<8x2816xf32, #tpu.memory_space<vmem>>, vector<8x1536xf32>
    %c144_171 = arith.constant 144 : index
    %c0_172 = arith.constant 0 : index
    %168 = vector.load %arg10[%c144_171, %c0_172] : memref<216x1536xf32, #tpu.memory_space<vmem>>, vector<8x1536xf32>
    tpu.vector_store %arg10[%c144_171, %c0_172], %167 {strides = array<i32>} : memref<216x1536xf32, #tpu.memory_space<vmem>>, vector<8x1536xf32>,
    %c0_173 = arith.constant 0 : index
    %c1004 = arith.constant 1004 : index
    %169 = vector.load %arg8[%c0_173, %c1004] : memref<8x2816xf32, #tpu.memory_space<vmem>>, vector<8x1536xf32>
    %c152_174 = arith.constant 152 : index
    %c0_175 = arith.constant 0 : index
    %170 = vector.load %arg10[%c152_174, %c0_175] : memref<216x1536xf32, #tpu.memory_space<vmem>>, vector<8x1536xf32>
    tpu.vector_store %arg10[%c152_174, %c0_175], %169 {strides = array<i32>} : memref<216x1536xf32, #tpu.memory_space<vmem>>, vector<8x1536xf32>,
    %c0_176 = arith.constant 0 : index
    %c1006 = arith.constant 1006 : index
    %171 = vector.load %arg8[%c0_176, %c1006] : memref<8x2816xf32, #tpu.memory_space<vmem>>, vector<8x1536xf32>
    %c160_177 = arith.constant 160 : index
    %c0_178 = arith.constant 0 : index
    %172 = vector.load %arg10[%c160_177, %c0_178] : memref<216x1536xf32, #tpu.memory_space<vmem>>, vector<8x1536xf32>
    tpu.vector_store %arg10[%c160_177, %c0_178], %171 {strides = array<i32>} : memref<216x1536xf32, #tpu.memory_space<vmem>>, vector<8x1536xf32>,
    %c0_179 = arith.constant 0 : index
    %c1030 = arith.constant 1030 : index
    %173 = vector.load %arg8[%c0_179, %c1030] : memref<8x2816xf32, #tpu.memory_space<vmem>>, vector<8x1536xf32>
    %c168_180 = arith.constant 168 : index
    %c0_181 = arith.constant 0 : index
    %174 = vector.load %arg10[%c168_180, %c0_181] : memref<216x1536xf32, #tpu.memory_space<vmem>>, vector<8x1536xf32>
    tpu.vector_store %arg10[%c168_180, %c0_181], %173 {strides = array<i32>} : memref<216x1536xf32, #tpu.memory_space<vmem>>, vector<8x1536xf32>,
    %c0_182 = arith.constant 0 : index
    %c1032 = arith.constant 1032 : index
    %175 = vector.load %arg8[%c0_182, %c1032] : memref<8x2816xf32, #tpu.memory_space<vmem>>, vector<8x1536xf32>
    %c176_183 = arith.constant 176 : index
    %c0_184 = arith.constant 0 : index
    %176 = vector.load %arg10[%c176_183, %c0_184] : memref<216x1536xf32, #tpu.memory_space<vmem>>, vector<8x1536xf32>
    tpu.vector_store %arg10[%c176_183, %c0_184], %175 {strides = array<i32>} : memref<216x1536xf32, #tpu.memory_space<vmem>>, vector<8x1536xf32>,
    %c0_185 = arith.constant 0 : index
    %c1034 = arith.constant 1034 : index
    %177 = vector.load %arg8[%c0_185, %c1034] : memref<8x2816xf32, #tpu.memory_space<vmem>>, vector<8x1536xf32>
    %c184_186 = arith.constant 184 : index
    %c0_187 = arith.constant 0 : index
    %178 = vector.load %arg10[%c184_186, %c0_187] : memref<216x1536xf32, #tpu.memory_space<vmem>>, vector<8x1536xf32>
    tpu.vector_store %arg10[%c184_186, %c0_187], %177 {strides = array<i32>} : memref<216x1536xf32, #tpu.memory_space<vmem>>, vector<8x1536xf32>,
    %c0_188 = arith.constant 0 : index
    %c1058 = arith.constant 1058 : index
    %179 = vector.load %arg8[%c0_188, %c1058] : memref<8x2816xf32, #tpu.memory_space<vmem>>, vector<8x1536xf32>
    %c192_189 = arith.constant 192 : index
    %c0_190 = arith.constant 0 : index
    %180 = vector.load %arg10[%c192_189, %c0_190] : memref<216x1536xf32, #tpu.memory_space<vmem>>, vector<8x1536xf32>
    tpu.vector_store %arg10[%c192_189, %c0_190], %179 {strides = array<i32>} : memref<216x1536xf32, #tpu.memory_space<vmem>>, vector<8x1536xf32>,
    %c0_191 = arith.constant 0 : index
    %c1060 = arith.constant 1060 : index
    %181 = vector.load %arg8[%c0_191, %c1060] : memref<8x2816xf32, #tpu.memory_space<vmem>>, vector<8x1536xf32>
    %c200_192 = arith.constant 200 : index
    %c0_193 = arith.constant 0 : index
    %182 = vector.load %arg10[%c200_192, %c0_193] : memref<216x1536xf32, #tpu.memory_space<vmem>>, vector<8x1536xf32>
    tpu.vector_store %arg10[%c200_192, %c0_193], %181 {strides = array<i32>} : memref<216x1536xf32, #tpu.memory_space<vmem>>, vector<8x1536xf32>,
    %c0_194 = arith.constant 0 : index
    %c1062 = arith.constant 1062 : index
    %183 = vector.load %arg8[%c0_194, %c1062] : memref<8x2816xf32, #tpu.memory_space<vmem>>, vector<8x1536xf32>
    %c208_195 = arith.constant 208 : index
    %c0_196 = arith.constant 0 : index
    %184 = vector.load %arg10[%c208_195, %c0_196] : memref<216x1536xf32, #tpu.memory_space<vmem>>, vector<8x1536xf32>
    tpu.vector_store %arg10[%c208_195, %c0_196], %183 {strides = array<i32>} : memref<216x1536xf32, #tpu.memory_space<vmem>>, vector<8x1536xf32>,
    %c1 = arith.constant 1 : index
    %c0_197 = arith.constant 0 : index
    %c0_198 = arith.constant 0 : index
    %185 = vector.load %arg3[%c1, %c0_197, %c0_198] : memref<3x8x216xf32, #tpu.memory_space<vmem>>, vector<1x8x216xf32>
    %186 = vector.shape_cast %185 : vector<1x8x216xf32> to vector<8x216xf32>
    %c0_199 = arith.constant 0 : index
    %c0_200 = arith.constant 0 : index
    %187 = vector.load %arg10[%c0_199, %c0_200] : memref<216x1536xf32, #tpu.memory_space<vmem>>, vector<216x1536xf32>
    %cst_201 = arith.constant dense<0.000000e+00> : vector<8x1536xf32>
    %188 = tpu.matmul %186, %187, %cst_201 {dimension_numbers = #tpu.dot_dimension_numbers<[1], [0], [0], [1], [0, 0, 1, 1], [], []>} : vector<8x216xf32>, vector<216x1536xf32>, vector<8x1536xf32> -> vector<8x1536xf32>
    %c1_202 = arith.constant 1 : index
    %c0_203 = arith.constant 0 : index
    %c0_204 = arith.constant 0 : index
    %189 = vector.load %arg4[%c1_202, %c0_203, %c0_204] : memref<3x8x1xf32, #tpu.memory_space<vmem>>, vector<1x8x1xf32>
    %190 = vector.shape_cast %189 : vector<1x8x1xf32> to vector<8x1xf32>
    %191 = vector.broadcast %190 : vector<8x1xf32> to vector<8x1536xf32>
    %192 = arith.addf %188, %191 : vector<8x1536xf32>
    %c0_205 = arith.constant 0 : index
    %c0_206 = arith.constant 0 : index
    %193 = vector.load %arg11[%c0_205, %c0_206] : memref<8x1536xf32, #tpu.memory_space<vmem>>, vector<8x1536xf32>
    tpu.vector_store %arg11[%c0_205, %c0_206], %192 {strides = array<i32>} : memref<8x1536xf32, #tpu.memory_space<vmem>>, vector<8x1536xf32>,
    %c0_207 = arith.constant 0 : index
    %c0_208 = arith.constant 0 : index
    %194 = vector.load %arg11[%c0_207, %c0_208] : memref<8x1536xf32, #tpu.memory_space<vmem>>, vector<8x1536xf32>
    %195 = vector.broadcast %4 : vector<1x1536xf32> to vector<8x1536xf32>
    %196 = arith.mulf %194, %195 : vector<8x1536xf32>
    %cst_209 = arith.constant dense<0.000000e+00> : vector<8xf32>
    %197 = vector.multi_reduction <add>, %196, %cst_209 [1] : vector<8x1536xf32> to vector<8xf32>
    %198 = vector.shape_cast %197 : vector<8xf32> to vector<8x1xf32>
    %cst_210 = arith.constant 0.001953125 : f32
    %199 = vector.broadcast %cst_210 : f32 to vector<8x1xf32>
    %200 = arith.mulf %198, %199 : vector<8x1xf32>
    %201 = vector.broadcast %200 : vector<8x1xf32> to vector<8x1536xf32>
    %202 = arith.subf %194, %201 : vector<8x1536xf32>
    %203 = vector.broadcast %4 : vector<1x1536xf32> to vector<8x1536xf32>
    %204 = arith.mulf %202, %203 : vector<8x1536xf32>
    %205 = arith.mulf %204, %204 : vector<8x1536xf32>
    %cst_211 = arith.constant dense<0.000000e+00> : vector<8xf32>
    %206 = vector.multi_reduction <add>, %205, %cst_211 [1] : vector<8x1536xf32> to vector<8xf32>
    %207 = vector.shape_cast %206 : vector<8xf32> to vector<8x1xf32>
    %cst_212 = arith.constant 0.001953125 : f32
    %208 = vector.broadcast %cst_212 : f32 to vector<8x1xf32>
    %209 = arith.mulf %207, %208 : vector<8x1xf32>
    %210 = vector.broadcast %200 : vector<8x1xf32> to vector<8x1536xf32>
    %211 = arith.subf %194, %210 : vector<8x1536xf32>
    %cst_213 = arith.constant 9.99999974E-6 : f32
    %212 = vector.broadcast %cst_213 : f32 to vector<8x1xf32>
    %213 = arith.addf %209, %212 : vector<8x1xf32>
    %214 = math.rsqrt %213 : vector<8x1xf32>
    %215 = vector.broadcast %214 : vector<8x1xf32> to vector<8x1536xf32>
    %216 = arith.mulf %211, %215 : vector<8x1536xf32>
    %c1_214 = arith.constant 1 : index
    %c0_215 = arith.constant 0 : index
    %c0_216 = arith.constant 0 : index
    %217 = vector.load %arg5[%c1_214, %c0_215, %c0_216] : memref<3x8x1xf32, #tpu.memory_space<vmem>>, vector<1x8x1xf32>
    %218 = vector.shape_cast %217 : vector<1x8x1xf32> to vector<8x1xf32>
    %219 = vector.broadcast %218 : vector<8x1xf32> to vector<8x1536xf32>
    %220 = arith.mulf %216, %219 : vector<8x1536xf32>
    %c1_217 = arith.constant 1 : index
    %c0_218 = arith.constant 0 : index
    %c0_219 = arith.constant 0 : index
    %221 = vector.load %arg6[%c1_217, %c0_218, %c0_219] : memref<3x8x1xf32, #tpu.memory_space<vmem>>, vector<1x8x1xf32>
    %222 = vector.shape_cast %221 : vector<1x8x1xf32> to vector<8x1xf32>
    %223 = vector.broadcast %222 : vector<8x1xf32> to vector<8x1536xf32>
    %224 = arith.addf %220, %223 : vector<8x1536xf32>
    %cst_220 = arith.constant 0.000000e+00 : f32
    %225 = vector.broadcast %cst_220 : f32 to vector<8x1536xf32>
    %226 = arith.maximumf %224, %225 : vector<8x1536xf32>
    %227 = vector.broadcast %4 : vector<1x1536xf32> to vector<8x1536xf32>
    %228 = arith.mulf %226, %227 : vector<8x1536xf32>
    %c0_221 = arith.constant 0 : index
    %c640_222 = arith.constant 640 : index
    %229 = vector.load %arg9[%c0_221, %c640_222] : memref<8x2816xf32, #tpu.memory_space<vmem>>, vector<8x1536xf32>
    tpu.vector_store %arg9[%c0_221, %c640_222], %228 {strides = array<i32>} : memref<8x2816xf32, #tpu.memory_space<vmem>>, vector<8x1536xf32>,
    %c0_223 = arith.constant 0 : index
    %c7 = arith.constant 7 : index
    %230 = vector.load %arg9[%c0_223, %c7] : memref<8x2816xf32, #tpu.memory_space<vmem>>, vector<8x1536xf32>
    %c0_224 = arith.constant 0 : index
    %c0_225 = arith.constant 0 : index
    %231 = vector.load %arg10[%c0_224, %c0_225] : memref<216x1536xf32, #tpu.memory_space<vmem>>, vector<8x1536xf32>
    tpu.vector_store %arg10[%c0_224, %c0_225], %230 {strides = array<i32>} : memref<216x1536xf32, #tpu.memory_space<vmem>>, vector<8x1536xf32>,
    %c0_226 = arith.constant 0 : index
    %c10 = arith.constant 10 : index
    %232 = vector.load %arg9[%c0_226, %c10] : memref<8x2816xf32, #tpu.memory_space<vmem>>, vector<8x1536xf32>
    %c8_227 = arith.constant 8 : index
    %c0_228 = arith.constant 0 : index
    %233 = vector.load %arg10[%c8_227, %c0_228] : memref<216x1536xf32, #tpu.memory_space<vmem>>, vector<8x1536xf32>
    tpu.vector_store %arg10[%c8_227, %c0_228], %232 {strides = array<i32>} : memref<216x1536xf32, #tpu.memory_space<vmem>>, vector<8x1536xf32>,
    %c0_229 = arith.constant 0 : index
    %c13 = arith.constant 13 : index
    %234 = vector.load %arg9[%c0_229, %c13] : memref<8x2816xf32, #tpu.memory_space<vmem>>, vector<8x1536xf32>
    %c16_230 = arith.constant 16 : index
    %c0_231 = arith.constant 0 : index
    %235 = vector.load %arg10[%c16_230, %c0_231] : memref<216x1536xf32, #tpu.memory_space<vmem>>, vector<8x1536xf32>
    tpu.vector_store %arg10[%c16_230, %c0_231], %234 {strides = array<i32>} : memref<216x1536xf32, #tpu.memory_space<vmem>>, vector<8x1536xf32>,
    %c0_232 = arith.constant 0 : index
    %c49 = arith.constant 49 : index
    %236 = vector.load %arg9[%c0_232, %c49] : memref<8x2816xf32, #tpu.memory_space<vmem>>, vector<8x1536xf32>
    %c24_233 = arith.constant 24 : index
    %c0_234 = arith.constant 0 : index
    %237 = vector.load %arg10[%c24_233, %c0_234] : memref<216x1536xf32, #tpu.memory_space<vmem>>, vector<8x1536xf32>
    tpu.vector_store %arg10[%c24_233, %c0_234], %236 {strides = array<i32>} : memref<216x1536xf32, #tpu.memory_space<vmem>>, vector<8x1536xf32>,
    %c0_235 = arith.constant 0 : index
    %c52 = arith.constant 52 : index
    %238 = vector.load %arg9[%c0_235, %c52] : memref<8x2816xf32, #tpu.memory_space<vmem>>, vector<8x1536xf32>
    %c32_236 = arith.constant 32 : index
    %c0_237 = arith.constant 0 : index
    %239 = vector.load %arg10[%c32_236, %c0_237] : memref<216x1536xf32, #tpu.memory_space<vmem>>, vector<8x1536xf32>
    tpu.vector_store %arg10[%c32_236, %c0_237], %238 {strides = array<i32>} : memref<216x1536xf32, #tpu.memory_space<vmem>>, vector<8x1536xf32>,
    %c0_238 = arith.constant 0 : index
    %c55 = arith.constant 55 : index
    %240 = vector.load %arg9[%c0_238, %c55] : memref<8x2816xf32, #tpu.memory_space<vmem>>, vector<8x1536xf32>
    %c40_239 = arith.constant 40 : index
    %c0_240 = arith.constant 0 : index
    %241 = vector.load %arg10[%c40_239, %c0_240] : memref<216x1536xf32, #tpu.memory_space<vmem>>, vector<8x1536xf32>
    tpu.vector_store %arg10[%c40_239, %c0_240], %240 {strides = array<i32>} : memref<216x1536xf32, #tpu.memory_space<vmem>>, vector<8x1536xf32>,
    %c0_241 = arith.constant 0 : index
    %c91 = arith.constant 91 : index
    %242 = vector.load %arg9[%c0_241, %c91] : memref<8x2816xf32, #tpu.memory_space<vmem>>, vector<8x1536xf32>
    %c48_242 = arith.constant 48 : index
    %c0_243 = arith.constant 0 : index
    %243 = vector.load %arg10[%c48_242, %c0_243] : memref<216x1536xf32, #tpu.memory_space<vmem>>, vector<8x1536xf32>
    tpu.vector_store %arg10[%c48_242, %c0_243], %242 {strides = array<i32>} : memref<216x1536xf32, #tpu.memory_space<vmem>>, vector<8x1536xf32>,
    %c0_244 = arith.constant 0 : index
    %c94 = arith.constant 94 : index
    %244 = vector.load %arg9[%c0_244, %c94] : memref<8x2816xf32, #tpu.memory_space<vmem>>, vector<8x1536xf32>
    %c56_245 = arith.constant 56 : index
    %c0_246 = arith.constant 0 : index
    %245 = vector.load %arg10[%c56_245, %c0_246] : memref<216x1536xf32, #tpu.memory_space<vmem>>, vector<8x1536xf32>
    tpu.vector_store %arg10[%c56_245, %c0_246], %244 {strides = array<i32>} : memref<216x1536xf32, #tpu.memory_space<vmem>>, vector<8x1536xf32>,
    %c0_247 = arith.constant 0 : index
    %c97 = arith.constant 97 : index
    %246 = vector.load %arg9[%c0_247, %c97] : memref<8x2816xf32, #tpu.memory_space<vmem>>, vector<8x1536xf32>
    %c64_248 = arith.constant 64 : index
    %c0_249 = arith.constant 0 : index
    %247 = vector.load %arg10[%c64_248, %c0_249] : memref<216x1536xf32, #tpu.memory_space<vmem>>, vector<8x1536xf32>
    tpu.vector_store %arg10[%c64_248, %c0_249], %246 {strides = array<i32>} : memref<216x1536xf32, #tpu.memory_space<vmem>>, vector<8x1536xf32>,
    %c0_250 = arith.constant 0 : index
    %c595 = arith.constant 595 : index
    %248 = vector.load %arg9[%c0_250, %c595] : memref<8x2816xf32, #tpu.memory_space<vmem>>, vector<8x1536xf32>
    %c72_251 = arith.constant 72 : index
    %c0_252 = arith.constant 0 : index
    %249 = vector.load %arg10[%c72_251, %c0_252] : memref<216x1536xf32, #tpu.memory_space<vmem>>, vector<8x1536xf32>
    tpu.vector_store %arg10[%c72_251, %c0_252], %248 {strides = array<i32>} : memref<216x1536xf32, #tpu.memory_space<vmem>>, vector<8x1536xf32>,
    %c0_253 = arith.constant 0 : index
    %c598 = arith.constant 598 : index
    %250 = vector.load %arg9[%c0_253, %c598] : memref<8x2816xf32, #tpu.memory_space<vmem>>, vector<8x1536xf32>
    %c80_254 = arith.constant 80 : index
    %c0_255 = arith.constant 0 : index
    %251 = vector.load %arg10[%c80_254, %c0_255] : memref<216x1536xf32, #tpu.memory_space<vmem>>, vector<8x1536xf32>
    tpu.vector_store %arg10[%c80_254, %c0_255], %250 {strides = array<i32>} : memref<216x1536xf32, #tpu.memory_space<vmem>>, vector<8x1536xf32>,
    %c0_256 = arith.constant 0 : index
    %c601 = arith.constant 601 : index
    %252 = vector.load %arg9[%c0_256, %c601] : memref<8x2816xf32, #tpu.memory_space<vmem>>, vector<8x1536xf32>
    %c88_257 = arith.constant 88 : index
    %c0_258 = arith.constant 0 : index
    %253 = vector.load %arg10[%c88_257, %c0_258] : memref<216x1536xf32, #tpu.memory_space<vmem>>, vector<8x1536xf32>
    tpu.vector_store %arg10[%c88_257, %c0_258], %252 {strides = array<i32>} : memref<216x1536xf32, #tpu.memory_space<vmem>>, vector<8x1536xf32>,
    %c0_259 = arith.constant 0 : index
    %c637 = arith.constant 637 : index
    %254 = vector.load %arg9[%c0_259, %c637] : memref<8x2816xf32, #tpu.memory_space<vmem>>, vector<8x1536xf32>
    %c96_260 = arith.constant 96 : index
    %c0_261 = arith.constant 0 : index
    %255 = vector.load %arg10[%c96_260, %c0_261] : memref<216x1536xf32, #tpu.memory_space<vmem>>, vector<8x1536xf32>
    tpu.vector_store %arg10[%c96_260, %c0_261], %254 {strides = array<i32>} : memref<216x1536xf32, #tpu.memory_space<vmem>>, vector<8x1536xf32>,
    %c0_262 = arith.constant 0 : index
    %c640_263 = arith.constant 640 : index
    %256 = vector.load %arg9[%c0_262, %c640_263] : memref<8x2816xf32, #tpu.memory_space<vmem>>, vector<8x1536xf32>
    %c104_264 = arith.constant 104 : index
    %c0_265 = arith.constant 0 : index
    %257 = vector.load %arg10[%c104_264, %c0_265] : memref<216x1536xf32, #tpu.memory_space<vmem>>, vector<8x1536xf32>
    tpu.vector_store %arg10[%c104_264, %c0_265], %256 {strides = array<i32>} : memref<216x1536xf32, #tpu.memory_space<vmem>>, vector<8x1536xf32>,
    %c0_266 = arith.constant 0 : index
    %c643 = arith.constant 643 : index
    %258 = vector.load %arg9[%c0_266, %c643] : memref<8x2816xf32, #tpu.memory_space<vmem>>, vector<8x1536xf32>
    %c112_267 = arith.constant 112 : index
    %c0_268 = arith.constant 0 : index
    %259 = vector.load %arg10[%c112_267, %c0_268] : memref<216x1536xf32, #tpu.memory_space<vmem>>, vector<8x1536xf32>
    tpu.vector_store %arg10[%c112_267, %c0_268], %258 {strides = array<i32>} : memref<216x1536xf32, #tpu.memory_space<vmem>>, vector<8x1536xf32>,
    %c0_269 = arith.constant 0 : index
    %c679 = arith.constant 679 : index
    %260 = vector.load %arg9[%c0_269, %c679] : memref<8x2816xf32, #tpu.memory_space<vmem>>, vector<8x1536xf32>
    %c120_270 = arith.constant 120 : index
    %c0_271 = arith.constant 0 : index
    %261 = vector.load %arg10[%c120_270, %c0_271] : memref<216x1536xf32, #tpu.memory_space<vmem>>, vector<8x1536xf32>
    tpu.vector_store %arg10[%c120_270, %c0_271], %260 {strides = array<i32>} : memref<216x1536xf32, #tpu.memory_space<vmem>>, vector<8x1536xf32>,
    %c0_272 = arith.constant 0 : index
    %c682 = arith.constant 682 : index
    %262 = vector.load %arg9[%c0_272, %c682] : memref<8x2816xf32, #tpu.memory_space<vmem>>, vector<8x1536xf32>
    %c128_273 = arith.constant 128 : index
    %c0_274 = arith.constant 0 : index
    %263 = vector.load %arg10[%c128_273, %c0_274] : memref<216x1536xf32, #tpu.memory_space<vmem>>, vector<8x1536xf32>
    tpu.vector_store %arg10[%c128_273, %c0_274], %262 {strides = array<i32>} : memref<216x1536xf32, #tpu.memory_space<vmem>>, vector<8x1536xf32>,
    %c0_275 = arith.constant 0 : index
    %c685 = arith.constant 685 : index
    %264 = vector.load %arg9[%c0_275, %c685] : memref<8x2816xf32, #tpu.memory_space<vmem>>, vector<8x1536xf32>
    %c136_276 = arith.constant 136 : index
    %c0_277 = arith.constant 0 : index
    %265 = vector.load %arg10[%c136_276, %c0_277] : memref<216x1536xf32, #tpu.memory_space<vmem>>, vector<8x1536xf32>
    tpu.vector_store %arg10[%c136_276, %c0_277], %264 {strides = array<i32>} : memref<216x1536xf32, #tpu.memory_space<vmem>>, vector<8x1536xf32>,
    %c0_278 = arith.constant 0 : index
    %c1183 = arith.constant 1183 : index
    %266 = vector.load %arg9[%c0_278, %c1183] : memref<8x2816xf32, #tpu.memory_space<vmem>>, vector<8x1536xf32>
    %c144_279 = arith.constant 144 : index
    %c0_280 = arith.constant 0 : index
    %267 = vector.load %arg10[%c144_279, %c0_280] : memref<216x1536xf32, #tpu.memory_space<vmem>>, vector<8x1536xf32>
    tpu.vector_store %arg10[%c144_279, %c0_280], %266 {strides = array<i32>} : memref<216x1536xf32, #tpu.memory_space<vmem>>, vector<8x1536xf32>,
    %c0_281 = arith.constant 0 : index
    %c1186 = arith.constant 1186 : index
    %268 = vector.load %arg9[%c0_281, %c1186] : memref<8x2816xf32, #tpu.memory_space<vmem>>, vector<8x1536xf32>
    %c152_282 = arith.constant 152 : index
    %c0_283 = arith.constant 0 : index
    %269 = vector.load %arg10[%c152_282, %c0_283] : memref<216x1536xf32, #tpu.memory_space<vmem>>, vector<8x1536xf32>
    tpu.vector_store %arg10[%c152_282, %c0_283], %268 {strides = array<i32>} : memref<216x1536xf32, #tpu.memory_space<vmem>>, vector<8x1536xf32>,
    %c0_284 = arith.constant 0 : index
    %c1189 = arith.constant 1189 : index
    %270 = vector.load %arg9[%c0_284, %c1189] : memref<8x2816xf32, #tpu.memory_space<vmem>>, vector<8x1536xf32>
    %c160_285 = arith.constant 160 : index
    %c0_286 = arith.constant 0 : index
    %271 = vector.load %arg10[%c160_285, %c0_286] : memref<216x1536xf32, #tpu.memory_space<vmem>>, vector<8x1536xf32>
    tpu.vector_store %arg10[%c160_285, %c0_286], %270 {strides = array<i32>} : memref<216x1536xf32, #tpu.memory_space<vmem>>, vector<8x1536xf32>,
    %c0_287 = arith.constant 0 : index
    %c1225 = arith.constant 1225 : index
    %272 = vector.load %arg9[%c0_287, %c1225] : memref<8x2816xf32, #tpu.memory_space<vmem>>, vector<8x1536xf32>
    %c168_288 = arith.constant 168 : index
    %c0_289 = arith.constant 0 : index
    %273 = vector.load %arg10[%c168_288, %c0_289] : memref<216x1536xf32, #tpu.memory_space<vmem>>, vector<8x1536xf32>
    tpu.vector_store %arg10[%c168_288, %c0_289], %272 {strides = array<i32>} : memref<216x1536xf32, #tpu.memory_space<vmem>>, vector<8x1536xf32>,
    %c0_290 = arith.constant 0 : index
    %c1228 = arith.constant 1228 : index
    %274 = vector.load %arg9[%c0_290, %c1228] : memref<8x2816xf32, #tpu.memory_space<vmem>>, vector<8x1536xf32>
    %c176_291 = arith.constant 176 : index
    %c0_292 = arith.constant 0 : index
    %275 = vector.load %arg10[%c176_291, %c0_292] : memref<216x1536xf32, #tpu.memory_space<vmem>>, vector<8x1536xf32>
    tpu.vector_store %arg10[%c176_291, %c0_292], %274 {strides = array<i32>} : memref<216x1536xf32, #tpu.memory_space<vmem>>, vector<8x1536xf32>,
    %c0_293 = arith.constant 0 : index
    %c1231 = arith.constant 1231 : index
    %276 = vector.load %arg9[%c0_293, %c1231] : memref<8x2816xf32, #tpu.memory_space<vmem>>, vector<8x1536xf32>
    %c184_294 = arith.constant 184 : index
    %c0_295 = arith.constant 0 : index
    %277 = vector.load %arg10[%c184_294, %c0_295] : memref<216x1536xf32, #tpu.memory_space<vmem>>, vector<8x1536xf32>
    tpu.vector_store %arg10[%c184_294, %c0_295], %276 {strides = array<i32>} : memref<216x1536xf32, #tpu.memory_space<vmem>>, vector<8x1536xf32>,
    %c0_296 = arith.constant 0 : index
    %c1267 = arith.constant 1267 : index
    %278 = vector.load %arg9[%c0_296, %c1267] : memref<8x2816xf32, #tpu.memory_space<vmem>>, vector<8x1536xf32>
    %c192_297 = arith.constant 192 : index
    %c0_298 = arith.constant 0 : index
    %279 = vector.load %arg10[%c192_297, %c0_298] : memref<216x1536xf32, #tpu.memory_space<vmem>>, vector<8x1536xf32>
    tpu.vector_store %arg10[%c192_297, %c0_298], %278 {strides = array<i32>} : memref<216x1536xf32, #tpu.memory_space<vmem>>, vector<8x1536xf32>,
    %c0_299 = arith.constant 0 : index
    %c1270 = arith.constant 1270 : index
    %280 = vector.load %arg9[%c0_299, %c1270] : memref<8x2816xf32, #tpu.memory_space<vmem>>, vector<8x1536xf32>
    %c200_300 = arith.constant 200 : index
    %c0_301 = arith.constant 0 : index
    %281 = vector.load %arg10[%c200_300, %c0_301] : memref<216x1536xf32, #tpu.memory_space<vmem>>, vector<8x1536xf32>
    tpu.vector_store %arg10[%c200_300, %c0_301], %280 {strides = array<i32>} : memref<216x1536xf32, #tpu.memory_space<vmem>>, vector<8x1536xf32>,
    %c0_302 = arith.constant 0 : index
    %c1273 = arith.constant 1273 : index
    %282 = vector.load %arg9[%c0_302, %c1273] : memref<8x2816xf32, #tpu.memory_space<vmem>>, vector<8x1536xf32>
    %c208_303 = arith.constant 208 : index
    %c0_304 = arith.constant 0 : index
    %283 = vector.load %arg10[%c208_303, %c0_304] : memref<216x1536xf32, #tpu.memory_space<vmem>>, vector<8x1536xf32>
    tpu.vector_store %arg10[%c208_303, %c0_304], %282 {strides = array<i32>} : memref<216x1536xf32, #tpu.memory_space<vmem>>, vector<8x1536xf32>,
    %c2 = arith.constant 2 : index
    %c0_305 = arith.constant 0 : index
    %c0_306 = arith.constant 0 : index
    %284 = vector.load %arg3[%c2, %c0_305, %c0_306] : memref<3x8x216xf32, #tpu.memory_space<vmem>>, vector<1x8x216xf32>
    %285 = vector.shape_cast %284 : vector<1x8x216xf32> to vector<8x216xf32>
    %c0_307 = arith.constant 0 : index
    %c0_308 = arith.constant 0 : index
    %286 = vector.load %arg10[%c0_307, %c0_308] : memref<216x1536xf32, #tpu.memory_space<vmem>>, vector<216x1536xf32>
    %cst_309 = arith.constant dense<0.000000e+00> : vector<8x1536xf32>
    %287 = tpu.matmul %285, %286, %cst_309 {dimension_numbers = #tpu.dot_dimension_numbers<[1], [0], [0], [1], [0, 0, 1, 1], [], []>} : vector<8x216xf32>, vector<216x1536xf32>, vector<8x1536xf32> -> vector<8x1536xf32>
    %c2_310 = arith.constant 2 : index
    %c0_311 = arith.constant 0 : index
    %c0_312 = arith.constant 0 : index
    %288 = vector.load %arg4[%c2_310, %c0_311, %c0_312] : memref<3x8x1xf32, #tpu.memory_space<vmem>>, vector<1x8x1xf32>
    %289 = vector.shape_cast %288 : vector<1x8x1xf32> to vector<8x1xf32>
    %290 = vector.broadcast %289 : vector<8x1xf32> to vector<8x1536xf32>
    %291 = arith.addf %287, %290 : vector<8x1536xf32>
    %c0_313 = arith.constant 0 : index
    %c0_314 = arith.constant 0 : index
    %292 = vector.load %arg11[%c0_313, %c0_314] : memref<8x1536xf32, #tpu.memory_space<vmem>>, vector<8x1536xf32>
    tpu.vector_store %arg11[%c0_313, %c0_314], %291 {strides = array<i32>} : memref<8x1536xf32, #tpu.memory_space<vmem>>, vector<8x1536xf32>,
    %c0_315 = arith.constant 0 : index
    %c0_316 = arith.constant 0 : index
    %293 = vector.load %arg11[%c0_315, %c0_316] : memref<8x1536xf32, #tpu.memory_space<vmem>>, vector<8x1536xf32>
    %294 = vector.broadcast %4 : vector<1x1536xf32> to vector<8x1536xf32>
    %295 = arith.mulf %293, %294 : vector<8x1536xf32>
    %cst_317 = arith.constant dense<0.000000e+00> : vector<8xf32>
    %296 = vector.multi_reduction <add>, %295, %cst_317 [1] : vector<8x1536xf32> to vector<8xf32>
    %297 = vector.shape_cast %296 : vector<8xf32> to vector<8x1xf32>
    %cst_318 = arith.constant 0.001953125 : f32
    %298 = vector.broadcast %cst_318 : f32 to vector<8x1xf32>
    %299 = arith.mulf %297, %298 : vector<8x1xf32>
    %300 = vector.broadcast %299 : vector<8x1xf32> to vector<8x1536xf32>
    %301 = arith.subf %293, %300 : vector<8x1536xf32>
    %302 = vector.broadcast %4 : vector<1x1536xf32> to vector<8x1536xf32>
    %303 = arith.mulf %301, %302 : vector<8x1536xf32>
    %304 = arith.mulf %303, %303 : vector<8x1536xf32>
    %cst_319 = arith.constant dense<0.000000e+00> : vector<8xf32>
    %305 = vector.multi_reduction <add>, %304, %cst_319 [1] : vector<8x1536xf32> to vector<8xf32>
    %306 = vector.shape_cast %305 : vector<8xf32> to vector<8x1xf32>
    %cst_320 = arith.constant 0.001953125 : f32
    %307 = vector.broadcast %cst_320 : f32 to vector<8x1xf32>
    %308 = arith.mulf %306, %307 : vector<8x1xf32>
    %309 = vector.broadcast %299 : vector<8x1xf32> to vector<8x1536xf32>
    %310 = arith.subf %293, %309 : vector<8x1536xf32>
    %cst_321 = arith.constant 9.99999974E-6 : f32
    %311 = vector.broadcast %cst_321 : f32 to vector<8x1xf32>
    %312 = arith.addf %308, %311 : vector<8x1xf32>
    %313 = math.rsqrt %312 : vector<8x1xf32>
    %314 = vector.broadcast %313 : vector<8x1xf32> to vector<8x1536xf32>
    %315 = arith.mulf %310, %314 : vector<8x1536xf32>
    %c2_322 = arith.constant 2 : index
    %c0_323 = arith.constant 0 : index
    %c0_324 = arith.constant 0 : index
    %316 = vector.load %arg5[%c2_322, %c0_323, %c0_324] : memref<3x8x1xf32, #tpu.memory_space<vmem>>, vector<1x8x1xf32>
    %317 = vector.shape_cast %316 : vector<1x8x1xf32> to vector<8x1xf32>
    %318 = vector.broadcast %317 : vector<8x1xf32> to vector<8x1536xf32>
    %319 = arith.mulf %315, %318 : vector<8x1536xf32>
    %c2_325 = arith.constant 2 : index
    %c0_326 = arith.constant 0 : index
    %c0_327 = arith.constant 0 : index
    %320 = vector.load %arg6[%c2_325, %c0_326, %c0_327] : memref<3x8x1xf32, #tpu.memory_space<vmem>>, vector<1x8x1xf32>
    %321 = vector.shape_cast %320 : vector<1x8x1xf32> to vector<8x1xf32>
    %322 = vector.broadcast %321 : vector<8x1xf32> to vector<8x1536xf32>
    %323 = arith.addf %319, %322 : vector<8x1536xf32>
    %cst_328 = arith.constant 0.000000e+00 : f32
    %324 = vector.broadcast %cst_328 : f32 to vector<8x1536xf32>
    %325 = arith.maximumf %323, %324 : vector<8x1536xf32>
    %326 = vector.broadcast %4 : vector<1x1536xf32> to vector<8x1536xf32>
    %327 = arith.mulf %325, %326 : vector<8x1536xf32>
    %c0_329 = arith.constant 0 : index
    %c0_330 = arith.constant 0 : index
    %c640_331 = arith.constant 640 : index
    %328 = vector.load %arg7[%c0_329, %c0_330, %c640_331] : memref<1x8x2816xf32, #tpu.memory_space<vmem>>, vector<1x8x1536xf32>
    %329 = vector.shape_cast %328 : vector<1x8x1536xf32> to vector<8x1536xf32>
    %330 = vector.shape_cast %327 : vector<8x1536xf32> to vector<1x8x1536xf32>
    tpu.vector_store %arg7[%c0_329, %c0_330, %c640_331], %330 {strides = array<i32>} : memref<1x8x2816xf32, #tpu.memory_space<vmem>>, vector<1x8x1536xf32>,
    return
  }
  func.func @transform_0(%arg0: i32) -> (i32, i32) {
    %c0_i32 = arith.constant 0 : i32
    %c0_i32_0 = arith.constant 0 : i32
    %c0_i32_1 = arith.constant 0 : i32
    return %c0_i32, %c0_i32_0 : i32, i32
  }
  func.func @transform_1(%arg0: i32) -> (i32, i32, i32) {
    %c0_i32 = arith.constant 0 : i32
    %c0_i32_0 = arith.constant 0 : i32
    %c0_i32_1 = arith.constant 0 : i32
    return %arg0, %c0_i32, %c0_i32_0 : i32, i32, i32
  }
  func.func @transform_2(%arg0: i32) -> (i32, i32, i32) {
    %c0_i32 = arith.constant 0 : i32
    %c0_i32_0 = arith.constant 0 : i32
    %c0_i32_1 = arith.constant 0 : i32
    %c0_i32_2 = arith.constant 0 : i32
    return %c0_i32, %c0_i32_0, %c0_i32_1 : i32, i32, i32
  }
  func.func @transform_3(%arg0: i32) -> (i32, i32, i32) {
    %c0_i32 = arith.constant 0 : i32
    %c0_i32_0 = arith.constant 0 : i32
    %c0_i32_1 = arith.constant 0 : i32
    %c0_i32_2 = arith.constant 0 : i32
    return %c0_i32, %c0_i32_0, %c0_i32_1 : i32, i32, i32
  }
  func.func @transform_4(%arg0: i32) -> (i32, i32, i32) {
    %c0_i32 = arith.constant 0 : i32
    %c0_i32_0 = arith.constant 0 : i32
    %c0_i32_1 = arith.constant 0 : i32
    %c0_i32_2 = arith.constant 0 : i32
    return %c0_i32, %c0_i32_0, %c0_i32_1 : i32, i32, i32
  }
  func.func @transform_5(%arg0: i32) -> (i32, i32, i32) {
    %c0_i32 = arith.constant 0 : i32
    %c0_i32_0 = arith.constant 0 : i32
    %c0_i32_1 = arith.constant 0 : i32
    %c0_i32_2 = arith.constant 0 : i32
    return %c0_i32, %c0_i32_0, %c0_i32_1 : i32, i32, i32
  }
  func.func @transform_6(%arg0: i32) -> (i32, i32, i32) {
    %c0_i32 = arith.constant 0 : i32
    %c0_i32_0 = arith.constant 0 : i32
    %c0_i32_1 = arith.constant 0 : i32
    return %arg0, %c0_i32, %c0_i32_0 : i32, i32, i32
  }
}

</mosaic_0001>

<bundles_post_ra>
// kernel: tpu_custom_call.1
= control target key start
LH: loop header
LB: loop body
LE: loop exit
PB: predicated region body
PF: predicated region fallthrough
CT: control target
= control target key end

     0   :  { %s19328_s0 = inlined_call_operand.vmem [shape: f32[1,1536], index: 0, kind: input, shape index: {}]   ;;  %s19329_s1 = inlined_call_operand.hbm [shape: f32[2,8,2816], index: 1, kind: input, shape index: {}]   ;;  %s19330_s2 = inlined_call_operand.vmem [shape: f32[3,8,216], index: 2, kind: input, shape index: {}]   ;;  %s19331_s3 = inlined_call_operand.vmem [shape: f32[3,8,1], index: 3, kind: input, shape index: {}]   ;;  %s19332_s4 = inlined_call_operand.vmem [shape: f32[3,8,1], index: 4, kind: input, shape index: {}]   ;;  %s19333_s5 = inlined_call_operand.vmem [shape: f32[3,8,1], index: 5, kind: input, shape index: {}]   ;;  %s19334_s6 = inlined_call_operand.hbm [shape: f32[2,8,2816], index: 6, kind: output, shape index: {}]  }
   0x1   :  { %19807 = sst [smem:[#allocation89_spill]] %s19328_s0 }
   0x2   :  { %19808 = sst [smem:[#allocation90_spill]] %s19329_s1 }
   0x3   :  { %11 = vsyncpa [#allocation7], 0 }
   0x4   :  { %13 = vsyncpa [#allocation7 + $0x1], 0 }
   0x5   :  { %14 = vsyncpa [#allocation8], 0 }
   0x6   :  { %16 = vsyncpa [#allocation8 + $0x1], 0  ;;  %s13901_s21 = smov 0   ;;  %s13903_s22 = smov 0  }
   0x7   :  { %s13905_s23 = smov 0   ;;  %s13907_s24 = smov 0  }
   0x8 LB: > { %19809 = sst [smem:[#allocation12_spill]] %s13780_s21  ;;  %s13922_s25 = sadd.s32 4294967295, %s13792_s24   ;;  %s13792_s24 = sphi %s13907_s24, %s20796_s24   ;;  %s13788_s23 = sphi %s13905_s23, %s20799_s23   ;;  %s13784_s22 = sphi %s13903_s22, %s20798_s22   ;;  %s13780_s21 = sphi %s13901_s21, %s20797_s21  }
   0x9   : > { %19810 = sst [smem:[#allocation13_spill]] %s13784_s22  ;;  %s10315_s26 = sadd.s32 4294967294, %s13792_s24  }
   0xa   : > { %19811 = sst [smem:[#allocation14_spill]] %s13788_s23  ;;  %s13926_s27 = sadd.s32 1, %s13792_s24  }
   0xb   : > { %19812 = sst [smem:[#allocation15_spill]] %s13792_s24  ;;  %s50_s28 = sadd.s32 1, %s13788_s23 }
   0xc   : > { %19813 = sst [smem:[#allocation16_spill]] %s13926_s27  ;;  %s47_s29 = ssub.s32 %s13792_s24, %s13926_s27 }
   0xd   : > { %p57_p0 = scmp.ne.s32.totalorder %s13788_s23, %s13784_s22  ;;  %p48_p1 = scmp.eq.s32.totalorder %s47_s29, 0 }
   0xe   : > { %p58_p2 = scmp.eq.s32.totalorder %s13792_s24, 0  ;;  %p63_p3 = scmp.ne.s32.totalorder %s13784_s22, %s13780_s21 }
   0xf   : > { %p64_p4 = scmp.eq.s32.totalorder %s13922_s25, 0  ;;  %p171_p7 = scmp.eq.s32.totalorder %s13922_s25, 1 }
  0x10   : > { %s13938_s30 = scalar_select %p48_p1, %s13788_s23, %s50_s28  }
  0x11   : > { %p59_p5 = por %p58_p2, %p57_p0  ;;  %p13940_p6 = por %p64_p4, %p63_p3 }
  0x12   : > { %19814 = sst [smem:[#allocation17_spill]] %s13938_s30  ;;  %p177_p8 = scmp.eq.s32.totalorder %s10315_s26, 1 }
  0x13   : > { %p11303_p10 = scmp.lt.s32.totalorder %s13792_s24, 2  ;;  %p13947_p11 = por %p171_p7, %p57_p0 }
  0x14   : > { %p13951_p12 = por %p177_p8, %p63_p3  ;;  %s212_s10 = sand.u32 1, %s13788_s23  }
  0x15   : > { %s19816_s8 = scalar_select %p13947_p11, 1, 0 }
  0x16   : > { %s19817_s9 = scalar_select %p13951_p12, 1, 0 }
  0x17   : > { %s11288_s11 = smul.u32 2816, %s13792_s24  ;;  %s19819_s1 = sld [smem:[#allocation90_spill]] }
  0x18   : > { %19818 = sst [smem:[#allocation18_spill]] %s19817_s9  ;;  %s11287_s12 = smul.u32 176, %s212_s10 }
  0x19   : > { %p13962_p13 = pnand %p11303_p10, %p59_p5  ;;  %s213_s19 = scalar_lea.sflag [#allocation7], %s212_s10 }
  0x1a   : > { %s216_s17 = scalar_lea.vmem [#allocation6], %s11287_s12 }
  0x1b   : > { %s224_s18 = sshll.u32 %s216_s17, 4  ;;  %p13698_p3 = pneg %p13962_p13  ;;  %s13967_s18 = int_to_ptr.vmem [resolvable:$true] %s224_s18 }
  0x1d   : > { %s13960_s15 = scalar_lea.hbm %s19819_s1, %s11288_s11  ;;  %s13701_s29 = scalar_lea.hbm %s19819_s1, 5632 }
  0x1e   : > { %s13696_s20 = scalar_lea.hbm %s13960_s15, 2816  ;;  %p13702_p7 = scmp.lt.u32.totalorder %s13960_s15, %s19819_s1 }
  0x1f   : > { %p13697_p2 = scmp.ne.s32.totalorder %s13960_s15, %s13696_s20  ;;  %p13703_p8 = scmp.lt.u32.totalorder %s13701_s29, %s13696_s20 }
  0x20   : > { %p13705_p9 = scmp.lt.u32.totalorder %s13696_s20, %s13960_s15 }
  0x21   : > { %p13699_p4 = pnand %p13698_p3, %p13697_p2  ;;  %p13704_p10 = por %p13703_p8, %p13702_p7 }
  0x23   : > { %p13700_p5 = pneg %p13699_p4  ;;  %p13706_p0 = por %p13705_p9, %p13704_p10 }
  0x25   : > { %p13707_p1 = pnand %p13706_p0, %p13700_p5 }
  0x27   : > { %13710 = shalt.err (!%p13707_p1)
}
  0x28   : > { %s13711_s10 = scalar_lea.vmem %s13967_s18, 2816  ;;  %s13794_s12 = smov [#allocation6]  }
  0x29   : > { %p13712_p2 = scmp.ne.s32.totalorder %s13967_s18, %s13711_s10  ;;  %s13716_s14 = sshll.u32 %s13794_s12, 4  ;;  %s13717_s14 = int_to_ptr.vmem [resolvable:$false] %s13716_s14 }
  0x2a   : > { %s13718_s17 = scalar_lea.vmem %s13717_s14, 5632  ;;  %p13719_p11 = scmp.lt.s32.totalorder %s13967_s18, %s13717_s14 }
  0x2b   : > { %p13714_p4 = pnand %p13712_p2, %p13698_p3  ;;  %p13720_p7 = scmp.lt.s32.totalorder %s13718_s17, %s13711_s10 }
  0x2d   : > { %p13715_p12 = pneg %p13714_p4  ;;  %p13721_p8 = por %p13720_p7, %p13719_p11 }
  0x2f   : > { %p13722_p9 = pnand %p13721_p8, %p13715_p12 }
  0x31   : > { %13725 = shalt.err (!%p13722_p9)
}
  0x32   : > { %11298 = dma.hbm_to_vmem [thread:$0]  (!%p13962_p13), %s13960_s15, 2816, %s13967_s18, %s213_s19  }
  0x33   : > { %p19821_p0 = scmp.lt.s32.totalorder %s13792_s24, 3  ;;  %p19822_p1 = scmp.ge.s32.totalorder %s13792_s24, 1 }
  0x35   : > { %p230_p3 = pnand %p19822_p1, %p19821_p0 }
  0x37   : > { %233 = sbr.rel (%p230_p3) target bundleno = 3134 (0xc3e), region = 44 }
  0x3e   : > { %s14000_s20 = sand.u32 1, %s13784_s22  }
  0x3f   : > { %s19344_s26 = smul.u32 176, %s14000_s20  ;;  %s236_s28 = scalar_lea.sflag [#allocation7], %s14000_s20 }
  0x41   : > { %s14006_s16 = scalar_lea.vmem [#allocation6], %s19344_s26 }
  0x42   : > { %13771 = dma.done.wait (%p13940_p6), %s236_s28, 2816  }
  0x43   : > { %13773 = vsyncadd (%p13940_p6), %s236_s28, 4294964480  ;;  %v318_v0 = vld [vmem:[%s14006_s16 + $0x38] sm:$0xff]  ;;  %v319_v1 = vld [vmem:[%s14006_s16 + $0x40] sm:$0xff]  ;;  %s19345_s7 = smov 83   ;;  %s13796_s15 = smov 82   ;;  %vm19567_vm0 = vcmask 678912  }
  0x44   : > { %v314_v2 = vld [vmem:[%s14006_s16 + $0x18] sm:$0xff]  ;;  %v14015_v3 = vpack.i.bf16 %v319_v1, %v318_v0  ;;  %v315_v4 = vld [vmem:[%s14006_s16 + $0x20] sm:$0xff]  ;;  %v320_v5 = vld [vmem:[%s14006_s16 + $0x48] sm:$0xff]  ;;  %s13797_s18 = smov 81   ;;  %s13798_s19 = smov 69   ;;  %vm455_vm1 = vcmask 670720  }
  0x45   : > { %v321_v6 = vld [vmem:[%s14006_s16 + $0x50] sm:$0xff]  ;;  %v14020_v7 = vpack.i.bf16 %v315_v4, %v314_v2  ;;  %v316_v8 = vld [vmem:[%s14006_s16 + $0x28] sm:$0xff]  ;;  %v14024_v10 = vpack.i.bf16 %v320_v5, %v319_v1  ;;  %v322_v17 = vld [vmem:[%s14006_s16 + $0x58] sm:$0xff]  ;;  %v14076_v24 = vpack.i.bf16 %v318_v0, %v315_v4  ;;  %s13799_s29 = smov 68   ;;  %s13800_s11 = smov 67   ;;  %vm544_vm2 = vcmask 662528  }
  0x46   : > { %v317_v9 = vld [vmem:[%s14006_s16 + $0x30] sm:$0xff]  ;;  %11418 = vrot.lane.b32.xlu1 %v14015_v3, %s19345_s7  ;;  %v14028_v11 = vpack.i.bf16 %v321_v6, %v320_v5  ;;  %v14030_v12 = vpack.i.bf16 %v316_v8, %v315_v4  ;;  %v14039_v15 = vld [vmem:[%s14006_s16 + $0x68] sm:$0xff]  ;;  %v14046_v18 = vld [vmem:[%s14006_s16 + $0x60] sm:$0xff]  ;;  %v14050_v20 = vpack.i.bf16 %v322_v17, %v321_v6  ;;  %v14086_v25 = vpack.i.bf16 %v319_v1, %v316_v8  ;;  %s19347_s13 = smov 55   ;;  %s13802_s10 = smov 54  }
  0x47   : > { %v14032_v13 = vpack.i.bf16 %v318_v0, %v317_v9  ;;  %11408 = vrot.lane.b32.xlu0 %v14020_v7, %s19345_s7  ;;  %v14036_v14 = vpack.i.bf16 %v317_v9, %v316_v8  ;;  %v14042_v16 = vld [vmem:[%s14006_s16 + $0x70] sm:$0xff]  ;;  %v11697_v19 = vpack.i.bf16 %v14039_v15, %v14046_v18  ;;  %v14061_v22 = vpack.i.bf16 %v14046_v18, %v322_v17  ;;  %v14068_v23 = vld [vmem:[%s14006_s16 + $0x78] sm:$0xff]  ;;  %s13803_s12 = smov 53   ;;  %s13804_s14 = smov 15   ;;  %v1127_v51 = vld [vmem:[%s14006_s16 + $0x80] sm:$0xff] }
  0x48   : > { %v14056_v21 = vpack.i.bf16 %v14042_v16, %v14039_v15  ;;  %v11702_v49 = vpack.i.bf16 %v14068_v23, %v14042_v16  ;;  %s13805_s17 = smov 14   ;;  %s19449_s28 = smov 13   ;;  %vm633_vm3 = vcmask 564224   ;;  %vm722_vm4 = vcmask 556032  }
  0x49   : > { %vm811_vm5 = vcmask 547840   ;;  %s19366_s26 = smov 73   ;;  %vm19558_vm6 = vcmask 449536   ;;  %vm989_vm7 = vcmask 441344   ;;  %vm2984_vm8 = vcmask 719872   ;;  %s20067_s0 = sld [smem:[#allocation89_spill]] }
  0x4a   : > { %11423 = vrot.lane.b32.xlu1 %v14028_v11, %s19345_s7  ;;  %vm1078_vm9 = vcmask 433152   ;;  %vm1167_vm10 = vcmask 121856   ;;  %vm1256_vm11 = vcmask 113664   ;;  %vm19554_vm12 = vcmask 105472   ;;  %s20475_s1 = smov 97   ;;  %s20478_s30 = smov 91  }
  0x4b   : > { %11413 = vrot.lane.b32.xlu0 %v14036_v14, %s19345_s7  ;;  %vm19435_vm13 = vcmask 7168   ;;  %vm19439_vm14 = vcmask 1039360   ;;  %vm19436_vm15 = vcmask 941056   ;;  %s20479_s23 = smov 49   ;;  %s20481_s22 = smov 52  }
  0x4c   : > { %s20493_s27 = smov 7   ;;  %s20518_s24 = smov 42  }
  0x4d   : > { %s20521_s9 = smov 3   ;;  %s20523_s21 = smov 39  }
  0x4e   : > { %11433 = vrot.lane.b32.xlu1 %v14056_v21, %s19345_s7  ;;  %p20790_p11 = scmp.ne.s32.totalorder %s19816_s8, 0 }
  0x4f   : > { %11428 = vrot.lane.b32.xlu0 %v14061_v22, %s19345_s7 }
  0x52   : > { %11438 = vrot.lane.b32.xlu1 %v14020_v7, %s13796_s15 }
  0x53   : > { %364 = vrot.lane.b32.xlu0 %v14068_v23, %s19345_s7  ;;  %s19364_s7 = smov 59  }
  0x56   : > { %11448 = vrot.lane.b32.xlu1 %v14015_v3, %s13796_s15 }
  0x57   : > { %11443 = vrot.lane.b32.xlu0 %v14036_v14, %s13796_s15 }
  0x5a   : > { %11458 = vrot.lane.b32.xlu1 %v14061_v22, %s13796_s15 }
  0x5b   : > { %11453 = vrot.lane.b32.xlu0 %v14028_v11, %s13796_s15 }
  0x5e   : > { %453 = vrot.lane.b32.xlu1 %v14068_v23, %s13796_s15 }
  0x5f   : > { %11463 = vrot.lane.b32.xlu0 %v14056_v21, %s13796_s15  ;;  %s13807_s15 = smov 1  }
  0x62   : > { %11473 = vrot.lane.b32.xlu1 %v14036_v14, %s13797_s18 }
  0x63   : > { %11468 = vrot.lane.b32.xlu0 %v14020_v7, %s13797_s18 }
  0x66   : > { %11483 = vrot.lane.b32.xlu1 %v14028_v11, %s13797_s18 }
  0x67   : > { %11478 = vrot.lane.b32.xlu0 %v14015_v3, %s13797_s18 }
  0x6a   : > { %11493 = vrot.lane.b32.xlu1 %v14056_v21, %s13797_s18 }
  0x6b   : > { %11488 = vrot.lane.b32.xlu0 %v14061_v22, %s13797_s18 }
  0x6e   : > { %11498 = vrot.lane.b32.xlu1 %v14020_v7, %s13798_s19 }
  0x6f   : > { %542 = vrot.lane.b32.xlu0 %v14068_v23, %s13797_s18  ;;  %s19451_s18 = smov 115  }
  0x72   : > { %11508 = vrot.lane.b32.xlu1 %v14015_v3, %s13798_s19 }
  0x73   : > { %11503 = vrot.lane.b32.xlu0 %v14036_v14, %s13798_s19 }
  0x76   : > { %11518 = vrot.lane.b32.xlu1 %v14061_v22, %s13798_s19 }
  0x77   : > { %11513 = vrot.lane.b32.xlu0 %v14028_v11, %s13798_s19 }
  0x7a   : > { %631 = vrot.lane.b32.xlu1 %v14068_v23, %s13798_s19 }
  0x7b   : > { %11523 = vrot.lane.b32.xlu0 %v14056_v21, %s13798_s19  ;;  %s13809_s19 = smov 127  }
  0x7e   : > { %11533 = vrot.lane.b32.xlu1 %v14036_v14, %s13799_s29 }
  0x7f   : > { %11528 = vrot.lane.b32.xlu0 %v14020_v7, %s13799_s29 }
  0x82   : > { %11543 = vrot.lane.b32.xlu1 %v14028_v11, %s13799_s29 }
  0x83   : > { %11538 = vrot.lane.b32.xlu0 %v14015_v3, %s13799_s29 }
  0x86   : > { %11553 = vrot.lane.b32.xlu1 %v14056_v21, %s13799_s29 }
  0x87   : > { %11548 = vrot.lane.b32.xlu0 %v14061_v22, %s13799_s29 }
  0x8a   : > { %11558 = vrot.lane.b32.xlu1 %v14020_v7, %s13800_s11 }
  0x8b   : > { %720 = vrot.lane.b32.xlu0 %v14068_v23, %s13799_s29  ;;  %s13810_s29 = smov 113  }
  0x8e   : > { %11568 = vrot.lane.b32.xlu1 %v14015_v3, %s13800_s11 }
  0x8f   : > { %11563 = vrot.lane.b32.xlu0 %v14036_v14, %s13800_s11 }
  0x92   : > { %11578 = vrot.lane.b32.xlu1 %v14061_v22, %s13800_s11 }
  0x93   : > { %11573 = vrot.lane.b32.xlu0 %v14028_v11, %s13800_s11 }
  0x96   : > { %809 = vrot.lane.b32.xlu1 %v14068_v23, %s13800_s11 }
  0x97   : > { %11583 = vrot.lane.b32.xlu0 %v14056_v21, %s13800_s11  ;;  %s19399_s11 = smov 114  }
  0x9a   : > { %11593 = vrot.lane.b32.xlu1 %v14036_v14, %s19347_s13 }
  0x9b   : > { %11588 = vrot.lane.b32.xlu0 %v14020_v7, %s19347_s13 }
  0x9e   : > { %11603 = vrot.lane.b32.xlu1 %v14028_v11, %s19347_s13 }
  0x9f   : > { %11598 = vrot.lane.b32.xlu0 %v14015_v3, %s19347_s13 }
  0xa2   : > { %11613 = vrot.lane.b32.xlu1 %v14056_v21, %s19347_s13 }
  0xa3   : > { %11608 = vrot.lane.b32.xlu0 %v14061_v22, %s19347_s13 }
  0xa6   : > { %11618 = vrot.lane.b32.xlu1 %v14020_v7, %s13802_s10 }
  0xa7   : > { %898 = vrot.lane.b32.xlu0 %v14068_v23, %s19347_s13  ;;  %s19362_s13 = smov 60  }
  0xaa   : > { %11628 = vrot.lane.b32.xlu1 %v14015_v3, %s13802_s10 }
  0xab   : > { %11623 = vrot.lane.b32.xlu0 %v14036_v14, %s13802_s10 }
  0xae   : > { %11638 = vrot.lane.b32.xlu1 %v14061_v22, %s13802_s10 }
  0xaf   : > { %11633 = vrot.lane.b32.xlu0 %v14028_v11, %s13802_s10 }
  0xb2   : > { %987 = vrot.lane.b32.xlu1 %v14068_v23, %s13802_s10 }
  0xb3   : > { %11643 = vrot.lane.b32.xlu0 %v14056_v21, %s13802_s10  ;;  %s19397_s10 = smov 74  }
  0xb6   : > { %11653 = vrot.lane.b32.xlu1 %v14036_v14, %s13803_s12 }
  0xb7   : > { %11648 = vrot.lane.b32.xlu0 %v14020_v7, %s13803_s12 }
  0xb8   : > { %v14134_v26 = vpop.permute.xlu1 %11418 }
  0xb9   : > { %v11409_v27 = vpop.permute.xlu0 %11408  ;;  %v19336_v34 = vunpack.i.h.bf16 %v14134_v26  ;;  %v11420_v35 = vunpack.i.l.bf16 %v14134_v26 }
  0xba   : > { %11663 = vrot.lane.b32.xlu1 %v14028_v11, %s13803_s12  ;;  %v11411_v41 = vunpack.i.h.bf16 %v11409_v27  ;;  %v11410_v42 = vunpack.i.l.bf16 %v11409_v27 }
  0xbb   : > { %11658 = vrot.lane.b32.xlu0 %v14015_v3, %s13803_s12  ;;  %v14164_v46 = vsel %vm19567_vm0, %v11420_v35, %v19336_v34 }
  0xbc   : > { %v14138_v28 = vpop.permute.xlu1 %11423  ;;  %v367_v63 = vsel %vm19567_vm0, %v11410_v42, %v11411_v41 }
  0xbd   : > { %v11414_v29 = vpop.permute.xlu0 %11413 }
  0xbe   : > { %11673 = vrot.lane.b32.xlu1 %v14056_v21, %s13803_s12  ;;  %v11416_v36 = vunpack.i.h.bf16 %v11414_v29  ;;  %v11415_v37 = vunpack.i.l.bf16 %v11414_v29 }
  0xbf   : > { %11668 = vrot.lane.b32.xlu0 %v14061_v22, %s13803_s12 }
  0xc0   : > { %v14142_v30 = vpop.permute.xlu1 %11433  ;;  %v368_v52 = vsel %vm19567_vm0, %v11411_v41, %v11415_v37  ;;  %v370_v53 = vsel %vm19567_vm0, %v11416_v36, %v11420_v35  ;;  %v369_v0 = vsel %vm19567_vm0, %v11415_v37, %v11416_v36 }
  0xc1   : > { %19823 = vst [vmem:[#allocation19_spill] sm:$0xff] %v14142_v30  ;;  %v14144_v31 = vpop.permute.xlu0 %11428 }
  0xc2   : > { %11678 = vrot.lane.b32.xlu1 %v14030_v12, %s13804_s14 }
  0xc3   : > { %1076 = vrot.lane.b32.xlu0 %v14068_v23, %s13803_s12  ;;  %s19395_s12 = smov 75  }
  0xc4   : > { %v11439_v32 = vpop.permute.xlu1 %11438 }
  0xc5   : > { %v14149_v33 = vpop.permute.xlu0 %364  ;;  %v11441_v38 = vunpack.i.h.bf16 %v11439_v32  ;;  %v11440_v39 = vunpack.i.l.bf16 %v11439_v32 }
  0xc6   : > { %19824 = vst [vmem:[#allocation20_spill] sm:$0xff] %v14149_v33  ;;  %11688 = vrot.lane.b32.xlu1 %v14024_v10, %s13804_s14 }
  0xc7   : > { %11683 = vrot.lane.b32.xlu0 %v14032_v13, %s13804_s14  ;;  %v456_v54 = vsel %vm455_vm1, %v11440_v39, %v11441_v38 }
  0xc8   : > { %v14157_v40 = vpop.permute.xlu1 %11448  ;;  %v10353_v1 = vpack.c.bf16 %v456_v54, %v367_v63 }
  0xc9   : > { %v19337_v43 = vunpack.i.h.bf16 %v14157_v40  ;;  %v11450_v44 = vunpack.i.l.bf16 %v14157_v40  ;;  %v11444_v45 = vpop.permute.xlu0 %11443 }
  0xca   : > { %v11446_v47 = vunpack.i.h.bf16 %v11444_v45  ;;  %v11445_v48 = vunpack.i.l.bf16 %v11444_v45  ;;  %11698 = vrot.lane.b32.xlu1 %v11697_v19, %s13804_s14 }
  0xcb   : > { %v14175_v50 = vsel %vm455_vm1, %v11450_v44, %v19337_v43  ;;  %11693 = vrot.lane.b32.xlu0 %v14050_v20, %s13804_s14 }
  0xcc   : > { %v14183_v55 = vpop.permute.xlu1 %11458  ;;  %v457_v56 = vsel %vm455_vm1, %v11441_v38, %v11445_v48  ;;  %v459_v57 = vsel %vm455_vm1, %v11446_v47, %v11450_v44  ;;  %v458_v58 = vsel %vm455_vm1, %v11445_v48, %v11446_v47 }
  0xcd   : > { %v14190_v60 = vpop.permute.xlu0 %11453  ;;  %v10351_v61 = vpack.c.bf16 %v457_v56, %v368_v52  ;;  %v10403_v62 = vpack.c.bf16 %v459_v57, %v370_v53  ;;  %v10405_v2 = vpack.c.bf16 %v458_v58, %v369_v0 }
  0xce   : > { %1165 = vrot.lane.b32.xlu1 %v1127_v51, %s13804_s14 }
  0xcf   : > { %11703 = vrot.lane.b32.xlu0 %v11702_v49, %s13804_s14  ;;  %10352 = vmatprep.subr.bf16.mxu0 %v10351_v61  ;;  %s19368_s14 = smov 61  }
  0xd0   : > { %10404 = vmatprep.subr.bf16.mxu1 %v10403_v62  ;;  %10354 = vmatpush1.bf16.msra.mxu0 %v10353_v1  ;;  %v14196_v3 = vpop.permute.xlu1 %453 }
  0xd1   : > { %19825 = vst [vmem:[#allocation21_spill] sm:$0xff] %v14196_v3  ;;  %10406 = vmatpush1.bf16.msra.mxu1 %v10405_v2  ;;  %v14198_v4 = vpop.permute.xlu0 %11463 }
  0xd2   : > { %19826 = vst [vmem:[#allocation22_spill] sm:$0xff] %v14198_v4  ;;  %11713 = vrot.lane.b32.xlu1 %v14032_v13, %s13805_s17 }
  0xd3   : > { %11708 = vrot.lane.b32.xlu0 %v14030_v12, %s13805_s17 }
  0xd4   : > { %v11474_v5 = vpop.permute.xlu1 %11473 }
  0xd5   : > { %v11469_v6 = vpop.permute.xlu0 %11468  ;;  %v11476_v19 = vunpack.i.h.bf16 %v11474_v5 }
  0xd6   : > { %11723 = vrot.lane.b32.xlu1 %v14050_v20, %s13805_s17  ;;  %v11475_v20 = vunpack.i.l.bf16 %v11474_v5  ;;  %v11471_v21 = vunpack.i.h.bf16 %v11469_v6  ;;  %v11470_v23 = vunpack.i.l.bf16 %v11469_v6 }
  0xd7   : > { %11718 = vrot.lane.b32.xlu0 %v14024_v10, %s13805_s17 }
  0xd8   : > { %v14208_v7 = vpop.permute.xlu1 %11483  ;;  %v546_v42 = vsel %vm544_vm2, %v11471_v21, %v11475_v20  ;;  %v547_v44 = vsel %vm544_vm2, %v11475_v20, %v11476_v19 }
  0xd9   : > { %v11479_v8 = vpop.permute.xlu0 %11478  ;;  %v11486_v27 = vunpack.i.h.bf16 %v14208_v7  ;;  %v11485_v29 = vunpack.i.l.bf16 %v14208_v7 }
  0xda   : > { %v11481_v9 = vunpack.i.h.bf16 %v11479_v8  ;;  %v11480_v15 = vunpack.i.l.bf16 %v11479_v8  ;;  %11733 = vrot.lane.b32.xlu1 %v14076_v24, %s19449_s28 }
  0xdb   : > { %11728 = vrot.lane.b32.xlu0 %v14036_v14, %s19449_s28 }
  0xdc   : > { %v14215_v12 = vsel %vm544_vm2, %v11480_v15, %v11481_v9  ;;  %v14217_v16 = vpop.permute.xlu1 %11493  ;;  %v548_v49 = vsel %vm544_vm2, %v11476_v19, %v11480_v15  ;;  %v14251_v52 = vsel %vm544_vm2, %v11481_v9, %v11485_v29 }
  0xdd   : > { %v14219_v17 = vpop.permute.xlu0 %11488  ;;  %v11495_v8 = vunpack.i.l.bf16 %v14217_v16 }
  0xde   : > { %11743 = vrot.lane.b32.xlu1 %v14036_v14, %s13807_s15  ;;  %v11491_v14 = vunpack.i.h.bf16 %v14219_v17  ;;  %v11490_v36 = vunpack.i.l.bf16 %v14219_v17 }
  0xdf   : > { %11738 = vrot.lane.b32.xlu0 %v14024_v10, %s19449_s28 }
  0xe0   : > { %v11499_v18 = vpop.permute.xlu1 %11498  ;;  %v14254_v53 = vsel %vm544_vm2, %v11490_v36, %v11491_v14  ;;  %v14270_v17 = vsel %vm544_vm2, %v11486_v27, %v11490_v36 }
  0xe1   : > { %v14225_v22 = vpop.permute.xlu0 %542  ;;  %v11501_v32 = vunpack.i.h.bf16 %v11499_v18  ;;  %v11500_v35 = vunpack.i.l.bf16 %v11499_v18  ;;  %19828 = vst [vmem:[#allocation24_spill] sm:$0xff] %v14254_v53  ;;  %v11496_v18 = vunpack.i.h.bf16 %v14217_v16 }
  0xe2   : > { %11753 = vrot.lane.b32.xlu1 %v14024_v10, %s13807_s15  ;;  %v14238_v10 = vsel %vm544_vm2, %v11485_v29, %v11486_v27 }
  0xe3   : > { %11748 = vrot.lane.b32.xlu0 %v14076_v24, %s13807_s15  ;;  %19827 = vst [vmem:[#allocation23_spill] sm:$0xff] %v14238_v10  ;;  %v545_v24 = vsel %vm544_vm2, %v11470_v23, %v11471_v21  ;;  %v634_v51 = vsel %vm633_vm3, %v11500_v35, %v11501_v32 }
  0xe4   : > { %v11509_v37 = vpop.permute.xlu1 %11508  ;;  %v10357_v6 = vpack.c.bf16 %v634_v51, %v545_v24 }
  0xe5   : > { %v11511_v38 = vunpack.i.h.bf16 %v11509_v37  ;;  %v11510_v39 = vunpack.i.l.bf16 %v11509_v37  ;;  %v11504_v41 = vpop.permute.xlu0 %11503 }
  0xe6   : > { %v11506_v45 = vunpack.i.h.bf16 %v11504_v41  ;;  %v11505_v47 = vunpack.i.l.bf16 %v11504_v41  ;;  %11763 = vrot.lane.b32.xlu1 %v14032_v13, %s19451_s18 }
  0xe7   : > { %v14244_v48 = vsel %vm633_vm3, %v11510_v39, %v11511_v38  ;;  %11758 = vrot.lane.b32.xlu0 %v14032_v13, %s13809_s19 }
  0xe8   : > { %v11519_v54 = vpop.permute.xlu1 %11518  ;;  %v635_v56 = vsel %vm633_vm3, %v11501_v32, %v11505_v47  ;;  %v637_v57 = vsel %vm633_vm3, %v11506_v45, %v11510_v39  ;;  %v636_v58 = vsel %vm633_vm3, %v11505_v47, %v11506_v45  ;;  %v14299_v39 = vsel %vm544_vm2, %v11496_v18, %v14225_v22 }
  0xe9   : > { %v11521_v61 = vunpack.i.h.bf16 %v11519_v54  ;;  %v11520_v62 = vunpack.i.l.bf16 %v11519_v54  ;;  %v11514_v63 = vpop.permute.xlu0 %11513  ;;  %v10355_v0 = vpack.c.bf16 %v635_v56, %v546_v42  ;;  %v10407_v1 = vpack.c.bf16 %v637_v57, %v548_v49  ;;  %19832 = vst [vmem:[#allocation28_spill] sm:$0xff] %v14299_v39 }
  0xea   : > { %v11516_v2 = vunpack.i.h.bf16 %v11514_v63  ;;  %v11515_v5 = vunpack.i.l.bf16 %v11514_v63  ;;  %11773 = vrot.lane.b32.xlu1 %v14086_v25, %s19451_s18  ;;  %v10409_v7 = vpack.c.bf16 %v636_v58, %v547_v44  ;;  %v14311_v47 = vsel %vm544_vm2, %v11495_v8, %v11496_v18  ;;  %v14330_v58 = vld [vmem:[%s14006_s16 + $0x38] sm:$0xff] }
  0xeb   : > { %v14263_v9 = vsel %vm633_vm3, %v11520_v62, %v11521_v61  ;;  %11768 = vrot.lane.b32.xlu0 %v14086_v25, %s13809_s19  ;;  %10356 = vmatprep.subr.bf16.mxu0 %v10355_v0  ;;  %19836 = vst [vmem:[#allocation32_spill] sm:$0xff] %v14311_v47 }
  0xec   : > { %19829 = vst [vmem:[#allocation25_spill] sm:$0xff] %v14263_v9  ;;  %v14274_v19 = vsel %vm633_vm3, %v11515_v5, %v11516_v2  ;;  %10408 = vmatprep.subr.bf16.mxu1 %v10407_v1  ;;  %10358 = vmatpush1.bf16.msra.mxu0 %v10357_v6  ;;  %v632_v20 = vpop.permute.xlu1 %631  ;;  %v14277_v21 = vsel %vm633_vm3, %v11511_v38, %v11515_v5  ;;  %v14354_v1 = vld [vmem:[%s14006_s16 + $0x48] sm:$0xff] }
  0xed   : > { %19830 = vst [vmem:[#allocation26_spill] sm:$0xff] %v14274_v19  ;;  %v14280_v23 = vsel %vm633_vm3, %v11516_v2, %v11520_v62  ;;  %10410 = vmatpush1.bf16.msra.mxu1 %v10409_v7  ;;  %v11524_v29 = vpop.permute.xlu0 %11523  ;;  %v14295_v38 = vsel %vm544_vm2, %v11491_v14, %v11495_v8  ;;  %vm19437_vm2 = vcmask 932864  }
  0xee   : > { %v11526_v36 = vunpack.i.h.bf16 %v11524_v29  ;;  %v11525_v37 = vunpack.i.l.bf16 %v11524_v29  ;;  %11783 = vrot.lane.b32.xlu1 %v14028_v11, %s19451_s18  ;;  %19831 = vst [vmem:[#allocation27_spill] sm:$0xff] %v14295_v38 }
  0xef   : > { %11778 = vrot.lane.b32.xlu0 %v14028_v11, %s13809_s19 }
  0xf0   : > { %v14302_v41 = vsel %vm633_vm3, %v11525_v37, %v11526_v36  ;;  %v11534_v42 = vpop.permute.xlu1 %11533  ;;  %v14305_v44 = vsel %vm633_vm3, %v11521_v61, %v11525_v37  ;;  %v14308_v45 = vsel %vm633_vm3, %v11526_v36, %v632_v20  ;;  %v14333_v61 = vld [vmem:[%s14006_s16 + $0x40] sm:$0xff]  ;;  %v14361_v36 = vld [vmem:[%s14006_s16 + $0x50] sm:$0xff]  ;;  %v14364_v37 = vld [vmem:[%s14006_s16 + $0x58] sm:$0xff]  ;;  %vm19438_vm3 = vcmask 924672  }
  0xf1   : > { %19833 = vst [vmem:[#allocation29_spill] sm:$0xff] %v14302_v41  ;;  %19834 = vst [vmem:[#allocation30_spill] sm:$0xff] %v14305_v44  ;;  %v11529_v14 = vpop.permute.xlu0 %11528  ;;  %v14346_v0 = vpack.i.bf16 %v14333_v61, %v14330_v58  ;;  %v11536_v2 = vunpack.i.h.bf16 %v11534_v42  ;;  %v11535_v5 = vunpack.i.l.bf16 %v11534_v42 }
  0xf2   : > { %19835 = vst [vmem:[#allocation31_spill] sm:$0xff] %v14308_v45  ;;  %11793 = vrot.lane.b32.xlu1 %v14032_v13, %s13810_s29  ;;  %v11531_v6 = vunpack.i.h.bf16 %v11529_v14  ;;  %v11530_v8 = vunpack.i.l.bf16 %v11529_v14 }
  0xf3   : > { %11788 = vrot.lane.b32.xlu0 %v14032_v13, %s19399_s11  ;;  %v725_v24 = vsel %vm722_vm4, %v11535_v5, %v11536_v2 }
  0xf4   : > { %v14323_v51 = vpop.permute.xlu1 %11543  ;;  %v724_v49 = vsel %vm722_vm4, %v11531_v6, %v11535_v5  ;;  %v723_v16 = vsel %vm722_vm4, %v11530_v8, %v11531_v6 }
  0xf5   : > { %v11539_v54 = vpop.permute.xlu0 %11538  ;;  %v11546_v18 = vunpack.i.h.bf16 %v14323_v51  ;;  %v11545_v20 = vunpack.i.l.bf16 %v14323_v51 }
  0xf6   : > { %v11541_v56 = vunpack.i.h.bf16 %v11539_v54  ;;  %v11540_v57 = vunpack.i.l.bf16 %v11539_v54  ;;  %11803 = vrot.lane.b32.xlu1 %v14086_v25, %s13810_s29  ;;  %v14376_v54 = vpack.i.bf16 %v14364_v37, %v14361_v36 }
  0xf7   : > { %11798 = vrot.lane.b32.xlu0 %v14086_v25, %s19399_s11  ;;  %v14351_v25 = vld [vmem:[%s14006_s16 + $0x30] sm:$0xff]  ;;  %v14381_v35 = vsel %vm722_vm4, %v11545_v20, %v11546_v18 }
  0xf8   : > { %v14336_v13 = vsel %vm722_vm4, %v11540_v57, %v11541_v56  ;;  %v14338_v62 = vpop.permute.xlu1 %11553  ;;  %19838 = vst [vmem:[#allocation34_spill] sm:$0xff] %v14381_v35  ;;  %v726_v59 = vsel %vm722_vm4, %v11536_v2, %v11540_v57  ;;  %v14388_v34 = vsel %vm722_vm4, %v11541_v56, %v11545_v20 }
  0xf9   : > { %19837 = vst [vmem:[#allocation33_spill] sm:$0xff] %v14336_v13  ;;  %v14340_v63 = vpop.permute.xlu0 %11548 }
  0xfa   : > { %11813 = vrot.lane.b32.xlu1 %v14028_v11, %s13810_s29  ;;  %v11551_v5 = vunpack.i.h.bf16 %v14340_v63  ;;  %v11550_v43 = vunpack.i.l.bf16 %v14340_v63 }
  0xfb   : > { %11808 = vrot.lane.b32.xlu0 %v14028_v11, %s19399_s11  ;;  %v14370_v11 = vpack.i.bf16 %v14354_v1, %v14351_v25 }
  0xfc   : > { %v11559_v7 = vpop.permute.xlu1 %11558 }
  0xfd   : > { %v14358_v29 = vpop.permute.xlu0 %720  ;;  %v11561_v42 = vunpack.i.h.bf16 %v11559_v7  ;;  %v11560_v14 = vunpack.i.l.bf16 %v11559_v7 }
  0xfe   : > { %11823 = vrot.lane.b32.xlu1 %v14346_v0, %s19397_s10 }
  0xff   : > { %11818 = vrot.lane.b32.xlu0 %v14346_v0, %s19395_s12  ;;  %v812_v6 = vsel %vm811_vm5, %v11560_v14, %v11561_v42 }
 0x100   : > { %v11569_v51 = vpop.permute.xlu1 %11568  ;;  %v10361_v14 = vpack.c.bf16 %v812_v6, %v723_v16 }
 0x101   : > { %v11571_v22 = vunpack.i.h.bf16 %v11569_v51  ;;  %v11570_v32 = vunpack.i.l.bf16 %v11569_v51  ;;  %v11564_v7 = vpop.permute.xlu0 %11563 }
 0x102   : > { %v11566_v15 = vunpack.i.h.bf16 %v11564_v7  ;;  %v11565_v27 = vunpack.i.l.bf16 %v11564_v7  ;;  %11833 = vrot.lane.b32.xlu1 %v14370_v11, %s19397_s10 }
 0x103   : > { %v14393_v47 = vsel %vm811_vm5, %v11570_v32, %v11571_v22  ;;  %11828 = vrot.lane.b32.xlu0 %v14370_v11, %s19395_s12 }
 0x104   : > { %19839 = vst [vmem:[#allocation35_spill] sm:$0xff] %v14393_v47  ;;  %v11579_v8 = vpop.permute.xlu1 %11578  ;;  %v813_v51 = vsel %vm811_vm5, %v11561_v42, %v11565_v27  ;;  %v815_v57 = vsel %vm811_vm5, %v11566_v15, %v11570_v32  ;;  %v814_v56 = vsel %vm811_vm5, %v11565_v27, %v11566_v15  ;;  %v11556_v42 = vunpack.i.h.bf16 %v14338_v62 }
 0x105   : > { %v11581_v20 = vunpack.i.h.bf16 %v11579_v8  ;;  %v11580_v63 = vunpack.i.l.bf16 %v11579_v8  ;;  %v11574_v7 = vpop.permute.xlu0 %11573  ;;  %v10359_v41 = vpack.c.bf16 %v813_v51, %v724_v49  ;;  %v10411_v39 = vpack.c.bf16 %v815_v57, %v726_v59 }
 0x106   : > { %v11576_v45 = vunpack.i.h.bf16 %v11574_v7  ;;  %v11575_v53 = vunpack.i.l.bf16 %v11574_v7  ;;  %11843 = vrot.lane.b32.xlu1 %v14376_v54, %s19397_s10  ;;  %v10413_v9 = vpack.c.bf16 %v814_v56, %v725_v24  ;;  %v14407_v32 = vsel %vm722_vm4, %v11550_v43, %v11551_v5 }
 0x107   : > { %19840 = vst [vmem:[#allocation36_spill] sm:$0xff] %v14407_v32  ;;  %v14410_v15 = vsel %vm811_vm5, %v11580_v63, %v11581_v20  ;;  %11838 = vrot.lane.b32.xlu0 %v14376_v54, %s19395_s12  ;;  %10360 = vmatprep.subr.bf16.mxu0 %v10359_v41  ;;  %v14415_v59 = vsel %vm722_vm4, %v11546_v18, %v11550_v43  ;;  %v11555_v27 = vunpack.i.l.bf16 %v14338_v62 }
 0x108   : > { %19841 = vst [vmem:[#allocation37_spill] sm:$0xff] %v14410_v15  ;;  %19842 = vst [vmem:[#allocation38_spill] sm:$0xff] %v14415_v59  ;;  %v14419_v16 = vsel %vm811_vm5, %v11575_v53, %v11576_v45  ;;  %10412 = vmatprep.subr.bf16.mxu1 %v10411_v39  ;;  %10362 = vmatpush1.bf16.msra.mxu0 %v10361_v14  ;;  %v810_v24 = vpop.permute.xlu1 %809  ;;  %v14422_v49 = vsel %vm811_vm5, %v11571_v22, %v11575_v53 }
 0x109   : > { %19843 = vst [vmem:[#allocation39_spill] sm:$0xff] %v14419_v16  ;;  %v14425_v6 = vsel %vm811_vm5, %v11576_v45, %v11580_v63  ;;  %10414 = vmatpush1.bf16.msra.mxu1 %v10413_v9  ;;  %v11584_v8 = vpop.permute.xlu0 %11583  ;;  %v14443_v22 = vsel %vm722_vm4, %v11551_v5, %v11555_v27  ;;  %v14449_v57 = vsel %vm722_vm4, %v11555_v27, %v11556_v42 }
 0x10a   : > { %19844 = vst [vmem:[#allocation40_spill] sm:$0xff] %v14425_v6  ;;  %v11586_v18 = vunpack.i.h.bf16 %v11584_v8  ;;  %v11585_v53 = vunpack.i.l.bf16 %v11584_v8  ;;  %11853 = vrot.lane.b32.xlu1 %v14346_v0, %s19368_s14  ;;  %19846 = vst [vmem:[#allocation42_spill] sm:$0xff] %v14443_v22  ;;  %v14453_v56 = vsel %vm722_vm4, %v11556_v42, %v14358_v29  ;;  %vm19412_vm4 = vcmask 613376  }
 0x10b   : > { %11848 = vrot.lane.b32.xlu0 %v14346_v0, %s19366_s26  ;;  %19848 = vst [vmem:[#allocation44_spill] sm:$0xff] %v14449_v57  ;;  %19849 = vst [vmem:[#allocation45_spill] sm:$0xff] %v14453_v56 }
 0x10c   : > { %v14440_v9 = vsel %vm811_vm5, %v11585_v53, %v11586_v18  ;;  %v11594_v45 = vpop.permute.xlu1 %11593  ;;  %v14446_v51 = vsel %vm811_vm5, %v11581_v20, %v11585_v53  ;;  %v14458_v14 = vsel %vm811_vm5, %v11586_v18, %v810_v24  ;;  %vm19413_vm5 = vcmask 605184  }
 0x10d   : > { %19845 = vst [vmem:[#allocation41_spill] sm:$0xff] %v14440_v9  ;;  %19847 = vst [vmem:[#allocation43_spill] sm:$0xff] %v14446_v51  ;;  %v11589_v63 = vpop.permute.xlu0 %11588  ;;  %v11595_v53 = vunpack.i.l.bf16 %v11594_v45  ;;  %v11596_v2 = vunpack.i.h.bf16 %v11594_v45 }
 0x10e   : > { %19850 = vst [vmem:[#allocation46_spill] sm:$0xff] %v14458_v14  ;;  %11863 = vrot.lane.b32.xlu1 %v14370_v11, %s19368_s14  ;;  %v11591_v20 = vunpack.i.h.bf16 %v11589_v63  ;;  %v11590_v43 = vunpack.i.l.bf16 %v11589_v63 }
 0x10f   : > { %11858 = vrot.lane.b32.xlu0 %v14370_v11, %s19366_s26 }
 0x110   : > { %v14468_v29 = vpop.permute.xlu1 %11603  ;;  %v901_v33 = vsel %vm19558_vm6, %v11590_v43, %v11591_v20 }
 0x111   : > { %v14470_v42 = vpop.permute.xlu0 %11598 }
 0x112   : > { %11873 = vrot.lane.b32.xlu1 %v14376_v54, %s19368_s14  ;;  %v19357_v5 = vunpack.i.h.bf16 %v14470_v42  ;;  %v11600_v39 = vunpack.i.l.bf16 %v14470_v42  ;;  %s19869_s14 = smov 61  }
 0x113   : > { %11868 = vrot.lane.b32.xlu0 %v14376_v54, %s19366_s26  ;;  %s19447_s26 = smov 45  }
 0x114   : > { %v14476_v27 = vpop.permute.xlu1 %11613  ;;  %v14502_v32 = vsel %vm19558_vm6, %v11600_v39, %v19357_v5  ;;  %v904_v63 = vsel %vm19558_vm6, %v11596_v2, %v11600_v39  ;;  %v903_v39 = vsel %vm19558_vm6, %v11595_v53, %v11596_v2 }
 0x115   : > { %19851 = vst [vmem:[#allocation47_spill] sm:$0xff] %v14476_v27  ;;  %v14478_v24 = vpop.permute.xlu0 %11608  ;;  %19853 = vst [vmem:[#allocation49_spill] sm:$0xff] %v14502_v32 }
 0x116   : > { %11883 = vrot.lane.b32.xlu1 %v14346_v0, %s19364_s7 }
 0x117   : > { %11878 = vrot.lane.b32.xlu0 %v14346_v0, %s19362_s13 }
 0x118   : > { %v11619_v8 = vpop.permute.xlu1 %11618 }
 0x119   : > { %v14484_v18 = vpop.permute.xlu0 %898  ;;  %v11621_v7 = vunpack.i.h.bf16 %v11619_v8  ;;  %v11620_v62 = vunpack.i.l.bf16 %v11619_v8  ;;  %v902_v8 = vsel %vm19558_vm6, %v11591_v20, %v11595_v53  ;;  %v14570_v20 = vld [vmem:[%s14006_s16 + $0x68] sm:$0xff] }
 0x11a   : > { %19852 = vst [vmem:[#allocation48_spill] sm:$0xff] %v14484_v18  ;;  %11893 = vrot.lane.b32.xlu1 %v14370_v11, %s19364_s7 }
 0x11b   : > { %11888 = vrot.lane.b32.xlu0 %v14370_v11, %s19362_s13 }
 0x11c   : > { %v14492_v41 = vpop.permute.xlu1 %11628 }
 0x11d   : > { %v19359_v57 = vunpack.i.h.bf16 %v14492_v41  ;;  %v11630_v9 = vunpack.i.l.bf16 %v14492_v41  ;;  %v11624_v18 = vpop.permute.xlu0 %11623 }
 0x11e   : > { %v11626_v56 = vunpack.i.h.bf16 %v11624_v18  ;;  %v11625_v14 = vunpack.i.l.bf16 %v11624_v18  ;;  %11903 = vrot.lane.b32.xlu1 %v14376_v54, %s19364_s7  ;;  %v990_v18 = vsel %vm989_vm7, %v11620_v62, %v11621_v7  ;;  %s13819_s7 = smov 47  }
 0x11f   : > { %v14507_v45 = vsel %vm989_vm7, %v11630_v9, %v19359_v57  ;;  %11898 = vrot.lane.b32.xlu0 %v14376_v54, %s19362_s13  ;;  %s13818_s13 = smov 46   ;;  %v10365_v62 = vpack.c.bf16 %v990_v18, %v901_v33  ;;  %v14539_v33 = vld [vmem:[%s19330_s2 + $0x8] sm:$0xff] }
 0x120   : > { %19854 = vst [vmem:[#allocation50_spill] sm:$0xff] %v14507_v45  ;;  %v14513_v15 = vpop.permute.xlu1 %11638  ;;  %v991_v22 = vsel %vm989_vm7, %v11621_v7, %v11625_v14  ;;  %v993_v51 = vsel %vm989_vm7, %v11626_v56, %v11630_v9  ;;  %v992_v5 = vsel %vm989_vm7, %v11625_v14, %v11626_v56  ;;  %10320 = vmatprep.mubr.msk.f32.mxu0 %vm2984_vm8, %v14539_v33 }
 0x121   : > { %v14520_v57 = vpop.permute.xlu0 %11633  ;;  %v10363_v38 = vpack.c.bf16 %v991_v22, %v902_v8  ;;  %v10415_v44 = vpack.c.bf16 %v993_v51, %v904_v63  ;;  %v10417_v7 = vpack.c.bf16 %v992_v5, %v903_v39  ;;  %10321 = vmatprep.mubr.msk.f32.mxu1 %vm2984_vm8, %v14539_v33  ;;  %v14567_v5 = vld [vmem:[%s14006_s16 + $0x60] sm:$0xff] }
 0x122   : > { %11913 = vrot.lane.b32.xlu1 %v14346_v0, %s13818_s13 }
 0x123   : > { %11908 = vrot.lane.b32.xlu0 %v14346_v0, %s13819_s7  ;;  %10364 = vmatprep.subr.bf16.mxu0 %v10363_v38 }
 0x124   : > { %10416 = vmatprep.subr.bf16.mxu1 %v10415_v44  ;;  %10366 = vmatpush1.bf16.msra.mxu0 %v10365_v62  ;;  %v14528_v9 = vpop.permute.xlu1 %987 }
 0x125   : > { %19855 = vst [vmem:[#allocation51_spill] sm:$0xff] %v14528_v9  ;;  %10418 = vmatpush1.bf16.msra.mxu1 %v10417_v7  ;;  %v14530_v22 = vpop.permute.xlu0 %11643 }
 0x126   : > { %19856 = vst [vmem:[#allocation52_spill] sm:$0xff] %v14530_v22  ;;  %11923 = vrot.lane.b32.xlu1 %v14370_v11, %s13818_s13  ;;  %v14588_v22 = vpack.i.bf16 %v14567_v5, %v14364_v37 }
 0x127   : > { %11918 = vrot.lane.b32.xlu0 %v14370_v11, %s13819_s7 }
 0x128   : > { %v11654_v38 = vpop.permute.xlu1 %11653 }
 0x129   : > { %v11649_v44 = vpop.permute.xlu0 %11648  ;;  %v11656_v53 = vunpack.i.h.bf16 %v11654_v38  ;;  %v11655_v8 = vunpack.i.l.bf16 %v11654_v38 }
 0x12a   : > { %11933 = vrot.lane.b32.xlu1 %v14376_v54, %s13818_s13  ;;  %v11651_v63 = vunpack.i.h.bf16 %v11649_v44  ;;  %v11650_v39 = vunpack.i.l.bf16 %v11649_v44 }
 0x12b   : > { %11928 = vrot.lane.b32.xlu0 %v14376_v54, %s13819_s7 }
 0x12c   : > { %v14549_v0 = vpop.permute.xlu1 %11663  ;;  %v1080_v44 = vsel %vm1078_vm9, %v11651_v63, %v11655_v8 }
 0x12d   : > { %v11659_v11 = vpop.permute.xlu0 %11658  ;;  %v11666_v62 = vunpack.i.h.bf16 %v14549_v0  ;;  %v11665_v7 = vunpack.i.l.bf16 %v14549_v0  ;;  %v1081_v0 = vsel %vm1078_vm9, %v11655_v8, %v11656_v53 }
 0x12e   : > { %v11661_v2 = vunpack.i.h.bf16 %v11659_v11  ;;  %v11660_v43 = vunpack.i.l.bf16 %v11659_v11  ;;  %2593 = vrot.lane.b32.xlu1 %v14333_v61, %s19447_s26 }
 0x12f   : > { %2591 = vrot.lane.b32.xlu0 %v14330_v58, %s19447_s26  ;;  %v14591_v3 = vsel %vm1078_vm9, %v11665_v7, %v11666_v62 }
 0x130   : > { %v14556_v51 = vsel %vm1078_vm9, %v11660_v43, %v11661_v2  ;;  %v14558_v56 = vpop.permute.xlu1 %11673  ;;  %19857 = vst [vmem:[#allocation53_spill] sm:$0xff] %v14591_v3  ;;  %v1082_v32 = vsel %vm1078_vm9, %v11656_v53, %v11660_v43  ;;  %v14598_v8 = vsel %vm1078_vm9, %v11661_v2, %v11665_v7 }
 0x131   : > { %v14560_v14 = vpop.permute.xlu0 %11668 }
 0x132   : > { %2595 = vrot.lane.b32.xlu1 %v14354_v1, %s19447_s26  ;;  %v14580_v1 = vpack.i.bf16 %v14570_v20, %v14567_v5  ;;  %v11671_v45 = vunpack.i.h.bf16 %v14560_v14  ;;  %v11670_v59 = vunpack.i.l.bf16 %v14560_v14 }
 0x133   : > { %2589 = vrot.lane.b32.xlu0 %v14351_v25, %s19447_s26 }
 0x134   : > { %v11679_v18 = vpop.permute.xlu1 %11678 }
 0x135   : > { %v14574_v11 = vpop.permute.xlu0 %1076  ;;  %v11681_v27 = vunpack.i.h.bf16 %v11679_v18  ;;  %v11680_v9 = vunpack.i.l.bf16 %v11679_v18  ;;  %v1079_v18 = vsel %vm1078_vm9, %v11650_v39, %v11651_v63 }
 0x136   : > { %11938 = vrot.lane.b32.xlu1 %v14376_v54, %s19449_s28 }
 0x137   : > { %2597 = vrot.lane.b32.xlu0 %v14361_v36, %s19447_s26 }
 0x138   : > { %v11689_v38 = vpop.permute.xlu1 %11688 }
 0x139   : > { %v11691_v30 = vunpack.i.h.bf16 %v11689_v38  ;;  %v11690_v4 = vunpack.i.l.bf16 %v11689_v38  ;;  %v11684_v35 = vpop.permute.xlu0 %11683 }
 0x13a   : > { %v11686_v16 = vunpack.i.h.bf16 %v11684_v35  ;;  %v11685_v36 = vunpack.i.l.bf16 %v11684_v35  ;;  %11948 = vrot.lane.b32.xlu1 %v14580_v1, %s19449_s28  ;;  %v1168_v35 = vsel %vm1167_vm10, %v11680_v9, %v11681_v27 }
 0x13b   : > { %v14603_v6 = vsel %vm1167_vm10, %v11690_v4, %v11691_v30  ;;  %11943 = vrot.lane.b32.xlu0 %v14580_v1, %s13805_s17  ;;  %v10369_v9 = vpack.c.bf16 %v1168_v35, %v1079_v18  ;;  %v11676_v18 = vunpack.i.h.bf16 %v14558_v56 }
 0x13c   : > { %v11699_v63 = vpop.permute.xlu1 %11698  ;;  %v1169_v39 = vsel %vm1167_vm10, %v11681_v27, %v11685_v36  ;;  %v1171_v43 = vsel %vm1167_vm10, %v11686_v16, %v11690_v4  ;;  %v1170_v2 = vsel %vm1167_vm10, %v11685_v36, %v11686_v16  ;;  %v11675_v4 = vunpack.i.l.bf16 %v14558_v56 }
 0x13d   : > { %v11701_v14 = vunpack.i.h.bf16 %v11699_v63  ;;  %v11700_v7 = vunpack.i.l.bf16 %v11699_v63  ;;  %v11694_v38 = vpop.permute.xlu0 %11693  ;;  %v10367_v10 = vpack.c.bf16 %v1169_v39, %v1080_v44  ;;  %v10419_v19 = vpack.c.bf16 %v1171_v43, %v1082_v32  ;;  %v14625_v32 = vld [vmem:[%s14006_s16 + $0x70] sm:$0xff] }
 0x13e   : > { %v11696_v13 = vunpack.i.h.bf16 %v11694_v38  ;;  %v11695_v47 = vunpack.i.l.bf16 %v11694_v38  ;;  %11958 = vrot.lane.b32.xlu1 %v14580_v1, %s13807_s15  ;;  %v10421_v27 = vpack.c.bf16 %v1170_v2, %v1081_v0  ;;  %v14617_v16 = vsel %vm1078_vm9, %v11670_v59, %v11671_v45 }
 0x13f   : > { %19858 = vst [vmem:[#allocation54_spill] sm:$0xff] %v14617_v16  ;;  %v14620_v36 = vsel %vm1167_vm10, %v11700_v7, %v11701_v14  ;;  %11953 = vrot.lane.b32.xlu0 %v14376_v54, %s13807_s15  ;;  %10368 = vmatprep.subr.bf16.mxu0 %v10367_v10  ;;  %v14628_v44 = vsel %vm1078_vm9, %v11666_v62, %v11670_v59 }
 0x140   : > { %19859 = vst [vmem:[#allocation55_spill] sm:$0xff] %v14620_v36  ;;  %19860 = vst [vmem:[#allocation56_spill] sm:$0xff] %v14628_v44  ;;  %v14632_v0 = vsel %vm1167_vm10, %v11695_v47, %v11696_v13  ;;  %10420 = vmatprep.subr.bf16.mxu1 %v10419_v19  ;;  %10370 = vmatpush1.bf16.msra.mxu0 %v10369_v9  ;;  %v1166_v35 = vpop.permute.xlu1 %1165  ;;  %v14635_v63 = vsel %vm1167_vm10, %v11691_v30, %v11695_v47 }
 0x141   : > { %19861 = vst [vmem:[#allocation57_spill] sm:$0xff] %v14632_v0  ;;  %v14638_v39 = vsel %vm1167_vm10, %v11696_v13, %v11700_v7  ;;  %10422 = vmatpush1.bf16.msra.mxu1 %v10421_v27  ;;  %v11704_v10 = vpop.permute.xlu0 %11703  ;;  %v11977_v47 = vpack.i.bf16 %v14625_v32, %v14570_v20  ;;  %v14655_v13 = vsel %vm1078_vm9, %v11671_v45, %v11675_v4 }
 0x142   : > { %v11706_v62 = vunpack.i.h.bf16 %v11704_v10  ;;  %v11705_v30 = vunpack.i.l.bf16 %v11704_v10  ;;  %11968 = vrot.lane.b32.xlu1 %v14588_v22, %s19451_s18  ;;  %19862 = vst [vmem:[#allocation58_spill] sm:$0xff] %v14655_v13  ;;  %v14659_v43 = vsel %vm1078_vm9, %v11676_v18, %v14574_v11  ;;  %v14671_v27 = vsel %vm1078_vm9, %v11675_v4, %v11676_v18 }
 0x143   : > { %11963 = vrot.lane.b32.xlu0 %v14588_v22, %s13809_s19  ;;  %19863 = vst [vmem:[#allocation59_spill] sm:$0xff] %v14659_v43  ;;  %19867 = vst [vmem:[#allocation63_spill] sm:$0xff] %v14671_v27  ;;  %v14694_v27 = vld [vmem:[%s14006_s16 + $0x78] sm:$0xff]  ;;  %vm19421_vm9 = vcmask 596992  }
 0x144   : > { %v14662_v2 = vsel %vm1167_vm10, %v11705_v30, %v11706_v62  ;;  %v11714_v7 = vpop.permute.xlu1 %11713  ;;  %v14665_v38 = vsel %vm1167_vm10, %v11701_v14, %v11705_v30  ;;  %v14668_v9 = vsel %vm1167_vm10, %v11706_v62, %v1166_v35  ;;  %vm19422_vm10 = vcmask 498688  }
 0x145   : > { %19864 = vst [vmem:[#allocation60_spill] sm:$0xff] %v14662_v2  ;;  %19865 = vst [vmem:[#allocation61_spill] sm:$0xff] %v14665_v38  ;;  %v11709_v10 = vpop.permute.xlu0 %11708  ;;  %v11715_v4 = vunpack.i.l.bf16 %v11714_v7  ;;  %v11716_v59 = vunpack.i.h.bf16 %v11714_v7  ;;  %v14708_v38 = vpack.i.bf16 %v14694_v27, %v14625_v32 }
 0x146   : > { %19866 = vst [vmem:[#allocation62_spill] sm:$0xff] %v14668_v9  ;;  %11978 = vrot.lane.b32.xlu1 %v11977_v47, %s19451_s18  ;;  %v11711_v18 = vunpack.i.h.bf16 %v11709_v10  ;;  %v11710_v62 = vunpack.i.l.bf16 %v11709_v10 }
 0x147   : > { %11973 = vrot.lane.b32.xlu0 %v11977_v47, %s13809_s19 }
 0x148   : > { %v14681_v14 = vpop.permute.xlu1 %11723  ;;  %v1258_v2 = vsel %vm1256_vm11, %v11711_v18, %v11715_v4 }
 0x149   : > { %v14683_v35 = vpop.permute.xlu0 %11718 }
 0x14a   : > { %11988 = vrot.lane.b32.xlu1 %v14588_v22, %s13810_s29  ;;  %v11720_v54 = vunpack.i.l.bf16 %v14683_v35 }
 0x14b   : > { %11983 = vrot.lane.b32.xlu0 %v14588_v22, %s19399_s11 }
 0x14c   : > { %v11734_v30 = vpop.permute.xlu1 %11733 }
 0x14d   : > { %v11735_v11 = vunpack.i.l.bf16 %v11734_v30  ;;  %v11729_v19 = vpop.permute.xlu0 %11728  ;;  %v11736_v22 = vunpack.i.h.bf16 %v11734_v30 }
 0x14e   : > { %v11731_v45 = vunpack.i.h.bf16 %v11729_v19  ;;  %v11730_v56 = vunpack.i.l.bf16 %v11729_v19  ;;  %11998 = vrot.lane.b32.xlu1 %v11977_v47, %s13810_s29  ;;  %v1257_v19 = vsel %vm1256_vm11, %v11710_v62, %v11711_v18  ;;  %v19868_v18 = vunpack.i.h.bf16 %v14683_v35 }
 0x14f   : > { %11993 = vrot.lane.b32.xlu0 %v11977_v47, %s19399_s11  ;;  %s19872_s11 = smov 60  }
 0x150   : > { %v11744_v10 = vpop.permute.xlu1 %11743  ;;  %v1347_v43 = vsel %vm19554_vm12, %v11730_v56, %v11731_v45  ;;  %v1346_v9 = vsel %vm19554_vm12, %v11735_v11, %v11730_v56  ;;  %v14713_v56 = vsel %vm1256_vm11, %v11720_v54, %v19868_v18 }
 0x151   : > { %v11746_v16 = vunpack.i.h.bf16 %v11744_v10  ;;  %v11745_v7 = vunpack.i.l.bf16 %v11744_v10  ;;  %v14700_v36 = vpop.permute.xlu0 %11738  ;;  %v10371_v53 = vpack.c.bf16 %v1347_v43, %v1258_v2  ;;  %v10373_v13 = vpack.c.bf16 %v1346_v9, %v1257_v19 }
 0x152   : > { %v19392_v30 = vunpack.i.h.bf16 %v14700_v36  ;;  %v11740_v47 = vunpack.i.l.bf16 %v14700_v36  ;;  %12008 = vrot.lane.b32.xlu1 %v14580_v1, %s19397_s10  ;;  %v1348_v2 = vsel %vm19554_vm12, %v11731_v45, %v11736_v22  ;;  %v1260_v10 = vsel %vm1256_vm11, %v11716_v59, %v11720_v54 }
 0x153   : > { %12003 = vrot.lane.b32.xlu0 %v14580_v1, %s19395_s12  ;;  %10372 = vmatprep.subr.bf16.mxu0 %v10371_v53  ;;  %v1436_v43 = vsel %vm19435_vm13, %v11745_v7, %v11746_v16  ;;  %v1259_v45 = vsel %vm1256_vm11, %v11715_v4, %v11716_v59 }
 0x154   : > { %v14722_v9 = vsel %vm19554_vm12, %v11740_v47, %v19392_v30  ;;  %10374 = vmatpush1.bf16.msra.mxu0 %v10373_v13  ;;  %v14724_v11 = vpop.permute.xlu1 %11753  ;;  %v10375_v62 = vpack.c.bf16 %v14351_v25, %v1436_v43  ;;  %v1349_v19 = vsel %vm19554_vm12, %v11736_v22, %v11740_v47  ;;  %v10425_v25 = vpack.c.bf16 %v1348_v2, %v1259_v45  ;;  %v1471_v13 = vld [vmem:[%s14006_s16 + $0x28] sm:$0xff] }
 0x155   : > { %v19404_v53 = vunpack.i.l.bf16 %v14724_v11  ;;  %v11749_v18 = vpop.permute.xlu0 %11748  ;;  %v10423_v3 = vpack.c.bf16 %v1349_v19, %v1260_v10 }
 0x156   : > { %v11751_v0 = vunpack.i.h.bf16 %v11749_v18  ;;  %v11750_v44 = vunpack.i.l.bf16 %v11749_v18  ;;  %12018 = vrot.lane.b32.xlu1 %v14708_v38, %s19397_s10  ;;  %10376 = vmatprep.subr.bf16.mxu0 %v10375_v62  ;;  %s19871_s10 = smov 59  }
 0x157   : > { %12013 = vrot.lane.b32.xlu0 %v14708_v38, %s19395_s12  ;;  %10424 = vmatprep.subr.bf16.mxu1 %v10423_v3  ;;  %s19870_s12 = smov 73  }
 0x158   : > { %10426 = vmatpush1.bf16.msra.mxu1 %v10425_v25  ;;  %v11764_v54 = vpop.permute.xlu1 %11763  ;;  %v1435_v59 = vsel %vm19435_vm13, %v11750_v44, %v11745_v7  ;;  %v1438_v4 = vsel %vm19435_vm13, %v11751_v0, %v19404_v53  ;;  %v1437_v22 = vsel %vm19435_vm13, %v11746_v16, %v11751_v0 }
 0x159   : > { %v11766_v47 = vunpack.i.h.bf16 %v11764_v54  ;;  %v11765_v43 = vunpack.i.l.bf16 %v11764_v54  ;;  %v11759_v2 = vpop.permute.xlu0 %11758  ;;  %v10377_v62 = vpack.c.bf16 %v1471_v13, %v1435_v59  ;;  %v10427_v10 = vpack.c.bf16 %v14333_v61, %v1438_v4 }
 0x15a   : > { %v11761_v19 = vunpack.i.h.bf16 %v11759_v2  ;;  %v11760_v3 = vunpack.i.l.bf16 %v11759_v2  ;;  %12028 = vrot.lane.b32.xlu1 %v14580_v1, %s19869_s14  ;;  %v10429_v44 = vpack.c.bf16 %v14330_v58, %v1437_v22 }
 0x15b   : > { %12023 = vrot.lane.b32.xlu0 %v14580_v1, %s19870_s12  ;;  %10378 = vmatpush1.bf16.msra.mxu0 %v10377_v62  ;;  %v1638_v16 = vsel %vm19436_vm15, %v11765_v43, %v11766_v47 }
 0x15c   : > { %10428 = vmatprep.subr.bf16.mxu1 %v10427_v10  ;;  %v11774_v0 = vpop.permute.xlu1 %11773  ;;  %v1549_v7 = vsel %vm19439_vm14, %v11760_v3, %v11761_v19 }
 0x15d   : > { %10430 = vmatpush1.bf16.msra.mxu1 %v10429_v44  ;;  %v11775_v18 = vunpack.i.l.bf16 %v11774_v0  ;;  %v11769_v61 = vpop.permute.xlu0 %11768  ;;  %v10379_v45 = vpack.c.bf16 %v1638_v16, %v1549_v7  ;;  %v11776_v25 = vunpack.i.h.bf16 %v11774_v0 }
 0x15e   : > { %v11770_v13 = vunpack.i.l.bf16 %v11769_v61  ;;  %12038 = vrot.lane.b32.xlu1 %v14708_v38, %s19869_s14  ;;  %v11771_v58 = vunpack.i.h.bf16 %v11769_v61 }
 0x15f   : > { %12033 = vrot.lane.b32.xlu0 %v14708_v38, %s19870_s12  ;;  %10380 = vmatprep.subr.bf16.mxu0 %v10379_v45  ;;  %v1637_v54 = vsel %vm19436_vm15, %v11775_v18, %v11765_v43  ;;  %v1639_v43 = vsel %vm19436_vm15, %v11766_v47, %v11776_v25 }
 0x160   : > { %v14756_v59 = vpop.permute.xlu1 %11783  ;;  %v1548_v4 = vsel %vm19439_vm14, %v11770_v13, %v11760_v3  ;;  %v1550_v7 = vsel %vm19439_vm14, %v11761_v19, %v11771_v58 }
 0x161   : > { %v19401_v22 = vunpack.i.h.bf16 %v14756_v59  ;;  %v11785_v2 = vunpack.i.l.bf16 %v14756_v59  ;;  %v14761_v62 = vpop.permute.xlu0 %11778  ;;  %v10381_v10 = vpack.c.bf16 %v1637_v54, %v1548_v4  ;;  %v10433_v19 = vpack.c.bf16 %v1639_v43, %v1550_v7 }
 0x162   : > { %v19402_v44 = vunpack.i.h.bf16 %v14761_v62  ;;  %v11780_v16 = vunpack.i.l.bf16 %v14761_v62  ;;  %12048 = vrot.lane.b32.xlu1 %v14580_v1, %s19871_s10 }
 0x163   : > { %v14771_v3 = vsel %vm19436_vm15, %v11785_v2, %v19401_v22  ;;  %12043 = vrot.lane.b32.xlu0 %v14580_v1, %s19872_s11  ;;  %10382 = vmatpush1.bf16.msra.mxu0 %v10381_v10  ;;  %v1640_v0 = vsel %vm19436_vm15, %v11776_v25, %v11785_v2 }
 0x164   : > { %v14780_v18 = vsel %vm19439_vm14, %v11780_v16, %v19402_v44  ;;  %v11794_v61 = vpop.permute.xlu1 %11793  ;;  %v1551_v47 = vsel %vm19439_vm14, %v11771_v58, %v11780_v16 }
 0x165   : > { %19873 = vst [vmem:[#allocation64_spill] sm:$0xff] %v14780_v18  ;;  %v11796_v45 = vunpack.i.h.bf16 %v11794_v61  ;;  %v11795_v13 = vunpack.i.l.bf16 %v11794_v61  ;;  %v11789_v54 = vpop.permute.xlu0 %11788  ;;  %v10431_v4 = vpack.c.bf16 %v1640_v0, %v1551_v47 }
 0x166   : > { %v11791_v25 = vunpack.i.h.bf16 %v11789_v54  ;;  %v11790_v2 = vunpack.i.l.bf16 %v11789_v54  ;;  %12058 = vrot.lane.b32.xlu1 %v14708_v38, %s19871_s10 }
 0x167   : > { %12053 = vrot.lane.b32.xlu0 %v14708_v38, %s19872_s11  ;;  %10432 = vmatprep.subr.bf16.mxu1 %v10431_v4  ;;  %v1816_v58 = vsel %vm19438_vm3, %v11795_v13, %v11796_v45 }
 0x168   : > { %10434 = vmatpush1.bf16.msra.mxu1 %v10433_v19  ;;  %v11804_v16 = vpop.permute.xlu1 %11803  ;;  %v1727_v61 = vsel %vm19437_vm2, %v11790_v2, %v11791_v25 }
 0x169   : > { %v11805_v0 = vunpack.i.l.bf16 %v11804_v16  ;;  %v11799_v47 = vpop.permute.xlu0 %11798  ;;  %v10383_v22 = vpack.c.bf16 %v1816_v58, %v1727_v61  ;;  %v11806_v10 = vunpack.i.h.bf16 %v11804_v16 }
 0x16a   : > { %v11800_v44 = vunpack.i.l.bf16 %v11799_v47  ;;  %12068 = vrot.lane.b32.xlu1 %v14580_v1, %s13818_s13  ;;  %v11801_v54 = vunpack.i.h.bf16 %v11799_v47 }
 0x16b   : > { %12063 = vrot.lane.b32.xlu0 %v14580_v1, %s13819_s7  ;;  %10384 = vmatprep.subr.bf16.mxu0 %v10383_v22  ;;  %v1815_v43 = vsel %vm19438_vm3, %v11805_v0, %v11795_v13  ;;  %v1817_v1 = vsel %vm19438_vm3, %v11796_v45, %v11806_v10 }
 0x16c   : > { %v14796_v7 = vpop.permute.xlu1 %11813  ;;  %v1726_v4 = vsel %vm19437_vm2, %v11800_v44, %v11790_v2  ;;  %v1728_v13 = vsel %vm19437_vm2, %v11791_v25, %v11801_v54 }
 0x16d   : > { %v19403_v19 = vunpack.i.h.bf16 %v14796_v7  ;;  %v11815_v58 = vunpack.i.l.bf16 %v14796_v7  ;;  %v14801_v16 = vpop.permute.xlu0 %11808  ;;  %v10385_v61 = vpack.c.bf16 %v1815_v43, %v1726_v4  ;;  %v10437_v25 = vpack.c.bf16 %v1817_v1, %v1728_v13 }
 0x16e   : > { %v19405_v30 = vunpack.i.h.bf16 %v14801_v16  ;;  %v11810_v47 = vunpack.i.l.bf16 %v14801_v16  ;;  %12078 = vrot.lane.b32.xlu1 %v14708_v38, %s13818_s13 }
 0x16f   : > { %v14811_v22 = vsel %vm19438_vm3, %v11815_v58, %v19403_v19  ;;  %12073 = vrot.lane.b32.xlu0 %v14708_v38, %s13819_s7  ;;  %10386 = vmatpush1.bf16.msra.mxu0 %v10385_v61  ;;  %v1818_v44 = vsel %vm19438_vm3, %v11806_v10, %v11815_v58 }
 0x170   : > { %19874 = vst [vmem:[#allocation65_spill] sm:$0xff] %v14811_v22  ;;  %v14820_v2 = vsel %vm19437_vm2, %v11810_v47, %v19405_v30  ;;  %v11824_v0 = vpop.permute.xlu1 %11823  ;;  %v1729_v45 = vsel %vm19437_vm2, %v11801_v54, %v11810_v47 }
 0x171   : > { %19875 = vst [vmem:[#allocation66_spill] sm:$0xff] %v14820_v2  ;;  %v11826_v43 = vunpack.i.h.bf16 %v11824_v0  ;;  %v11825_v4 = vunpack.i.l.bf16 %v11824_v0  ;;  %v11819_v19 = vpop.permute.xlu0 %11818  ;;  %v10435_v53 = vpack.c.bf16 %v1818_v44, %v1729_v45 }
 0x172   : > { %v11821_v10 = vunpack.i.h.bf16 %v11819_v19  ;;  %v11820_v58 = vunpack.i.l.bf16 %v11819_v19  ;;  %2601 = vrot.lane.b32.xlu1 %v14567_v5, %s19447_s26 }
 0x173   : > { %2599 = vrot.lane.b32.xlu0 %v14364_v37, %s19447_s26  ;;  %10436 = vmatprep.subr.bf16.mxu1 %v10435_v53  ;;  %v1994_v54 = vsel %vm19413_vm5, %v11825_v4, %v11826_v43 }
 0x174   : > { %10438 = vmatpush1.bf16.msra.mxu1 %v10437_v25  ;;  %v11834_v47 = vpop.permute.xlu1 %11833  ;;  %v1905_v0 = vsel %vm19412_vm4, %v11820_v58, %v11821_v10 }
 0x175   : > { %v11835_v44 = vunpack.i.l.bf16 %v11834_v47  ;;  %v11829_v45 = vpop.permute.xlu0 %11828  ;;  %v10387_v30 = vpack.c.bf16 %v1994_v54, %v1905_v0  ;;  %v11836_v61 = vunpack.i.h.bf16 %v11834_v47 }
 0x176   : > { %v11830_v2 = vunpack.i.l.bf16 %v11829_v45  ;;  %2605 = vrot.lane.b32.xlu1 %v14625_v32, %s19447_s26  ;;  %v11831_v5 = vunpack.i.h.bf16 %v11829_v45 }
 0x177   : > { %2603 = vrot.lane.b32.xlu0 %v14570_v20, %s19447_s26  ;;  %10388 = vmatprep.subr.bf16.mxu0 %v10387_v30  ;;  %v1993_v37 = vsel %vm19413_vm5, %v11835_v44, %v11825_v4  ;;  %v1995_v20 = vsel %vm19413_vm5, %v11826_v43, %v11836_v61 }
 0x178   : > { %v14836_v53 = vpop.permute.xlu1 %11843  ;;  %v1904_v19 = vsel %vm19412_vm4, %v11830_v2, %v11820_v58  ;;  %v14856_v2 = vld [vmem:[%s14006_s16 + $0x80] sm:$0xff]  ;;  %v1906_v58 = vsel %vm19412_vm4, %v11821_v10, %v11831_v5 }
 0x179   : > { %19876 = vst [vmem:[#allocation67_spill] sm:$0xff] %v14836_v53  ;;  %v19407_v1 = vunpack.i.h.bf16 %v14836_v53  ;;  %v11845_v13 = vunpack.i.l.bf16 %v14836_v53  ;;  %v14841_v25 = vpop.permute.xlu0 %11838  ;;  %v10389_v54 = vpack.c.bf16 %v1993_v37, %v1904_v19  ;;  %v10441_v10 = vpack.c.bf16 %v1995_v20, %v1906_v58 }
 0x17a   : > { %19877 = vst [vmem:[#allocation68_spill] sm:$0xff] %v14841_v25  ;;  %v19408_v32 = vunpack.i.h.bf16 %v14841_v25  ;;  %v11840_v47 = vunpack.i.l.bf16 %v14841_v25  ;;  %12088 = vrot.lane.b32.xlu1 %v14708_v38, %s19449_s28  ;;  %v12102_v20 = vpack.i.bf16 %v14856_v2, %v14694_v27 }
 0x17b   : > { %v14851_v30 = vsel %vm19413_vm5, %v11845_v13, %v19407_v1  ;;  %12083 = vrot.lane.b32.xlu0 %v14708_v38, %s13805_s17  ;;  %10390 = vmatpush1.bf16.msra.mxu0 %v10389_v54  ;;  %v1996_v4 = vsel %vm19413_vm5, %v11836_v61, %v11845_v13  ;;  %vm2348_vm5 = vcmask 482304  }
 0x17c   : > { %19878 = vst [vmem:[#allocation69_spill] sm:$0xff] %v14851_v30  ;;  %v14863_v0 = vsel %vm19412_vm4, %v11840_v47, %v19408_v32  ;;  %v11854_v43 = vpop.permute.xlu1 %11853  ;;  %v1907_v44 = vsel %vm19412_vm4, %v11831_v5, %v11840_v47  ;;  %vm19431_vm4 = vcmask 490496  }
 0x17d   : > { %19879 = vst [vmem:[#allocation70_spill] sm:$0xff] %v14863_v0  ;;  %v11856_v45 = vunpack.i.h.bf16 %v11854_v43  ;;  %v11855_v37 = vunpack.i.l.bf16 %v11854_v43  ;;  %v11849_v19 = vpop.permute.xlu0 %11848  ;;  %v10439_v54 = vpack.c.bf16 %v1996_v4, %v1907_v44 }
 0x17e   : > { %v11851_v61 = vunpack.i.h.bf16 %v11849_v19  ;;  %v11850_v13 = vunpack.i.l.bf16 %v11849_v19  ;;  %1343 = vrot.lane.b32.xlu1 %v14856_v2, %s19449_s28  ;;  %s19457_s28 = smov 98  }
 0x17f   : > { %1254 = vrot.lane.b32.xlu0 %v14856_v2, %s13805_s17  ;;  %10440 = vmatprep.subr.bf16.mxu1 %v10439_v54  ;;  %v2172_v5 = vsel %vm19422_vm10, %v11855_v37, %v11856_v45  ;;  %s19884_s17 = smov 114  }
 0x180   : > { %10442 = vmatpush1.bf16.msra.mxu1 %v10441_v10  ;;  %v11864_v47 = vpop.permute.xlu1 %11863  ;;  %v2083_v43 = vsel %vm19421_vm9, %v11850_v13, %v11851_v61 }
 0x181   : > { %v11865_v4 = vunpack.i.l.bf16 %v11864_v47  ;;  %v11859_v44 = vpop.permute.xlu0 %11858  ;;  %v10391_v32 = vpack.c.bf16 %v2172_v5, %v2083_v43  ;;  %v11866_v1 = vunpack.i.h.bf16 %v11864_v47 }
 0x182   : > { %v11860_v0 = vunpack.i.l.bf16 %v11859_v44  ;;  %1432 = vrot.lane.b32.xlu1 %v14856_v2, %s13807_s15  ;;  %v11861_v58 = vunpack.i.h.bf16 %v11859_v44 }
 0x183   : > { %12093 = vrot.lane.b32.xlu0 %v14708_v38, %s13807_s15  ;;  %10392 = vmatprep.subr.bf16.mxu0 %v10391_v32  ;;  %v2171_v19 = vsel %vm19422_vm10, %v11865_v4, %v11855_v37  ;;  %v2173_v38 = vsel %vm19422_vm10, %v11856_v45, %v11866_v1  ;;  %s19889_s15 = smov 74  }
 0x184   : > { %v14881_v54 = vpop.permute.xlu1 %11873  ;;  %v2082_v10 = vsel %vm19421_vm9, %v11860_v0, %v11850_v13  ;;  %v14899_v0 = vld [vmem:[%s14006_s16 + $0x88] sm:$0xff]  ;;  %v2084_v13 = vsel %vm19421_vm9, %v11851_v61, %v11861_v58 }
 0x185   : > { %19880 = vst [vmem:[#allocation71_spill] sm:$0xff] %v14881_v54  ;;  %v19414_v5 = vunpack.i.h.bf16 %v14881_v54  ;;  %v11875_v47 = vunpack.i.l.bf16 %v14881_v54  ;;  %v14886_v43 = vpop.permute.xlu0 %11868  ;;  %v10393_v30 = vpack.c.bf16 %v2171_v19, %v2082_v10  ;;  %v10445_v61 = vpack.c.bf16 %v2173_v38, %v2084_v13 }
 0x186   : > { %19881 = vst [vmem:[#allocation72_spill] sm:$0xff] %v14886_v43  ;;  %v19417_v44 = vunpack.i.h.bf16 %v14886_v43  ;;  %v11870_v22 = vunpack.i.l.bf16 %v14886_v43  ;;  %12103 = vrot.lane.b32.xlu1 %v12102_v20, %s19451_s18 }
 0x187   : > { %v14895_v32 = vsel %vm19422_vm10, %v11875_v47, %v19414_v5  ;;  %12098 = vrot.lane.b32.xlu0 %v12102_v20, %s13809_s19  ;;  %10394 = vmatpush1.bf16.msra.mxu0 %v10393_v30  ;;  %v2174_v37 = vsel %vm19422_vm10, %v11866_v1, %v11875_v47  ;;  %vm2526_vm10 = vcmask 375808  }
 0x188   : > { %19882 = vst [vmem:[#allocation73_spill] sm:$0xff] %v14895_v32  ;;  %v14906_v4 = vsel %vm19421_vm9, %v11870_v22, %v19417_v44  ;;  %v11884_v45 = vpop.permute.xlu1 %11883  ;;  %v2085_v19 = vsel %vm19421_vm9, %v11861_v58, %v11870_v22  ;;  %vm2437_vm9 = vcmask 384000  }
 0x189   : > { %19883 = vst [vmem:[#allocation74_spill] sm:$0xff] %v14906_v4  ;;  %v11886_v10 = vunpack.i.h.bf16 %v11884_v45  ;;  %v11885_v5 = vunpack.i.l.bf16 %v11884_v45  ;;  %v11879_v54 = vpop.permute.xlu0 %11878  ;;  %v10443_v30 = vpack.c.bf16 %v2174_v37, %v2085_v19 }
 0x18a   : > { %v11881_v1 = vunpack.i.h.bf16 %v11879_v54  ;;  %v11880_v47 = vunpack.i.l.bf16 %v11879_v54  ;;  %1634 = vrot.lane.b32.xlu1 %v14899_v0, %s19451_s18  ;;  %s19499_s18 = smov 100  }
 0x18b   : > { %1545 = vrot.lane.b32.xlu0 %v14899_v0, %s13809_s19  ;;  %10444 = vmatprep.subr.bf16.mxu1 %v10443_v30  ;;  %v2350_v22 = vsel %vm2348_vm5, %v11885_v5, %v11886_v10  ;;  %s19890_s19 = smov 75  }
 0x18c   : > { %10446 = vmatpush1.bf16.msra.mxu1 %v10445_v61  ;;  %v11894_v58 = vpop.permute.xlu1 %11893  ;;  %v2261_v45 = vsel %vm19431_vm4, %v11880_v47, %v11881_v1 }
 0x18d   : > { %v11895_v37 = vunpack.i.l.bf16 %v11894_v58  ;;  %v11889_v19 = vpop.permute.xlu0 %11888  ;;  %v10395_v44 = vpack.c.bf16 %v2350_v22, %v2261_v45  ;;  %v11896_v25 = vunpack.i.h.bf16 %v11894_v58 }
 0x18e   : > { %v11890_v4 = vunpack.i.l.bf16 %v11889_v19  ;;  %12113 = vrot.lane.b32.xlu1 %v12102_v20, %s13810_s29  ;;  %v11891_v54 = vunpack.i.h.bf16 %v11889_v19 }
 0x18f   : > { %12108 = vrot.lane.b32.xlu0 %v12102_v20, %s19884_s17  ;;  %10396 = vmatprep.subr.bf16.mxu0 %v10395_v44  ;;  %v2349_v38 = vsel %vm2348_vm5, %v11895_v37, %v11885_v5  ;;  %v14933_v20 = vpack.i.bf16 %v14899_v0, %v14856_v2  ;;  %v2351_v5 = vsel %vm2348_vm5, %v11886_v10, %v11896_v25 }
 0x190   : > { %v14920_v13 = vpop.permute.xlu1 %11903  ;;  %v2260_v30 = vsel %vm19431_vm4, %v11890_v4, %v11880_v47  ;;  %v2262_v47 = vsel %vm19431_vm4, %v11881_v1, %v11891_v54 }
 0x191   : > { %19885 = vst [vmem:[#allocation75_spill] sm:$0xff] %v14920_v13  ;;  %v19423_v61 = vunpack.i.h.bf16 %v14920_v13  ;;  %v11905_v32 = vunpack.i.l.bf16 %v14920_v13  ;;  %v14925_v43 = vpop.permute.xlu0 %11898  ;;  %v10397_v22 = vpack.c.bf16 %v2349_v38, %v2260_v30 }
 0x192   : > { %19886 = vst [vmem:[#allocation76_spill] sm:$0xff] %v14925_v43  ;;  %v19425_v58 = vunpack.i.h.bf16 %v14925_v43  ;;  %v11900_v45 = vunpack.i.l.bf16 %v14925_v43  ;;  %1812 = vrot.lane.b32.xlu1 %v14899_v0, %s13810_s29  ;;  %s13823_s29 = smov 36  }
 0x193   : > { %v14939_v44 = vsel %vm2348_vm5, %v11905_v32, %v19423_v61  ;;  %1723 = vrot.lane.b32.xlu0 %v14899_v0, %s19884_s17  ;;  %10398 = vmatpush1.bf16.msra.mxu0 %v10397_v22  ;;  %v2352_v4 = vsel %vm2348_vm5, %v11896_v25, %v11905_v32  ;;  %v13821_v32 = vmov 0   ;;  %s13827_s17 = smov 8  }
 0x194   : > { %19887 = vst [vmem:[#allocation77_spill] sm:$0xff] %v14939_v44  ;;  %v14948_v37 = vsel %vm19431_vm4, %v11900_v45, %v19425_v58  ;;  %v11914_v10 = vpop.permute.xlu1 %11913  ;;  %v2263_v19 = vsel %vm19431_vm4, %v11891_v54, %v11900_v45  ;;  %12157 = vset.pattern.permute.xlu0 %v13821_v32  ;;  %12158 = vset.pattern.permute.xlu1 %v13821_v32  ;;  %v14958_v54 = vld [vmem:[%s14006_s16 + $0x90] sm:$0xff]  ;;  %vm19568_vm4 = vcmask 367616  }
 0x195   : > { %19888 = vst [vmem:[#allocation78_spill] sm:$0xff] %v14948_v37  ;;  %v11916_v38 = vunpack.i.h.bf16 %v11914_v10  ;;  %v11915_v30 = vunpack.i.l.bf16 %v11914_v10  ;;  %v11909_v61 = vpop.permute.xlu0 %11908  ;;  %v10447_v13 = vpack.c.bf16 %v2352_v4, %v2263_v19  ;;  %v10449_v58 = vpack.c.bf16 %v2351_v5, %v2262_v47 }
 0x196   : > { %v11911_v1 = vunpack.i.h.bf16 %v11909_v61  ;;  %v11910_v22 = vunpack.i.l.bf16 %v11909_v61  ;;  %12123 = vrot.lane.b32.xlu1 %v14933_v20, %s19889_s15 }
 0x197   : > { %12118 = vrot.lane.b32.xlu0 %v14933_v20, %s19890_s19  ;;  %10448 = vmatprep.subr.bf16.mxu1 %v10447_v13  ;;  %v2528_v45 = vsel %vm2526_vm10, %v11915_v30, %v11916_v38 }
 0x198   : > { %10450 = vmatpush1.bf16.msra.mxu1 %v10449_v58  ;;  %v11924_v4 = vpop.permute.xlu1 %11923  ;;  %v2439_v10 = vsel %vm2437_vm9, %v11910_v22, %v11911_v1 }
 0x199   : > { %v11925_v19 = vunpack.i.l.bf16 %v11924_v4  ;;  %v11919_v32 = vpop.permute.xlu0 %11918  ;;  %v10399_v25 = vpack.c.bf16 %v2528_v45, %v2439_v10  ;;  %v11926_v5 = vunpack.i.h.bf16 %v11924_v4 }
 0x19a   : > { %v11920_v61 = vunpack.i.l.bf16 %v11919_v32  ;;  %1990 = vrot.lane.b32.xlu1 %v14958_v54, %s19889_s15  ;;  %v11921_v47 = vunpack.i.h.bf16 %v11919_v32  ;;  %s13828_s15 = smov 6  }
 0x19b   : > { %1901 = vrot.lane.b32.xlu0 %v14958_v54, %s19890_s19  ;;  %10400 = vmatprep.subr.bf16.mxu0 %v10399_v25  ;;  %v2527_v13 = vsel %vm2526_vm10, %v11925_v19, %v11915_v30  ;;  %v11455_v30 = vunpack.i.l.bf16 %v14190_v60  ;;  %s19453_s19 = smov 108  }
 0x19c   : > { %v14967_v37 = vpop.permute.xlu1 %11933  ;;  %v2438_v58 = vsel %vm2437_vm9, %v11920_v61, %v11910_v22  ;;  %v2440_v61 = vsel %vm2437_vm9, %v11911_v1, %v11921_v47  ;;  %v19892_v1 = vunpack.i.h.bf16 %v14157_v40  ;;  %v11430_v40 = vunpack.i.l.bf16 %v14144_v31 }
 0x19d   : > { %19891 = vst [vmem:[#allocation79_spill] sm:$0xff] %v14967_v37  ;;  %v19432_v44 = vunpack.i.h.bf16 %v14967_v37  ;;  %v11935_v45 = vunpack.i.l.bf16 %v14967_v37  ;;  %v14972_v10 = vpop.permute.xlu0 %11928  ;;  %v10401_v43 = vpack.c.bf16 %v2527_v13, %v2438_v58  ;;  %v2529_v13 = vsel %vm2526_vm10, %v11916_v38, %v11926_v5 }
 0x19e   : > { %v19434_v53 = vunpack.i.h.bf16 %v14972_v10  ;;  %v11930_v18 = vunpack.i.l.bf16 %v14972_v10  ;;  %12133 = vrot.lane.b32.xlu1 %v14933_v20, %s19869_s14  ;;  %v11425_v58 = vunpack.i.l.bf16 %v14138_v28  ;;  %v461_v38 = vsel %vm455_vm1, %v19892_v1, %v11455_v30 }
 0x19f   : > { %v14982_v25 = vsel %vm2526_vm10, %v11935_v45, %v19432_v44  ;;  %12128 = vrot.lane.b32.xlu0 %v14933_v20, %s19870_s12  ;;  %10402 = vmatpush1.bf16.msra.mxu0 %v10401_v43  ;;  %v2530_v22 = vsel %vm2526_vm10, %v11926_v5, %v11935_v45  ;;  %v11460_v5 = vunpack.i.l.bf16 %v14183_v55  ;;  %v19893_v43 = vunpack.i.h.bf16 %v14134_v26 }
 0x1a0   : > { %v14990_v4 = vsel %vm2437_vm9, %v11930_v18, %v19434_v53  ;;  %v2594_v19 = vpop.permute.xlu1 %2593  ;;  %v2441_v32 = vsel %vm2437_vm9, %v11921_v47, %v11930_v18  ;;  %v10453_v18 = vpack.c.bf16 %v2529_v13, %v2440_v61  ;;  %v11456_v47 = vunpack.i.h.bf16 %v14190_v60  ;;  %v15014_v61 = vld [vmem:[%s19330_s2] sm:$0xff] }
 0x1a1   : > { %v2592_v44 = vpop.permute.xlu0 %2591  ;;  %v10451_v37 = vpack.c.bf16 %v2530_v22, %v2441_v32  ;;  %v372_v53 = vsel %vm19567_vm0, %v19893_v43, %v11425_v58  ;;  %v11426_v26 = vunpack.i.h.bf16 %v14138_v28 }
 0x1a2   : > { %2168 = vrot.lane.b32.xlu1 %v14958_v54, %s19869_s14  ;;  %v2617_v45 = vsel %vm19568_vm4, %v2592_v44, %v2594_v19  ;;  %v463_v43 = vsel %vm455_vm1, %v11456_v47, %v11460_v5  ;;  %v462_v28 = vsel %vm455_vm1, %v11455_v30, %v11456_v47  ;;  %v19896_v47 = vpack.c.bf16 %v14244_v48, %v14215_v12  ;;  %s13824_s14 = smov 38  }
 0x1a3   : > { %2079 = vrot.lane.b32.xlu0 %v14958_v54, %s19870_s12  ;;  %3040 = vmatprep.subr.mxu0 %v2617_v45  ;;  %v11635_v45 = vunpack.i.l.bf16 %v14520_v57  ;;  %v19899_v12 = vunpack.i.h.bf16 %v14470_v42  ;;  %v19902_v42 = vld [vmem:[#allocation33_spill] sm:$0xff] }
 0x1a4   : > { %10452 = vmatprep.subr.bf16.mxu1 %v10451_v37  ;;  %v2596_v22 = vpop.permute.xlu1 %2595  ;;  %v10455_v37 = vpack.c.bf16 %v461_v38, %v372_v53  ;;  %v19894_v53 = vpack.c.bf16 %v14175_v50, %v14164_v46  ;;  %v374_v46 = vsel %vm19567_vm0, %v11426_v26, %v11430_v40  ;;  %v11605_v50 = vunpack.i.l.bf16 %v14468_v29 }
 0x1a5   : > { %10454 = vmatpush1.bf16.msra.mxu1 %v10453_v18  ;;  %v2590_v32 = vpop.permute.xlu0 %2589 }
 0x1a6   : > { %12143 = vrot.lane.b32.xlu1 %v14933_v20, %s19871_s10  ;;  %v2616_v60 = vsel %vm19568_vm4, %v2590_v32, %v2592_v44  ;;  %v19895_v44 = vpack.c.bf16 %v14277_v21, %v14251_v52  ;;  %v10507_v52 = vpack.c.bf16 %v463_v43, %v374_v46  ;;  %v373_v21 = vsel %vm19567_vm0, %v11425_v58, %v11426_v26 }
 0x1a7   : > { %12138 = vrot.lane.b32.xlu0 %v14933_v20, %s19872_s11  ;;  %3041 = vmatpush1.msra.mxu0 %v2616_v60  ;;  %v10509_v32 = vpack.c.bf16 %v462_v28, %v373_v21  ;;  %v19897_v60 = vunpack.i.h.bf16 %v14492_v41  ;;  %v11640_v58 = vunpack.i.l.bf16 %v14513_v15  ;;  %v906_v48 = vsel %vm19558_vm6, %v19899_v12, %v11605_v50  ;;  %v19908_v21 = vld [vmem:[#allocation38_spill] sm:$0xff]  ;;  %v19911_v12 = vld [vmem:[#allocation49_spill] sm:$0xff] }
 0x1a8   : > { %10456 = vmatprep.subr.bf16.mxu0 %v10455_v37  ;;  %v15023_v13 = vpop.permute.xlu1 %11938  ;;  %3053 = vmatmul.mubr.f32.vlgmr.msra.gmra.mrb[0].mxu0 %v15014_v61  ;;  %v19900_v41 = vpack.c.bf16 %v14280_v23, %v14270_v17  ;;  %v11606_v17 = vunpack.i.h.bf16 %v14468_v29  ;;  %v11725_v23 = vunpack.i.l.bf16 %v14681_v14 }
 0x1a9   : > { %v15030_v18 = vpop.permute.xlu0 %2597  ;;  %10458 = vmatpush1.bf16.msra.mxu0 %v19894_v53  ;;  %10322 = vmatprep.mubr.msk.f32.mxu0 %vm2984_vm8, %v14539_v33  ;;  %v2618_v33 = vsel %vm19568_vm4, %v2594_v19, %v2596_v22  ;;  %v995_v37 = vsel %vm989_vm7, %v19897_v60, %v11635_v45  ;;  %v19898_v19 = vpack.c.bf16 %v14422_v49, %v14388_v34  ;;  %v11940_v26 = vunpack.i.l.bf16 %v15023_v13  ;;  %v19901_v53 = vld [vmem:[#allocation35_spill] sm:$0xff] }
 0x1aa   : > { %10460 = vmatprep.subr.bf16.mxu0 %v19895_v44  ;;  %2346 = vrot.lane.b32.xlu1 %v14958_v54, %s19871_s10  ;;  %v2619_v1 = vsel %vm19568_vm4, %v2596_v22, %v15030_v18  ;;  %v11636_v22 = vunpack.i.h.bf16 %v14520_v57  ;;  %v10467_v49 = vpack.c.bf16 %v995_v37, %v906_v48  ;;  %v11610_v57 = vunpack.i.l.bf16 %v14478_v24  ;;  %v19904_v44 = vld [vmem:[#allocation26_spill] sm:$0xff]  ;;  %s19517_s10 = smov 102  }
 0x1ab   : > { %2257 = vrot.lane.b32.xlu0 %v14958_v54, %s19872_s11  ;;  %3111 = vmatprep.subr.mxu1 %v2619_v1  ;;  %v19903_v28 = vpack.c.bf16 %v19901_v53, %v19902_v42  ;;  %v19905_v1 = vld [vmem:[#allocation23_spill] sm:$0xff]  ;;  %v907_v42 = vsel %vm19558_vm6, %v11605_v50, %v11606_v17  ;;  %s19455_s11 = smov 106  }
 0x1ac   : > { %3112 = vmatpush1.msra.mxu1 %v2618_v33  ;;  %v15053_v30 = vpop.permute.xlu1 %11948  ;;  %v19906_v46 = vpack.c.bf16 %v19904_v44, %v19905_v1  ;;  %v997_v33 = vsel %vm989_vm7, %v11636_v22, %v11640_v58 }
 0x1ad   : > { %v15055_v38 = vpop.permute.xlu0 %11943  ;;  %10462 = vmatpush1.bf16.msra.mxu0 %v19896_v47  ;;  %10508 = vmatprep.subr.bf16.mxu1 %v10507_v52  ;;  %v19907_v52 = vld [vmem:[#allocation40_spill] sm:$0xff]  ;;  %v11950_v44 = vunpack.i.l.bf16 %v15053_v30 }
 0x1ae   : > { %3124 = vmatmul.mubr.f32.vlgmr.msra.gmra.mrb[0].mxu1 %v15014_v61  ;;  %10464 = vmatprep.subr.bf16.mxu0 %v19898_v19  ;;  %v19909_v29 = vpack.c.bf16 %v19907_v52, %v19908_v21  ;;  %v19910_v19 = vld [vmem:[#allocation50_spill] sm:$0xff]  ;;  %v11945_v1 = vunpack.i.l.bf16 %v15055_v38 }
 0x1af   : > { %10510 = vmatpush1.bf16.msra.mxu1 %v10509_v32  ;;  %12153 = vrot.lane.b32.xlu1 %v14933_v20, %s13818_s13  ;;  %v996_v32 = vsel %vm989_vm7, %v11635_v45, %v11636_v22  ;;  %v19912_v48 = vpack.c.bf16 %v19910_v19, %v19911_v12  ;;  %v19914_v45 = vpack.c.bf16 %v14635_v63, %v14598_v8  ;;  %v19916_v52 = vld [vmem:[#allocation34_spill] sm:$0xff]  ;;  %v11726_v63 = vunpack.i.h.bf16 %v14681_v14  ;;  %v1476_v14 = vld [vmem:[%s14006_s16 + $0x50] sm:$0xff] }
 0x1b0   : > { %12148 = vrot.lane.b32.xlu0 %v14933_v20, %s13819_s7  ;;  %10512 = vmatprep.subr.bf16.mxu1 %v19900_v41  ;;  %v15079_v34 = vpop.permute.xlu1 %11958  ;;  %v15091_v20 = vld [vmem:[%s19330_s2 + $0x8] sm:$0xff]  ;;  %v908_v41 = vsel %vm19558_vm6, %v11606_v17, %v11610_v57 }
 0x1b1   : > { %v15083_v43 = vpop.permute.xlu0 %11953  ;;  %10466 = vmatpush1.bf16.msra.mxu0 %v19903_v28  ;;  %10323 = vmatprep.mubr.msk.f32.mxu1 %vm2984_vm8, %v15091_v20  ;;  %v10519_v22 = vpack.c.bf16 %v997_v33, %v908_v41  ;;  %v11756_v28 = vunpack.i.h.bf16 %v14724_v11  ;;  %v10521_v33 = vpack.c.bf16 %v996_v32, %v907_v42  ;;  %v11960_v32 = vunpack.i.l.bf16 %v15079_v34 }
 0x1b2   : > { %10468 = vmatprep.subr.bf16.mxu0 %v10467_v49  ;;  %v11955_v60 = vunpack.i.l.bf16 %v15083_v43  ;;  %v19913_v49 = vunpack.i.h.bf16 %v14700_v36  ;;  %v19918_v36 = vunpack.i.h.bf16 %v14683_v35  ;;  %v19919_v35 = vpack.c.bf16 %v14603_v6, %v14556_v51 }
 0x1b3   : > { %10514 = vmatpush1.bf16.msra.mxu1 %v19906_v46  ;;  %2524 = vrot.lane.b32.xlu1 %v14958_v54, %s13818_s13  ;;  %v19915_v46 = vld [vmem:[#allocation39_spill] sm:$0xff]  ;;  %v1264_v6 = vsel %vm1256_vm11, %v11726_v63, %v11945_v1  ;;  %s19471_s13 = smov 10  }
 0x1b4   : > { %2435 = vrot.lane.b32.xlu0 %v14958_v54, %s13819_s7  ;;  %10516 = vmatprep.subr.bf16.mxu1 %v19909_v29  ;;  %v15110_v47 = vpop.permute.xlu1 %11968  ;;  %v1351_v53 = vsel %vm19554_vm12, %v19913_v49, %v11940_v26  ;;  %v19917_v21 = vpack.c.bf16 %v19915_v46, %v19916_v52  ;;  %v1262_v8 = vsel %vm1256_vm11, %v19918_v36, %v11725_v23  ;;  %v11941_v29 = vunpack.i.h.bf16 %v15023_v13  ;;  %v19921_v49 = vld [vmem:[#allocation56_spill] sm:$0xff]  ;;  %s19495_s7 = smov 34  }
 0x1b5   : > { %v15114_v37 = vpop.permute.xlu0 %11963  ;;  %10470 = vmatpush1.bf16.msra.mxu0 %v19912_v48  ;;  %v10475_v17 = vpack.c.bf16 %v1351_v53, %v1262_v8  ;;  %v11970_v19 = vunpack.i.l.bf16 %v15110_v47  ;;  %v11956_v13 = vunpack.i.h.bf16 %v15083_v43  ;;  %v19920_v48 = vunpack.i.l.bf16 %v14724_v11 }
 0x1b6   : > { %10472 = vmatprep.subr.bf16.mxu0 %v19914_v45  ;;  %v1353_v51 = vsel %vm19554_vm12, %v11941_v29, %v11950_v44  ;;  %v19922_v53 = vpack.c.bf16 %v14638_v39, %v19921_v49  ;;  %v1475_v45 = vld [vmem:[%s14006_s16 + $0x48] sm:$0xff]  ;;  %v19923_v11 = vpack.c.bf16 %v14722_v9, %v14713_v56  ;;  %v19925_v39 = vunpack.i.h.bf16 %v14756_v59 }
 0x1b7   : > { %10518 = vmatpush1.bf16.msra.mxu1 %v19917_v21  ;;  %2609 = vrot.lane.b32.xlu1 %v14856_v2, %s19447_s26  ;;  %v11965_v2 = vunpack.i.l.bf16 %v15114_v37  ;;  %v1439_v41 = vsel %vm19435_vm13, %v19920_v48, %v11756_v28  ;;  %v1263_v36 = vsel %vm1256_vm11, %v11725_v23, %v11726_v63  ;;  %v10527_v9 = vpack.c.bf16 %v1353_v51, %v1264_v6 }
 0x1b8   : > { %2607 = vrot.lane.b32.xlu0 %v14694_v27, %s19447_s26  ;;  %10520 = vmatprep.subr.bf16.mxu1 %v10519_v22  ;;  %v15143_v50 = vpop.permute.xlu1 %11978  ;;  %v1440_v27 = vsel %vm19435_vm13, %v11756_v28, %v11955_v60  ;;  %v1352_v22 = vsel %vm19554_vm12, %v11940_v26, %v11941_v29  ;;  %v1642_v21 = vsel %vm19436_vm15, %v19925_v39, %v11970_v19  ;;  %v2978_v26 = vld [vmem:[%s19331_s3] sm:$0xff]  ;;  %v11971_v6 = vunpack.i.h.bf16 %v15110_v47 }
 0x1b9   : > { %v15148_v12 = vpop.permute.xlu0 %11973  ;;  %10474 = vmatpush1.bf16.msra.mxu0 %v19919_v35  ;;  %v10479_v42 = vpack.c.bf16 %v1476_v14, %v1440_v27  ;;  %v11980_v8 = vunpack.i.l.bf16 %v15143_v50  ;;  %v10481_v59 = vpack.c.bf16 %v1475_v45, %v1439_v41  ;;  %v1442_v35 = vsel %vm19435_vm13, %v11956_v13, %v11960_v32  ;;  %v1478_v27 = vld [vmem:[%s14006_s16 + $0x60] sm:$0xff] }
 0x1ba   : > { %10476 = vmatprep.subr.bf16.mxu0 %v10475_v17  ;;  %v19926_v17 = vld [vmem:[#allocation57_spill] sm:$0xff]  ;;  %v10529_v14 = vpack.c.bf16 %v1352_v22, %v1263_v36  ;;  %v11966_v51 = vunpack.i.h.bf16 %v15114_v37  ;;  %v19929_v41 = vunpack.i.h.bf16 %v14801_v16  ;;  %v3608_v45 = vld [vmem:[%s19333_s5] sm:$0xff]  ;;  %v1441_v22 = vsel %vm19435_vm13, %v11955_v60, %v11956_v13 }
 0x1bb   : > { %10522 = vmatpush1.bf16.msra.mxu1 %v10521_v33  ;;  %2613 = vrot.lane.b32.xlu1 %v14958_v54, %s19447_s26  ;;  %v19927_v33 = vld [vmem:[#allocation53_spill] sm:$0xff]  ;;  %v1644_v39 = vsel %vm19436_vm15, %v11971_v6, %v11980_v8  ;;  %vm19935_vm13 = vcmask 605184  }
 0x1bc   : > { %2611 = vrot.lane.b32.xlu0 %v14899_v0, %s19447_s26  ;;  %10524 = vmatprep.subr.bf16.mxu1 %v19922_v53  ;;  %v11989_v54 = vpop.permute.xlu1 %11988  ;;  %v19924_v0 = vunpack.i.h.bf16 %v14761_v62  ;;  %v11975_v62 = vunpack.i.l.bf16 %v15148_v12  ;;  %v19928_v29 = vpack.c.bf16 %v19926_v17, %v19927_v33  ;;  %v19930_v53 = vunpack.i.h.bf16 %v14796_v7  ;;  %v19931_v33 = vld [vmem:[#allocation64_spill] sm:$0xff]  ;;  %s19531_s26 = smov 126  }
 0x1bd   : > { %v11990_v46 = vunpack.i.l.bf16 %v11989_v54  ;;  %v11984_v52 = vpop.permute.xlu0 %11983  ;;  %10478 = vmatpush1.bf16.msra.mxu0 %v19923_v11  ;;  %v10531_v11 = vpack.c.bf16 %v1478_v27, %v1442_v35  ;;  %v1554_v36 = vsel %vm19439_vm14, %v11965_v2, %v11966_v51  ;;  %v19933_v35 = vld [vmem:[#allocation67_spill] sm:$0xff] }
 0x1be   : > { %v1553_v28 = vsel %vm19439_vm14, %v19924_v0, %v11965_v2  ;;  %v11985_v56 = vunpack.i.l.bf16 %v11984_v52  ;;  %10480 = vmatprep.subr.bf16.mxu0 %v10479_v42  ;;  %v1477_v0 = vld [vmem:[%s14006_s16 + $0x58] sm:$0xff]  ;;  %v1555_v7 = vsel %vm19439_vm14, %v11966_v51, %v11975_v62  ;;  %v11986_v43 = vunpack.i.h.bf16 %v11984_v52 }
 0x1bf   : > { %10526 = vmatpush1.bf16.msra.mxu1 %v19928_v29  ;;  %v10483_v63 = vpack.c.bf16 %v1642_v21, %v1553_v28  ;;  %v1820_v42 = vsel %vm19438_vm3, %v19930_v53, %v11990_v46  ;;  %v11991_v21 = vunpack.i.h.bf16 %v11989_v54  ;;  %v19932_v29 = vpack.c.bf16 %v14771_v3, %v19931_v33 }
 0x1c0   : > { %10528 = vmatprep.subr.bf16.mxu1 %v10527_v9  ;;  %v15203_v23 = vpop.permute.xlu1 %11998  ;;  %2981 = vperm.xlu0 %12157, %v2978_v26   ;;  %v1731_v49 = vsel %vm19437_vm2, %v19929_v41, %v11985_v56  ;;  %v1643_v26 = vsel %vm19436_vm15, %v11970_v19, %v11971_v6  ;;  %v10533_v54 = vpack.c.bf16 %v1477_v0, %v1441_v22  ;;  %v19934_v27 = vunpack.i.h.bf16 %v19933_v35  ;;  %v19936_v6 = vld [vmem:[#allocation68_spill] sm:$0xff]  ;;  %v19939_v22 = vld [vmem:[#allocation65_spill] sm:$0xff] }
 0x1c1   : > { %v15207_v48 = vpop.permute.xlu0 %11993  ;;  %10482 = vmatpush1.bf16.msra.mxu0 %v10481_v59  ;;  %v12000_v28 = vunpack.i.l.bf16 %v15203_v23  ;;  %v10487_v13 = vpack.c.bf16 %v1820_v42, %v1731_v49  ;;  %v10535_v59 = vpack.c.bf16 %v1644_v39, %v1555_v7  ;;  %v1821_v3 = vsel %vm19438_vm3, %v11990_v46, %v11991_v21 }
 0x1c2   : > { %10484 = vmatprep.subr.bf16.mxu0 %v10483_v63  ;;  %v11995_v16 = vunpack.i.l.bf16 %v15207_v48  ;;  %v1732_v2 = vsel %vm19437_vm2, %v11985_v56, %v11986_v43  ;;  %v19937_v51 = vunpack.i.h.bf16 %v19936_v6  ;;  %vm19938_vm15 = vcmask 613376  }
 0x1c3   : > { %10530 = vmatpush1.bf16.msra.mxu1 %v10529_v14  ;;  %v1822_v19 = vsel %vm19438_vm3, %v11991_v21, %v12000_v28  ;;  %v10537_v14 = vpack.c.bf16 %v1643_v26, %v1554_v36  ;;  %v10541_v35 = vpack.c.bf16 %v1821_v3, %v1732_v2  ;;  %v19952_v3 = vld [vmem:[#allocation72_spill] sm:$0xff] }
 0x1c4   : > { %10532 = vmatprep.subr.bf16.mxu1 %v10531_v11  ;;  %v12009_v60 = vpop.permute.xlu1 %12008  ;;  %3611 = vperm.xlu0 %12157, %v3608_v45   ;;  %v1733_v37 = vsel %vm19437_vm2, %v11986_v43, %v11995_v16  ;;  %v19940_v11 = vld [vmem:[#allocation66_spill] sm:$0xff]  ;;  %vm19943_vm2 = vcmask 613376   ;;  %v19953_v2 = vunpack.i.h.bf16 %v19952_v3 }
 0x1c5   : > { %v12010_v9 = vunpack.i.l.bf16 %v12009_v60  ;;  %v12004_v17 = vpop.permute.xlu0 %12003  ;;  %10486 = vmatpush1.bf16.msra.mxu0 %v19932_v29  ;;  %v12011_v49 = vunpack.i.h.bf16 %v12009_v60  ;;  %v19941_v46 = vpack.c.bf16 %v19939_v22, %v19940_v11  ;;  %v10539_v21 = vpack.c.bf16 %v1822_v19, %v1733_v37  ;;  %vm19944_vm3 = vmmov %vm19943_vm2  ;;  %v19945_v29 = vld [vmem:[#allocation69_spill] sm:$0xff] }
 0x1c6   : > { %v12005_v52 = vunpack.i.l.bf16 %v12004_v17  ;;  %10488 = vmatprep.subr.bf16.mxu0 %v10487_v13  ;;  %v12006_v0 = vunpack.i.h.bf16 %v12004_v17 }
 0x1c7   : > { %10534 = vmatpush1.bf16.msra.mxu1 %v10533_v54  ;;  %v1998_v47 = vsel %vm19935_vm13, %v19934_v27, %v12010_v9  ;;  %v19946_v54 = vld [vmem:[#allocation70_spill] sm:$0xff]  ;;  %v1999_v37 = vsel %vm19935_vm13, %v12010_v9, %v12011_v49 }
 0x1c8   : > { %10536 = vmatprep.subr.bf16.mxu1 %v10535_v59  ;;  %v15250_v63 = vpop.permute.xlu1 %12018  ;;  %v1909_v41 = vsel %vm19938_vm15, %v19937_v51, %v12005_v52  ;;  %vm19942_vm15 = vmmov %vm19935_vm13  ;;  %v19947_v59 = vpack.c.bf16 %v19945_v29, %v19946_v54  ;;  %v19960_v54 = vld [vmem:[#allocation74_spill] sm:$0xff] }
 0x1c9   : > { %v12021_v53 = vunpack.i.h.bf16 %v15250_v63  ;;  %v12020_v42 = vunpack.i.l.bf16 %v15250_v63  ;;  %v15257_v45 = vpop.permute.xlu0 %12013  ;;  %10490 = vmatpush1.bf16.msra.mxu0 %v19941_v46  ;;  %v10491_v56 = vpack.c.bf16 %v1998_v47, %v1909_v41  ;;  %v19949_v41 = vld [vmem:[#allocation71_spill] sm:$0xff] }
 0x1ca   : > { %v19444_v7 = vunpack.i.h.bf16 %v15257_v45  ;;  %v12015_v39 = vunpack.i.l.bf16 %v15257_v45 }
 0x1cb   : > { %v15267_v43 = vsel %vm19935_vm13, %v12020_v42, %v12021_v53  ;;  %10538 = vmatpush1.bf16.msra.mxu1 %v10537_v14  ;;  %10492 = vmatprep.subr.bf16.mxu0 %v10491_v56  ;;  %v2000_v60 = vsel %vm19942_vm15, %v12011_v49, %v12020_v42  ;;  %vm19948_vm15 = vmmov %vm19943_vm2  ;;  %v19950_v42 = vunpack.i.h.bf16 %v19949_v41 }
 0x1cc   : > { %v15273_v13 = vsel %vm19943_vm2, %v12015_v39, %v19444_v7  ;;  %10540 = vmatprep.subr.bf16.mxu1 %v10539_v21  ;;  %v12029_v26 = vpop.permute.xlu1 %12028  ;;  %v1911_v36 = vsel %vm19944_vm3, %v12006_v0, %v12015_v39  ;;  %v1910_v19 = vsel %vm19948_vm15, %v12005_v52, %v12006_v0  ;;  %vm19951_vm2 = vcmask 498688  }
 0x1cd   : > { %v12030_v17 = vunpack.i.l.bf16 %v12029_v26  ;;  %v12024_v33 = vpop.permute.xlu0 %12023  ;;  %10494 = vmatpush1.bf16.msra.mxu0 %v19947_v59  ;;  %v10543_v27 = vpack.c.bf16 %v2000_v60, %v1911_v36  ;;  %v12031_v14 = vunpack.i.h.bf16 %v12029_v26  ;;  %vm19954_vm3 = vcmask 596992   ;;  %vm19955_vm13 = vmmov %vm19951_vm2 }
 0x1ce   : > { %v12025_v6 = vunpack.i.l.bf16 %v12024_v33  ;;  %v12026_v51 = vunpack.i.h.bf16 %v12024_v33  ;;  %v10545_v49 = vpack.c.bf16 %v1999_v37, %v1910_v19  ;;  %vm19956_vm15 = vmmov %vm19954_vm3 }
 0x1cf   : > { %10542 = vmatpush1.bf16.msra.mxu1 %v10541_v35  ;;  %v2176_v22 = vsel %vm19951_vm2, %v19950_v42, %v12030_v17  ;;  %v2177_v39 = vsel %vm19955_vm13, %v12030_v17, %v12031_v14  ;;  %vm19958_vm14 = vmmov %vm19956_vm15  ;;  %v19959_v17 = vld [vmem:[#allocation73_spill] sm:$0xff] }
 0x1d0   : > { %10544 = vmatprep.subr.bf16.mxu1 %v10543_v27  ;;  %v15286_v11 = vpop.permute.xlu1 %12038  ;;  %v2087_v46 = vsel %vm19954_vm3, %v19953_v2, %v12025_v6  ;;  %v2088_v26 = vsel %vm19956_vm15, %v12025_v6, %v12026_v51  ;;  %vm19957_vm3 = vmmov %vm19951_vm2  ;;  %v19961_v59 = vpack.c.bf16 %v19959_v17, %v19960_v54  ;;  %v19963_v2 = vld [vmem:[#allocation75_spill] sm:$0xff] }
 0x1d1   : > { %v19443_v56 = vunpack.i.h.bf16 %v15286_v11  ;;  %v12040_v9 = vunpack.i.l.bf16 %v15286_v11  ;;  %v15293_v52 = vpop.permute.xlu0 %12033  ;;  %v10495_v0 = vpack.c.bf16 %v2176_v22, %v2087_v46  ;;  %vm19962_vm13 = vmmov %vm19958_vm14  ;;  %v19964_v46 = vunpack.i.h.bf16 %v19963_v2  ;;  %v19970_v2 = vld [vmem:[#allocation77_spill] sm:$0xff] }
 0x1d2   : > { %v19442_v21 = vunpack.i.h.bf16 %v15293_v52  ;;  %v12035_v60 = vunpack.i.l.bf16 %v15293_v52 }
 0x1d3   : > { %v15302_v36 = vsel %vm19951_vm2, %v12040_v9, %v19443_v56  ;;  %10546 = vmatpush1.bf16.msra.mxu1 %v10545_v49  ;;  %10496 = vmatprep.subr.bf16.mxu0 %v10495_v0  ;;  %v2178_v33 = vsel %vm19957_vm3, %v12031_v14, %v12040_v9  ;;  %v10549_v14 = vpack.c.bf16 %v2177_v39, %v2088_v26  ;;  %v19965_v0 = vld [vmem:[#allocation76_spill] sm:$0xff] }
 0x1d4   : > { %v15308_v29 = vsel %vm19958_vm14, %v12035_v60, %v19442_v21  ;;  %10498 = vmatpush1.bf16.msra.mxu0 %v19961_v59  ;;  %v12049_v35 = vpop.permute.xlu1 %12048  ;;  %v2089_v27 = vsel %vm19962_vm13, %v12026_v51, %v12035_v60  ;;  %v19966_v51 = vunpack.i.h.bf16 %v19965_v0  ;;  %vm19967_vm14 = vcmask 490496  }
 0x1d5   : > { %v12050_v37 = vunpack.i.l.bf16 %v12049_v35  ;;  %v12044_v19 = vpop.permute.xlu0 %12043  ;;  %v10547_v6 = vpack.c.bf16 %v2178_v33, %v2089_v27  ;;  %v12051_v22 = vunpack.i.h.bf16 %v12049_v35  ;;  %vm19968_vm15 = vmmov %vm19967_vm14  ;;  %vm20024_vm13 = vcmask 1039360  }
 0x1d6   : > { %v12045_v42 = vunpack.i.l.bf16 %v12044_v19  ;;  %v12046_v3 = vunpack.i.h.bf16 %v12044_v19  ;;  %vm19969_vm2 = vmmov %vm19967_vm14 }
 0x1d7   : > { %10548 = vmatprep.subr.bf16.mxu1 %v10547_v6  ;;  %v2354_v9 = vsel %vm2348_vm5, %v19964_v46, %v12050_v37  ;;  %v2355_v35 = vsel %vm2348_vm5, %v12050_v37, %v12051_v22  ;;  %v19971_v46 = vld [vmem:[#allocation78_spill] sm:$0xff]  ;;  %vm19973_vm3 = vmmov %vm19969_vm2 }
 0x1d8   : > { %10550 = vmatpush1.bf16.msra.mxu1 %v10549_v14  ;;  %v15319_v49 = vpop.permute.xlu1 %12058  ;;  %v2265_v60 = vsel %vm19967_vm14, %v19966_v51, %v12045_v42  ;;  %v2266_v27 = vsel %vm19968_vm15, %v12045_v42, %v12046_v3  ;;  %vm20025_vm14 = vcmask 941056  }
 0x1d9   : > { %v19440_v33 = vunpack.i.h.bf16 %v15319_v49  ;;  %v12060_v17 = vunpack.i.l.bf16 %v15319_v49  ;;  %v15326_v54 = vpop.permute.xlu0 %12053  ;;  %v10499_v39 = vpack.c.bf16 %v2354_v9, %v2265_v60  ;;  %v19972_v9 = vpack.c.bf16 %v19970_v2, %v19971_v46  ;;  %v19976_v2 = vld [vmem:[#allocation22_spill] sm:$0xff] }
 0x1da   : > { %v19441_v26 = vunpack.i.h.bf16 %v15326_v54  ;;  %v12055_v59 = vunpack.i.l.bf16 %v15326_v54  ;;  %v11465_v46 = vunpack.i.l.bf16 %v19976_v2 }
 0x1db   : > { %v15335_v19 = vsel %vm2348_vm5, %v12060_v17, %v19440_v33  ;;  %10500 = vmatprep.subr.bf16.mxu0 %v10499_v39  ;;  %v2356_v6 = vsel %vm2348_vm5, %v12051_v22, %v12060_v17  ;;  %v10553_v22 = vpack.c.bf16 %v2355_v35, %v2266_v27 }
 0x1dc   : > { %v15341_v14 = vsel %vm19969_vm2, %v12055_v59, %v19441_v26  ;;  %10502 = vmatpush1.bf16.msra.mxu0 %v19972_v9  ;;  %v12069_v37 = vpop.permute.xlu1 %12068  ;;  %v2267_v42 = vsel %vm19973_vm3, %v12046_v3, %v12055_v59  ;;  %v19974_v26 = vld [vmem:[#allocation79_spill] sm:$0xff]  ;;  %v19977_v3 = vunpack.i.h.bf16 %v14972_v10  ;;  %vm20027_vm2 = vmmov %vm20025_vm14 }
 0x1dd   : > { %v12070_v0 = vunpack.i.l.bf16 %v12069_v37  ;;  %v12064_v51 = vpop.permute.xlu0 %12063  ;;  %v10551_v60 = vpack.c.bf16 %v2356_v6, %v2267_v42  ;;  %v12071_v17 = vunpack.i.h.bf16 %v12069_v37  ;;  %v19975_v21 = vunpack.i.h.bf16 %v19974_v26  ;;  %v19978_v42 = vld [vmem:[#allocation19_spill] sm:$0xff] }
 0x1de   : > { %v12065_v33 = vunpack.i.l.bf16 %v12064_v51  ;;  %v12066_v41 = vunpack.i.h.bf16 %v12064_v51  ;;  %v11461_v6 = vunpack.i.h.bf16 %v14183_v55  ;;  %v11431_v51 = vunpack.i.h.bf16 %v14144_v31  ;;  %v19981_v31 = vld [vmem:[#allocation20_spill] sm:$0xff] }
 0x1df   : > { %10552 = vmatprep.subr.bf16.mxu1 %v10551_v60  ;;  %v2532_v56 = vsel %vm2526_vm10, %v19975_v21, %v12070_v0  ;;  %v11435_v21 = vunpack.i.l.bf16 %v19978_v42  ;;  %v2533_v10 = vsel %vm2526_vm10, %v12070_v0, %v12071_v17  ;;  %v19979_v0 = vpack.c.bf16 %v14982_v25, %v14990_v4 }
 0x1e0   : > { %10554 = vmatpush1.bf16.msra.mxu1 %v10553_v22  ;;  %v15353_v9 = vpop.permute.xlu1 %12078  ;;  %v2443_v59 = vsel %vm2437_vm9, %v19977_v3, %v12065_v33  ;;  %v2444_v3 = vsel %vm2437_vm9, %v12065_v33, %v12066_v41  ;;  %v375_v55 = vsel %vm19567_vm0, %v11430_v40, %v11431_v51 }
 0x1e1   : > { %v19445_v35 = vunpack.i.h.bf16 %v15353_v9  ;;  %v12080_v27 = vunpack.i.l.bf16 %v15353_v9  ;;  %v15361_v37 = vpop.permute.xlu0 %12073  ;;  %v10503_v26 = vpack.c.bf16 %v2532_v56, %v2443_v59  ;;  %v11466_v59 = vunpack.i.h.bf16 %v19976_v2 }
 0x1e2   : > { %v19446_v60 = vunpack.i.h.bf16 %v15361_v37  ;;  %v12075_v22 = vunpack.i.l.bf16 %v15361_v37  ;;  %v10557_v4 = vpack.c.bf16 %v2533_v10, %v2444_v3 }
 0x1e3   : > { %v15372_v39 = vsel %vm2526_vm10, %v12080_v27, %v19445_v35  ;;  %10504 = vmatprep.subr.bf16.mxu0 %v10503_v26  ;;  %v2534_v56 = vsel %vm2526_vm10, %v12071_v17, %v12080_v27  ;;  %v465_v35 = vsel %vm455_vm1, %v11461_v6, %v11465_v46  ;;  %v464_v17 = vsel %vm455_vm1, %v11460_v5, %v11461_v6 }
 0x1e4   : > { %v15379_v47 = vsel %vm2437_vm9, %v12075_v22, %v19446_v60  ;;  %10506 = vmatpush1.bf16.msra.mxu0 %v19979_v0  ;;  %v2602_v33 = vpop.permute.xlu1 %2601  ;;  %v2445_v7 = vsel %vm2437_vm9, %v12066_v41, %v12075_v22  ;;  %v376_v0 = vsel %vm19567_vm0, %v11431_v51, %v11435_v21  ;;  %v11436_v41 = vunpack.i.h.bf16 %v19978_v42  ;;  %v19980_v22 = vld [vmem:[#allocation21_spill] sm:$0xff]  ;;  %v19982_v42 = vld [vmem:[#allocation52_spill] sm:$0xff] }
 0x1e5   : > { %v2600_v27 = vpop.permute.xlu0 %2599  ;;  %v10555_v2 = vpack.c.bf16 %v2534_v56, %v2445_v7  ;;  %v10609_v26 = vpack.c.bf16 %v15372_v39, %v15379_v47  ;;  %v10559_v5 = vpack.c.bf16 %v465_v35, %v376_v0  ;;  %v10561_v6 = vpack.c.bf16 %v464_v17, %v375_v55  ;;  %v19983_v56 = vld [vmem:[#allocation30_spill] sm:$0xff] }
 0x1e6   : > { %v2621_v60 = vsel %vm19568_vm4, %v2600_v27, %v2602_v33  ;;  %v2620_v25 = vsel %vm19568_vm4, %v15030_v18, %v2600_v27  ;;  %v467_v18 = vsel %vm455_vm1, %v11466_v59, %v19980_v22  ;;  %v466_v10 = vsel %vm455_vm1, %v11465_v46, %v11466_v59  ;;  %v19984_v59 = vld [vmem:[#allocation27_spill] sm:$0xff] }
 0x1e7   : > { %3182 = vmatprep.subr.mxu0 %v2621_v60  ;;  %10556 = vmatprep.subr.bf16.mxu1 %v10555_v2  ;;  %v378_v40 = vsel %vm19567_vm0, %v11436_v41, %v19981_v31  ;;  %v11645_v51 = vunpack.i.l.bf16 %v19982_v42  ;;  %v377_v46 = vsel %vm19567_vm0, %v11435_v21, %v11436_v41  ;;  %v19985_v17 = vpack.c.bf16 %v19983_v56, %v19984_v59  ;;  %v19986_v2 = vld [vmem:[#allocation47_spill] sm:$0xff]  ;;  %v19987_v41 = vld [vmem:[#allocation25_spill] sm:$0xff]  ;;  %v19991_v31 = vld [vmem:[#allocation42_spill] sm:$0xff] }
 0x1e8   : > { %3183 = vmatpush1.msra.mxu0 %v2620_v25  ;;  %10558 = vmatpush1.bf16.msra.mxu1 %v10557_v4  ;;  %v15399_v7 = vpop.permute.xlu1 %2605  ;;  %v10611_v27 = vpack.c.bf16 %v467_v18, %v378_v40  ;;  %v11615_v25 = vunpack.i.l.bf16 %v19986_v2  ;;  %v11611_v4 = vunpack.i.h.bf16 %v14478_v24  ;;  %v11641_v0 = vunpack.i.h.bf16 %v14513_v15 }
 0x1e9   : > { %v2604_v3 = vpop.permute.xlu0 %2603  ;;  %3195 = vmatmul.mubr.f32.vlgmr.msra.gmra.mrb[2].mxu0 %v15014_v61  ;;  %10560 = vmatprep.subr.bf16.mxu0 %v10559_v5  ;;  %v11646_v21 = vunpack.i.h.bf16 %v19982_v42  ;;  %vm20016_vm1 = vcmask 7168   ;;  %vm19582_vm0 = vcmask 834560  }
 0x1ea   : > { %10562 = vmatpush1.bf16.msra.mxu0 %v10561_v6  ;;  %v2623_v35 = vsel %vm19568_vm4, %v2604_v3, %v15399_v7  ;;  %v2622_v60 = vsel %vm19568_vm4, %v2602_v33, %v2604_v3  ;;  %10324 = vmatprep.mubr.msk.f32.mxu0 %vm2984_vm8, %v15091_v20  ;;  %v10613_v33 = vpack.c.bf16 %v466_v10, %v377_v46  ;;  %v19988_v6 = vld [vmem:[#allocation24_spill] sm:$0xff]  ;;  %v19990_v3 = vld [vmem:[#allocation43_spill] sm:$0xff]  ;;  %vm20026_vm15 = vmmov %vm20016_vm1 }
 0x1eb   : > { %3253 = vmatprep.subr.mxu1 %v2623_v35  ;;  %10564 = vmatprep.subr.bf16.mxu0 %v19985_v17  ;;  %v19989_v22 = vpack.c.bf16 %v19987_v41, %v19988_v6  ;;  %v999_v18 = vsel %vm989_vm7, %v11641_v0, %v11645_v51  ;;  %v19992_v40 = vpack.c.bf16 %v19990_v3, %v19991_v31  ;;  %v19993_v35 = vld [vmem:[#allocation31_spill] sm:$0xff]  ;;  %v19994_v10 = vld [vmem:[#allocation28_spill] sm:$0xff]  ;;  %v11616_v17 = vunpack.i.h.bf16 %v19986_v2  ;;  %v19996_v41 = vld [vmem:[#allocation37_spill] sm:$0xff] }
 0x1ec   : > { %3254 = vmatpush1.msra.mxu1 %v2622_v60  ;;  %v15420_v55 = vpop.permute.xlu1 %12088  ;;  %v19995_v60 = vpack.c.bf16 %v19993_v35, %v19994_v10  ;;  %v998_v42 = vsel %vm989_vm7, %v11640_v58, %v11641_v0  ;;  %v19997_v6 = vld [vmem:[#allocation36_spill] sm:$0xff]  ;;  %v19999_v3 = vld [vmem:[#allocation29_spill] sm:$0xff]  ;;  %v909_v58 = vsel %vm19558_vm6, %v11610_v57, %v11611_v4  ;;  %v20003_v2 = vld [vmem:[#allocation46_spill] sm:$0xff] }
 0x1ed   : > { %v15422_v5 = vpop.permute.xlu0 %12083  ;;  %3266 = vmatmul.mubr.f32.vlgmr.msra.gmra.mrb[2].mxu1 %v15014_v61  ;;  %10612 = vmatprep.subr.bf16.mxu1 %v10611_v27  ;;  %v910_v61 = vsel %vm19558_vm6, %v11611_v4, %v11615_v25  ;;  %v12090_v27 = vunpack.i.l.bf16 %v15420_v55  ;;  %v20000_v31 = vld [vmem:[#allocation32_spill] sm:$0xff]  ;;  %v20004_v0 = vld [vmem:[#allocation45_spill] sm:$0xff]  ;;  %vm20029_vm3 = vmmov %vm20016_vm1 }
 0x1ee   : > { %10566 = vmatpush1.bf16.msra.mxu0 %v19989_v22  ;;  %10614 = vmatpush1.bf16.msra.mxu1 %v10613_v33  ;;  %v10571_v59 = vpack.c.bf16 %v999_v18, %v910_v61  ;;  %v12085_v33 = vunpack.i.l.bf16 %v15422_v5  ;;  %v19998_v22 = vpack.c.bf16 %v19996_v41, %v19997_v6  ;;  %v20005_v18 = vpack.c.bf16 %v20003_v2, %v20004_v0  ;;  %v20006_v35 = vld [vmem:[#allocation48_spill] sm:$0xff]  ;;  %v20007_v57 = vld [vmem:[#allocation41_spill] sm:$0xff] }
 0x1ef   : > { %10568 = vmatprep.subr.bf16.mxu0 %v19992_v40  ;;  %10616 = vmatprep.subr.bf16.mxu1 %v19995_v60  ;;  %v20001_v40 = vpack.c.bf16 %v19999_v3, %v20000_v31  ;;  %v912_v10 = vsel %vm19558_vm6, %v11616_v17, %v20006_v35  ;;  %v11951_v60 = vunpack.i.h.bf16 %v15053_v30  ;;  %v11946_v61 = vunpack.i.h.bf16 %v15055_v38  ;;  %v20008_v4 = vld [vmem:[#allocation44_spill] sm:$0xff] }
 0x1f0   : > { %v1344_v46 = vpop.permute.xlu1 %1343  ;;  %10325 = vmatprep.mubr.msk.f32.mxu1 %vm2984_vm8, %v15091_v20  ;;  %v20002_v20 = vld [vmem:[#allocation51_spill] sm:$0xff]  ;;  %v10573_v6 = vpack.c.bf16 %v998_v42, %v909_v58  ;;  %v911_v2 = vsel %vm19558_vm6, %v11615_v25, %v11616_v17  ;;  %v12091_v0 = vunpack.i.h.bf16 %v15420_v55  ;;  %v12086_v42 = vunpack.i.h.bf16 %v15422_v5  ;;  %v20010_v58 = vld [vmem:[#allocation61_spill] sm:$0xff] }
 0x1f1   : > { %v1255_v56 = vpop.permute.xlu0 %1254  ;;  %v1001_v15 = vsel %vm989_vm7, %v11646_v21, %v20002_v20  ;;  %v1355_v20 = vsel %vm19554_vm12, %v11951_v60, %v12090_v27  ;;  %v1265_v25 = vsel %vm1256_vm11, %v11945_v1, %v11946_v61  ;;  %v1480_v1 = vld [vmem:[%s14006_s16 + $0x70] sm:$0xff]  ;;  %vm19571_vm6 = vcmask 15360  }
 0x1f2   : > { %10570 = vmatpush1.bf16.msra.mxu0 %v19998_v22  ;;  %10618 = vmatpush1.bf16.msra.mxu1 %v20001_v40  ;;  %v1000_v22 = vsel %vm989_vm7, %v11645_v51, %v11646_v21  ;;  %v10623_v24 = vpack.c.bf16 %v1001_v15, %v912_v10  ;;  %v1266_v40 = vsel %vm1256_vm11, %v11946_v61, %v12085_v33  ;;  %v20011_v51 = vld [vmem:[#allocation58_spill] sm:$0xff]  ;;  %vm20020_vm7 = vmmov %vm20016_vm1 }
 0x1f3   : > { %10572 = vmatprep.subr.bf16.mxu0 %v10571_v59  ;;  %10620 = vmatprep.subr.bf16.mxu1 %v20005_v18  ;;  %v20009_v59 = vpack.c.bf16 %v20007_v57, %v20008_v4  ;;  %v20012_v21 = vpack.c.bf16 %v20010_v58, %v20011_v51  ;;  %v1354_v15 = vsel %vm19554_vm12, %v11950_v44, %v11951_v60  ;;  %v11961_v18 = vunpack.i.h.bf16 %v15079_v34  ;;  %v20013_v60 = vld [vmem:[#allocation55_spill] sm:$0xff]  ;;  %v20014_v57 = vld [vmem:[#allocation54_spill] sm:$0xff] }
 0x1f4   : > { %v1433_v41 = vpop.permute.xlu1 %1432  ;;  %v10625_v10 = vpack.c.bf16 %v1000_v22, %v911_v2  ;;  %v1357_v55 = vsel %vm19554_vm12, %v12091_v0, %v1344_v46  ;;  %v1268_v5 = vsel %vm1256_vm11, %v12086_v42, %v1255_v56  ;;  %v20015_v4 = vpack.c.bf16 %v20013_v60, %v20014_v57  ;;  %v20017_v61 = vld [vmem:[#allocation62_spill] sm:$0xff]  ;;  %v20018_v22 = vld [vmem:[#allocation59_spill] sm:$0xff] }
 0x1f5   : > { %v12094_v3 = vpop.permute.xlu0 %12093  ;;  %v11981_v46 = vunpack.i.h.bf16 %v15143_v50  ;;  %v11976_v56 = vunpack.i.h.bf16 %v15148_v12  ;;  %v1356_v2 = vsel %vm19554_vm12, %v12090_v27, %v12091_v0  ;;  %v1267_v58 = vsel %vm1256_vm11, %v12085_v33, %v12086_v42  ;;  %v1479_v60 = vld [vmem:[%s14006_s16 + $0x68] sm:$0xff]  ;;  %v20022_v57 = vld [vmem:[#allocation63_spill] sm:$0xff]  ;;  %vm20028_vm11 = vmmov %vm20024_vm13 }
 0x1f6   : > { %v12095_v31 = vunpack.i.l.bf16 %v12094_v3  ;;  %10574 = vmatpush1.bf16.msra.mxu0 %v10573_v6  ;;  %10622 = vmatpush1.bf16.msra.mxu1 %v20009_v59  ;;  %v10579_v6 = vpack.c.bf16 %v1355_v20, %v1266_v40  ;;  %v12096_v30 = vunpack.i.h.bf16 %v12094_v3  ;;  %v20019_v3 = vpack.c.bf16 %v20017_v61, %v20018_v22 }
 0x1f7   : > { %10576 = vmatprep.subr.bf16.mxu0 %v20012_v21  ;;  %10624 = vmatprep.subr.bf16.mxu1 %v10623_v24  ;;  %v1443_v59 = vsel %vm20020_vm7, %v11960_v32, %v11961_v18  ;;  %v10581_v20 = vpack.c.bf16 %v1354_v15, %v1265_v25  ;;  %v10631_v51 = vpack.c.bf16 %v1357_v55, %v1268_v5  ;;  %v1482_v15 = vld [vmem:[%s14006_s16 + $0x80] sm:$0xff]  ;;  %v12001_v0 = vunpack.i.h.bf16 %v15203_v23  ;;  %vm20031_vm7 = vmmov %vm20028_vm11 }
 0x1f8   : > { %v15479_v35 = vpop.permute.xlu1 %12103  ;;  %v1444_v38 = vsel %vm20016_vm1, %v11961_v18, %v12095_v31  ;;  %v1446_v32 = vsel %vm20026_vm15, %v12096_v30, %v1433_v41  ;;  %v1645_v27 = vsel %vm20027_vm2, %v11980_v8, %v11981_v46  ;;  %v1556_v33 = vsel %vm20028_vm11, %v11975_v62, %v11976_v56  ;;  %v1481_v62 = vld [vmem:[%s14006_s16 + $0x78] sm:$0xff]  ;;  %vm20030_vm1 = vmmov %vm20027_vm2  ;;  %s13829_s16 = smov 110  }
 0x1f9   : > { %v15486_v17 = vpop.permute.xlu0 %12098  ;;  %v12105_v24 = vunpack.i.l.bf16 %v15479_v35  ;;  %v11996_v42 = vunpack.i.h.bf16 %v15207_v48  ;;  %v12106_v18 = vunpack.i.h.bf16 %v15479_v35  ;;  %v10585_v55 = vpack.c.bf16 %v1479_v60, %v1443_v59  ;;  %vm20036_vm11 = vmmov %vm20030_vm1 }
 0x1fa   : > { %v12100_v44 = vunpack.i.l.bf16 %v15486_v17  ;;  %10578 = vmatpush1.bf16.msra.mxu0 %v20015_v4  ;;  %10626 = vmatpush1.bf16.msra.mxu1 %v10625_v10  ;;  %v10583_v10 = vpack.c.bf16 %v1480_v1, %v1444_v38  ;;  %v12101_v41 = vunpack.i.h.bf16 %v15486_v17  ;;  %v10633_v50 = vpack.c.bf16 %v1356_v2, %v1267_v58 }
 0x1fb   : > { %10580 = vmatprep.subr.bf16.mxu0 %v10579_v6  ;;  %10628 = vmatprep.subr.bf16.mxu1 %v20019_v3  ;;  %v20021_v6 = vld [vmem:[#allocation60_spill] sm:$0xff]  ;;  %v1646_v34 = vsel %vm20025_vm14, %v11981_v46, %v12105_v24  ;;  %v1445_v8 = vsel %vm20029_vm3, %v12095_v31, %v12096_v30  ;;  %v10635_v1 = vpack.c.bf16 %v1482_v15, %v1446_v32  ;;  %vm20033_vm14 = vcmask 932864   ;;  %vm20037_vm3 = vmmov %vm20031_vm7 }
 0x1fc   : > { %v1635_v40 = vpop.permute.xlu1 %1634  ;;  %v20023_v4 = vpack.c.bf16 %v20021_v6, %v20022_v57  ;;  %v1557_v61 = vsel %vm20024_vm13, %v11976_v56, %v12100_v44  ;;  %v10589_v35 = vpack.c.bf16 %v1645_v27, %v1556_v33  ;;  %vm20032_vm13 = vcmask 924672   ;;  %vm20035_vm2 = vmmov %vm20033_vm14 }
 0x1fd   : > { %v1546_v21 = vpop.permute.xlu0 %1545  ;;  %v10587_v38 = vpack.c.bf16 %v1646_v34, %v1557_v61  ;;  %v1648_v46 = vsel %vm20030_vm1, %v12106_v18, %v1635_v40  ;;  %v1823_v17 = vsel %vm20032_vm13, %v12000_v28, %v12001_v0  ;;  %v1734_v31 = vsel %vm20033_vm14, %v11995_v16, %v11996_v42  ;;  %vm20034_vm15 = vmmov %vm20032_vm13 }
 0x1fe   : > { %10582 = vmatpush1.bf16.msra.mxu0 %v10581_v20  ;;  %10630 = vmatpush1.bf16.msra.mxu1 %v20023_v4  ;;  %v1559_v56 = vsel %vm20031_vm7, %v12101_v41, %v1546_v21  ;;  %v10637_v20 = vpack.c.bf16 %v1481_v62, %v1445_v8  ;;  %v1647_v58 = vsel %vm20036_vm11, %v12105_v24, %v12106_v18  ;;  %vm20038_vm1 = vmmov %vm20032_vm13  ;;  %v20043_v18 = vunpack.i.h.bf16 %v15257_v45 }
 0x1ff   : > { %10584 = vmatprep.subr.bf16.mxu0 %v10583_v10  ;;  %10632 = vmatprep.subr.bf16.mxu1 %v10631_v51  ;;  %v1558_v23 = vsel %vm20037_vm3, %v12100_v44, %v12101_v41  ;;  %v10639_v51 = vpack.c.bf16 %v1648_v46, %v1559_v56  ;;  %vm20039_vm7 = vmmov %vm20035_vm2  ;;  %v10593_v10 = vpack.c.bf16 %v1823_v17, %v1734_v31  ;;  %v3590_v44 = vld [vmem:[%s19332_s4] sm:$0xff]  ;;  %v20050_v17 = vunpack.i.h.bf16 %v15286_v11 }
 0x200   : > { %v12114_v25 = vpop.permute.xlu1 %12113  ;;  %vm20040_vm13 = vmmov %vm20038_vm1  ;;  %v10641_v24 = vpack.c.bf16 %v1647_v58, %v1558_v23  ;;  %3593 = vperm.xlu1 %12158, %v3590_v44   ;;  %vm19572_vm12 = vcmask 211968  }
 0x201   : > { %v12115_v5 = vunpack.i.l.bf16 %v12114_v25  ;;  %v12109_v12 = vpop.permute.xlu0 %12108  ;;  %v12116_v3 = vunpack.i.h.bf16 %v12114_v25  ;;  %vm20041_vm14 = vmmov %vm20035_vm2  ;;  %v19469_v25 = vmov 0.0  }
 0x202   : > { %v12110_v22 = vunpack.i.l.bf16 %v12109_v12  ;;  %10586 = vmatpush1.bf16.msra.mxu0 %v10585_v55  ;;  %10634 = vmatpush1.bf16.msra.mxu1 %v10633_v50  ;;  %v12111_v59 = vunpack.i.h.bf16 %v12109_v12  ;;  %v20049_v12 = vpack.c.bf16 %v15267_v43, %v15273_v13  ;;  %v20052_v43 = vunpack.i.h.bf16 %v15293_v52 }
 0x203   : > { %10588 = vmatprep.subr.bf16.mxu0 %v10587_v38  ;;  %10636 = vmatprep.subr.bf16.mxu1 %v10635_v1  ;;  %v1824_v30 = vsel %vm20034_vm15, %v12001_v0, %v12115_v5  ;;  %v1825_v60 = vsel %vm20040_vm13, %v12115_v5, %v12116_v3  ;;  %vm20042_vm15 = vcmask 605184   ;;  %vm20051_vm13 = vcmask 498688  }
 0x204   : > { %v1813_v40 = vpop.permute.xlu1 %1812  ;;  %v1735_v2 = vsel %vm20035_vm2, %v11996_v42, %v12110_v22  ;;  %v1736_v6 = vsel %vm20041_vm14, %v12110_v22, %v12111_v59  ;;  %vm20044_vm2 = vcmask 613376   ;;  %12175 = vrot.lane.b32.xlu0 %v19469_v25, %s13823_s29  ;;  %vm20045_vm11 = vmmov %vm20042_vm15  ;;  %12160 = vrot.lane.b32.xlu1 %v19469_v25, %s13824_s14  ;;  %vm20053_vm14 = vcmask 596992  }
 0x205   : > { %v1724_v28 = vpop.permute.xlu0 %1723  ;;  %v10591_v21 = vpack.c.bf16 %v1824_v30, %v1735_v2  ;;  %v1826_v48 = vsel %vm20038_vm1, %v12116_v3, %v1813_v40  ;;  %v10645_v42 = vpack.c.bf16 %v1825_v60, %v1736_v6  ;;  %vm20046_vm3 = vmmov %vm20044_vm2  ;;  %v20058_v52 = vpack.c.bf16 %v15302_v36, %v15308_v29 }
 0x206   : > { %v1737_v16 = vsel %vm20039_vm7, %v12111_v59, %v1724_v28  ;;  %10590 = vmatpush1.bf16.msra.mxu0 %v10589_v35  ;;  %10638 = vmatpush1.bf16.msra.mxu1 %v10637_v20  ;;  %vm20047_vm1 = vmmov %vm20045_vm11  ;;  %v20059_v60 = vunpack.i.h.bf16 %v15319_v49  ;;  %v20064_v49 = vpack.c.bf16 %v15335_v19, %v15341_v14 }
 0x207   : > { %10592 = vmatprep.subr.bf16.mxu0 %v10591_v21  ;;  %10640 = vmatprep.subr.bf16.mxu1 %v10639_v51  ;;  %v10643_v4 = vpack.c.bf16 %v1826_v48, %v1737_v16  ;;  %vm20048_vm7 = vmmov %vm20044_vm2 }
 0x208   : > { %v12124_v57 = vpop.permute.xlu1 %12123  ;;  %12165 = vrot.lane.b32.xlu1 %v19469_v25, %s13824_s14  ;;  %12180 = vrot.lane.b32.xlu0 %v19469_v25, %s19495_s7 }
 0x209   : > { %v12126_v61 = vunpack.i.h.bf16 %v12124_v57  ;;  %v12125_v34 = vunpack.i.l.bf16 %v12124_v57  ;;  %v12119_v32 = vpop.permute.xlu0 %12118 }
 0x20a   : > { %v12121_v15 = vunpack.i.h.bf16 %v12119_v32  ;;  %v12120_v27 = vunpack.i.l.bf16 %v12119_v32  ;;  %10594 = vmatpush1.bf16.msra.mxu0 %v10593_v10  ;;  %10642 = vmatpush1.bf16.msra.mxu1 %v10641_v24  ;;  %v20060_v24 = vunpack.i.h.bf16 %v15326_v54 }
 0x20b   : > { %10644 = vmatprep.subr.bf16.mxu1 %v10643_v4  ;;  %v2002_v33 = vsel %vm20042_vm15, %v12021_v53, %v12125_v34  ;;  %v2003_v55 = vsel %vm20045_vm11, %v12125_v34, %v12126_v61  ;;  %vm20054_vm15 = vmmov %vm20051_vm13 }
 0x20c   : > { %v1991_v0 = vpop.permute.xlu1 %1990  ;;  %v1913_v41 = vsel %vm20044_vm2, %v20043_v18, %v12120_v27  ;;  %v1914_v50 = vsel %vm20046_vm3, %v12120_v27, %v12121_v15  ;;  %vm20055_vm2 = vmmov %vm20053_vm14  ;;  %12170 = vrot.lane.b32.xlu1 %v19469_v25, %s13823_s29  ;;  %12195 = vrot.lane.b32.xlu0 %v19469_v25, %s19471_s13 }
 0x20d   : > { %v2004_v8 = vsel %vm20047_vm1, %v12126_v61, %v1991_v0  ;;  %v1902_v63 = vpop.permute.xlu0 %1901  ;;  %v10595_v5 = vpack.c.bf16 %v2002_v33, %v1913_v41  ;;  %v10649_v1 = vpack.c.bf16 %v2003_v55, %v1914_v50  ;;  %vm20056_vm11 = vmmov %vm20051_vm13  ;;  %vm20061_vm1 = vcmask 490496  }
 0x20e   : > { %v1915_v53 = vsel %vm20048_vm7, %v12121_v15, %v1902_v63  ;;  %10646 = vmatpush1.bf16.msra.mxu1 %v10645_v42  ;;  %vm20057_vm3 = vmmov %vm20055_vm2  ;;  %v20065_v55 = vunpack.i.h.bf16 %v15353_v9  ;;  %v20066_v63 = vunpack.i.h.bf16 %v15361_v37 }
 0x20f   : > { %v10647_v45 = vpack.c.bf16 %v2004_v8, %v1915_v53  ;;  %10596 = vmatprep.subr.bf16.mxu0 %v10595_v5  ;;  %vm20062_vm7 = vmmov %vm20061_vm1 }
 0x210   : > { %10598 = vmatpush1.bf16.msra.mxu0 %v20049_v12  ;;  %v12134_v38 = vpop.permute.xlu1 %12133  ;;  %12185 = vrot.lane.b32.xlu1 %v19469_v25, %s19495_s7 }
 0x211   : > { %v12136_v62 = vunpack.i.h.bf16 %v12134_v38  ;;  %v12135_v46 = vunpack.i.l.bf16 %v12134_v38  ;;  %v12129_v56 = vpop.permute.xlu0 %12128  ;;  %10648 = vmatprep.subr.bf16.mxu1 %v10647_v45  ;;  %12200 = vrot.lane.b32.xlu0 %v19469_v25, %s13827_s17 }
 0x212   : > { %v12131_v22 = vunpack.i.h.bf16 %v12129_v56  ;;  %v12130_v35 = vunpack.i.l.bf16 %v12129_v56  ;;  %10650 = vmatpush1.bf16.msra.mxu1 %v10649_v1 }
 0x213   : > { %v2180_v31 = vsel %vm20051_vm13, %v20050_v17, %v12135_v46  ;;  %v2181_v3 = vsel %vm20054_vm15, %v12135_v46, %v12136_v62  ;;  %vm20063_vm13 = vmmov %vm20061_vm1  ;;  %v13691_v17 = vld [vmem:[%s19330_s2] sm:$0xff]  ;;  %vm19625_vm15 = vcmask 64512  }
 0x214   : > { %v2169_v30 = vpop.permute.xlu1 %2168  ;;  %v2091_v13 = vsel %vm20053_vm14, %v20052_v43, %v12130_v35  ;;  %v2092_v59 = vsel %vm20055_vm2, %v12130_v35, %v12131_v22  ;;  %12190 = vrot.lane.b32.xlu1 %v19469_v25, %s19471_s13  ;;  %vm3981_vm14 = vcmask 80896   ;;  %vm4159_vm2 = vcmask 48128  }
 0x215   : > { %v2182_v40 = vsel %vm20056_vm11, %v12136_v62, %v2169_v30  ;;  %v2080_v20 = vpop.permute.xlu0 %2079  ;;  %v10599_v2 = vpack.c.bf16 %v2180_v31, %v2091_v13  ;;  %v10653_v51 = vpack.c.bf16 %v2181_v3, %v2092_v59  ;;  %12215 = vrot.lane.b32.xlu0 %v19469_v25, %s13828_s15  ;;  %vm19622_vm11 = vcmask 900096  }
 0x216   : > { %v2093_v11 = vsel %vm20057_vm3, %v12131_v22, %v2080_v20  ;;  %vm19623_vm3 = vcmask 883712  }
 0x217   : > { %v10651_v58 = vpack.c.bf16 %v2182_v40, %v2093_v11  ;;  %10600 = vmatprep.subr.bf16.mxu0 %v10599_v2 }
 0x218   : > { %10602 = vmatpush1.bf16.msra.mxu0 %v20058_v52  ;;  %v12144_v23 = vpop.permute.xlu1 %12143  ;;  %12205 = vrot.lane.b32.xlu1 %v19469_v25, %s13827_s17 }
 0x219   : > { %v12146_v28 = vunpack.i.h.bf16 %v12144_v23  ;;  %v12145_v21 = vunpack.i.l.bf16 %v12144_v23  ;;  %v12139_v48 = vpop.permute.xlu0 %12138  ;;  %10652 = vmatprep.subr.bf16.mxu1 %v10651_v58  ;;  %12220 = vrot.lane.b32.xlu0 %v19469_v25, %s13829_s16 }
 0x21a   : > { %v12141_v16 = vunpack.i.h.bf16 %v12139_v48  ;;  %v12140_v10 = vunpack.i.l.bf16 %v12139_v48  ;;  %10654 = vmatpush1.bf16.msra.mxu1 %v10653_v51 }
 0x21b   : > { %v2358_v6 = vsel %vm2348_vm5, %v20059_v60, %v12145_v21  ;;  %v2359_v36 = vsel %vm2348_vm5, %v12145_v21, %v12146_v28 }
 0x21c   : > { %v2347_v57 = vpop.permute.xlu1 %2346  ;;  %v2269_v44 = vsel %vm20061_vm1, %v20060_v24, %v12140_v10  ;;  %v2270_v29 = vsel %vm20062_vm7, %v12140_v10, %v12141_v16  ;;  %12210 = vrot.lane.b32.xlu1 %v19469_v25, %s13828_s15  ;;  %vm19621_vm1 = vcmask 867328   ;;  %vm19620_vm7 = vcmask 244736  }
 0x21d   : > { %v2360_v4 = vsel %vm2348_vm5, %v12146_v28, %v2347_v57  ;;  %v2258_v61 = vpop.permute.xlu0 %2257  ;;  %v10603_v34 = vpack.c.bf16 %v2358_v6, %v2269_v44  ;;  %v10657_v27 = vpack.c.bf16 %v2359_v36, %v2270_v29  ;;  %12230 = vrot.lane.b32.xlu0 %v19469_v25, %s19455_s11  ;;  %s19510_s11 = smov 22   ;;  %vm3714_vm5 = vcmask 310272  }
 0x21e   : > { %v2271_v32 = vsel %vm20063_vm13, %v12141_v16, %v2258_v61  ;;  %vm19624_vm13 = vcmask 228352  }
 0x21f   : > { %v10655_v15 = vpack.c.bf16 %v2360_v4, %v2271_v32  ;;  %10604 = vmatprep.subr.bf16.mxu0 %v10603_v34 }
 0x220   : > { %10606 = vmatpush1.bf16.msra.mxu0 %v20064_v49  ;;  %12225 = vrot.lane.b32.xlu1 %v19469_v25, %s19453_s19  ;;  %s19461_s19 = smov 20  }
 0x221   : > { %v12154_v54 = vpop.permute.xlu1 %12153  ;;  %10656 = vmatprep.subr.bf16.mxu1 %v10655_v15  ;;  %4893 = vrot.lane.b32.xlu0 %v19469_v25, %s19531_s26 }
 0x222   : > { %v12156_v33 = vunpack.i.h.bf16 %v12154_v54  ;;  %v12155_v0 = vunpack.i.l.bf16 %v12154_v54  ;;  %v12149_v42 = vpop.permute.xlu0 %12148  ;;  %10658 = vmatpush1.bf16.msra.mxu1 %v10657_v27 }
 0x223   : > { %v12151_v18 = vunpack.i.h.bf16 %v12149_v42  ;;  %v12150_v41 = vunpack.i.l.bf16 %v12149_v42 }
 0x224   : > { %v2536_v50 = vsel %vm2526_vm10, %v20065_v55, %v12155_v0  ;;  %v2537_v19 = vsel %vm2526_vm10, %v12155_v0, %v12156_v33  ;;  %4982 = vrot.lane.b32.xlu1 %v19469_v25, %s19517_s10 }
 0x225   : > { %v2525_v8 = vpop.permute.xlu1 %2524  ;;  %v2447_v5 = vsel %vm2437_vm9, %v20066_v63, %v12150_v41  ;;  %v2448_v14 = vsel %vm2437_vm9, %v12150_v41, %v12151_v18  ;;  %5071 = vrot.lane.b32.xlu0 %v19469_v25, %s19499_s18 }
 0x226   : > { %v2538_v53 = vsel %vm2526_vm10, %v12156_v33, %v2525_v8  ;;  %v2436_v45 = vpop.permute.xlu0 %2435  ;;  %v10607_v12 = vpack.c.bf16 %v2536_v50, %v2447_v5  ;;  %v10661_v37 = vpack.c.bf16 %v2537_v19, %v2448_v14  ;;  %vm3892_vm10 = vcmask 277504  }
 0x227   : > { %v2449_v38 = vsel %vm2437_vm9, %v12151_v18, %v2436_v45  ;;  %vm3803_vm9 = vcmask 293888  }
 0x228   : > { %v10659_v1 = vpack.c.bf16 %v2538_v53, %v2449_v38  ;;  %10608 = vmatprep.subr.bf16.mxu0 %v10607_v12  ;;  %5160 = vrot.lane.b32.xlu1 %v19469_v25, %s19457_s28  ;;  %s19459_s28 = smov 18  }
 0x229   : > { %10610 = vmatpush1.bf16.msra.mxu0 %v10609_v26  ;;  %v2610_v9 = vpop.permute.xlu1 %2609  ;;  %12235 = vrot.lane.b32.xlu0 %v19469_v25, %s19510_s11 }
 0x22a   : > { %v2608_v62 = vpop.permute.xlu0 %2607  ;;  %10660 = vmatprep.subr.bf16.mxu1 %v10659_v1 }
 0x22b   : > { %10662 = vmatpush1.bf16.msra.mxu1 %v10661_v37  ;;  %v2625_v46 = vsel %vm19568_vm4, %v2608_v62, %v2610_v9  ;;  %v2624_v56 = vsel %vm19568_vm4, %v15399_v7, %v2608_v62 }
 0x22c   : > { %3324 = vmatprep.subr.mxu0 %v2625_v46  ;;  %12240 = vrot.lane.b32.xlu1 %v19469_v25, %s19461_s19 }
 0x22d   : > { %3325 = vmatpush1.msra.mxu0 %v2624_v56  ;;  %v2614_v22 = vpop.permute.xlu1 %2613  ;;  %5249 = vrot.lane.b32.xlu0 %v19469_v25, %s19510_s11 }
 0x22e   : > { %v2612_v35 = vpop.permute.xlu0 %2611  ;;  %3337 = vmatmul.mubr.f32.vlgmr.msra.gmra.mrb[4].mxu0 %v13691_v17 }
 0x22f   : > { %v2627_v47 = vsel %vm19568_vm4, %v2612_v35, %v2614_v22  ;;  %v2626_v39 = vsel %vm19568_vm4, %v2610_v9, %v2612_v35  ;;  %vm19583_vm4 = vcmask 1031168  }
 0x230   : > { %3395 = vmatprep.subr.mxu1 %v2627_v47  ;;  %5338 = vrot.lane.b32.xlu1 %v19469_v25, %s19461_s19  ;;  %s19562_s19 = smov 2  }
 0x231   : > { %3396 = vmatpush1.msra.mxu1 %v2626_v39  ;;  %12245 = vrot.lane.b32.xlu0 %v19469_v25, %s19459_s28  ;;  %s19508_s28 = smov 122  }
 0x232   : > { %3408 = vmatmul.mubr.f32.vlgmr.msra.gmra.mrb[4].mxu1 %v13691_v17 }
 0x23f   : > { %v15658_v43 = vpop.permute.xlu0 %2981 }
 0x243   : > { %v15662_v3 = vpop.permute.xlu0 %3611 }
 0x276   : > { %v15668_v20 = vpop.permute.xlu0 %12175 }
 0x277   : > { %v12177_v52 = vunpack.i.l.bf16 %v15668_v20  ;;  %v19467_v38 = vunpack.i.h.bf16 %v15668_v20 }
 0x279   : > { %v15714_v39 = vsel %vm3803_vm9, %v12177_v52, %v19467_v38 }
 0x27a   : > { %v12181_v57 = vpop.permute.xlu0 %12180 }
 0x27b   : > { %v15650_v26 = vpop.f32.mrb[0].mxu0  ;;  %v12182_v44 = vunpack.i.l.bf16 %v12181_v57  ;;  %v12183_v4 = vunpack.i.h.bf16 %v12181_v57 }
 0x27c   : > { %v15652_v7 = vpop.f32.mrb[1].mxu0 }
 0x27d   : > { %v3893_v54 = vsel %vm3892_vm10, %v12182_v44, %v12183_v4  ;;  %v312_v44 = vld [vmem:[%s20067_s0] sm:$0xff] }
 0x27e   : > { %v15678_v36 = vpop.permute.xlu0 %12195 }
 0x27f   : > { %v15660_v13 = vpop.permute.xlu1 %3593  ;;  %v12197_v32 = vunpack.i.l.bf16 %v15678_v36 }
 0x281   : > { %v15654_v31 = vpop.f32.mrb[0].mxu1 }
 0x282   : > { %v15656_v30 = vpop.f32.mrb[1].mxu1 }
 0x283   : > { %v12161_v59 = vpop.permute.xlu1 %12160  ;;  %v12201_v33 = vpop.permute.xlu0 %12200 }
 0x284   : > { %v12163_v2 = vunpack.i.h.bf16 %v12161_v59  ;;  %v12162_v11 = vunpack.i.l.bf16 %v12161_v59  ;;  %v12203_v8 = vunpack.i.h.bf16 %v12201_v33  ;;  %v12202_v63 = vunpack.i.l.bf16 %v12201_v33 }
 0x286   : > { %v3715_v51 = vsel %vm3714_vm5, %v12162_v11, %v12163_v2  ;;  %v4071_v9 = vsel %vm19625_vm15, %v12202_v63, %v12203_v8  ;;  %v19465_v11 = vunpack.i.h.bf16 %v15678_v36 }
 0x287   : > { %v15666_v40 = vpop.permute.xlu1 %12165  ;;  %v15697_v14 = vpop.permute.xlu0 %12215 }
 0x288   : > { %v12167_v58 = vunpack.i.l.bf16 %v15666_v40  ;;  %v12217_v45 = vunpack.i.l.bf16 %v15697_v14  ;;  %v19468_v12 = vunpack.i.h.bf16 %v15666_v40 }
 0x28a   : > { %v3716_v48 = vsel %vm3714_vm5, %v12163_v2, %v12167_v58  ;;  %v15709_v47 = vsel %vm3714_vm5, %v12167_v58, %v19468_v12  ;;  %v15728_v58 = vsel %vm3981_vm14, %v12197_v32, %v19465_v11 }
 0x28b   : > { %v12171_v23 = vpop.permute.xlu1 %12170 }
 0x28c   : > { %v12173_v28 = vunpack.i.h.bf16 %v12171_v23  ;;  %v12172_v21 = vunpack.i.l.bf16 %v12171_v23 }
 0x28e   : > { %v3804_v16 = vsel %vm3803_vm9, %v12172_v21, %v12173_v28  ;;  %v3805_v10 = vsel %vm3803_vm9, %v12173_v28, %v12177_v52  ;;  %v19463_v21 = vunpack.i.h.bf16 %v15697_v14 }
 0x28f   : > { %v10663_v60 = vpack.c.bf16 %v3805_v10, %v3716_v48  ;;  %v10665_v6 = vpack.c.bf16 %v3804_v16, %v3715_v51  ;;  %v15676_v24 = vpop.permute.xlu1 %12185  ;;  %v3440_v51 = vlaneseq }
 0x290   : > { %v12187_v61 = vunpack.i.l.bf16 %v15676_v24  ;;  %v19466_v2 = vunpack.i.h.bf16 %v15676_v24  ;;  %v15742_v10 = vsel %vm4159_vm2, %v12217_v45, %v19463_v21 }
 0x291   : > { %10664 = vmatprep.subr.bf16.mxu0 %v10663_v60  ;;  %v3441_v48 = vshrl.u32 %v3440_v51, 7 }
 0x292   : > { %10666 = vmatpush1.bf16.msra.mxu0 %v10665_v6  ;;  %v3894_v18 = vsel %vm3892_vm10, %v12183_v4, %v12187_v61  ;;  %v15723_v23 = vsel %vm3892_vm10, %v12187_v61, %v19466_v2  ;;  %v15751_v61 = vadd.f32 %v15650_v26, %v15658_v43  ;;  %v3126_v26 = vadd.f32 %v15654_v31, %v15658_v43 }
 0x293   : > { %v12191_v15 = vpop.permute.xlu1 %12190  ;;  %v3442_v60 = vsub.s32 0, %v3441_v48  ;;  %v3446_v6 = vsub.s32 1, %v3441_v48  ;;  %v3450_v4 = vsub.s32 2, %v3441_v48  ;;  %v3466_v31 = vsub.s32 6, %v3441_v48 }
 0x294   : > { %v12193_v49 = vunpack.i.h.bf16 %v12191_v15  ;;  %v12192_v27 = vunpack.i.l.bf16 %v12191_v15 }
 0x295   : > { %v15757_v15 = vrot.slane %v312_v44, %v3442_v60 }
 0x296   : > { %v3982_v42 = vsel %vm3981_vm14, %v12192_v27, %v12193_v49  ;;  %v3983_v50 = vsel %vm3981_vm14, %v12193_v49, %v12197_v32  ;;  %v15755_v32 = vadd.f32 %v15652_v7, %v15658_v43  ;;  %v15759_v49 = vrot.slane %v312_v44, %v3446_v6 }
 0x297   : > { %v15693_v55 = vpop.permute.xlu1 %12205  ;;  %v10669_v19 = vpack.c.bf16 %v3982_v42, %v3893_v54  ;;  %v10667_v53 = vpack.c.bf16 %v3983_v50, %v3894_v18  ;;  %20068 = vst [vmem:[#allocation35_spill] sm:$0xff] %v15757_v15  ;;  %v15761_v27 = vrot.slane %v312_v44, %v3450_v4  ;;  %v3500_v54 = vmul.f32 %v15757_v15, %v15751_v61 }
 0x298   : > { %v12207_v5 = vunpack.i.l.bf16 %v15693_v55  ;;  %v19464_v28 = vunpack.i.h.bf16 %v15693_v55  ;;  %20069 = vst [vmem:[#allocation33_spill] sm:$0xff] %v15759_v49  ;;  %v3501_v33 = vmul.f32 %v15759_v49, %v15755_v32  ;;  %v3454_v42 = vsub.s32 3, %v3441_v48 }
 0x299   : > { %10668 = vmatprep.subr.bf16.mxu0 %v10667_v53  ;;  %20070 = vst [vmem:[#allocation26_spill] sm:$0xff] %v15761_v27  ;;  %v3458_v18 = vsub.s32 4, %v3441_v48  ;;  %v3502_v7 = vmul.f32 %v15761_v27, %v3126_v26  ;;  %v3462_v53 = vsub.s32 5, %v3441_v48 }
 0x29a   : > { %10670 = vmatpush1.bf16.msra.mxu0 %v10669_v19  ;;  %v4072_v46 = vsel %vm19625_vm15, %v12203_v8, %v12207_v5  ;;  %v15737_v16 = vsel %vm19625_vm15, %v12207_v5, %v19464_v28  ;;  %v3512_v50 = vadd.f32 %v3501_v33, %v3500_v54  ;;  %v3128_v8 = vadd.f32 %v15656_v30, %v15658_v43 }
 0x29b   : > { %v12211_v1 = vpop.permute.xlu1 %12210  ;;  %v15772_v63 = vrot.slane %v312_v44, %v3454_v42  ;;  %v15776_v19 = vrot.slane %v312_v44, %v3458_v18 }
 0x29c   : > { %v12213_v37 = vunpack.i.h.bf16 %v12211_v1  ;;  %v12212_v62 = vunpack.i.l.bf16 %v12211_v1 }
 0x29d   : > { %20071 = vst [vmem:[#allocation23_spill] sm:$0xff] %v15772_v63  ;;  %20072 = vst [vmem:[#allocation40_spill] sm:$0xff] %v15776_v19  ;;  %v3503_v1 = vmul.f32 %v15772_v63, %v3128_v8 }
 0x29e   : > { %v4160_v56 = vsel %vm4159_vm2, %v12212_v62, %v12213_v37  ;;  %v4161_v22 = vsel %vm4159_vm2, %v12213_v37, %v12217_v45  ;;  %v3513_v45 = vadd.f32 %v3512_v50, %v3502_v7  ;;  %v15782_v62 = vrot.slane %v312_v44, %v3462_v53 }
 0x29f   : > { %v10671_v35 = vpack.c.bf16 %v4161_v22, %v4072_v46  ;;  %v10673_v17 = vpack.c.bf16 %v4160_v56, %v4071_v9  ;;  %v15784_v46 = vrot.slane %v312_v44, %v3466_v31 }
 0x2a0   : > { %20073 = vst [vmem:[#allocation38_spill] sm:$0xff] %v15782_v62  ;;  %v3514_v30 = vadd.f32 %v3513_v45, %v3503_v1 }
 0x2a1   : > { %10672 = vmatprep.subr.bf16.mxu0 %v10671_v35  ;;  %20074 = vst [vmem:[#allocation50_spill] sm:$0xff] %v15784_v46  ;;  %v3470_v35 = vsub.s32 7, %v3441_v48 }
 0x2a2   : > { %10674 = vmatpush1.bf16.msra.mxu0 %v10673_v17 }
 0x2a3   : > { %v15792_v33 = vrot.slane %v312_v44, %v3470_v35 }
 0x2a5   : > { %20075 = vst [vmem:[#allocation49_spill] sm:$0xff] %v15792_v33 }
 0x2bc   : > { %v15680_v29 = vpop.f32.mrb[2].mxu0 }
 0x2bd   : > { %v15683_v34 = vpop.f32.mrb[3].mxu0  ;;  %v3197_v5 = vadd.f32 %v15680_v29, %v15658_v43 }
 0x2be   : > { %v3199_v37 = vadd.f32 %v15683_v34, %v15658_v43  ;;  %v313_v34 = vld [vmem:[%s20067_s0 + $0x8] sm:$0xf]  ;;  %s20469_s0 = smov 89  }
 0x2bf   : > { %v3504_v9 = vmul.f32 %v15776_v19, %v3197_v5  ;;  %v15798_v7 = vrot.slane %v313_v34, %v3442_v60  ;;  %v15805_v31 = vrot.slane %v313_v34, %v3450_v4  ;;  %v15816_v4 = vpop.permute.xlu1 %12225 }
 0x2c0   : > { %v15687_v0 = vpop.f32.mrb[2].mxu1  ;;  %v3505_v29 = vmul.f32 %v15782_v62, %v3199_v37 }
 0x2c1   : > { %v15691_v41 = vpop.f32.mrb[3].mxu1  ;;  %v3515_v56 = vadd.f32 %v3514_v30, %v3504_v9  ;;  %v3268_v22 = vadd.f32 %v15687_v0, %v15658_v43  ;;  %20076 = vst [vmem:[#allocation39_spill] sm:$0xff] %v15798_v7  ;;  %v15800_v0 = vrot.slane %v313_v34, %v3446_v6  ;;  %20078 = vst [vmem:[#allocation56_spill] sm:$0xff] %v15805_v31 }
 0x2c2   : > { %v3270_v54 = vadd.f32 %v15691_v41, %v15658_v43 }
 0x2c3   : > { %v3516_v17 = vadd.f32 %v3515_v56, %v3505_v29  ;;  %v3506_v51 = vmul.f32 %v15784_v46, %v3268_v22  ;;  %20077 = vst [vmem:[#allocation34_spill] sm:$0xff] %v15800_v0  ;;  %v15808_v56 = vrot.slane %v313_v34, %v3454_v42  ;;  %v15818_v42 = vpop.permute.xlu1 %4982 }
 0x2c4   : > { %v3507_v50 = vmul.f32 %v15792_v33, %v3270_v54  ;;  %20080 = vst [vmem:[#allocation53_spill] sm:$0xff] %v15818_v42 }
 0x2c5   : > { %v3517_v18 = vadd.f32 %v3516_v17, %v3506_v51  ;;  %20079 = vst [vmem:[#allocation57_spill] sm:$0xff] %v15808_v56 }
 0x2c7   : > { %v3518_v41 = vadd.f32 %v3517_v18, %v3507_v50  ;;  %v15820_v34 = vpop.permute.xlu1 %5160 }
 0x2c8   : > { %20081 = vst [vmem:[#allocation64_spill] sm:$0xff] %v15820_v34 }
 0x301   : > { %v3338_v53 = vpop.f32.mrb[4].mxu0 }
 0x302   : > { %v3339_v48 = vadd.f32 %v3338_v53, %v15658_v43  ;;  %v3340_v45 = vpop.f32.mrb[5].mxu0 }
 0x303   : > { %v3341_v1 = vadd.f32 %v3340_v45, %v15658_v43  ;;  %v15822_v45 = vpop.permute.xlu1 %12240 }
 0x304   : > { %v3508_v44 = vmul.f32 %v15798_v7, %v3339_v48  ;;  %20082 = vst [vmem:[#allocation67_spill] sm:$0xff] %v15822_v45 }
 0x305   : > { %v3509_v9 = vmul.f32 %v15800_v0, %v3341_v1  ;;  %v3409_v30 = vpop.f32.mrb[4].mxu1 }
 0x306   : > { %v3519_v60 = vadd.f32 %v3518_v41, %v3508_v44  ;;  %v3410_v29 = vadd.f32 %v3409_v30, %v15658_v43  ;;  %v3411_v6 = vpop.f32.mrb[5].mxu1 }
 0x307   : > { %v3412_v35 = vadd.f32 %v3411_v6, %v15658_v43  ;;  %v15824_v43 = vpop.permute.xlu1 %5338 }
 0x308   : > { %v3520_v17 = vadd.f32 %v3519_v60, %v3509_v9  ;;  %v3510_v51 = vmul.f32 %v15805_v31, %v3410_v29  ;;  %20083 = vst [vmem:[#allocation68_spill] sm:$0xff] %v15824_v43  ;;  %v20116_v43 = vunpack.i.h.bf16 %v15676_v24 }
 0x309   : > { %v3511_v18 = vmul.f32 %v15808_v56, %v3412_v35 }
 0x30a   : > { %v3521_v50 = vadd.f32 %v3520_v17, %v3510_v51 }
 0x30c   : > { %v3522_v53 = vadd.f32 %v3521_v50, %v3511_v18 }
 0x30e   : > { %3523 = vadd.xlane.f32.xlu1 %v3522_v53 }
 0x31f   : > { %12250 = vrot.lane.b32.xlu1 %v19469_v25, %s19508_s28 }
 0x39b   : > { %v3524_v41 = vpop.xlane.xlu1 %3523 }
 0x39c   : > { %v3525_v44 = vmul.f32 0.001953125, %v3524_v41 }
 0x39e   : > { %v3526_v9 = vsub.f32 %v15751_v61, %v3525_v44  ;;  %v3527_v30 = vsub.f32 %v15755_v32, %v3525_v44  ;;  %v3528_v60 = vsub.f32 %v3126_v26, %v3525_v44  ;;  %v3529_v6 = vsub.f32 %v3128_v8, %v3525_v44 }
 0x39f   : > { %v3530_v18 = vsub.f32 %v3197_v5, %v3525_v44  ;;  %v3531_v21 = vsub.f32 %v3199_v37, %v3525_v44  ;;  %v3532_v52 = vsub.f32 %v3268_v22, %v3525_v44  ;;  %v3533_v32 = vsub.f32 %v3270_v54, %v3525_v44 }
 0x3a0   : > { %v3538_v17 = vmul.f32 %v3526_v9, %v15757_v15  ;;  %v3539_v51 = vmul.f32 %v3527_v30, %v15759_v49  ;;  %v3540_v50 = vmul.f32 %v3528_v60, %v15761_v27  ;;  %v3541_v28 = vmul.f32 %v3529_v6, %v15772_v63 }
 0x3a1   : > { %v3542_v41 = vmul.f32 %v3530_v18, %v15776_v19  ;;  %v3543_v26 = vmul.f32 %v3531_v21, %v15782_v62  ;;  %v15834_v59 = vsub.f32 %v3339_v48, %v3525_v44  ;;  %v3544_v5 = vmul.f32 %v3532_v52, %v15784_v46 }
 0x3a2   : > { %v3550_v53 = vmul.f32 %v3538_v17, %v3538_v17  ;;  %v3551_v57 = vmul.f32 %v3539_v51, %v3539_v51  ;;  %v3552_v61 = vmul.f32 %v3540_v50, %v3540_v50  ;;  %v3553_v8 = vmul.f32 %v3541_v28, %v3541_v28 }
 0x3a3   : > { %v3554_v38 = vmul.f32 %v3542_v41, %v3542_v41  ;;  %v15837_v51 = vsub.f32 %v3341_v1, %v3525_v44  ;;  %v3545_v37 = vmul.f32 %v3533_v32, %v15792_v33  ;;  %v3555_v22 = vmul.f32 %v3543_v26, %v3543_v26 }
 0x3a4   : > { %v3562_v11 = vadd.f32 %v3551_v57, %v3550_v53  ;;  %v15840_v25 = vsub.f32 %v3410_v29, %v3525_v44  ;;  %v3546_v57 = vmul.f32 %v15834_v59, %v15798_v7  ;;  %v3556_v54 = vmul.f32 %v3544_v5, %v3544_v5  ;;  %v15852_v5 = vpop.permute.xlu0 %12220 }
 0x3a5   : > { %v3547_v48 = vmul.f32 %v15837_v51, %v15800_v0  ;;  %v3557_v50 = vmul.f32 %v3545_v37, %v3545_v37 }
 0x3a6   : > { %v3563_v2 = vadd.f32 %v3562_v11, %v3552_v61  ;;  %v15844_v11 = vsub.f32 %v3412_v35, %v3525_v44  ;;  %v3548_v1 = vmul.f32 %v15840_v25, %v15805_v31  ;;  %v3558_v53 = vmul.f32 %v3546_v57, %v3546_v57 }
 0x3a7   : > { %v3559_v29 = vmul.f32 %v3547_v48, %v3547_v48 }
 0x3a8   : > { %v3564_v17 = vadd.f32 %v3563_v2, %v3553_v8  ;;  %v3560_v26 = vmul.f32 %v3548_v1, %v3548_v1 }
 0x3aa   : > { %v3565_v12 = vadd.f32 %v3564_v17, %v3554_v38  ;;  %v3549_v38 = vmul.f32 %v15844_v11, %v15808_v56  ;;  %v15854_v17 = vpop.permute.xlu0 %12230 }
 0x3ac   : > { %v3566_v28 = vadd.f32 %v3565_v12, %v3555_v22  ;;  %v3561_v12 = vmul.f32 %v3549_v38, %v3549_v38 }
 0x3ae   : > { %v3567_v2 = vadd.f32 %v3566_v28, %v3556_v54  ;;  %v15856_v37 = vpop.permute.xlu0 %4893 }
 0x3af   : > { %20084 = vst [vmem:[#allocation65_spill] sm:$0xff] %v15856_v37 }
 0x3b0   : > { %v3568_v41 = vadd.f32 %v3567_v2, %v3557_v50 }
 0x3b2   : > { %v3569_v61 = vadd.f32 %v3568_v41, %v3558_v53  ;;  %v15858_v22 = vpop.permute.xlu0 %5071 }
 0x3b3   : > { %20085 = vst [vmem:[#allocation66_spill] sm:$0xff] %v15858_v22 }
 0x3b4   : > { %v3570_v8 = vadd.f32 %v3569_v61, %v3559_v29 }
 0x3b6   : > { %v3571_v35 = vadd.f32 %v3570_v8, %v3560_v26  ;;  %v15860_v57 = vpop.permute.xlu0 %12235 }
 0x3b7   : > { %20086 = vst [vmem:[#allocation69_spill] sm:$0xff] %v15860_v57 }
 0x3b8   : > { %v3572_v44 = vadd.f32 %v3571_v35, %v3561_v12 }
 0x3ba   : > { %3573 = vadd.xlane.f32.xlu0 %v3572_v44  ;;  %v15862_v54 = vpop.permute.xlu0 %5249 }
 0x3bb   : > { %20087 = vst [vmem:[#allocation70_spill] sm:$0xff] %v15862_v54 }
 0x3be   : > { %v15864_v28 = vpop.permute.xlu0 %12245 }
 0x3bf   : > { %20088 = vst [vmem:[#allocation71_spill] sm:$0xff] %v15864_v28 }
 0x447   : > { %v3574_v48 = vpop.xlane.xlu0 %3573 }
 0x448   : > { %v3575_v50 = vmul.f32 0.001953125, %v3574_v48 }
 0x44a   : > { %v3576_v2 = vadd.f32 1e-05, %v3575_v50 }
 0x44c   : > { %13684 = vrsqrt.f32 %v3576_v2 }
 0x456   : > { %v15866_v1 = vpop.eup %13684 }
 0x457   : > { %v3580_v53 = vmul.f32 %v15866_v1, %v3528_v60  ;;  %v3581_v41 = vmul.f32 %v15866_v1, %v3529_v6  ;;  %v3578_v38 = vmul.f32 %v15866_v1, %v3526_v9  ;;  %v3579_v29 = vmul.f32 %v15866_v1, %v3527_v30 }
 0x458   : > { %v3584_v61 = vmul.f32 %v15866_v1, %v3532_v52  ;;  %v3585_v26 = vmul.f32 %v15866_v1, %v3533_v32  ;;  %v3582_v8 = vmul.f32 %v15866_v1, %v3530_v18  ;;  %v3583_v12 = vmul.f32 %v15866_v1, %v3531_v21 }
 0x459   : > { %v3598_v35 = vmul.f32 %v15660_v13, %v3580_v53  ;;  %v3599_v44 = vmul.f32 %v15660_v13, %v3581_v41  ;;  %v3596_v60 = vmul.f32 %v15660_v13, %v3578_v38  ;;  %v3597_v6 = vmul.f32 %v15660_v13, %v3579_v29 }
 0x45a   : > { %v3602_v9 = vmul.f32 %v15660_v13, %v3584_v61  ;;  %v3603_v30 = vmul.f32 %v15660_v13, %v3585_v26  ;;  %v3600_v52 = vmul.f32 %v15660_v13, %v3582_v8  ;;  %v3601_v32 = vmul.f32 %v15660_v13, %v3583_v12 }
 0x45b   : > { %v3616_v18 = vadd.f32 %v15662_v3, %v3598_v35  ;;  %v3617_v21 = vadd.f32 %v15662_v3, %v3599_v44  ;;  %v3614_v48 = vadd.f32 %v15662_v3, %v3596_v60  ;;  %v3615_v50 = vadd.f32 %v15662_v3, %v3597_v6 }
 0x45c   : > { %v3620_v2 = vadd.f32 %v15662_v3, %v3602_v9  ;;  %v3621_v53 = vadd.f32 %v15662_v3, %v3603_v30  ;;  %v3618_v41 = vadd.f32 %v15662_v3, %v3600_v52  ;;  %v3619_v38 = vadd.f32 %v15662_v3, %v3601_v32 }
 0x45d   : > { %v3628_v29 = vmax.f32 %v3616_v18, 0.0  ;;  %v3629_v61 = vmax.f32 %v3617_v21, 0.0  ;;  %v3626_v26 = vmax.f32 %v3614_v48, 0.0  ;;  %v3627_v8 = vmax.f32 %v3615_v50, 0.0 }
 0x45e   : > { %v3632_v12 = vmax.f32 %v3620_v2, 0.0  ;;  %v3633_v35 = vmax.f32 %v3621_v53, 0.0  ;;  %v3630_v34 = vmax.f32 %v3618_v41, 0.0  ;;  %v3631_v44 = vmax.f32 %v3619_v38, 0.0 }
 0x45f   : > { %v15893_v60 = vmul.f32 %v3628_v29, %v15761_v27  ;;  %v15896_v6 = vmul.f32 %v3629_v61, %v15772_v63  ;;  %v15899_v9 = vmul.f32 %v3626_v26, %v15757_v15  ;;  %v15902_v30 = vmul.f32 %v3627_v8, %v15759_v49 }
 0x460   : > { %v15905_v52 = vmul.f32 %v3632_v12, %v15784_v46  ;;  %v15908_v32 = vmul.f32 %v3633_v35, %v15792_v33  ;;  %v15911_v18 = vmul.f32 %v3630_v34, %v15776_v19  ;;  %v15920_v50 = vmul.f32 %v3631_v44, %v15782_v62 }
 0x461   : > { %v12259_v21 = vpack.i.bf16 %v15896_v6, %v15893_v60  ;;  %v15917_v48 = vpack.i.bf16 %v15902_v30, %v15899_v9  ;;  %v3586_v2 = vmul.f32 %v15866_v1, %v15834_v59  ;;  %v3587_v61 = vmul.f32 %v15866_v1, %v15837_v51 }
 0x462   : > { %20089 = vst [vmem:[#allocation72_spill] sm:$0xff] %v15905_v52  ;;  %20090 = vst [vmem:[#allocation73_spill] sm:$0xff] %v15908_v32  ;;  %v15930_v53 = vpack.i.bf16 %v15908_v32, %v15905_v52  ;;  %v15934_v41 = vpack.i.bf16 %v15920_v50, %v15911_v18  ;;  %v20094_v8 = vmov 0.0   ;;  %v12379_v35 = vpack.i.bf16 %v15893_v60, %v15902_v30 }
 0x463   : > { %20091 = vst [vmem:[#allocation74_spill] sm:$0xff] %v15911_v18  ;;  %20092 = vst [vmem:[#allocation75_spill] sm:$0xff] %v15920_v50  ;;  %12260 = vrot.lane.b32.xlu1 %v12259_v21, %s13824_s14  ;;  %12255 = vrot.lane.b32.xlu0 %v15917_v48, %s13824_s14  ;;  %v3604_v34 = vmul.f32 %v15660_v13, %v3586_v2  ;;  %v3605_v26 = vmul.f32 %v15660_v13, %v3587_v61 }
 0x464   : > { %v12374_v12 = vpack.i.bf16 %v15899_v9, %v20094_v8  ;;  %v16003_v44 = vpack.i.bf16 %v15911_v18, %v15896_v6  ;;  %v12489_v61 = vpack.i.bf16 %v15896_v6, %v15899_v9  ;;  %v12584_v28 = vpack.i.bf16 %v15905_v52, %v15896_v6 }
 0x465   : > { %v3622_v38 = vadd.f32 %v15662_v3, %v3604_v34  ;;  %v3623_v51 = vadd.f32 %v15662_v3, %v3605_v26  ;;  %v16056_v26 = vpop.permute.xlu1 %12250 }
 0x466   : > { %20098 = vst [vmem:[#allocation78_spill] sm:$0xff] %v16056_v26 }
 0x467   : > { %12270 = vrot.lane.b32.xlu1 %v15930_v53, %s13824_s14  ;;  %12265 = vrot.lane.b32.xlu0 %v15934_v41, %s13824_s14  ;;  %v3634_v59 = vmax.f32 %v3622_v38, 0.0  ;;  %v3635_v2 = vmax.f32 %v3623_v51, 0.0 }
 0x469   : > { %v15942_v29 = vmul.f32 %v3634_v59, %v15798_v7  ;;  %v16018_v38 = vmul.f32 %v3635_v2, %v15800_v0  ;;  %v12419_v59 = vpack.i.bf16 %v15893_v60, %v20094_v8 }
 0x46b   : > { %20093 = vst [vmem:[#allocation76_spill] sm:$0xff] %v15942_v29  ;;  %12275 = vrot.lane.b32.xlu1 %v15917_v48, %s13823_s29  ;;  %3712 = vrot.lane.b32.xlu0 %v15942_v29, %s13824_s14  ;;  %v16015_v34 = vpack.i.bf16 %v15942_v29, %v15908_v32  ;;  %20095 = vst [vmem:[#allocation77_spill] sm:$0xff] %v16018_v38  ;;  %s19584_s14 = smov 30  }
 0x46f   : > { %12285 = vrot.lane.b32.xlu1 %v15934_v41, %s13823_s29  ;;  %12280 = vrot.lane.b32.xlu0 %v12259_v21, %s13823_s29 }
 0x473   : > { %3801 = vrot.lane.b32.xlu1 %v15942_v29, %s13823_s29  ;;  %12290 = vrot.lane.b32.xlu0 %v15930_v53, %s13823_s29  ;;  %s20096_s29 = smov 108  }
 0x477   : > { %12300 = vrot.lane.b32.xlu1 %v12259_v21, %s19495_s7  ;;  %12295 = vrot.lane.b32.xlu0 %v15917_v48, %s19495_s7 }
 0x47b   : > { %12310 = vrot.lane.b32.xlu1 %v15930_v53, %s19495_s7  ;;  %12305 = vrot.lane.b32.xlu0 %v15934_v41, %s19495_s7 }
 0x47f   : > { %12315 = vrot.lane.b32.xlu1 %v15917_v48, %s19471_s13  ;;  %3890 = vrot.lane.b32.xlu0 %v15942_v29, %s19495_s7  ;;  %s20105_s7 = smov 20  }
 0x483   : > { %12325 = vrot.lane.b32.xlu1 %v15934_v41, %s19471_s13  ;;  %12320 = vrot.lane.b32.xlu0 %v12259_v21, %s19471_s13 }
 0x487   : > { %3979 = vrot.lane.b32.xlu1 %v15942_v29, %s19471_s13  ;;  %12330 = vrot.lane.b32.xlu0 %v15930_v53, %s19471_s13  ;;  %s20099_s13 = smov 98  }
 0x48b   : > { %12340 = vrot.lane.b32.xlu1 %v12259_v21, %s13827_s17  ;;  %12335 = vrot.lane.b32.xlu0 %v15917_v48, %s13827_s17 }
 0x48f   : > { %12350 = vrot.lane.b32.xlu1 %v15930_v53, %s13827_s17  ;;  %12345 = vrot.lane.b32.xlu0 %v15934_v41, %s13827_s17 }
 0x493   : > { %12355 = vrot.lane.b32.xlu1 %v15917_v48, %s13828_s15  ;;  %4068 = vrot.lane.b32.xlu0 %v15942_v29, %s13827_s17  ;;  %s20097_s17 = smov 106  }
 0x497   : > { %12365 = vrot.lane.b32.xlu1 %v15934_v41, %s13828_s15  ;;  %12360 = vrot.lane.b32.xlu0 %v12259_v21, %s13828_s15  ;;  %v16007_v21 = vpack.i.bf16 %v15905_v52, %v15920_v50 }
 0x49b   : > { %4157 = vrot.lane.b32.xlu1 %v15942_v29, %s13828_s15  ;;  %12370 = vrot.lane.b32.xlu0 %v15930_v53, %s13828_s15  ;;  %s19569_s15 = smov 28  }
 0x49f   : > { %12375 = vrot.lane.b32.xlu1 %v12374_v12, %s13829_s16  ;;  %12380 = vrot.lane.b32.xlu0 %v12379_v35, %s13829_s16 }
 0x4a3   : > { %12385 = vrot.lane.b32.xlu1 %v16003_v44, %s13829_s16  ;;  %12390 = vrot.lane.b32.xlu0 %v16007_v21, %s13829_s16 }
 0x4a7   : > { %12395 = vrot.lane.b32.xlu1 %v16015_v34, %s13829_s16  ;;  %4246 = vrot.lane.b32.xlu0 %v16018_v38, %s13829_s16  ;;  %s19565_s16 = smov 26  }
 0x4ab   : > { %12405 = vrot.lane.b32.xlu1 %v12379_v35, %s20096_s29  ;;  %12400 = vrot.lane.b32.xlu0 %v12374_v12, %s20096_s29 }
 0x4af   : > { %12410 = vrot.lane.b32.xlu1 %v15917_v48, %s19584_s14  ;;  %12415 = vrot.lane.b32.xlu0 %v12374_v12, %s20097_s17 }
 0x4b3   : > { %12420 = vrot.lane.b32.xlu1 %v12419_v59, %s19584_s14  ;;  %12425 = vrot.lane.b32.xlu0 %v12379_v35, %s20097_s17 }
 0x4b7   : > { %12430 = vrot.lane.b32.xlu1 %v16003_v44, %s19584_s14  ;;  %12435 = vrot.lane.b32.xlu0 %v15917_v48, %s19569_s15 }
 0x4bb   : > { %12440 = vrot.lane.b32.xlu1 %v15917_v48, %s19565_s16  ;;  %12445 = vrot.lane.b32.xlu0 %v12419_v59, %s19569_s15 }
 0x4bf   : > { %12450 = vrot.lane.b32.xlu1 %v12419_v59, %s19565_s16  ;;  %12455 = vrot.lane.b32.xlu0 %v16003_v44, %s19569_s15 }
 0x4c3   : > { %12460 = vrot.lane.b32.xlu1 %v16003_v44, %s19565_s16  ;;  %12465 = vrot.lane.b32.xlu0 %v15917_v48, %s19562_s19 }
 0x4c7   : > { %12470 = vrot.lane.b32.xlu1 %v12419_v59, %s19562_s19  ;;  %12475 = vrot.lane.b32.xlu0 %v16003_v44, %s19562_s19 }
 0x4cb   : > { %12480 = vrot.lane.b32.xlu1 %v12379_v35, %s19531_s26  ;;  %12485 = vrot.lane.b32.xlu0 %v12379_v35, %s19517_s10 }
 0x4cf   : > { %12490 = vrot.lane.b32.xlu1 %v12489_v61, %s19531_s26  ;;  %12495 = vrot.lane.b32.xlu0 %v12489_v61, %s19517_s10 }
 0x4d3   : > { %12500 = vrot.lane.b32.xlu1 %v15934_v41, %s19531_s26  ;;  %12505 = vrot.lane.b32.xlu0 %v15934_v41, %s19517_s10  ;;  %s19687_s10 = smov 94   ;;  %s19601_s26 = smov 90  }
 0x4d5   : > { %v16062_v48 = vpop.permute.xlu0 %12255  ;;  %v16064_v12 = vpop.permute.xlu1 %12260 }
 0x4d6   : > { %v19491_v59 = vunpack.i.h.bf16 %v16062_v48  ;;  %v12257_v0 = vunpack.i.l.bf16 %v16062_v48 }
 0x4d7   : > { %12510 = vrot.lane.b32.xlu1 %v12379_v35, %s19499_s18  ;;  %12515 = vrot.lane.b32.xlu0 %v12379_v35, %s20099_s13 }
 0x4d8   : > { %v16085_v62 = vsel %vm3714_vm5, %v12257_v0, %v19491_v59  ;;  %v20104_v59 = vunpack.i.h.bf16 %v15668_v20 }
 0x4d9   : > { %v16068_v51 = vpop.permute.xlu0 %12265  ;;  %v16070_v2 = vpop.permute.xlu1 %12270 }
 0x4da   : > { %20100 = vst [vmem:[#allocation79_spill] sm:$0xff] %v16070_v2  ;;  %v19497_v63 = vunpack.i.h.bf16 %v16068_v51  ;;  %v20106_v20 = vunpack.i.l.bf16 %v16068_v51 }
 0x4db   : > { %12520 = vrot.lane.b32.xlu1 %v12489_v61, %s19499_s18  ;;  %12525 = vrot.lane.b32.xlu0 %v12489_v61, %s20099_s13  ;;  %v20102_v61 = vunpack.i.h.bf16 %v15666_v40 }
 0x4dd   : > { %v16076_v7 = vpop.permute.xlu0 %3712  ;;  %v16078_v33 = vpop.permute.xlu1 %12275  ;;  %v3718_v19 = vsel %vm3714_vm5, %v20102_v61, %v12257_v0 }
 0x4de   : > { %20101 = vst [vmem:[#allocation22_spill] sm:$0xff] %v16076_v7  ;;  %v12277_v35 = vunpack.i.l.bf16 %v16078_v33  ;;  %v20103_v27 = vunpack.i.h.bf16 %v16078_v33 }
 0x4df   : > { %12530 = vrot.lane.b32.xlu1 %v15934_v41, %s19499_s18  ;;  %12535 = vrot.lane.b32.xlu0 %v15934_v41, %s20099_s13  ;;  %s20113_s18 = smov 18  }
 0x4e0   : > { %v16099_v49 = vsel %vm3803_vm9, %v12277_v35, %v20103_v27  ;;  %v3807_v15 = vsel %vm3803_vm9, %v20104_v59, %v12277_v35  ;;  %v16121_v27 = vsel %vm3714_vm5, %v20106_v20, %v19497_v63  ;;  %v12549_v20 = vpack.i.bf16 %v15920_v50, %v15893_v60 }
 0x4e1   : > { %v16104_v26 = vpop.permute.xlu0 %12280  ;;  %v16106_v22 = vpop.permute.xlu1 %12285  ;;  %v10715_v40 = vpack.c.bf16 %v3807_v15, %v3718_v19  ;;  %20107 = vst [vmem:[#allocation19_spill] sm:$0xff] %v16121_v27  ;;  %v20109_v19 = vpack.c.bf16 %v15714_v39, %v15709_v47 }
 0x4e2   : > { %v19498_v61 = vunpack.i.h.bf16 %v16106_v22  ;;  %v19501_v46 = vunpack.i.l.bf16 %v16106_v22 }
 0x4e3   : > { %12540 = vrot.lane.b32.xlu1 %v16003_v44, %s19510_s11  ;;  %12545 = vrot.lane.b32.xlu0 %v16003_v44, %s20105_s7 }
 0x4e4   : > { %v16128_v15 = vsel %vm3803_vm9, %v19501_v46, %v19498_v61  ;;  %10716 = vmatprep.subr.bf16.mxu1 %v10715_v40 }
 0x4e5   : > { %20108 = vst [vmem:[#allocation21_spill] sm:$0xff] %v16128_v15  ;;  %10718 = vmatpush1.bf16.msra.mxu1 %v20109_v19  ;;  %v16133_v59 = vpop.permute.xlu0 %12290  ;;  %v16135_v35 = vpop.permute.xlu1 %3801 }
 0x4e6   : > { %20110 = vst [vmem:[#allocation20_spill] sm:$0xff] %v16133_v59  ;;  %20111 = vst [vmem:[#allocation52_spill] sm:$0xff] %v16135_v35  ;;  %v20131_v35 = vunpack.i.h.bf16 %v15697_v14  ;;  %v10327_v14 = vld [vmem:[%s19330_s2 + $0x18] sm:$0xff] }
 0x4e7   : > { %12550 = vrot.lane.b32.xlu1 %v12549_v20, %s19510_s11  ;;  %12555 = vrot.lane.b32.xlu0 %v12549_v20, %s20105_s7 }
 0x4e8   : > { %10329 = vmatprep.mubr.msk.f32.mxu0 %vm2984_vm8, %v10327_v14  ;;  %10330 = vmatprep.mubr.msk.f32.mxu1 %vm2984_vm8, %v10327_v14  ;;  %v12223_v14 = vunpack.i.h.bf16 %v15852_v5 }
 0x4e9   : > { %v16143_v61 = vpop.permute.xlu0 %12295  ;;  %v16145_v40 = vpop.permute.xlu1 %12300 }
 0x4ea   : > { %v19506_v19 = vunpack.i.h.bf16 %v16143_v61  ;;  %v12297_v63 = vunpack.i.l.bf16 %v16143_v61 }
 0x4eb   : > { %12560 = vrot.lane.b32.xlu1 %v15930_v53, %s19510_s11  ;;  %12565 = vrot.lane.b32.xlu0 %v15930_v53, %s20105_s7  ;;  %s19529_s11 = smov 118  }
 0x4ec   : > { %v16172_v37 = vsel %vm3892_vm10, %v12297_v63, %v19506_v19  ;;  %v3896_v57 = vsel %vm3892_vm10, %v20116_v43, %v12297_v63  ;;  %v20118_v19 = vunpack.i.h.bf16 %v15678_v36 }
 0x4ed   : > { %v16151_v47 = vpop.permute.xlu0 %12305  ;;  %v16153_v39 = vpop.permute.xlu1 %12310  ;;  %20115 = vst [vmem:[#allocation47_spill] sm:$0xff] %v16172_v37 }
 0x4ee   : > { %20112 = vst [vmem:[#allocation30_spill] sm:$0xff] %v16153_v39  ;;  %v19512_v45 = vunpack.i.h.bf16 %v16151_v47  ;;  %v20119_v36 = vunpack.i.l.bf16 %v16151_v47 }
 0x4ef   : > { %12570 = vrot.lane.b32.xlu1 %v16003_v44, %s20113_s18  ;;  %12575 = vrot.lane.b32.xlu0 %v15934_v41, %s19508_s28 }
 0x4f1   : > { %v16161_v0 = vpop.permute.xlu0 %3890  ;;  %v16163_v46 = vpop.permute.xlu1 %12315 }
 0x4f2   : > { %20114 = vst [vmem:[#allocation27_spill] sm:$0xff] %v16161_v0  ;;  %v19515_v54 = vunpack.i.h.bf16 %v16163_v46  ;;  %v12317_v42 = vunpack.i.l.bf16 %v16163_v46 }
 0x4f3   : > { %12580 = vrot.lane.b32.xlu1 %v12549_v20, %s20113_s18  ;;  %12585 = vrot.lane.b32.xlu0 %v12584_v28, %s19508_s28 }
 0x4f4   : > { %v16184_v27 = vsel %vm3981_vm14, %v12317_v42, %v19515_v54  ;;  %v3985_v15 = vsel %vm3981_vm14, %v20118_v19, %v12317_v42  ;;  %v16206_v42 = vsel %vm3892_vm10, %v20119_v36, %v19512_v45 }
 0x4f5   : > { %20117 = vst [vmem:[#allocation25_spill] sm:$0xff] %v16184_v27  ;;  %v16189_v20 = vpop.permute.xlu0 %12320  ;;  %v16191_v7 = vpop.permute.xlu1 %12325  ;;  %v10719_v24 = vpack.c.bf16 %v3985_v15, %v3896_v57  ;;  %20120 = vst [vmem:[#allocation24_spill] sm:$0xff] %v16206_v42  ;;  %v20122_v15 = vpack.c.bf16 %v15728_v58, %v15723_v23 }
 0x4f6   : > { %v19513_v43 = vunpack.i.h.bf16 %v16191_v7  ;;  %v19514_v0 = vunpack.i.l.bf16 %v16191_v7 }
 0x4f7   : > { %12590 = vrot.lane.b32.xlu1 %v15930_v53, %s20113_s18  ;;  %12595 = vrot.lane.b32.xlu0 %v16015_v34, %s19508_s28  ;;  %s19519_s28 = smov 120  }
 0x4f8   : > { %v16213_v57 = vsel %vm3981_vm14, %v19514_v0, %v19513_v43  ;;  %10720 = vmatprep.subr.bf16.mxu1 %v10719_v24 }
 0x4f9   : > { %20121 = vst [vmem:[#allocation43_spill] sm:$0xff] %v16213_v57  ;;  %10722 = vmatpush1.bf16.msra.mxu1 %v20122_v15  ;;  %v16218_v19 = vpop.permute.xlu0 %12330  ;;  %v16220_v63 = vpop.permute.xlu1 %3979 }
 0x4fa   : > { %20123 = vst [vmem:[#allocation42_spill] sm:$0xff] %v16218_v19  ;;  %20124 = vst [vmem:[#allocation31_spill] sm:$0xff] %v16220_v63  ;;  %v20130_v63 = vunpack.i.h.bf16 %v15693_v55 }
 0x4fb   : > { %12600 = vrot.lane.b32.xlu1 %v15934_v41, %s19519_s28  ;;  %12605 = vrot.lane.b32.xlu0 %v15934_v41, %s19529_s11 }
 0x4fd   : > { %v16228_v24 = vpop.permute.xlu0 %12335  ;;  %v16230_v45 = vpop.permute.xlu1 %12340 }
 0x4fe   : > { %v19526_v15 = vunpack.i.h.bf16 %v16228_v24  ;;  %v12337_v36 = vunpack.i.l.bf16 %v16228_v24 }
 0x4ff   : > { %12610 = vrot.lane.b32.xlu1 %v12584_v28, %s19519_s28  ;;  %12615 = vrot.lane.b32.xlu0 %v12584_v28, %s19529_s11 }
 0x500   : > { %v16257_v57 = vsel %vm19625_vm15, %v12337_v36, %v19526_v15 }
 0x501   : > { %v16234_v23 = vpop.permute.xlu0 %12345  ;;  %v16236_v58 = vpop.permute.xlu1 %12350  ;;  %20128 = vst [vmem:[#allocation29_spill] sm:$0xff] %v16257_v57 }
 0x502   : > { %20125 = vst [vmem:[#allocation28_spill] sm:$0xff] %v16234_v23  ;;  %20126 = vst [vmem:[#allocation37_spill] sm:$0xff] %v16236_v58  ;;  %v4074_v58 = vsel %vm19625_vm15, %v20130_v63, %v12337_v36  ;;  %v19535_v19 = vunpack.i.l.bf16 %v16234_v23 }
 0x503   : > { %12620 = vrot.lane.b32.xlu1 %v16015_v34, %s19519_s28  ;;  %12625 = vrot.lane.b32.xlu0 %v16015_v34, %s19529_s11  ;;  %s13847_s28 = smov 92   ;;  %s20146_s11 = smov 126  }
 0x505   : > { %v16244_v43 = vpop.permute.xlu0 %4068  ;;  %v16246_v0 = vpop.permute.xlu1 %12355 }
 0x506   : > { %20127 = vst [vmem:[#allocation36_spill] sm:$0xff] %v16244_v43  ;;  %v19528_v54 = vunpack.i.h.bf16 %v16246_v0  ;;  %v12357_v42 = vunpack.i.l.bf16 %v16246_v0 }
 0x507   : > { %12630 = vrot.lane.b32.xlu1 %v15934_v41, %s19687_s10  ;;  %12635 = vrot.lane.b32.xlu0 %v15934_v41, %s13847_s28  ;;  %v19533_v41 = vunpack.i.h.bf16 %v16234_v23 }
 0x508   : > { %v16262_v43 = vsel %vm4159_vm2, %v12357_v42, %v19528_v54  ;;  %v4163_v39 = vsel %vm4159_vm2, %v20131_v35, %v12357_v42 }
 0x509   : > { %20129 = vst [vmem:[#allocation32_spill] sm:$0xff] %v16262_v43  ;;  %v16272_v2 = vpop.permute.xlu0 %12360  ;;  %v16274_v15 = vpop.permute.xlu1 %12365  ;;  %v10723_v59 = vpack.c.bf16 %v4163_v39, %v4074_v58  ;;  %v16298_v39 = vsel %vm19625_vm15, %v19535_v19, %v19533_v41 }
 0x50a   : > { %20132 = vst [vmem:[#allocation51_spill] sm:$0xff] %v16274_v15  ;;  %v19534_v55 = vunpack.i.h.bf16 %v16274_v15  ;;  %v19536_v63 = vunpack.i.l.bf16 %v16274_v15  ;;  %20134 = vst [vmem:[#allocation45_spill] sm:$0xff] %v16298_v39 }
 0x50b   : > { %12640 = vrot.lane.b32.xlu1 %v12584_v28, %s19687_s10  ;;  %12645 = vrot.lane.b32.xlu0 %v12584_v28, %s13847_s28  ;;  %v20135_v28 = vpack.c.bf16 %v15742_v10, %v15737_v16 }
 0x50c   : > { %v16290_v35 = vsel %vm4159_vm2, %v19536_v63, %v19534_v55  ;;  %10724 = vmatprep.subr.bf16.mxu1 %v10723_v59  ;;  %v12228_v59 = vunpack.i.h.bf16 %v15816_v4  ;;  %v12227_v55 = vunpack.i.l.bf16 %v15816_v4 }
 0x50d   : > { %20133 = vst [vmem:[#allocation46_spill] sm:$0xff] %v16290_v35  ;;  %10726 = vmatpush1.bf16.msra.mxu1 %v20135_v28  ;;  %v16303_v42 = vpop.permute.xlu0 %12370  ;;  %v16305_v36 = vpop.permute.xlu1 %4157  ;;  %v12222_v28 = vunpack.i.l.bf16 %v15852_v5 }
 0x50e   : > { %20136 = vst [vmem:[#allocation48_spill] sm:$0xff] %v16303_v42  ;;  %20137 = vst [vmem:[#allocation41_spill] sm:$0xff] %v16305_v36  ;;  %v4338_v4 = vsel %vm19623_vm3, %v12227_v55, %v12228_v59  ;;  %v12232_v42 = vunpack.i.l.bf16 %v15854_v17 }
 0x50f   : > { %12650 = vrot.lane.b32.xlu1 %v16015_v34, %s19687_s10  ;;  %12655 = vrot.lane.b32.xlu0 %v16015_v34, %s13847_s28  ;;  %v4249_v5 = vsel %vm19622_vm11, %v12222_v28, %v12223_v14 }
 0x511   : > { %v16314_v58 = vpop.permute.xlu0 %12380  ;;  %v12376_v41 = vpop.permute.xlu1 %12375 }
 0x512   : > { %20138 = vst [vmem:[#allocation44_spill] sm:$0xff] %v16314_v58  ;;  %v12382_v54 = vunpack.i.l.bf16 %v16314_v58  ;;  %v12378_v35 = vunpack.i.h.bf16 %v12376_v41  ;;  %v12377_v36 = vunpack.i.l.bf16 %v12376_v41 }
 0x513   : > { %5939 = vrot.lane.b32.xlu1 %v15911_v18, %s19601_s26  ;;  %5941 = vrot.lane.b32.xlu0 %v15920_v50, %s19601_s26 }
 0x514   : > { %v4251_v50 = vsel %vm19622_vm11, %v12377_v36, %v12378_v35  ;;  %v4252_v19 = vsel %vm19622_vm11, %v12378_v35, %v12382_v54 }
 0x515   : > { %v16320_v16 = vpop.permute.xlu0 %12390  ;;  %v16322_v10 = vpop.permute.xlu1 %12385 }
 0x517   : > { %5937 = vrot.lane.b32.xlu1 %v15896_v6, %s19601_s26  ;;  %5943 = vrot.lane.b32.xlu0 %v15905_v52, %s19601_s26 }
 0x519   : > { %v16334_v63 = vpop.permute.xlu0 %4246  ;;  %v16336_v39 = vpop.permute.xlu1 %12395 }
 0x51a   : > { %20139 = vst [vmem:[#allocation61_spill] sm:$0xff] %v16334_v63  ;;  %20140 = vst [vmem:[#allocation58_spill] sm:$0xff] %v16336_v39  ;;  %v20141_v63 = vunpack.i.h.bf16 %v16314_v58 }
 0x51b   : > { %5945 = vrot.lane.b32.xlu1 %v15908_v32, %s19601_s26  ;;  %12660 = vrot.lane.b32.xlu0 %v16003_v44, %s20096_s29 }
 0x51c   : > { %v16349_v39 = vsel %vm19622_vm11, %v12382_v54, %v20141_v63  ;;  %v4250_v63 = vsel %vm19622_vm11, %v12223_v14, %v12377_v36  ;;  %v10677_v14 = vpack.c.bf16 %v4338_v4, %v4249_v5 }
 0x51d   : > { %v12401_v28 = vpop.permute.xlu0 %12400  ;;  %v16351_v55 = vpop.permute.xlu1 %12405 }
 0x51e   : > { %v12403_v41 = vunpack.i.h.bf16 %v12401_v28  ;;  %v12402_v52 = vunpack.i.l.bf16 %v12401_v28  ;;  %v19556_v32 = vunpack.i.h.bf16 %v16351_v55  ;;  %v12407_v18 = vunpack.i.l.bf16 %v16351_v55 }
 0x51f   : > { %12665 = vrot.lane.b32.xlu1 %v16007_v21, %s20096_s29  ;;  %12670 = vrot.lane.b32.xlu0 %v16003_v44, %s20097_s17 }
 0x520   : > { %v4340_v23 = vsel %vm19623_vm3, %v12402_v52, %v12403_v41  ;;  %v16366_v28 = vsel %vm19623_vm3, %v12407_v18, %v19556_v32  ;;  %v4339_v57 = vsel %vm19623_vm3, %v12228_v59, %v12402_v52  ;;  %v4341_v43 = vsel %vm19623_vm3, %v12403_v41, %v12407_v18 }
 0x521   : > { %v12416_v58 = vpop.permute.xlu0 %12415  ;;  %v12411_v15 = vpop.permute.xlu1 %12410  ;;  %v10675_v37 = vpack.c.bf16 %v4339_v57, %v4250_v63  ;;  %v10727_v44 = vpack.c.bf16 %v4341_v43, %v4252_v19  ;;  %v10729_v27 = vpack.c.bf16 %v4340_v23, %v4251_v50  ;;  %v20142_v18 = vunpack.i.h.bf16 %v15854_v17 }
 0x522   : > { %v12413_v35 = vunpack.i.h.bf16 %v12411_v15  ;;  %v12412_v36 = vunpack.i.l.bf16 %v12411_v15  ;;  %v12417_v52 = vunpack.i.l.bf16 %v12416_v58  ;;  %v12418_v41 = vunpack.i.h.bf16 %v12416_v58 }
 0x523   : > { %12680 = vrot.lane.b32.xlu0 %v16007_v21, %s20097_s17  ;;  %12675 = vrot.lane.b32.xlu1 %v16007_v21, %s19584_s14  ;;  %v4428_v43 = vsel %vm19621_vm1, %v12232_v42, %v20142_v18 }
 0x524   : > { %10676 = vmatprep.subr.bf16.mxu0 %v10675_v37  ;;  %10728 = vmatprep.subr.bf16.mxu1 %v10727_v44  ;;  %v4517_v50 = vsel %vm19620_vm7, %v12412_v36, %v12413_v35  ;;  %v4427_v37 = vsel %vm19621_vm1, %v12417_v52, %v12232_v42 }
 0x525   : > { %10678 = vmatpush1.bf16.msra.mxu0 %v10677_v14  ;;  %10730 = vmatpush1.bf16.msra.mxu1 %v10729_v27  ;;  %v16380_v57 = vpop.permute.xlu0 %12425  ;;  %v12421_v19 = vpop.permute.xlu1 %12420  ;;  %v10679_v23 = vpack.c.bf16 %v4517_v50, %v4428_v43  ;;  %v3588_v50 = vmul.f32 %v15866_v1, %v15840_v25 }
 0x526   : > { %v12422_v15 = vunpack.i.l.bf16 %v12421_v19  ;;  %v19555_v59 = vunpack.i.h.bf16 %v16380_v57  ;;  %v12427_v5 = vunpack.i.l.bf16 %v16380_v57  ;;  %v12423_v4 = vunpack.i.h.bf16 %v12421_v19 }
 0x527   : > { %12690 = vrot.lane.b32.xlu0 %v16007_v21, %s19569_s15  ;;  %12685 = vrot.lane.b32.xlu1 %v16015_v34, %s19584_s14  ;;  %s20160_s14 = smov 118  }
 0x528   : > { %v4516_v27 = vsel %vm19620_vm7, %v12422_v15, %v12412_v36  ;;  %10680 = vmatprep.subr.bf16.mxu0 %v10679_v23  ;;  %v16401_v42 = vsel %vm19621_vm1, %v12427_v5, %v19555_v59  ;;  %v4518_v36 = vsel %vm19620_vm7, %v12413_v35, %v12423_v4  ;;  %v4430_v58 = vsel %vm19621_vm1, %v12418_v41, %v12427_v5 }
 0x529   : > { %v16390_v63 = vpop.permute.xlu0 %12435  ;;  %v16392_v44 = vpop.permute.xlu1 %12430  ;;  %v10681_v14 = vpack.c.bf16 %v4516_v27, %v4427_v37  ;;  %20143 = vst [vmem:[#allocation55_spill] sm:$0xff] %v16401_v42  ;;  %v20145_v27 = vunpack.i.h.bf16 %v15854_v17 }
 0x52a   : > { %v19557_v18 = vunpack.i.h.bf16 %v16392_v44  ;;  %v12432_v43 = vunpack.i.l.bf16 %v16392_v44  ;;  %v19559_v52 = vunpack.i.h.bf16 %v16390_v63  ;;  %v12437_v19 = vunpack.i.l.bf16 %v16390_v63 }
 0x52b   : > { %12700 = vrot.lane.b32.xlu0 %v16015_v34, %s19569_s15  ;;  %12695 = vrot.lane.b32.xlu1 %v16007_v21, %s19565_s16  ;;  %v4429_v54 = vsel %vm19621_vm1, %v20145_v27, %v12418_v41  ;;  %s20153_s15 = smov 22  }
 0x52c   : > { %v16414_v25 = vsel %vm19620_vm7, %v12432_v43, %v19557_v18  ;;  %10682 = vmatpush1.bf16.msra.mxu0 %v10681_v14  ;;  %v4519_v35 = vsel %vm19620_vm7, %v12423_v4, %v12432_v43  ;;  %v10733_v4 = vpack.c.bf16 %v4518_v36, %v4429_v54  ;;  %v3589_v14 = vmul.f32 %v15866_v1, %v15844_v11 }
 0x52d   : > { %20144 = vst [vmem:[#allocation54_spill] sm:$0xff] %v16414_v25  ;;  %v12446_v23 = vpop.permute.xlu0 %12445  ;;  %v12441_v15 = vpop.permute.xlu1 %12440  ;;  %v10731_v37 = vpack.c.bf16 %v4519_v35, %v4430_v58  ;;  %v4606_v17 = vsel %vm19624_vm13, %v12437_v19, %v19559_v52  ;;  %v16437_v54 = vpack.i.bf16 %v16018_v38, %v15942_v29 }
 0x52e   : > { %v12443_v59 = vunpack.i.h.bf16 %v12441_v15  ;;  %v12442_v32 = vunpack.i.l.bf16 %v12441_v15  ;;  %v12447_v43 = vunpack.i.l.bf16 %v12446_v23  ;;  %v3606_v15 = vmul.f32 %v15660_v13, %v3588_v50 }
 0x52f   : > { %12710 = vrot.lane.b32.xlu0 %v16007_v21, %s19562_s19  ;;  %12705 = vrot.lane.b32.xlu1 %v16015_v34, %s19565_s16  ;;  %s20150_s16 = smov 100  }
 0x530   : > { %10732 = vmatprep.subr.bf16.mxu1 %v10731_v37  ;;  %v4695_v41 = vsel %vm19572_vm12, %v12442_v32, %v12443_v59  ;;  %v3607_v37 = vmul.f32 %v15660_v13, %v3589_v14  ;;  %v4605_v50 = vsel %vm19624_vm13, %v12447_v43, %v12437_v19 }
 0x531   : > { %10734 = vmatpush1.bf16.msra.mxu1 %v10733_v4  ;;  %v16432_v58 = vpop.permute.xlu0 %12455  ;;  %v12451_v35 = vpop.permute.xlu1 %12450  ;;  %v10683_v21 = vpack.c.bf16 %v4695_v41, %v4606_v17  ;;  %v12448_v17 = vunpack.i.h.bf16 %v12446_v23 }
 0x532   : > { %v12452_v27 = vunpack.i.l.bf16 %v12451_v35  ;;  %v12457_v1 = vunpack.i.l.bf16 %v16432_v58  ;;  %v12453_v36 = vunpack.i.h.bf16 %v12451_v35  ;;  %v3624_v35 = vadd.f32 %v15662_v3, %v3606_v15 }
 0x533   : > { %12720 = vrot.lane.b32.xlu0 %v15930_v53, %s20146_s11  ;;  %12715 = vrot.lane.b32.xlu1 %v16015_v34, %s19562_s19  ;;  %v20147_v13 = vunpack.i.h.bf16 %v16432_v58  ;;  %s20148_s19 = smov 102   ;;  %v3625_v23 = vadd.f32 %v15662_v3, %v3607_v37  ;;  %v20149_v37 = vunpack.i.h.bf16 %v16390_v63 }
 0x534   : > { %v4694_v4 = vsel %vm19572_vm12, %v12452_v27, %v12442_v32  ;;  %10684 = vmatprep.subr.bf16.mxu0 %v10683_v21  ;;  %v4696_v32 = vsel %vm19572_vm12, %v12443_v59, %v12453_v36  ;;  %v4608_v21 = vsel %vm19624_vm13, %v12448_v17, %v12457_v1 }
 0x535   : > { %v12466_v41 = vpop.permute.xlu0 %12465  ;;  %v16448_v5 = vpop.permute.xlu1 %12460  ;;  %v10685_v18 = vpack.c.bf16 %v4694_v4, %v4605_v50  ;;  %v16456_v19 = vsel %vm19624_vm13, %v12457_v1, %v20147_v13  ;;  %v3637_v63 = vmax.f32 %v3625_v23, 0.0 }
 0x536   : > { %v12468_v52 = vunpack.i.h.bf16 %v12466_v41  ;;  %v12467_v11 = vunpack.i.l.bf16 %v12466_v41  ;;  %v19564_v42 = vunpack.i.h.bf16 %v16448_v5  ;;  %v12462_v25 = vunpack.i.l.bf16 %v16448_v5 }
 0x537   : > { %12730 = vrot.lane.b32.xlu0 %v16437_v54, %s20146_s11  ;;  %12725 = vrot.lane.b32.xlu1 %v15930_v53, %s20148_s19  ;;  %v4607_v41 = vsel %vm19624_vm13, %v20149_v37, %v12448_v17 }
 0x538   : > { %v16467_v14 = vsel %vm19572_vm12, %v12462_v25, %v19564_v42  ;;  %10686 = vmatpush1.bf16.msra.mxu0 %v10685_v18  ;;  %v4784_v43 = vsel %vm19571_vm6, %v12467_v11, %v12468_v52  ;;  %v4697_v59 = vsel %vm19572_vm12, %v12453_v36, %v12462_v25  ;;  %v10737_v25 = vpack.c.bf16 %v4696_v32, %v4607_v41 }
 0x539   : > { %v16472_v15 = vpop.permute.xlu0 %12475  ;;  %v12471_v27 = vpop.permute.xlu1 %12470  ;;  %v10687_v50 = vpack.c.bf16 %v15902_v30, %v4784_v43  ;;  %v10735_v4 = vpack.c.bf16 %v4697_v59, %v4608_v21  ;;  %v3636_v30 = vmax.f32 %v3624_v35, 0.0  ;;  %v16503_v41 = vmul.f32 %v3637_v63, %v15808_v56 }
 0x53a   : > { %v19575_v18 = vunpack.i.l.bf16 %v16472_v15  ;;  %v12473_v13 = vunpack.i.h.bf16 %v12471_v27  ;;  %v12472_v42 = vunpack.i.l.bf16 %v12471_v27  ;;  %vm19593_vm12 = vcmask 818176  }
 0x53b   : > { %12740 = vrot.lane.b32.xlu0 %v15930_v53, %s20150_s16  ;;  %12735 = vrot.lane.b32.xlu1 %v16437_v54, %s20148_s19  ;;  %v16500_v37 = vmul.f32 %v3636_v30, %v15805_v31  ;;  %20152 = vst [vmem:[#allocation59_spill] sm:$0xff] %v16503_v41 }
 0x53c   : > { %v4785_v1 = vsel %vm19571_vm6, %v12468_v52, %v12473_v13  ;;  %v4783_v36 = vsel %vm19571_vm6, %v12472_v42, %v12467_v11  ;;  %10688 = vmatprep.subr.bf16.mxu0 %v10687_v50  ;;  %10736 = vmatprep.subr.bf16.mxu1 %v10735_v4  ;;  %v4786_v59 = vsel %vm19571_vm6, %v12473_v13, %v19575_v18  ;;  %vm19592_vm6 = vcmask 801792  }
 0x53d   : > { %10738 = vmatpush1.bf16.msra.mxu1 %v10737_v25  ;;  %v12486_v17 = vpop.permute.xlu0 %12485  ;;  %v12481_v43 = vpop.permute.xlu1 %12480  ;;  %v10689_v21 = vpack.c.bf16 %v15899_v9, %v4783_v36  ;;  %v10741_v32 = vpack.c.bf16 %v15893_v60, %v4785_v1  ;;  %v10739_v11 = vpack.c.bf16 %v15896_v6, %v4786_v59  ;;  %20151 = vst [vmem:[#allocation62_spill] sm:$0xff] %v16500_v37 }
 0x53e   : > { %v12488_v35 = vunpack.i.h.bf16 %v12486_v17  ;;  %v12487_v52 = vunpack.i.l.bf16 %v12486_v17  ;;  %v12483_v27 = vunpack.i.h.bf16 %v12481_v43  ;;  %v12482_v42 = vunpack.i.l.bf16 %v12481_v43 }
 0x53f   : > { %12750 = vrot.lane.b32.xlu0 %v16437_v54, %s20150_s16  ;;  %12745 = vrot.lane.b32.xlu1 %v15930_v53, %s20099_s13  ;;  %v16517_v17 = vpack.i.bf16 %v16503_v41, %v16500_v37 }
 0x540   : > { %10690 = vmatpush1.bf16.msra.mxu0 %v10689_v21  ;;  %v4897_v9 = vsel %vm19583_vm4, %v12482_v42, %v12483_v27  ;;  %v4986_v23 = vsel %vm19582_vm0, %v12487_v52, %v12488_v35  ;;  %10740 = vmatprep.subr.bf16.mxu1 %v10739_v11 }
 0x541   : > { %v12496_v60 = vpop.permute.xlu0 %12495  ;;  %v12491_v50 = vpop.permute.xlu1 %12490  ;;  %v10691_v4 = vpack.c.bf16 %v4986_v23, %v4897_v9  ;;  %10742 = vmatpush1.bf16.msra.mxu1 %v10741_v32 }
 0x542   : > { %v12497_v13 = vunpack.i.l.bf16 %v12496_v60  ;;  %v12492_v53 = vunpack.i.l.bf16 %v12491_v50  ;;  %v12498_v25 = vunpack.i.h.bf16 %v12496_v60  ;;  %v12493_v6 = vunpack.i.h.bf16 %v12491_v50 }
 0x543   : > { %12760 = vrot.lane.b32.xlu0 %v16437_v54, %s20153_s15  ;;  %12755 = vrot.lane.b32.xlu1 %v16437_v54, %s20099_s13 }
 0x544   : > { %v4985_v1 = vsel %vm19582_vm0, %v12497_v13, %v12487_v52  ;;  %v4896_v36 = vsel %vm19583_vm4, %v12492_v53, %v12482_v42  ;;  %10692 = vmatprep.subr.bf16.mxu0 %v10691_v4  ;;  %v4987_v42 = vsel %vm19582_vm0, %v12488_v35, %v12498_v25  ;;  %v4898_v11 = vsel %vm19583_vm4, %v12483_v27, %v12493_v6 }
 0x545   : > { %v16511_v30 = vpop.permute.xlu0 %12505  ;;  %v16513_v63 = vpop.permute.xlu1 %12500  ;;  %v10693_v43 = vpack.c.bf16 %v4985_v1, %v4896_v36 }
 0x546   : > { %v19573_v21 = vunpack.i.h.bf16 %v16511_v30  ;;  %v12507_v59 = vunpack.i.l.bf16 %v16511_v30  ;;  %v19574_v32 = vunpack.i.h.bf16 %v16513_v63  ;;  %v12502_v52 = vunpack.i.l.bf16 %v16513_v63 }
 0x547   : > { %12770 = vrot.lane.b32.xlu0 %v16517_v17, %s20153_s15  ;;  %12765 = vrot.lane.b32.xlu1 %v16437_v54, %s20105_s7  ;;  %s20157_s15 = smov 120  }
 0x548   : > { %v16532_v9 = vsel %vm19582_vm0, %v12507_v59, %v19573_v21  ;;  %v16537_v23 = vsel %vm19583_vm4, %v12502_v52, %v19574_v32  ;;  %10694 = vmatpush1.bf16.msra.mxu0 %v10693_v43  ;;  %v4899_v35 = vsel %vm19583_vm4, %v12493_v6, %v12502_v52  ;;  %v4988_v27 = vsel %vm19582_vm0, %v12498_v25, %v12507_v59 }
 0x549   : > { %v12516_v60 = vpop.permute.xlu0 %12515  ;;  %v12511_v50 = vpop.permute.xlu1 %12510  ;;  %v10743_v4 = vpack.c.bf16 %v4988_v27, %v4899_v35  ;;  %v10745_v6 = vpack.c.bf16 %v4987_v42, %v4898_v11  ;;  %v16551_v35 = vpack.i.bf16 %v16500_v37, %v16018_v38  ;;  %vm19595_vm0 = vcmask 162816  }
 0x54a   : > { %v12518_v53 = vunpack.i.h.bf16 %v12516_v60  ;;  %v12517_v1 = vunpack.i.l.bf16 %v12516_v60  ;;  %v12513_v36 = vunpack.i.h.bf16 %v12511_v50  ;;  %v12512_v21 = vunpack.i.l.bf16 %v12511_v50 }
 0x54b   : > { %12780 = vrot.lane.b32.xlu0 %v16437_v54, %s20113_s18  ;;  %12775 = vrot.lane.b32.xlu1 %v16517_v17, %s20105_s7  ;;  %s20154_s7 = smov 122   ;;  %vm19596_vm4 = vcmask 179200  }
 0x54c   : > { %10744 = vmatprep.subr.bf16.mxu1 %v10743_v4  ;;  %v5075_v25 = vsel %vm19593_vm12, %v12512_v21, %v12513_v36  ;;  %v5164_v43 = vsel %vm19592_vm6, %v12517_v1, %v12518_v53 }
 0x54d   : > { %10746 = vmatpush1.bf16.msra.mxu1 %v10745_v6  ;;  %v12526_v59 = vpop.permute.xlu0 %12525  ;;  %v12521_v52 = vpop.permute.xlu1 %12520  ;;  %v10695_v27 = vpack.c.bf16 %v5164_v43, %v5075_v25  ;;  %v16565_v25 = vpack.i.bf16 %v20094_v8, %v16503_v41 }
 0x54e   : > { %v12527_v60 = vunpack.i.l.bf16 %v12526_v59  ;;  %v12522_v50 = vunpack.i.l.bf16 %v12521_v52  ;;  %v12528_v54 = vunpack.i.h.bf16 %v12526_v59  ;;  %v12523_v13 = vunpack.i.h.bf16 %v12521_v52 }
 0x54f   : > { %12790 = vrot.lane.b32.xlu0 %v16517_v17, %s20113_s18  ;;  %12785 = vrot.lane.b32.xlu1 %v16551_v35, %s20154_s7 }
 0x550   : > { %v5163_v42 = vsel %vm19592_vm6, %v12527_v60, %v12517_v1  ;;  %v5074_v11 = vsel %vm19593_vm12, %v12522_v50, %v12512_v21  ;;  %10696 = vmatprep.subr.bf16.mxu0 %v10695_v27  ;;  %v5165_v21 = vsel %vm19592_vm6, %v12518_v53, %v12528_v54  ;;  %v5076_v27 = vsel %vm19593_vm12, %v12513_v36, %v12523_v13 }
 0x551   : > { %v16559_v4 = vpop.permute.xlu0 %12535  ;;  %v16561_v6 = vpop.permute.xlu1 %12530  ;;  %v10697_v43 = vpack.c.bf16 %v5163_v42, %v5074_v11 }
 0x552   : > { %20155 = vst [vmem:[#allocation60_spill] sm:$0xff] %v16559_v4  ;;  %20156 = vst [vmem:[#allocation63_spill] sm:$0xff] %v16561_v6  ;;  %v19580_v59 = vunpack.i.h.bf16 %v16559_v4  ;;  %v12537_v52 = vunpack.i.l.bf16 %v16559_v4  ;;  %v19586_v32 = vunpack.i.h.bf16 %v16561_v6  ;;  %v12532_v1 = vunpack.i.l.bf16 %v16561_v6 }
 0x553   : > { %12800 = vrot.lane.b32.xlu0 %v16551_v35, %s20157_s15  ;;  %12795 = vrot.lane.b32.xlu1 %v16565_v25, %s20154_s7 }
 0x554   : > { %v16580_v60 = vsel %vm19592_vm6, %v12537_v52, %v19580_v59  ;;  %v16585_v50 = vsel %vm19593_vm12, %v12532_v1, %v19586_v32  ;;  %10698 = vmatpush1.bf16.msra.mxu0 %v10697_v43  ;;  %v5077_v53 = vsel %vm19593_vm12, %v12523_v13, %v12532_v1  ;;  %v5166_v36 = vsel %vm19592_vm6, %v12528_v54, %v12537_v52 }
 0x555   : > { %20158 = vst [vmem:[#allocation80_spill] sm:$0xff] %v16580_v60  ;;  %20159 = vst [vmem:[#allocation81_spill] sm:$0xff] %v16585_v50  ;;  %v12546_v42 = vpop.permute.xlu0 %12545  ;;  %v12541_v11 = vpop.permute.xlu1 %12540  ;;  %v10747_v3 = vpack.c.bf16 %v5166_v36, %v5077_v53  ;;  %v10749_v13 = vpack.c.bf16 %v5165_v21, %v5076_v27  ;;  %vm19605_vm6 = vcmask 146432   ;;  %vm19604_vm12 = vcmask 998400  }
 0x556   : > { %v12548_v56 = vunpack.i.h.bf16 %v12546_v42  ;;  %v12547_v31 = vunpack.i.l.bf16 %v12546_v42  ;;  %v12543_v59 = vunpack.i.h.bf16 %v12541_v11  ;;  %v12542_v4 = vunpack.i.l.bf16 %v12541_v11 }
 0x557   : > { %12810 = vrot.lane.b32.xlu0 %v16565_v25, %s20157_s15  ;;  %12805 = vrot.lane.b32.xlu1 %v16551_v35, %s20160_s14 }
 0x558   : > { %10748 = vmatprep.subr.bf16.mxu1 %v10747_v3  ;;  %v5253_v54 = vsel %vm19596_vm4, %v12542_v4, %v12543_v59  ;;  %v5342_v43 = vsel %vm19595_vm0, %v12547_v31, %v12548_v56 }
 0x559   : > { %10750 = vmatpush1.bf16.msra.mxu1 %v10749_v13  ;;  %v12556_v52 = vpop.permute.xlu0 %12555  ;;  %v12551_v1 = vpop.permute.xlu1 %12550  ;;  %v10699_v53 = vpack.c.bf16 %v5342_v43, %v5253_v54 }
 0x55a   : > { %v12557_v36 = vunpack.i.l.bf16 %v12556_v52  ;;  %v12552_v42 = vunpack.i.l.bf16 %v12551_v1  ;;  %v12558_v11 = vunpack.i.h.bf16 %v12556_v52  ;;  %v12553_v18 = vunpack.i.h.bf16 %v12551_v1 }
 0x55b   : > { %12820 = vrot.lane.b32.xlu0 %v16551_v35, %s19687_s10  ;;  %12815 = vrot.lane.b32.xlu1 %v16565_v25, %s20160_s14 }
 0x55c   : > { %v5341_v3 = vsel %vm19595_vm0, %v12557_v36, %v12547_v31  ;;  %v5252_v21 = vsel %vm19596_vm4, %v12552_v42, %v12542_v4  ;;  %10700 = vmatprep.subr.bf16.mxu0 %v10699_v53  ;;  %v5343_v50 = vsel %vm19595_vm0, %v12548_v56, %v12558_v11  ;;  %v5254_v31 = vsel %vm19596_vm4, %v12543_v59, %v12553_v18 }
 0x55d   : > { %v16603_v27 = vpop.permute.xlu0 %12565  ;;  %v16605_v13 = vpop.permute.xlu1 %12560  ;;  %v10701_v54 = vpack.c.bf16 %v5341_v3, %v5252_v21 }
 0x55e   : > { %20161 = vst [vmem:[#allocation82_spill] sm:$0xff] %v16603_v27  ;;  %v19590_v43 = vunpack.i.h.bf16 %v16603_v27  ;;  %v12567_v52 = vunpack.i.l.bf16 %v16603_v27  ;;  %v19594_v1 = vunpack.i.h.bf16 %v16605_v13  ;;  %v12562_v32 = vunpack.i.l.bf16 %v16605_v13 }
 0x55f   : > { %12830 = vrot.lane.b32.xlu0 %v16565_v25, %s19687_s10  ;;  %12825 = vrot.lane.b32.xlu1 %v16551_v35, %s13847_s28 }
 0x560   : > { %v16620_v4 = vsel %vm19595_vm0, %v12567_v52, %v19590_v43  ;;  %v16625_v53 = vsel %vm19596_vm4, %v12562_v32, %v19594_v1  ;;  %10702 = vmatpush1.bf16.msra.mxu0 %v10701_v54  ;;  %v5255_v56 = vsel %vm19596_vm4, %v12553_v18, %v12562_v32  ;;  %v5344_v59 = vsel %vm19595_vm0, %v12558_v11, %v12567_v52 }
 0x561   : > { %v12576_v36 = vpop.permute.xlu0 %12575  ;;  %v12571_v42 = vpop.permute.xlu1 %12570  ;;  %v10751_v3 = vpack.c.bf16 %v5344_v59, %v5255_v56  ;;  %v10753_v18 = vpack.c.bf16 %v5343_v50, %v5254_v31  ;;  %vm19611_vm0 = vcmask 965632   ;;  %vm5607_vm4 = vcmask 982016  }
 0x562   : > { %v12578_v27 = vunpack.i.h.bf16 %v12576_v36  ;;  %v12577_v60 = vunpack.i.l.bf16 %v12576_v36  ;;  %v12573_v43 = vunpack.i.h.bf16 %v12571_v42  ;;  %v12572_v6 = vunpack.i.l.bf16 %v12571_v42 }
 0x563   : > { %5947 = vrot.lane.b32.xlu0 %v15942_v29, %s19601_s26  ;;  %12835 = vrot.lane.b32.xlu1 %v16565_v25, %s13847_s28 }
 0x564   : > { %10752 = vmatprep.subr.bf16.mxu1 %v10751_v3  ;;  %v5431_v32 = vsel %vm19605_vm6, %v12572_v6, %v12573_v43  ;;  %v5520_v11 = vsel %vm19604_vm12, %v12577_v60, %v12578_v27 }
 0x565   : > { %10754 = vmatpush1.bf16.msra.mxu1 %v10753_v18  ;;  %v12586_v54 = vpop.permute.xlu0 %12585  ;;  %v12581_v52 = vpop.permute.xlu1 %12580  ;;  %v10703_v56 = vpack.c.bf16 %v5520_v11, %v5431_v32 }
 0x566   : > { %v12587_v59 = vunpack.i.l.bf16 %v12586_v54  ;;  %v12582_v36 = vunpack.i.l.bf16 %v12581_v52  ;;  %v12588_v42 = vunpack.i.h.bf16 %v12586_v54  ;;  %v12583_v21 = vunpack.i.h.bf16 %v12581_v52 }
 0x567   : > { %5951 = vrot.lane.b32.xlu0 %v16500_v37, %s19601_s26  ;;  %5949 = vrot.lane.b32.xlu1 %v16018_v38, %s19601_s26 }
 0x568   : > { %v5519_v25 = vsel %vm19604_vm12, %v12587_v59, %v12577_v60  ;;  %v5430_v50 = vsel %vm19605_vm6, %v12582_v36, %v12572_v6  ;;  %10704 = vmatprep.subr.bf16.mxu0 %v10703_v56  ;;  %v5521_v1 = vsel %vm19604_vm12, %v12578_v27, %v12588_v42  ;;  %v5432_v60 = vsel %vm19605_vm6, %v12573_v43, %v12583_v21 }
 0x569   : > { %v16643_v31 = vpop.permute.xlu0 %12595  ;;  %v16645_v3 = vpop.permute.xlu1 %12590  ;;  %v10705_v18 = vpack.c.bf16 %v5519_v25, %v5430_v50 }
 0x56a   : > { %20162 = vst [vmem:[#allocation83_spill] sm:$0xff] %v16643_v31  ;;  %v19597_v32 = vunpack.i.h.bf16 %v16643_v31  ;;  %v12597_v11 = vunpack.i.l.bf16 %v16643_v31  ;;  %v19603_v54 = vunpack.i.h.bf16 %v16645_v3  ;;  %v12592_v52 = vunpack.i.l.bf16 %v16645_v3 }
 0x56b   : > { %12840 = vrot.lane.b32.xlu0 %v16015_v34, %s20096_s29  ;;  %5953 = vrot.lane.b32.xlu1 %v16503_v41, %s19601_s26  ;;  %s20163_s26 = smov 30  }
 0x56c   : > { %v16660_v6 = vsel %vm19604_vm12, %v12597_v11, %v19597_v32  ;;  %v16665_v56 = vsel %vm19605_vm6, %v12592_v52, %v19603_v54  ;;  %10706 = vmatpush1.bf16.msra.mxu0 %v10705_v18  ;;  %v5433_v27 = vsel %vm19605_vm6, %v12583_v21, %v12592_v52  ;;  %v5522_v43 = vsel %vm19604_vm12, %v12588_v42, %v12597_v11 }
 0x56d   : > { %v12606_v59 = vpop.permute.xlu0 %12605  ;;  %v12601_v36 = vpop.permute.xlu1 %12600  ;;  %v10755_v25 = vpack.c.bf16 %v5522_v43, %v5433_v27  ;;  %v10757_v21 = vpack.c.bf16 %v5521_v1, %v5432_v60  ;;  %vm5874_vm12 = vcmask 752640   ;;  %vm19760_vm6 = vcmask 769024  }
 0x56e   : > { %v12608_v32 = vunpack.i.h.bf16 %v12606_v59  ;;  %v12607_v37 = vunpack.i.l.bf16 %v12606_v59  ;;  %v12603_v29 = vunpack.i.h.bf16 %v12601_v36  ;;  %v12602_v31 = vunpack.i.l.bf16 %v12601_v36 }
 0x56f   : > { %12845 = vrot.lane.b32.xlu0 %v16015_v34, %s20097_s17  ;;  %4335 = vrot.lane.b32.xlu1 %v16018_v38, %s20096_s29  ;;  %s20166_s29 = smov 28  }
 0x570   : > { %10756 = vmatprep.subr.bf16.mxu1 %v10755_v25  ;;  %v5609_v42 = vsel %vm5607_vm4, %v12602_v31, %v12603_v29  ;;  %v5698_v18 = vsel %vm19611_vm0, %v12607_v37, %v12608_v32 }
 0x571   : > { %10758 = vmatpush1.bf16.msra.mxu1 %v10757_v21  ;;  %v12616_v11 = vpop.permute.xlu0 %12615  ;;  %v12611_v52 = vpop.permute.xlu1 %12610  ;;  %v10707_v27 = vpack.c.bf16 %v5698_v18, %v5609_v42 }
 0x572   : > { %v12617_v43 = vunpack.i.l.bf16 %v12616_v11  ;;  %v12612_v59 = vunpack.i.l.bf16 %v12611_v52  ;;  %v12618_v50 = vunpack.i.h.bf16 %v12616_v11  ;;  %v12613_v36 = vunpack.i.h.bf16 %v12611_v52 }
 0x573   : > { %4424 = vrot.lane.b32.xlu0 %v16018_v38, %s20097_s17  ;;  %12850 = vrot.lane.b32.xlu1 %v16551_v35, %s20163_s26  ;;  %s20167_s17 = smov 26  }
 0x574   : > { %v5697_v34 = vsel %vm19611_vm0, %v12617_v43, %v12607_v37  ;;  %v5608_v1 = vsel %vm5607_vm4, %v12612_v59, %v12602_v31  ;;  %10708 = vmatprep.subr.bf16.mxu0 %v10707_v27  ;;  %v5699_v54 = vsel %vm19611_vm0, %v12608_v32, %v12618_v50  ;;  %v5610_v37 = vsel %vm5607_vm4, %v12603_v29, %v12613_v36 }
 0x575   : > { %v16683_v60 = vpop.permute.xlu0 %12625  ;;  %v16685_v25 = vpop.permute.xlu1 %12620  ;;  %v10709_v21 = vpack.c.bf16 %v5697_v34, %v5608_v1 }
 0x576   : > { %20164 = vst [vmem:[#allocation84_spill] sm:$0xff] %v16683_v60  ;;  %20165 = vst [vmem:[#allocation85_spill] sm:$0xff] %v16685_v25  ;;  %v19606_v42 = vunpack.i.h.bf16 %v16683_v60  ;;  %v12627_v18 = vunpack.i.l.bf16 %v16683_v60  ;;  %v19610_v11 = vunpack.i.h.bf16 %v16685_v25  ;;  %v12622_v52 = vunpack.i.l.bf16 %v16685_v25 }
 0x577   : > { %12855 = vrot.lane.b32.xlu0 %v16551_v35, %s20166_s29  ;;  %4513 = vrot.lane.b32.xlu1 %v16503_v41, %s20163_s26  ;;  %s20168_s26 = smov 2  }
 0x578   : > { %v16700_v31 = vsel %vm19611_vm0, %v12627_v18, %v19606_v42  ;;  %v16705_v27 = vsel %vm5607_vm4, %v12622_v52, %v19610_v11  ;;  %10710 = vmatpush1.bf16.msra.mxu0 %v10709_v21  ;;  %v5611_v32 = vsel %vm5607_vm4, %v12613_v36, %v12622_v52  ;;  %v5700_v29 = vsel %vm19611_vm0, %v12618_v50, %v12627_v18 }
 0x579   : > { %v12636_v43 = vpop.permute.xlu0 %12635  ;;  %v12631_v59 = vpop.permute.xlu1 %12630  ;;  %v10759_v34 = vpack.c.bf16 %v5700_v29, %v5611_v32  ;;  %v10761_v36 = vpack.c.bf16 %v5699_v54, %v5610_v37  ;;  %v12282_v11 = vunpack.i.l.bf16 %v16104_v26  ;;  %vm5963_vm0 = vcmask 736256  }
 0x57a   : > { %v12638_v42 = vunpack.i.h.bf16 %v12636_v43  ;;  %v12637_v38 = vunpack.i.l.bf16 %v12636_v43  ;;  %v12633_v60 = vunpack.i.h.bf16 %v12631_v59  ;;  %v12632_v25 = vunpack.i.l.bf16 %v12631_v59 }
 0x57b   : > { %4602 = vrot.lane.b32.xlu0 %v16503_v41, %s20166_s29  ;;  %12860 = vrot.lane.b32.xlu1 %v16551_v35, %s20167_s17  ;;  %s20423_s29 = smov 55  }
 0x57c   : > { %10760 = vmatprep.subr.bf16.mxu1 %v10759_v34  ;;  %v5787_v50 = vsel %vm19760_vm6, %v12632_v25, %v12633_v60  ;;  %v5876_v21 = vsel %vm5874_vm12, %v12637_v38, %v12638_v42 }
 0x57d   : > { %10762 = vmatpush1.bf16.msra.mxu1 %v10761_v36  ;;  %v12646_v18 = vpop.permute.xlu0 %12645  ;;  %v12641_v52 = vpop.permute.xlu1 %12640  ;;  %v10711_v32 = vpack.c.bf16 %v5876_v21, %v5787_v50 }
 0x57e   : > { %v12647_v29 = vunpack.i.l.bf16 %v12646_v18  ;;  %v12642_v43 = vunpack.i.l.bf16 %v12641_v52  ;;  %v12648_v1 = vunpack.i.h.bf16 %v12646_v18  ;;  %v12643_v59 = vunpack.i.h.bf16 %v12641_v52 }
 0x57f   : > { %12865 = vrot.lane.b32.xlu0 %v16551_v35, %s20168_s26  ;;  %4691 = vrot.lane.b32.xlu1 %v16503_v41, %s20167_s17  ;;  %s19654_s17 = smov 49  }
 0x580   : > { %v5875_v54 = vsel %vm5874_vm12, %v12647_v29, %v12637_v38  ;;  %v5786_v37 = vsel %vm19760_vm6, %v12642_v43, %v12632_v25  ;;  %10712 = vmatprep.subr.bf16.mxu0 %v10711_v32  ;;  %v5877_v38 = vsel %vm5874_vm12, %v12638_v42, %v12648_v1  ;;  %v5788_v25 = vsel %vm19760_vm6, %v12633_v60, %v12643_v59 }
 0x581   : > { %v16723_v34 = vpop.permute.xlu0 %12655  ;;  %v16725_v36 = vpop.permute.xlu1 %12650  ;;  %v10713_v50 = vpack.c.bf16 %v5875_v54, %v5786_v37  ;;  %v12262_v43 = vunpack.i.l.bf16 %v16064_v12  ;;  %v12283_v54 = vunpack.i.h.bf16 %v16104_v26  ;;  %v12302_v26 = vunpack.i.l.bf16 %v16145_v40 }
 0x582   : > { %20169 = vst [vmem:[#allocation86_spill] sm:$0xff] %v16723_v34  ;;  %20170 = vst [vmem:[#allocation87_spill] sm:$0xff] %v16725_v36  ;;  %v19614_v21 = vunpack.i.h.bf16 %v16723_v34  ;;  %v12657_v18 = vunpack.i.l.bf16 %v16723_v34  ;;  %v19616_v52 = vunpack.i.h.bf16 %v16725_v36  ;;  %v12652_v35 = vunpack.i.l.bf16 %v16725_v36 }
 0x583   : > { %12870 = vrot.lane.b32.xlu0 %v16517_v17, %s20146_s11  ;;  %4780 = vrot.lane.b32.xlu1 %v16503_v41, %s20168_s26  ;;  %v12322_v36 = vunpack.i.l.bf16 %v16189_v20  ;;  %s20202_s11 = smov 90   ;;  %s20424_s26 = smov 10  }
 0x584   : > { %v16741_v32 = vsel %vm5874_vm12, %v12657_v18, %v19614_v21  ;;  %v16746_v29 = vsel %vm19760_vm6, %v12652_v35, %v19616_v52  ;;  %10714 = vmatpush1.bf16.msra.mxu0 %v10713_v50  ;;  %v5789_v60 = vsel %vm19760_vm6, %v12643_v59, %v12652_v35  ;;  %v5878_v42 = vsel %vm5874_vm12, %v12648_v1, %v12657_v18 }
 0x585   : > { %20171 = vst [vmem:[#allocation88_spill] sm:$0xff] %v16746_v29  ;;  %v5942_v37 = vpop.permute.xlu0 %5941  ;;  %v5940_v41 = vpop.permute.xlu1 %5939  ;;  %v10763_v34 = vpack.c.bf16 %v5878_v42, %v5789_v60  ;;  %v10765_v1 = vpack.c.bf16 %v5877_v38, %v5788_v25  ;;  %v12263_v59 = vunpack.i.h.bf16 %v16064_v12  ;;  %v20172_v50 = vunpack.i.h.bf16 %v16078_v33 }
 0x586   : > { %v5965_v52 = vsel %vm5963_vm0, %v5940_v41, %v5942_v37  ;;  %v12323_v35 = vunpack.i.h.bf16 %v16189_v20  ;;  %v20173_v21 = vunpack.i.h.bf16 %v16062_v48  ;;  %v20174_v38 = vunpack.i.l.bf16 %v16106_v22  ;;  %v16778_v20 = vld [vmem:[%s19330_s2 + $0x10] sm:$0xff] }
 0x587   : > { %12880 = vrot.lane.b32.xlu0 %v16517_v17, %s20150_s16  ;;  %12875 = vrot.lane.b32.xlu1 %v16517_v17, %s20148_s19  ;;  %v3809_v18 = vsel %vm3803_vm9, %v20172_v50, %v12282_v11  ;;  %v20175_v25 = vunpack.i.h.bf16 %v16163_v46  ;;  %v12342_v50 = vunpack.i.l.bf16 %v16230_v45  ;;  %v20177_v46 = vunpack.i.h.bf16 %v16143_v61  ;;  %s13849_s16 = smov 121   ;;  %s20345_s19 = smov 115  }
 0x588   : > { %6389 = vmatprep.subr.mxu0 %v5965_v52  ;;  %10764 = vmatprep.subr.bf16.mxu1 %v10763_v34  ;;  %v3720_v29 = vsel %vm3714_vm5, %v20173_v21, %v12262_v43  ;;  %v3811_v12 = vsel %vm3803_vm9, %v12283_v54, %v20174_v38  ;;  %v3810_v52 = vsel %vm3803_vm9, %v12282_v11, %v12283_v54  ;;  %v12362_v34 = vunpack.i.l.bf16 %v16272_v2 }
 0x589   : > { %10766 = vmatpush1.bf16.msra.mxu1 %v10765_v1  ;;  %v5944_v60 = vpop.permute.xlu0 %5943  ;;  %v5938_v42 = vpop.permute.xlu1 %5937  ;;  %v3987_v48 = vsel %vm3981_vm14, %v20175_v25, %v12322_v36  ;;  %v12303_v21 = vunpack.i.h.bf16 %v16145_v40  ;;  %v10767_v11 = vpack.c.bf16 %v3809_v18, %v3720_v29  ;;  %v3721_v1 = vsel %vm3714_vm5, %v12262_v43, %v12263_v59 }
 0x58a   : > { %v5964_v33 = vsel %vm5963_vm0, %v5938_v42, %v5940_v41  ;;  %v20176_v41 = vunpack.i.l.bf16 %v16068_v51  ;;  %v3898_v40 = vsel %vm3892_vm10, %v20177_v46, %v12302_v26  ;;  %v16797_v38 = vsel %vm3981_vm14, %v12322_v36, %v12323_v35 }
 0x58b   : > { %5427 = vrot.lane.b32.xlu0 %v20094_v8, %s20113_s18  ;;  %12885 = vrot.lane.b32.xlu1 %v16517_v17, %s20099_s13  ;;  %v10771_v18 = vpack.c.bf16 %v3987_v48, %v3898_v40  ;;  %v10821_v43 = vpack.c.bf16 %v3810_v52, %v3721_v1  ;;  %v20178_v61 = vpack.c.bf16 %v16099_v49, %v16085_v62  ;;  %v20179_v36 = vunpack.i.h.bf16 %v16246_v0  ;;  %v16819_v52 = vld [vmem:[%s19330_s2 + $0x18] sm:$0xff]  ;;  %s19658_s18 = smov 79   ;;  %s19664_s13 = smov 76  }
 0x58c   : > { %v3722_v54 = vsel %vm3714_vm5, %v12263_v59, %v20176_v41  ;;  %6390 = vmatpush1.msra.mxu0 %v5964_v33  ;;  %v20180_v25 = vunpack.i.l.bf16 %v16191_v7  ;;  %v3899_v49 = vsel %vm3892_vm10, %v12302_v26, %v12303_v21  ;;  %v12363_v62 = vunpack.i.h.bf16 %v16272_v2 }
 0x58d   : > { %v10819_v42 = vpack.c.bf16 %v3811_v12, %v3722_v54  ;;  %6402 = vmatmul.mubr.f32.vlgmr.msra.gmra.mrb[6].mxu0 %v16778_v20  ;;  %10768 = vmatprep.subr.bf16.mxu0 %v10767_v11  ;;  %v16800_v17 = vpop.permute.xlu0 %12660  ;;  %v16802_v29 = vpop.permute.xlu1 %5945  ;;  %v4165_v33 = vsel %vm4159_vm2, %v20179_v36, %v12362_v34  ;;  %v19618_v0 = vunpack.i.h.bf16 %v16320_v16  ;;  %v12392_v48 = vunpack.i.l.bf16 %v16320_v16 }
 0x58e   : > { %v12662_v59 = vunpack.i.l.bf16 %v16800_v17  ;;  %10770 = vmatpush1.bf16.msra.mxu0 %v20178_v61  ;;  %v5967_v12 = vsel %vm5963_vm0, %v5944_v60, %v16802_v29  ;;  %v3989_v11 = vsel %vm3981_vm14, %v12323_v35, %v20180_v25  ;;  %10331 = vmatprep.mubr.msk.f32.mxu0 %vm2984_vm8, %v16819_v52  ;;  %v12387_v35 = vunpack.i.l.bf16 %v16322_v10  ;;  %v20184_v25 = vld [vmem:[#allocation47_spill] sm:$0xff] }
 0x58f   : > { %10772 = vmatprep.subr.bf16.mxu0 %v10771_v18  ;;  %12890 = vrot.lane.b32.xlu0 %v20094_v8, %s20157_s15  ;;  %v5966_v41 = vsel %vm5963_vm0, %v5942_v37, %v5944_v60  ;;  %v20181_v26 = vunpack.i.h.bf16 %v16228_v24  ;;  %v20182_v54 = vunpack.i.l.bf16 %v16151_v47  ;;  %v10825_v36 = vpack.c.bf16 %v16797_v38, %v3899_v49  ;;  %v20183_v60 = vld [vmem:[#allocation25_spill] sm:$0xff] }
 0x590   : > { %5516 = vrot.lane.b32.xlu1 %v20094_v8, %s20154_s7  ;;  %6460 = vmatprep.subr.mxu1 %v5967_v12  ;;  %v12343_v12 = vunpack.i.h.bf16 %v16230_v45  ;;  %v4166_v38 = vsel %vm4159_vm2, %v12362_v34, %v12363_v62  ;;  %v16860_v45 = vsel %vm19622_vm11, %v12392_v48, %v19618_v0  ;;  %v20189_v34 = vld [vmem:[#allocation44_spill] sm:$0xff]  ;;  %s20425_s7 = smov 83  }
 0x591   : > { %v4076_v2 = vsel %vm19625_vm15, %v20181_v26, %v12342_v50  ;;  %v3900_v1 = vsel %vm3892_vm10, %v12303_v21, %v20182_v54  ;;  %6461 = vmatpush1.msra.mxu1 %v5966_v41  ;;  %v16839_v46 = vpop.permute.xlu0 %12670  ;;  %v16841_v40 = vpop.permute.xlu1 %12665  ;;  %v20185_v21 = vpack.c.bf16 %v20183_v60, %v20184_v25  ;;  %v20186_v41 = vunpack.i.h.bf16 %v16351_v55  ;;  %v20194_v0 = vld [vmem:[#allocation28_spill] sm:$0xff] }
 0x592   : > { %v10775_v18 = vpack.c.bf16 %v4165_v33, %v4076_v2  ;;  %v10823_v61 = vpack.c.bf16 %v3989_v11, %v3900_v1  ;;  %v19619_v37 = vunpack.i.h.bf16 %v16841_v40  ;;  %v12667_v24 = vunpack.i.l.bf16 %v16841_v40  ;;  %6473 = vmatmul.mubr.f32.vlgmr.msra.gmra.mrb[6].mxu1 %v16778_v20  ;;  %10820 = vmatprep.subr.bf16.mxu1 %v10819_v42  ;;  %v20187_v11 = vld [vmem:[#allocation51_spill] sm:$0xff] }
 0x593   : > { %10774 = vmatpush1.bf16.msra.mxu0 %v20185_v21  ;;  %v4343_v33 = vsel %vm19623_vm3, %v20186_v41, %v12662_v59  ;;  %v20188_v49 = vunpack.i.l.bf16 %v20187_v11  ;;  %v12672_v2 = vunpack.i.l.bf16 %v16839_v46  ;;  %10822 = vmatpush1.bf16.msra.mxu1 %v10821_v43  ;;  %v20190_v42 = vunpack.i.h.bf16 %v20189_v34  ;;  %v20192_v34 = vld [vmem:[#allocation29_spill] sm:$0xff] }
 0x594   : > { %10776 = vmatprep.subr.bf16.mxu0 %v10775_v18  ;;  %v16869_v55 = vsel %vm19623_vm3, %v12667_v24, %v19619_v37  ;;  %5605 = vrot.lane.b32.xlu0 %v20094_v8, %s20157_s15  ;;  %v12388_v1 = vunpack.i.h.bf16 %v16322_v10  ;;  %v4077_v25 = vsel %vm19625_vm15, %v12342_v50, %v12343_v12  ;;  %v12663_v21 = vunpack.i.h.bf16 %v16800_v17  ;;  %s19652_s15 = smov 37  }
 0x595   : > { %v4167_v26 = vsel %vm4159_vm2, %v12363_v62, %v20188_v49  ;;  %v4254_v54 = vsel %vm19622_vm11, %v20190_v42, %v12387_v35  ;;  %12895 = vrot.lane.b32.xlu1 %v20094_v8, %s20160_s14  ;;  %10824 = vmatprep.subr.bf16.mxu1 %v10823_v61  ;;  %v16881_v62 = vpop.permute.xlu0 %12680  ;;  %v12676_v18 = vpop.permute.xlu1 %12675  ;;  %v20191_v49 = vld [vmem:[#allocation32_spill] sm:$0xff]  ;;  %v20195_v37 = vunpack.i.l.bf16 %v20194_v0  ;;  %v10829_v43 = vpack.c.bf16 %v4166_v38, %v4077_v25 }
 0x596   : > { %v10779_v60 = vpack.c.bf16 %v4343_v33, %v4254_v54  ;;  %v12677_v41 = vunpack.i.l.bf16 %v12676_v18  ;;  %v20193_v42 = vpack.c.bf16 %v20191_v49, %v20192_v34  ;;  %10332 = vmatprep.mubr.msk.f32.mxu1 %vm2984_vm8, %v16819_v52  ;;  %v19639_v33 = vunpack.i.h.bf16 %v16881_v62 }
 0x597   : > { %v4078_v61 = vsel %vm19625_vm15, %v12343_v12, %v20195_v37  ;;  %v12682_v54 = vunpack.i.l.bf16 %v16881_v62  ;;  %10826 = vmatpush1.bf16.msra.mxu1 %v10825_v36  ;;  %v20196_v49 = vunpack.i.h.bf16 %v16380_v57  ;;  %v20197_v12 = vunpack.i.h.bf16 %v16392_v44 }
 0x598   : > { %10778 = vmatpush1.bf16.msra.mxu0 %v20193_v42  ;;  %v10827_v50 = vpack.c.bf16 %v4167_v26, %v4078_v61  ;;  %12905 = vrot.lane.b32.xlu0 %v20094_v8, %s19687_s10  ;;  %v4345_v42 = vsel %vm19623_vm3, %v12663_v21, %v12667_v24  ;;  %v12673_v57 = vunpack.i.h.bf16 %v16839_v46  ;;  %v12678_v25 = vunpack.i.h.bf16 %v12676_v18 }
 0x599   : > { %10780 = vmatprep.subr.bf16.mxu0 %v10779_v60  ;;  %v4432_v34 = vsel %vm19621_vm1, %v20196_v49, %v12672_v2  ;;  %v4521_v37 = vsel %vm19620_vm7, %v20197_v12, %v12677_v41  ;;  %12900 = vrot.lane.b32.xlu1 %v20094_v8, %s20160_s14  ;;  %v16908_v26 = vpop.permute.xlu0 %12690  ;;  %v16910_v36 = vpop.permute.xlu1 %12685  ;;  %v4256_v60 = vsel %vm19622_vm11, %v12388_v1, %v12392_v48 }
 0x59a   : > { %10828 = vmatprep.subr.bf16.mxu1 %v10827_v50  ;;  %v10783_v38 = vpack.c.bf16 %v4521_v37, %v4432_v34  ;;  %v19637_v44 = vunpack.i.h.bf16 %v16910_v36  ;;  %v12687_v61 = vunpack.i.l.bf16 %v16910_v36  ;;  %v20198_v24 = vpack.c.bf16 %v16366_v28, %v16349_v39  ;;  %v20199_v37 = vld [vmem:[#allocation54_spill] sm:$0xff] }
 0x59b   : > { %v4344_v50 = vsel %vm19623_vm3, %v12662_v59, %v12663_v21  ;;  %v16925_v49 = vsel %vm19621_vm1, %v12682_v54, %v19639_v33  ;;  %v10831_v48 = vpack.c.bf16 %v4345_v42, %v4256_v60  ;;  %v12692_v46 = vunpack.i.l.bf16 %v16908_v26  ;;  %10830 = vmatpush1.bf16.msra.mxu1 %v10829_v43  ;;  %v20200_v42 = vld [vmem:[#allocation55_spill] sm:$0xff] }
 0x59c   : > { %10782 = vmatpush1.bf16.msra.mxu0 %v20198_v24  ;;  %v16931_v18 = vsel %vm19620_vm7, %v12687_v61, %v19637_v44  ;;  %5783 = vrot.lane.b32.xlu0 %v20094_v8, %s19687_s10  ;;  %v4434_v39 = vsel %vm19621_vm1, %v12673_v57, %v12682_v54  ;;  %v4523_v28 = vsel %vm19620_vm7, %v12678_v25, %v12687_v61  ;;  %v20203_v60 = vunpack.i.h.bf16 %v16432_v58  ;;  %v10328_v58 = vld [vmem:[%s19331_s3 + $0x8] sm:$0xff] }
 0x59d   : > { %10784 = vmatprep.subr.bf16.mxu0 %v10783_v38  ;;  %v4255_v17 = vsel %vm19622_vm11, %v12387_v35, %v12388_v1  ;;  %12910 = vrot.lane.b32.xlu1 %v20094_v8, %s13847_s28  ;;  %v16942_v59 = vpop.permute.xlu0 %12700  ;;  %v12696_v21 = vpop.permute.xlu1 %12695  ;;  %v10835_v34 = vpack.c.bf16 %v4523_v28, %v4434_v39  ;;  %v4522_v12 = vsel %vm19620_vm7, %v12677_v41, %v12678_v25  ;;  %v12478_v35 = vunpack.i.h.bf16 %v16472_v15 }
 0x59e   : > { %10832 = vmatprep.subr.bf16.mxu1 %v10831_v48  ;;  %v12697_v54 = vunpack.i.l.bf16 %v12696_v21  ;;  %v20201_v38 = vpack.c.bf16 %v20199_v37, %v20200_v42  ;;  %v10833_v10 = vpack.c.bf16 %v4344_v50, %v4255_v17  ;;  %v4433_v1 = vsel %vm19621_vm1, %v12672_v2, %v12673_v57 }
 0x59f   : > { %v4610_v61 = vsel %vm19624_vm13, %v20203_v60, %v12692_v46  ;;  %v20204_v41 = vunpack.i.h.bf16 %v16448_v5  ;;  %vm20205_vm7 = vcmask 211968   ;;  %v19632_v24 = vunpack.i.h.bf16 %v16942_v59 }
 0x5a0   : > { %10786 = vmatpush1.bf16.msra.mxu0 %v20201_v38  ;;  %10834 = vmatpush1.bf16.msra.mxu1 %v10833_v10  ;;  %v12698_v48 = vunpack.i.h.bf16 %v12696_v21  ;;  %v10837_v50 = vpack.c.bf16 %v4522_v12, %v4433_v1  ;;  %v12702_v5 = vunpack.i.l.bf16 %v16942_v59  ;;  %v12693_v37 = vunpack.i.h.bf16 %v16908_v26 }
 0x5a1   : > { %12915 = vrot.lane.b32.xlu0 %v20094_v8, %s20202_s11  ;;  %v4699_v25 = vsel %vm20205_vm7, %v20204_v41, %v12697_v54  ;;  %5872 = vrot.lane.b32.xlu1 %v20094_v8, %s13847_s28  ;;  %v12711_v2 = vpop.permute.xlu0 %12710  ;;  %v16963_v57 = vpop.permute.xlu1 %12705  ;;  %vm20207_vm7 = vcmask 15360   ;;  %vm20208_vm1 = vcmask 211968   ;;  %v20212_v41 = vld [vmem:[#allocation75_spill] sm:$0xff]  ;;  %s20422_s28 = smov 34  }
 0x5a2   : > { %10836 = vmatprep.subr.bf16.mxu1 %v10835_v34  ;;  %v10787_v39 = vpack.c.bf16 %v4699_v25, %v4610_v61  ;;  %v12712_v28 = vunpack.i.l.bf16 %v12711_v2  ;;  %v19630_v17 = vunpack.i.h.bf16 %v16963_v57  ;;  %v12707_v21 = vunpack.i.l.bf16 %v16963_v57  ;;  %vm20209_vm11 = vmmov %vm20207_vm7  ;;  %v10335_v61 = vld [vmem:[%s19332_s4 + $0x8] sm:$0xff] }
 0x5a3   : > { %v20206_v34 = vunpack.i.l.bf16 %v16472_v15  ;;  %vm20210_vm3 = vmmov %vm20208_vm1  ;;  %v12713_v1 = vunpack.i.h.bf16 %v12711_v2  ;;  %v20211_v15 = vpack.c.bf16 %v16467_v14, %v16456_v19  ;;  %v10336_v19 = vld [vmem:[%s19333_s5 + $0x8] sm:$0xff]  ;;  %v4612_v14 = vsel %vm19624_vm13, %v12693_v37, %v12702_v5 }
 0x5a4   : > { %10788 = vmatprep.subr.bf16.mxu0 %v10787_v39  ;;  %v16978_v12 = vsel %vm20208_vm1, %v12707_v21, %v19630_v17  ;;  %10838 = vmatpush1.bf16.msra.mxu1 %v10837_v50  ;;  %v4788_v38 = vsel %vm20209_vm11, %v12478_v35, %v12712_v28  ;;  %v4700_v10 = vsel %vm20210_vm3, %v12697_v54, %v12698_v48  ;;  %vm20213_vm11 = vmmov %vm20208_vm1 }
 0x5a5   : > { %v4787_v42 = vsel %vm20207_vm7, %v20206_v34, %v12478_v35  ;;  %6331 = vperm.xlu0 %12157, %v10328_v58   ;;  %12920 = vrot.lane.b32.xlu1 %v20094_v8, %s20202_s11  ;;  %v12721_v26 = vpop.permute.xlu0 %12720  ;;  %v16987_v60 = vpop.permute.xlu1 %12715  ;;  %v10791_v25 = vpack.c.bf16 %v20212_v41, %v4788_v38  ;;  %v4701_v35 = vsel %vm20213_vm11, %v12698_v48, %v12707_v21  ;;  %v20214_v21 = vld [vmem:[#allocation74_spill] sm:$0xff]  ;;  %vm20215_vm3 = vmmov %vm20207_vm7  ;;  %vm20220_vm7 = vcmask 1031168   ;;  %s19656_s11 = smov 89  }
 0x5a6   : > { %10790 = vmatpush1.bf16.msra.mxu0 %v20211_v15  ;;  %v16997_v54 = vsel %vm19624_vm13, %v12702_v5, %v19632_v24  ;;  %v19629_v2 = vunpack.i.l.bf16 %v16987_v60  ;;  %v4611_v50 = vsel %vm19624_vm13, %v12692_v46, %v12693_v37  ;;  %v10839_v58 = vpack.c.bf16 %v4701_v35, %v4612_v14  ;;  %vm20216_vm1 = vmmov %vm20215_vm3  ;;  %v20217_v37 = vld [vmem:[#allocation73_spill] sm:$0xff]  ;;  %v20218_v14 = vld [vmem:[#allocation72_spill] sm:$0xff] }
 0x5a7   : > { %10792 = vmatprep.subr.bf16.mxu0 %v10791_v25  ;;  %v12722_v39 = vunpack.i.l.bf16 %v12721_v26  ;;  %v10793_v34 = vpack.c.bf16 %v20214_v21, %v4787_v42  ;;  %v10841_v38 = vpack.c.bf16 %v4700_v10, %v4611_v50  ;;  %v4789_v41 = vsel %vm20216_vm1, %v12712_v28, %v12713_v1 }
 0x5a8   : > { %v4790_v15 = vsel %vm20215_vm3, %v12713_v1, %v19629_v2  ;;  %10840 = vmatprep.subr.bf16.mxu1 %v10839_v58  ;;  %v10845_v50 = vpack.c.bf16 %v20218_v14, %v4789_v41  ;;  %v20219_v28 = vunpack.i.h.bf16 %v16513_v63  ;;  %vm20222_vm11 = vcmask 834560   ;;  %vm20223_vm3 = vmmov %vm20220_vm7 }
 0x5a9   : > { %6881 = vperm.xlu0 %12157, %v10335_v61   ;;  %6900 = vperm.xlu1 %12158, %v10336_v19   ;;  %v17012_v5 = vpop.permute.xlu0 %12730  ;;  %v12726_v46 = vpop.permute.xlu1 %12725  ;;  %v10843_v25 = vpack.c.bf16 %v20217_v37, %v4790_v15  ;;  %v20221_v19 = vunpack.i.h.bf16 %v16511_v30  ;;  %v12723_v21 = vunpack.i.h.bf16 %v12721_v26  ;;  %vm20224_vm1 = vmmov %vm20222_vm11 }
 0x5aa   : > { %10794 = vmatpush1.bf16.msra.mxu0 %v10793_v34  ;;  %10842 = vmatpush1.bf16.msra.mxu1 %v10841_v38  ;;  %v12727_v35 = vunpack.i.l.bf16 %v12726_v46  ;;  %v19627_v61 = vunpack.i.h.bf16 %v17012_v5  ;;  %v12732_v42 = vunpack.i.l.bf16 %v17012_v5  ;;  %v12728_v10 = vunpack.i.h.bf16 %v12726_v46  ;;  %vm20228_vm13 = vmmov %vm20224_vm1 }
 0x5ab   : > { %10844 = vmatprep.subr.bf16.mxu1 %v10843_v25  ;;  %v4901_v1 = vsel %vm20220_vm7, %v20219_v28, %v12722_v39  ;;  %vm20225_vm7 = vmmov %vm20224_vm1  ;;  %v20226_v25 = vpack.c.bf16 %v16532_v9, %v16537_v23 }
 0x5ac   : > { %v4990_v58 = vsel %vm20222_vm11, %v20221_v19, %v12727_v35  ;;  %v17035_v30 = vsel %vm20223_vm3, %v12732_v42, %v19627_v61  ;;  %v4991_v46 = vsel %vm20224_vm1, %v12727_v35, %v12728_v10  ;;  %vm20227_vm11 = vmmov %vm20223_vm3 }
 0x5ad   : > { %12930 = vrot.lane.b32.xlu0 %v20094_v8, %s13849_s16  ;;  %v12741_v34 = vpop.permute.xlu0 %12740  ;;  %v17026_v38 = vpop.permute.xlu1 %12735  ;;  %v10795_v15 = vpack.c.bf16 %v4990_v58, %v4901_v1  ;;  %12925 = vrot.lane.b32.xlu1 %v20094_v8, %s13849_s16  ;;  %v4903_v14 = vsel %vm20227_vm11, %v12723_v21, %v12732_v42  ;;  %vm20229_vm15 = vmmov %vm20223_vm3 }
 0x5ae   : > { %10846 = vmatpush1.bf16.msra.mxu1 %v10845_v50  ;;  %v19626_v63 = vunpack.i.h.bf16 %v17026_v38  ;;  %v12737_v41 = vunpack.i.l.bf16 %v17026_v38  ;;  %v12742_v26 = vunpack.i.l.bf16 %v12741_v34  ;;  %v4902_v28 = vsel %vm20229_vm15, %v12722_v39, %v12723_v21  ;;  %v20230_v39 = vld [vmem:[#allocation63_spill] sm:$0xff] }
 0x5af   : > { %10796 = vmatprep.subr.bf16.mxu0 %v10795_v15  ;;  %vm20232_vm15 = vcmask 818176  }
 0x5b0   : > { %v17041_v37 = vsel %vm20225_vm7, %v12737_v41, %v19626_v63  ;;  %10798 = vmatpush1.bf16.msra.mxu0 %v20226_v25  ;;  %v4992_v50 = vsel %vm20228_vm13, %v12728_v10, %v12737_v41  ;;  %v10849_v63 = vpack.c.bf16 %v4991_v46, %v4902_v28  ;;  %v20231_v10 = vunpack.i.h.bf16 %v20230_v39  ;;  %v20233_v41 = vld [vmem:[#allocation60_spill] sm:$0xff]  ;;  %vm20236_vm3 = vmmov %vm20232_vm15 }
 0x5b1   : > { %v17049_v1 = vpop.permute.xlu0 %12750  ;;  %v12746_v35 = vpop.permute.xlu1 %12745  ;;  %v10847_v19 = vpack.c.bf16 %v4992_v50, %v4903_v14  ;;  %12935 = vrot.lane.b32.xlu0 %v20094_v8, %s20160_s14  ;;  %v20234_v25 = vunpack.i.h.bf16 %v20233_v41  ;;  %vm20235_vm13 = vcmask 801792   ;;  %v12743_v50 = vunpack.i.h.bf16 %v12741_v34  ;;  %v20239_v39 = vld [vmem:[#allocation80_spill] sm:$0xff]  ;;  %vm20242_vm11 = vmmov %vm20236_vm3  ;;  %12940 = vrot.lane.b32.xlu1 %v20094_v8, %s20160_s14 }
 0x5b2   : > { %v12747_v15 = vunpack.i.l.bf16 %v12746_v35  ;;  %v19628_v9 = vunpack.i.h.bf16 %v17049_v1  ;;  %v12752_v23 = vunpack.i.l.bf16 %v17049_v1  ;;  %v12748_v42 = vunpack.i.h.bf16 %v12746_v35  ;;  %vm20237_vm1 = vmmov %vm20235_vm13 }
 0x5b3   : > { %10848 = vmatprep.subr.bf16.mxu1 %v10847_v19  ;;  %v5079_v21 = vsel %vm20232_vm15, %v20231_v10, %v12742_v26  ;;  %vm20238_vm7 = vmmov %vm20237_vm1  ;;  %v20240_v10 = vld [vmem:[#allocation81_spill] sm:$0xff] }
 0x5b4   : > { %10850 = vmatpush1.bf16.msra.mxu1 %v10849_v63  ;;  %v5168_v14 = vsel %vm20235_vm13, %v20234_v25, %v12747_v15  ;;  %v17070_v63 = vsel %vm20236_vm3, %v12752_v23, %v19628_v9  ;;  %v5169_v35 = vsel %vm20237_vm1, %v12747_v15, %v12748_v42  ;;  %v5081_v41 = vsel %vm20242_vm11, %v12743_v50, %v12752_v23  ;;  %vm20243_vm15 = vmmov %vm20237_vm1  ;;  %v20247_v23 = vld [vmem:[#allocation82_spill] sm:$0xff] }
 0x5b5   : > { %v12761_v61 = vpop.permute.xlu0 %12760  ;;  %v17063_v58 = vpop.permute.xlu1 %12755  ;;  %v10799_v46 = vpack.c.bf16 %v5168_v14, %v5079_v21  ;;  %v20241_v21 = vpack.c.bf16 %v20239_v39, %v20240_v10  ;;  %vm20244_vm13 = vmmov %vm20236_vm3  ;;  %vm20246_vm3 = vcmask 179200   ;;  %vm20249_vm1 = vcmask 162816   ;;  %12945 = vrot.lane.b32.xlu0 %v20094_v8, %s20345_s19  ;;  %12950 = vrot.lane.b32.xlu1 %v20094_v8, %s20345_s19 }
 0x5b6   : > { %v19631_v28 = vunpack.i.h.bf16 %v17063_v58  ;;  %v12757_v48 = vunpack.i.l.bf16 %v17063_v58  ;;  %v12762_v19 = vunpack.i.l.bf16 %v12761_v61  ;;  %v5080_v14 = vsel %vm20244_vm13, %v12742_v26, %v12743_v50  ;;  %vm20252_vm11 = vmmov %vm20249_vm1 }
 0x5b7   : > { %10800 = vmatprep.subr.bf16.mxu0 %v10799_v46  ;;  %vm20256_vm13 = vmmov %vm20246_vm3 }
 0x5b8   : > { %v17076_v34 = vsel %vm20238_vm7, %v12757_v48, %v19631_v28  ;;  %10802 = vmatpush1.bf16.msra.mxu0 %v20241_v21  ;;  %v5170_v25 = vsel %vm20243_vm15, %v12748_v42, %v12757_v48  ;;  %v10853_v28 = vpack.c.bf16 %v5169_v35, %v5080_v14  ;;  %v20245_v48 = vunpack.i.h.bf16 %v16605_v13  ;;  %vm20250_vm7 = vmmov %vm20246_vm3 }
 0x5b9   : > { %v17084_v9 = vpop.permute.xlu0 %12770  ;;  %v12766_v15 = vpop.permute.xlu1 %12765  ;;  %v10851_v46 = vpack.c.bf16 %v5170_v25, %v5081_v41  ;;  %v20248_v42 = vunpack.i.h.bf16 %v20247_v23  ;;  %v12763_v21 = vunpack.i.h.bf16 %v12761_v61  ;;  %vm20253_vm15 = vmmov %vm20249_vm1  ;;  %12960 = vrot.lane.b32.xlu0 %v20094_v8, %s19658_s18  ;;  %12955 = vrot.lane.b32.xlu1 %v20094_v8, %s19658_s18  ;;  %s19662_s18 = smov 52  }
 0x5ba   : > { %v12767_v17 = vunpack.i.l.bf16 %v12766_v15  ;;  %v19633_v24 = vunpack.i.h.bf16 %v17084_v9  ;;  %v12772_v39 = vunpack.i.l.bf16 %v17084_v9  ;;  %v12768_v10 = vunpack.i.h.bf16 %v12766_v15 }
 0x5bb   : > { %10852 = vmatprep.subr.bf16.mxu1 %v10851_v46  ;;  %v5257_v26 = vsel %vm20246_vm3, %v20245_v48, %v12762_v19  ;;  %v20255_v46 = vpack.c.bf16 %v16620_v4, %v16625_v53  ;;  %vm20257_vm3 = vmmov %vm20249_vm1 }
 0x5bc   : > { %10854 = vmatpush1.bf16.msra.mxu1 %v10853_v28  ;;  %v5346_v50 = vsel %vm20249_vm1, %v20248_v42, %v12767_v17  ;;  %v17103_v28 = vsel %vm20250_vm7, %v12772_v39, %v19633_v24  ;;  %v5347_v13 = vsel %vm20252_vm11, %v12767_v17, %v12768_v10  ;;  %v5259_v48 = vsel %vm20256_vm13, %v12763_v21, %v12772_v39  ;;  %vm20258_vm1 = vmmov %vm20250_vm7  ;;  %v20261_v39 = vld [vmem:[#allocation83_spill] sm:$0xff] }
 0x5bd   : > { %v12781_v41 = vpop.permute.xlu0 %12780  ;;  %v17096_v25 = vpop.permute.xlu1 %12775  ;;  %v10803_v35 = vpack.c.bf16 %v5346_v50, %v5257_v26  ;;  %20251 = vst [vmem:[#allocation25_spill] sm:$0xff] %v17103_v28  ;;  %v5258_v23 = vsel %vm20258_vm1, %v12762_v19, %v12763_v21  ;;  %vm20260_vm7 = vcmask 146432   ;;  %vm20263_vm11 = vcmask 998400   ;;  %12965 = vrot.lane.b32.xlu0 %v20094_v8, %s19664_s13  ;;  %12970 = vrot.lane.b32.xlu1 %v20094_v8, %s19870_s12 }
 0x5be   : > { %v19634_v14 = vunpack.i.h.bf16 %v17096_v25  ;;  %v12777_v2 = vunpack.i.l.bf16 %v17096_v25  ;;  %v12782_v15 = vunpack.i.l.bf16 %v12781_v41  ;;  %vm20266_vm13 = vmmov %vm20263_vm11 }
 0x5bf   : > { %10804 = vmatprep.subr.bf16.mxu0 %v10803_v35  ;;  %vm20270_vm1 = vmmov %vm20260_vm7 }
 0x5c0   : > { %v17109_v61 = vsel %vm20253_vm15, %v12777_v2, %v19634_v14  ;;  %10806 = vmatpush1.bf16.msra.mxu0 %v20255_v46  ;;  %v5348_v26 = vsel %vm20257_vm3, %v12768_v10, %v12777_v2  ;;  %v10857_v14 = vpack.c.bf16 %v5347_v13, %v5258_v23  ;;  %v20259_v2 = vunpack.i.h.bf16 %v16645_v3  ;;  %vm20264_vm15 = vmmov %vm20260_vm7 }
 0x5c1   : > { %20254 = vst [vmem:[#allocation47_spill] sm:$0xff] %v17109_v61  ;;  %v17117_v42 = vpop.permute.xlu0 %12790  ;;  %v12786_v17 = vpop.permute.xlu1 %12785  ;;  %v10855_v50 = vpack.c.bf16 %v5348_v26, %v5259_v48  ;;  %v20262_v10 = vunpack.i.h.bf16 %v20261_v39  ;;  %v12783_v46 = vunpack.i.h.bf16 %v12781_v41  ;;  %vm20267_vm3 = vmmov %vm20263_vm11  ;;  %12975 = vrot.lane.b32.xlu0 %v20094_v8, %s19664_s13  ;;  %12980 = vrot.lane.b32.xlu1 %v20094_v8, %s19870_s12  ;;  %s19691_s13 = smov 125  }
 0x5c2   : > { %v12787_v24 = vunpack.i.l.bf16 %v12786_v17  ;;  %v19635_v43 = vunpack.i.h.bf16 %v17117_v42  ;;  %v12792_v4 = vunpack.i.l.bf16 %v17117_v42  ;;  %v12788_v53 = vunpack.i.h.bf16 %v12786_v17 }
 0x5c3   : > { %10856 = vmatprep.subr.bf16.mxu1 %v10855_v50  ;;  %v5435_v19 = vsel %vm20260_vm7, %v20259_v2, %v12782_v15  ;;  %v20269_v50 = vpack.c.bf16 %v16660_v6, %v16665_v56  ;;  %vm20271_vm7 = vmmov %vm20267_vm3  ;;  %v20274_v56 = vld [vmem:[#allocation85_spill] sm:$0xff] }
 0x5c4   : > { %10858 = vmatpush1.bf16.msra.mxu1 %v10857_v14  ;;  %v5524_v21 = vsel %vm20263_vm11, %v20262_v10, %v12787_v24  ;;  %v17136_v14 = vsel %vm20264_vm15, %v12792_v4, %v19635_v43  ;;  %v5525_v3 = vsel %vm20266_vm13, %v12787_v24, %v12788_v53  ;;  %v5437_v2 = vsel %vm20270_vm1, %v12783_v46, %v12792_v4  ;;  %vm20272_vm11 = vmmov %vm20270_vm1 }
 0x5c5   : > { %v12801_v48 = vpop.permute.xlu0 %12800  ;;  %v17129_v26 = vpop.permute.xlu1 %12795  ;;  %v10807_v13 = vpack.c.bf16 %v5524_v21, %v5435_v19  ;;  %20265 = vst [vmem:[#allocation51_spill] sm:$0xff] %v17136_v14  ;;  %v5436_v39 = vsel %vm20272_vm11, %v12782_v15, %v12783_v46  ;;  %v20275_v4 = vunpack.i.h.bf16 %v20274_v56  ;;  %vm20278_vm15 = vcmask 965632   ;;  %12985 = vrot.lane.b32.xlu0 %v20094_v8, %s19652_s15  ;;  %12990 = vrot.lane.b32.xlu1 %v20094_v8, %s20422_s28 }
 0x5c6   : > { %v19636_v23 = vunpack.i.h.bf16 %v17129_v26  ;;  %v12797_v35 = vunpack.i.l.bf16 %v17129_v26  ;;  %v12802_v17 = vunpack.i.l.bf16 %v12801_v48  ;;  %vm20279_vm13 = vmmov %vm20278_vm15 }
 0x5c7   : > { %10808 = vmatprep.subr.bf16.mxu0 %v10807_v13 }
 0x5c8   : > { %v17142_v41 = vsel %vm20267_vm3, %v12797_v35, %v19636_v23  ;;  %10810 = vmatpush1.bf16.msra.mxu0 %v20269_v50  ;;  %v5526_v19 = vsel %vm20271_vm7, %v12788_v53, %v12797_v35  ;;  %v10861_v23 = vpack.c.bf16 %v5525_v3, %v5436_v39  ;;  %v5613_v35 = vsel %vm5607_vm4, %v20275_v4, %v12802_v17  ;;  %v20276_v53 = vld [vmem:[#allocation84_spill] sm:$0xff]  ;;  %vm20281_vm3 = vmmov %vm20279_vm13 }
 0x5c9   : > { %20268 = vst [vmem:[#allocation44_spill] sm:$0xff] %v17142_v41  ;;  %v17150_v10 = vpop.permute.xlu0 %12810  ;;  %v12806_v24 = vpop.permute.xlu1 %12805  ;;  %v10859_v21 = vpack.c.bf16 %v5526_v19, %v5437_v2  ;;  %v20277_v15 = vunpack.i.h.bf16 %v20276_v53  ;;  %v12803_v50 = vunpack.i.h.bf16 %v12801_v48  ;;  %v20292_v41 = vld [vmem:[#allocation88_spill] sm:$0xff]  ;;  %vm20321_vm7 = vcmask 900096   ;;  %12995 = vrot.lane.b32.xlu0 %v20094_v8, %s19652_s15  ;;  %13000 = vrot.lane.b32.xlu1 %v20094_v8, %s20422_s28  ;;  %s19660_s15 = smov 31  }
 0x5ca   : > { %20273 = vst [vmem:[#allocation32_spill] sm:$0xff] %v17150_v10  ;;  %v12807_v43 = vunpack.i.l.bf16 %v12806_v24  ;;  %v12808_v44 = vunpack.i.h.bf16 %v12806_v24  ;;  %v19638_v6 = vunpack.i.l.bf16 %v17150_v10 }
 0x5cb   : > { %10860 = vmatprep.subr.bf16.mxu1 %v10859_v21  ;;  %v5614_v56 = vsel %vm5607_vm4, %v12802_v17, %v12803_v50 }
 0x5cc   : > { %10862 = vmatpush1.bf16.msra.mxu1 %v10861_v23  ;;  %v5702_v46 = vsel %vm20278_vm15, %v20277_v15, %v12807_v43  ;;  %v5703_v39 = vsel %vm20279_vm13, %v12807_v43, %v12808_v44  ;;  %v20280_v23 = vpack.c.bf16 %v16700_v31, %v16705_v27  ;;  %v5615_v21 = vsel %vm5607_vm4, %v12803_v50, %v19638_v6  ;;  %v20283_v31 = vld [vmem:[#allocation20_spill] sm:$0xff]  ;;  %v20288_v50 = vld [vmem:[#allocation79_spill] sm:$0xff] }
 0x5cd   : > { %v12821_v2 = vpop.permute.xlu0 %12820  ;;  %v17161_v19 = vpop.permute.xlu1 %12815  ;;  %v10811_v13 = vpack.c.bf16 %v5702_v46, %v5613_v35  ;;  %v10865_v53 = vpack.c.bf16 %v5703_v39, %v5614_v56  ;;  %v12292_v27 = vunpack.i.l.bf16 %v20283_v31  ;;  %v12272_v14 = vunpack.i.l.bf16 %v20288_v50  ;;  %8613 = vrot.lane.b32.xlu1 %v20094_v8, %s19687_s10  ;;  %13005 = vrot.lane.b32.xlu0 %v20094_v8, %s19660_s15 }
 0x5ce   : > { %v19640_v3 = vunpack.i.l.bf16 %v17161_v19  ;;  %v12822_v24 = vunpack.i.l.bf16 %v12821_v2 }
 0x5cf   : > { %10812 = vmatprep.subr.bf16.mxu0 %v10811_v13 }
 0x5d0   : > { %10814 = vmatpush1.bf16.msra.mxu0 %v20280_v23  ;;  %v5704_v48 = vsel %vm20281_vm3, %v12808_v44, %v19640_v3  ;;  %v20284_v23 = vld [vmem:[#allocation87_spill] sm:$0xff]  ;;  %v20286_v44 = vld [vmem:[#allocation86_spill] sm:$0xff]  ;;  %vm20331_vm3 = vcmask 867328  }
 0x5d1   : > { %v17175_v4 = vpop.permute.xlu0 %12830  ;;  %v12826_v35 = vpop.permute.xlu1 %12825  ;;  %v10863_v43 = vpack.c.bf16 %v5704_v48, %v5615_v21  ;;  %v20285_v6 = vunpack.i.h.bf16 %v20284_v23  ;;  %v20287_v3 = vunpack.i.h.bf16 %v20286_v44  ;;  %v12823_v21 = vunpack.i.h.bf16 %v12821_v2  ;;  %v20291_v44 = vld [vmem:[#allocation30_spill] sm:$0xff]  ;;  %8790 = vrot.lane.b32.xlu1 %v20094_v8, %s20423_s29  ;;  %13010 = vrot.lane.b32.xlu0 %v20094_v8, %s19660_s15  ;;  %s20426_s15 = smov 13  }
 0x5d2   : > { %20282 = vst [vmem:[#allocation29_spill] sm:$0xff] %v17175_v4  ;;  %v12827_v13 = vunpack.i.l.bf16 %v12826_v35  ;;  %v12828_v15 = vunpack.i.h.bf16 %v12826_v35  ;;  %v20290_v35 = vld [vmem:[#allocation42_spill] sm:$0xff]  ;;  %v12293_v23 = vunpack.i.h.bf16 %v20283_v31  ;;  %v20293_v2 = vpack.c.bf16 %v16741_v32, %v20292_v41 }
 0x5d3   : > { %10864 = vmatprep.subr.bf16.mxu1 %v10863_v43  ;;  %v5791_v33 = vsel %vm19760_vm6, %v20285_v6, %v12822_v24  ;;  %v12332_v43 = vunpack.i.l.bf16 %v20290_v35  ;;  %v20294_v28 = vunpack.i.l.bf16 %v17175_v4  ;;  %v20296_v41 = vunpack.i.h.bf16 %v16068_v51 }
 0x5d4   : > { %10866 = vmatpush1.bf16.msra.mxu1 %v10865_v53  ;;  %v5880_v17 = vsel %vm5874_vm12, %v20287_v3, %v12827_v13  ;;  %v12273_v53 = vunpack.i.h.bf16 %v20288_v50  ;;  %v5881_v6 = vsel %vm5874_vm12, %v12827_v13, %v12828_v15  ;;  %v12312_v3 = vunpack.i.l.bf16 %v20291_v44 }
 0x5d5   : > { %v5948_v48 = vpop.permute.xlu0 %5947  ;;  %v17186_v39 = vpop.permute.xlu1 %12835  ;;  %v10815_v56 = vpack.c.bf16 %v5880_v17, %v5791_v33  ;;  %v5793_v33 = vsel %vm19760_vm6, %v12823_v21, %v20294_v28  ;;  %v20295_v50 = vunpack.i.h.bf16 %v16106_v22  ;;  %v12333_v13 = vunpack.i.h.bf16 %v20290_v35  ;;  %v20297_v28 = vld [vmem:[#allocation48_spill] sm:$0xff]  ;;  %8967 = vrot.lane.b32.xlu1 %v20094_v8, %s19654_s17  ;;  %s19685_s17 = smov 97  }
 0x5d6   : > { %20289 = vst [vmem:[#allocation28_spill] sm:$0xff] %v17186_v39  ;;  %v19651_v46 = vunpack.i.l.bf16 %v17186_v39  ;;  %v12372_v4 = vunpack.i.l.bf16 %v20297_v28  ;;  %v20298_v22 = vunpack.i.h.bf16 %v16191_v7  ;;  %v3725_v35 = vsel %vm3714_vm5, %v12272_v14, %v12273_v53  ;;  %8524 = vrot.lane.b32.xlu0 %v20094_v8, %s19685_s17 }
 0x5d7   : > { %10816 = vmatprep.subr.bf16.mxu0 %v10815_v56  ;;  %v3813_v31 = vsel %vm3803_vm9, %v20295_v50, %v12292_v27  ;;  %v5792_v56 = vsel %vm19760_vm6, %v12822_v24, %v12823_v21  ;;  %v5968_v24 = vsel %vm5963_vm0, %v16802_v29, %v5948_v48  ;;  %v3814_v51 = vsel %vm3803_vm9, %v12292_v27, %v12293_v23  ;;  %v20303_v29 = vld [vmem:[#allocation31_spill] sm:$0xff] }
 0x5d8   : > { %10818 = vmatpush1.bf16.msra.mxu0 %v20293_v2  ;;  %v5882_v17 = vsel %vm5874_vm12, %v12828_v15, %v19651_v46  ;;  %v3724_v2 = vsel %vm3714_vm5, %v20296_v41, %v12272_v14  ;;  %v10869_v15 = vpack.c.bf16 %v5881_v6, %v5792_v56  ;;  %v3991_v50 = vsel %vm3981_vm14, %v20298_v22, %v12332_v43  ;;  %v20300_v41 = vld [vmem:[#allocation37_spill] sm:$0xff]  ;;  %v20302_v14 = vld [vmem:[#allocation22_spill] sm:$0xff] }
 0x5d9   : > { %v5952_v61 = vpop.permute.xlu0 %5951  ;;  %v5950_v10 = vpop.permute.xlu1 %5949  ;;  %v10867_v32 = vpack.c.bf16 %v5882_v17, %v5793_v33  ;;  %v10871_v21 = vpack.c.bf16 %v3813_v31, %v3724_v2  ;;  %v20299_v33 = vld [vmem:[#allocation52_spill] sm:$0xff]  ;;  %v12352_v46 = vunpack.i.l.bf16 %v20300_v41  ;;  %v20301_v7 = vunpack.i.h.bf16 %v16151_v47  ;;  %v20304_v2 = vld [vmem:[#allocation21_spill] sm:$0xff]  ;;  %9144 = vrot.lane.b32.xlu1 %v20094_v8, %s20424_s26 }
 0x5da   : > { %v5969_v39 = vsel %vm5963_vm0, %v5948_v48, %v5950_v10  ;;  %v3815_v17 = vsel %vm3803_vm9, %v12293_v23, %v20299_v33  ;;  %v12313_v56 = vunpack.i.h.bf16 %v20291_v44  ;;  %v3993_v48 = vsel %vm3981_vm14, %v12333_v13, %v20303_v29 }
 0x5db   : > { %6531 = vmatprep.subr.mxu0 %v5969_v39  ;;  %10868 = vmatprep.subr.bf16.mxu1 %v10867_v32  ;;  %v3902_v6 = vsel %vm3892_vm10, %v20301_v7, %v12312_v3  ;;  %v3726_v39 = vsel %vm3714_vm5, %v12273_v53, %v20302_v14  ;;  %v12373_v32 = vunpack.i.h.bf16 %v20297_v28  ;;  %v20307_v44 = vunpack.i.h.bf16 %v20187_v11  ;;  %v20309_v14 = vld [vmem:[#allocation58_spill] sm:$0xff] }
 0x5dc   : > { %6532 = vmatpush1.msra.mxu0 %v5968_v24  ;;  %10870 = vmatpush1.bf16.msra.mxu1 %v10869_v15  ;;  %v10875_v23 = vpack.c.bf16 %v3991_v50, %v3902_v6  ;;  %v20305_v15 = vld [vmem:[#allocation19_spill] sm:$0xff]  ;;  %v10923_v33 = vpack.c.bf16 %v3815_v17, %v3726_v39  ;;  %v5970_v28 = vsel %vm5963_vm0, %v5950_v10, %v5952_v61  ;;  %v12397_v29 = vunpack.i.l.bf16 %v20309_v14 }
 0x5dd   : > { %v12841_v27 = vpop.permute.xlu0 %12840  ;;  %v17231_v31 = vpop.permute.xlu1 %5953  ;;  %6544 = vmatmul.mubr.f32.vlgmr.msra.gmra.mrb[8].mxu0 %v16778_v20  ;;  %10872 = vmatprep.subr.bf16.mxu0 %v10871_v21  ;;  %v20306_v22 = vpack.c.bf16 %v20304_v2, %v20305_v15  ;;  %v4169_v24 = vsel %vm4159_vm2, %v20307_v44, %v12372_v4  ;;  %v10925_v50 = vpack.c.bf16 %v3814_v51, %v3725_v35  ;;  %v20308_v21 = vld [vmem:[#allocation27_spill] sm:$0xff]  ;;  %v20310_v11 = vunpack.i.h.bf16 %v20194_v0  ;;  %v20312_v35 = vld [vmem:[#allocation41_spill] sm:$0xff]  ;;  %v20314_v51 = vld [vmem:[#allocation24_spill] sm:$0xff] }
 0x5de   : > { %v12842_v47 = vunpack.i.l.bf16 %v12841_v27  ;;  %v5971_v53 = vsel %vm5963_vm0, %v5952_v61, %v17231_v31  ;;  %10333 = vmatprep.mubr.msk.f32.mxu0 %vm2984_vm8, %v16819_v52  ;;  %v3904_v7 = vsel %vm3892_vm10, %v12313_v56, %v20308_v21  ;;  %v3992_v6 = vsel %vm3981_vm14, %v12332_v43, %v12333_v13  ;;  %v20313_v13 = vld [vmem:[#allocation43_spill] sm:$0xff]  ;;  %8266 = vrot.lane.b32.xlu1 %v20094_v8, %s19656_s11  ;;  %s19683_s11 = smov 91  }
 0x5df   : > { %10874 = vmatpush1.bf16.msra.mxu0 %v20306_v22  ;;  %6602 = vmatprep.subr.mxu1 %v5971_v53  ;;  %vm20311_vm5 = vcmask 64512   ;;  %v10927_v15 = vpack.c.bf16 %v3993_v48, %v3904_v7  ;;  %v12353_v17 = vunpack.i.h.bf16 %v20300_v41  ;;  %v3903_v10 = vsel %vm3892_vm10, %v12312_v3, %v12313_v56  ;;  %v20318_v48 = vld [vmem:[#allocation36_spill] sm:$0xff] }
 0x5e0   : > { %10876 = vmatprep.subr.bf16.mxu0 %v10875_v23  ;;  %6603 = vmatpush1.msra.mxu1 %v5970_v28  ;;  %v4080_v2 = vsel %vm20311_vm5, %v20310_v11, %v12352_v46  ;;  %v4171_v43 = vsel %vm4159_vm2, %v12373_v32, %v20312_v35  ;;  %v20315_v22 = vpack.c.bf16 %v20313_v13, %v20314_v51  ;;  %v20316_v0 = vunpack.i.h.bf16 %v16841_v40  ;;  %vm20319_vm1 = vmmov %vm20311_vm5 }
 0x5e1   : > { %v12846_v39 = vpop.permute.xlu0 %12845  ;;  %v4336_v23 = vpop.permute.xlu1 %4335  ;;  %6615 = vmatmul.mubr.f32.vlgmr.msra.gmra.mrb[8].mxu1 %v16778_v20  ;;  %10924 = vmatprep.subr.bf16.mxu1 %v10923_v33  ;;  %v10879_v61 = vpack.c.bf16 %v4169_v24, %v4080_v2  ;;  %vm20317_vm9 = vcmask 883712   ;;  %v4082_v53 = vsel %vm20319_vm1, %v12353_v17, %v20318_v48  ;;  %v12398_v20 = vunpack.i.h.bf16 %v20309_v14  ;;  %vm20322_vm11 = vmmov %vm20319_vm1  ;;  %v20324_v2 = vld [vmem:[#allocation46_spill] sm:$0xff] }
 0x5e2   : > { %10926 = vmatpush1.bf16.msra.mxu1 %v10925_v50  ;;  %v4347_v41 = vsel %vm20317_vm9, %v20316_v0, %v12842_v47  ;;  %v10929_v3 = vpack.c.bf16 %v3992_v6, %v3903_v10  ;;  %v4170_v56 = vsel %vm4159_vm2, %v12372_v4, %v12373_v32  ;;  %v12843_v44 = vunpack.i.h.bf16 %v12841_v27  ;;  %10334 = vmatprep.mubr.msk.f32.mxu1 %vm2984_vm8, %v16819_v52  ;;  %vm20323_vm15 = vmmov %vm20317_vm9  ;;  %v20325_v4 = vld [vmem:[#allocation45_spill] sm:$0xff] }
 0x5e3   : > { %10878 = vmatpush1.bf16.msra.mxu0 %v20315_v22  ;;  %10928 = vmatprep.subr.bf16.mxu1 %v10927_v15  ;;  %v12847_v24 = vunpack.i.l.bf16 %v12846_v39  ;;  %v20320_v33 = vunpack.i.h.bf16 %v16320_v16  ;;  %v10931_v40 = vpack.c.bf16 %v4171_v43, %v4082_v53  ;;  %v4081_v14 = vsel %vm20322_vm11, %v12352_v46, %v12353_v17  ;;  %v20327_v16 = vld [vmem:[#allocation61_spill] sm:$0xff]  ;;  %vm20328_vm2 = vmmov %vm20321_vm7 }
 0x5e4   : > { %10880 = vmatprep.subr.bf16.mxu0 %v10879_v61  ;;  %v4349_v11 = vsel %vm20323_vm15, %v12843_v44, %v4336_v23  ;;  %v20326_v27 = vpack.c.bf16 %v20324_v2, %v20325_v4  ;;  %v4260_v32 = vsel %vm20328_vm2, %v12398_v20, %v20327_v16  ;;  %v10933_v52 = vpack.c.bf16 %v4170_v56, %v4081_v14  ;;  %vm20329_vm13 = vmmov %vm20317_vm9 }
 0x5e5   : > { %v4258_v28 = vsel %vm20321_vm7, %v20320_v33, %v12397_v29  ;;  %v4425_v50 = vpop.permute.xlu0 %4424  ;;  %v12851_v21 = vpop.permute.xlu1 %12850  ;;  %v4348_v15 = vsel %vm20329_vm13, %v12842_v47, %v12843_v44  ;;  %v20330_v10 = vunpack.i.h.bf16 %v16881_v62  ;;  %v20332_v17 = vunpack.i.h.bf16 %v16910_v36  ;;  %vm20334_vm9 = vmmov %vm20328_vm2  ;;  %8444 = vrot.lane.b32.xlu1 %v20094_v8, %s20425_s7  ;;  %8701 = vrot.lane.b32.xlu0 %v20094_v8, %s19683_s11 }
 0x5e6   : > { %v10883_v7 = vpack.c.bf16 %v4347_v41, %v4258_v28  ;;  %v12852_v6 = vunpack.i.l.bf16 %v12851_v21  ;;  %10930 = vmatpush1.bf16.msra.mxu1 %v10929_v3  ;;  %v12853_v61 = vunpack.i.h.bf16 %v12851_v21  ;;  %vm20333_vm5 = vcmask 244736   ;;  %vm20337_vm7 = vmmov %vm20331_vm3 }
 0x5e7   : > { %10882 = vmatpush1.bf16.msra.mxu0 %v20326_v27  ;;  %10932 = vmatprep.subr.bf16.mxu1 %v10931_v40  ;;  %v4436_v46 = vsel %vm20331_vm3, %v20330_v10, %v12847_v24  ;;  %v10935_v35 = vpack.c.bf16 %v4349_v11, %v4260_v32  ;;  %v4259_v22 = vsel %vm20334_vm9, %v12397_v29, %v12398_v20  ;;  %v12848_v0 = vunpack.i.h.bf16 %v12846_v39  ;;  %vm20335_vm1 = vmmov %vm20333_vm5 }
 0x5e8   : > { %10884 = vmatprep.subr.bf16.mxu0 %v10883_v7  ;;  %v4525_v23 = vsel %vm20333_vm5, %v20332_v17, %v12852_v6  ;;  %v20336_v47 = vpack.c.bf16 %v16869_v55, %v16860_v45  ;;  %v10937_v62 = vpack.c.bf16 %v4348_v15, %v4259_v22  ;;  %v12718_v53 = vunpack.i.h.bf16 %v16987_v60  ;;  %vm20338_vm11 = vmmov %vm20335_vm1  ;;  %v20359_v22 = vld [vmem:[#allocation59_spill] sm:$0xff] }
 0x5e9   : > { %v12856_v43 = vpop.permute.xlu0 %12855  ;;  %v4514_v13 = vpop.permute.xlu1 %4513  ;;  %v10887_v51 = vpack.c.bf16 %v4525_v23, %v4436_v46  ;;  %v4438_v36 = vsel %vm20337_vm7, %v12848_v0, %v4425_v50  ;;  %v4526_v3 = vsel %vm20338_vm11, %v12852_v6, %v12853_v61  ;;  %v20339_v45 = vpack.c.bf16 %v16931_v18, %v16925_v49  ;;  %vm20340_vm15 = vmmov %vm20331_vm3  ;;  %v20355_v46 = vld [vmem:[#allocation77_spill] sm:$0xff]  ;;  %v20356_v23 = vld [vmem:[#allocation67_spill] sm:$0xff]  ;;  %8878 = vrot.lane.b32.xlu0 %v20094_v8, %s19662_s18  ;;  %s19666_s18 = smov 7  }
 0x5ea   : > { %v4527_v41 = vsel %vm20335_vm1, %v12853_v61, %v4514_v13  ;;  %10934 = vmatpush1.bf16.msra.mxu1 %v10933_v52  ;;  %v12857_v48 = vunpack.i.l.bf16 %v12856_v43  ;;  %v4437_v55 = vsel %vm20340_vm15, %v12847_v24, %v12848_v0  ;;  %v12858_v33 = vunpack.i.h.bf16 %v12856_v43 }
 0x5eb   : > { %10886 = vmatpush1.bf16.msra.mxu0 %v20336_v47  ;;  %10936 = vmatprep.subr.bf16.mxu1 %v10935_v35  ;;  %v10939_v56 = vpack.c.bf16 %v4527_v41, %v4438_v36  ;;  %v10941_v28 = vpack.c.bf16 %v4526_v3, %v4437_v55  ;;  %v20341_v40 = vunpack.i.h.bf16 %v16942_v59  ;;  %vm20342_vm2 = vcmask 228352   ;;  %v20360_v41 = vld [vmem:[#allocation62_spill] sm:$0xff]  ;;  %v20361_v36 = vld [vmem:[#allocation69_spill] sm:$0xff] }
 0x5ec   : > { %10888 = vmatprep.subr.bf16.mxu0 %v10887_v51  ;;  %v20343_v21 = vunpack.i.h.bf16 %v16963_v57  ;;  %vm20344_vm13 = vcmask 211968   ;;  %v20346_v49 = vunpack.i.l.bf16 %v16987_v60  ;;  %vm20347_vm3 = vcmask 15360   ;;  %vm20349_vm9 = vmmov %vm20342_vm2 }
 0x5ed   : > { %v4603_v29 = vpop.permute.xlu0 %4602  ;;  %v12861_v39 = vpop.permute.xlu1 %12860  ;;  %v4614_v50 = vsel %vm20342_vm2, %v20341_v40, %v12857_v48  ;;  %vm20348_vm5 = vmmov %vm20344_vm13  ;;  %v20352_v60 = vpack.c.bf16 %v16978_v12, %v16997_v54  ;;  %v12243_v35 = vunpack.i.h.bf16 %v20356_v23  ;;  %v20358_v12 = vld [vmem:[#allocation76_spill] sm:$0xff]  ;;  %9056 = vrot.lane.b32.xlu0 %v20094_v8, %s20426_s15 }
 0x5ee   : > { %v12863_v20 = vunpack.i.h.bf16 %v12861_v39  ;;  %v12862_v44 = vunpack.i.l.bf16 %v12861_v39  ;;  %10938 = vmatpush1.bf16.msra.mxu1 %v10937_v62  ;;  %v4791_v18 = vsel %vm20347_vm3, %v20346_v49, %v12718_v53  ;;  %v4616_v59 = vsel %vm20349_vm9, %v12858_v33, %v4603_v29  ;;  %vm20350_vm1 = vmmov %vm20348_vm5  ;;  %v20362_v29 = vld [vmem:[#allocation68_spill] sm:$0xff]  ;;  %v20370_v49 = vld [vmem:[#allocation65_spill] sm:$0xff] }
 0x5ef   : > { %10890 = vmatpush1.bf16.msra.mxu0 %v20339_v45  ;;  %10940 = vmatprep.subr.bf16.mxu1 %v10939_v56  ;;  %vm20351_vm7 = vmmov %vm20342_vm2  ;;  %v10897_v54 = vpack.c.bf16 %v20358_v12, %v4791_v18  ;;  %v12242_v62 = vunpack.i.l.bf16 %v20356_v23  ;;  %v12237_v56 = vunpack.i.l.bf16 %v20361_v36  ;;  %vm20367_vm9 = vcmask 834560  }
 0x5f0   : > { %v4703_v7 = vsel %vm20344_vm13, %v20343_v21, %v12862_v44  ;;  %v4704_v24 = vsel %vm20348_vm5, %v12862_v44, %v12863_v20  ;;  %v4615_v27 = vsel %vm20351_vm7, %v12857_v48, %v12858_v33  ;;  %vm20353_vm11 = vmmov %vm20347_vm3  ;;  %v12238_v48 = vunpack.i.h.bf16 %v20361_v36 }
 0x5f1   : > { %v12866_v14 = vpop.permute.xlu0 %12865  ;;  %v4692_v11 = vpop.permute.xlu1 %4691  ;;  %v10891_v6 = vpack.c.bf16 %v4703_v7, %v4614_v50  ;;  %v10945_v32 = vpack.c.bf16 %v4704_v24, %v4615_v27  ;;  %vm20354_vm15 = vmmov %vm20347_vm3  ;;  %vm20363_vm13 = vcmask 162816   ;;  %v20368_v21 = vunpack.i.h.bf16 %v17026_v38  ;;  %v20372_v24 = vld [vmem:[#allocation53_spill] sm:$0xff]  ;;  %v20376_v27 = vld [vmem:[#allocation71_spill] sm:$0xff]  ;;  %9232 = vrot.lane.b32.xlu0 %v20094_v8, %s19666_s18  ;;  %s19689_s18 = smov 86  }
 0x5f2   : > { %v12868_v2 = vunpack.i.h.bf16 %v12866_v14  ;;  %v12867_v4 = vunpack.i.l.bf16 %v12866_v14  ;;  %v4705_v57 = vsel %vm20350_vm1, %v12863_v20, %v4692_v11  ;;  %10942 = vmatpush1.bf16.msra.mxu1 %v10941_v28  ;;  %vm20357_vm2 = vmmov %vm20347_vm3  ;;  %v5352_v39 = vsel %vm20363_vm13, %v12243_v35, %v20362_v29  ;;  %v20374_v11 = vld [vmem:[#allocation70_spill] sm:$0xff] }
 0x5f3   : > { %v10943_v16 = vpack.c.bf16 %v4705_v57, %v4616_v59  ;;  %10892 = vmatprep.subr.bf16.mxu0 %v10891_v6  ;;  %vm20364_vm3 = vcmask 1031168   ;;  %v20365_v28 = vunpack.i.h.bf16 %v17012_v5  ;;  %vm20369_vm1 = vmmov %vm20367_vm9 }
 0x5f4   : > { %10894 = vmatpush1.bf16.msra.mxu0 %v20352_v60  ;;  %v4792_v52 = vsel %vm20353_vm11, %v12718_v53, %v12867_v4  ;;  %v4793_v15 = vsel %vm20354_vm15, %v12867_v4, %v12868_v2  ;;  %vm20366_vm5 = vmmov %vm20364_vm3  ;;  %vm20375_vm15 = vcmask 179200  }
 0x5f5   : > { %v12871_v61 = vpop.permute.xlu0 %12870  ;;  %v4781_v10 = vpop.permute.xlu1 %4780  ;;  %10944 = vmatprep.subr.bf16.mxu1 %v10943_v16  ;;  %v10895_v17 = vpack.c.bf16 %v20355_v46, %v4792_v52  ;;  %v10949_v47 = vpack.c.bf16 %v20360_v41, %v4793_v15  ;;  %vm20371_vm7 = vmmov %vm20364_vm3  ;;  %v5263_v5 = vsel %vm20375_vm15, %v12238_v48, %v20374_v11  ;;  %v12248_v16 = vunpack.i.h.bf16 %v20376_v27  ;;  %8177 = vrot.lane.b32.xlu0 %v20094_v8, %s19691_s13  ;;  %s19695_s13 = smov 39  }
 0x5f6   : > { %v4794_v43 = vsel %vm20357_vm2, %v12868_v2, %v4781_v10  ;;  %10946 = vmatpush1.bf16.msra.mxu1 %v10945_v32  ;;  %v12873_v13 = vunpack.i.h.bf16 %v12871_v61  ;;  %v12872_v51 = vunpack.i.l.bf16 %v12871_v61  ;;  %vm20373_vm11 = vmmov %vm20369_vm1  ;;  %v20377_v32 = vunpack.i.h.bf16 %v17096_v25 }
 0x5f7   : > { %v10947_v0 = vpack.c.bf16 %v20359_v22, %v4794_v43  ;;  %10896 = vmatprep.subr.bf16.mxu0 %v10895_v17  ;;  %vm20378_vm2 = vmmov %vm20363_vm13  ;;  %v12247_v15 = vunpack.i.l.bf16 %v20376_v27  ;;  %vm20379_vm13 = vcmask 818176   ;;  %v20380_v10 = vunpack.i.h.bf16 %v17049_v1  ;;  %v20382_v17 = vld [vmem:[#allocation66_spill] sm:$0xff]  ;;  %v20389_v22 = vld [vmem:[#allocation64_spill] sm:$0xff] }
 0x5f8   : > { %10898 = vmatpush1.bf16.msra.mxu0 %v10897_v54  ;;  %v4906_v45 = vsel %vm20364_vm3, %v12872_v51, %v12873_v13  ;;  %v4905_v40 = vsel %vm20366_vm5, %v20365_v28, %v12872_v51  ;;  %v4907_v18 = vsel %vm20371_vm7, %v12873_v13, %v20370_v49  ;;  %v5350_v52 = vsel %vm20378_vm2, %v20377_v32, %v12242_v62  ;;  %vm20381_vm3 = vmmov %vm20379_vm13  ;;  %v20384_v43 = vld [vmem:[#allocation78_spill] sm:$0xff] }
 0x5f9   : > { %v12881_v53 = vpop.permute.xlu0 %12880  ;;  %v12876_v3 = vpop.permute.xlu1 %12875  ;;  %10948 = vmatprep.subr.bf16.mxu1 %v10947_v0  ;;  %vm20383_vm5 = vmmov %vm20381_vm3  ;;  %v12253_v12 = vunpack.i.h.bf16 %v20384_v43  ;;  %v20386_v25 = vpack.c.bf16 %v17041_v37, %v17035_v30  ;;  %v20387_v13 = vunpack.i.h.bf16 %v17063_v58  ;;  %v12252_v0 = vunpack.i.l.bf16 %v20384_v43  ;;  %v20416_v43 = vld [vmem:[#allocation29_spill] sm:$0xff]  ;;  %8355 = vrot.lane.b32.xlu0 %v20094_v8, %s19689_s18  ;;  %s20468_s18 = smov 45  }
 0x5fa   : > { %v12878_v20 = vunpack.i.h.bf16 %v12876_v3  ;;  %v12877_v44 = vunpack.i.l.bf16 %v12876_v3  ;;  %10950 = vmatpush1.bf16.msra.mxu1 %v10949_v47  ;;  %v12883_v55 = vunpack.i.h.bf16 %v12881_v53  ;;  %v12882_v33 = vunpack.i.l.bf16 %v12881_v53 }
 0x5fb   : > { %v5262_v29 = vsel %vm20375_vm15, %v12237_v56, %v12238_v48  ;;  %v20392_v37 = vunpack.i.h.bf16 %v17084_v9 }
 0x5fc   : > { %v4995_v50 = vsel %vm20367_vm9, %v12877_v44, %v12878_v20  ;;  %v4994_v7 = vsel %vm20369_vm1, %v20368_v21, %v12877_v44  ;;  %v4996_v14 = vsel %vm20373_vm11, %v12878_v20, %v20372_v24  ;;  %v5084_v61 = vsel %vm20379_vm13, %v12882_v33, %v12883_v55  ;;  %vm20391_vm11 = vmmov %vm20378_vm2  ;;  %v20404_v24 = vld [vmem:[#allocation47_spill] sm:$0xff] }
 0x5fd   : > { %v5428_v6 = vpop.permute.xlu0 %5427  ;;  %v12886_v59 = vpop.permute.xlu1 %12885  ;;  %v10899_v2 = vpack.c.bf16 %v4994_v7, %v4905_v40  ;;  %v10951_v4 = vpack.c.bf16 %v4996_v14, %v4907_v18  ;;  %v10953_v57 = vpack.c.bf16 %v4995_v50, %v4906_v45  ;;  %v5083_v46 = vsel %vm20381_vm3, %v20380_v10, %v12882_v33  ;;  %vm20393_vm2 = vmmov %vm20375_vm15  ;;  %v20403_v7 = vld [vmem:[#allocation32_spill] sm:$0xff]  ;;  %v20405_v14 = vld [vmem:[#allocation25_spill] sm:$0xff]  ;;  %13015 = vrot.lane.b32.xlu0 %v20094_v8, %s19685_s17 }
 0x5fe   : > { %v12888_v60 = vunpack.i.h.bf16 %v12886_v59  ;;  %v12887_v38 = vunpack.i.l.bf16 %v12886_v59  ;;  %v5085_v23 = vsel %vm20383_vm5, %v12883_v55, %v20382_v17  ;;  %vm20385_vm9 = vcmask 801792   ;;  %v20414_v10 = vld [vmem:[#allocation28_spill] sm:$0xff] }
 0x5ff   : > { %10900 = vmatprep.subr.bf16.mxu0 %v10899_v2  ;;  %10952 = vmatprep.subr.bf16.mxu1 %v10951_v4  ;;  %vm20388_vm1 = vmmov %vm20385_vm9  ;;  %v5351_v3 = vsel %vm20391_vm11, %v12242_v62, %v12243_v35  ;;  %v5261_v58 = vsel %vm20393_vm2, %v20392_v37, %v12237_v56  ;;  %v10959_v20 = vpack.c.bf16 %v5352_v39, %v5263_v5  ;;  %vm20394_vm13 = vcmask 998400  }
 0x600   : > { %v5173_v54 = vsel %vm20385_vm9, %v12887_v38, %v12888_v60  ;;  %10902 = vmatpush1.bf16.msra.mxu0 %v20386_v25  ;;  %10954 = vmatpush1.bf16.msra.mxu1 %v10953_v57  ;;  %v5172_v51 = vsel %vm20388_vm1, %v20387_v13, %v12887_v38  ;;  %vm20390_vm7 = vmmov %vm20388_vm1  ;;  %v10907_v44 = vpack.c.bf16 %v5350_v52, %v5261_v58  ;;  %v20396_v35 = vunpack.i.h.bf16 %v17129_v26 }
 0x601   : > { %v5174_v1 = vsel %vm20390_vm7, %v12888_v60, %v20389_v22  ;;  %v12891_v41 = vpop.permute.xlu0 %12890  ;;  %v10903_v47 = vpack.c.bf16 %v5172_v51, %v5083_v46  ;;  %v10957_v53 = vpack.c.bf16 %v5173_v54, %v5084_v61  ;;  %v20395_v55 = vpack.c.bf16 %v17076_v34, %v17070_v63  ;;  %vm20397_vm3 = vmmov %vm20394_vm13  ;;  %v20412_v61 = vld [vmem:[#allocation51_spill] sm:$0xff]  ;;  %13025 = vrot.lane.b32.xlu0 %v20094_v8, %s19685_s17  ;;  %s20466_s17 = smov 37  }
 0x602   : > { %v10955_v36 = vpack.c.bf16 %v5174_v1, %v5085_v23  ;;  %v5517_v30 = vpop.permute.xlu1 %5516  ;;  %v5528_v62 = vsel %vm20397_vm3, %v20396_v35, %v12252_v0  ;;  %vm20398_vm5 = vcmask 146432   ;;  %vm20399_vm9 = vmmov %vm20397_vm3  ;;  %v10961_v56 = vpack.c.bf16 %v5351_v3, %v5262_v29 }
 0x603   : > { %10904 = vmatprep.subr.bf16.mxu0 %v10903_v47  ;;  %v5530_v45 = vsel %vm20394_vm13, %v12253_v12, %v5517_v30  ;;  %v5440_v48 = vsel %vm20398_vm5, %v12247_v15, %v12248_v16  ;;  %v5529_v9 = vsel %vm20399_vm9, %v12252_v0, %v12253_v12  ;;  %v12818_v39 = vunpack.i.h.bf16 %v17161_v19  ;;  %vm20400_vm1 = vmmov %vm20398_vm5 }
 0x604   : > { %10956 = vmatprep.subr.bf16.mxu1 %v10955_v36  ;;  %10906 = vmatpush1.bf16.msra.mxu0 %v20395_v55  ;;  %v5441_v33 = vsel %vm20400_vm1, %v12248_v16, %v5428_v6  ;;  %v12892_v28 = vunpack.i.l.bf16 %v12891_v41  ;;  %v20401_v63 = vunpack.i.h.bf16 %v17117_v42  ;;  %vm20402_vm7 = vmmov %vm20400_vm1  ;;  %v12813_v49 = vunpack.i.h.bf16 %v20403_v7 }
 0x605   : > { %10958 = vmatpush1.bf16.msra.mxu1 %v10957_v53  ;;  %10908 = vmatprep.subr.bf16.mxu0 %v10907_v44  ;;  %v10963_v26 = vpack.c.bf16 %v5530_v45, %v5441_v33  ;;  %v20406_v11 = vpack.c.bf16 %v20404_v24, %v20405_v14  ;;  %v10965_v6 = vpack.c.bf16 %v5529_v9, %v5440_v48  ;;  %v20407_v59 = vunpack.i.l.bf16 %v17161_v19 }
 0x606   : > { %10960 = vmatprep.subr.bf16.mxu1 %v10959_v20  ;;  %v5606_v40 = vpop.permute.xlu0 %5605  ;;  %v5439_v34 = vsel %vm20402_vm7, %v20401_v63, %v12247_v15  ;;  %vm20408_vm11 = vcmask 965632   ;;  %v12893_v2 = vunpack.i.h.bf16 %v12891_v41  ;;  %v5617_v57 = vsel %vm5607_vm4, %v12813_v49, %v12892_v28  ;;  %v20411_v15 = vld [vmem:[#allocation44_spill] sm:$0xff]  ;;  %13035 = vrot.lane.b32.xlu0 %v20094_v8, %s19683_s11  ;;  %s20465_s11 = smov 79  }
 0x607   : > { %v12896_v50 = vpop.permute.xlu1 %12895  ;;  %v10911_v21 = vpack.c.bf16 %v5528_v62, %v5439_v34  ;;  %v5705_v42 = vsel %vm20408_vm11, %v20407_v59, %v12818_v39  ;;  %vm20409_vm15 = vmmov %vm20408_vm11  ;;  %v20410_v38 = vunpack.i.l.bf16 %v20403_v7  ;;  %v20413_v19 = vpack.c.bf16 %v20411_v15, %v20412_v61 }
 0x608   : > { %v12897_v18 = vunpack.i.l.bf16 %v12896_v50  ;;  %10910 = vmatpush1.bf16.msra.mxu0 %v20406_v11  ;;  %v12898_v5 = vunpack.i.h.bf16 %v12896_v50  ;;  %v12838_v46 = vunpack.i.h.bf16 %v20414_v10  ;;  %vm20415_vm2 = vmmov %vm20408_vm11  ;;  %v12833_v12 = vunpack.i.h.bf16 %v20416_v43 }
 0x609   : > { %10962 = vmatpush1.bf16.msra.mxu1 %v10961_v56  ;;  %10912 = vmatprep.subr.bf16.mxu0 %v10911_v21  ;;  %v5616_v32 = vsel %vm5607_vm4, %v20410_v38, %v12813_v49  ;;  %v5619_v54 = vsel %vm5607_vm4, %v12893_v2, %v5606_v40  ;;  %vm20417_vm13 = vmmov %vm20415_vm2  ;;  %v5618_v22 = vsel %vm5607_vm4, %v12892_v28, %v12893_v2  ;;  %v20418_v3 = vunpack.i.l.bf16 %v20414_v10 }
 0x60a   : > { %10964 = vmatprep.subr.bf16.mxu1 %v10963_v26  ;;  %v12906_v4 = vpop.permute.xlu0 %12905  ;;  %v5706_v27 = vsel %vm20409_vm15, %v12818_v39, %v12897_v18  ;;  %v5707_v17 = vsel %vm20415_vm2, %v12897_v18, %v12898_v5  ;;  %v10917_v23 = vpack.c.bf16 %v5705_v42, %v5616_v32  ;;  %v20419_v30 = vunpack.i.l.bf16 %v20416_v43  ;;  %v13693_v18 = vld [vmem:[%s19330_s2 + $0x10] sm:$0xff]  ;;  %vm20421_vm4 = vmmov %vm20415_vm2 }
 0x60b   : > { %v17406_v16 = vpop.permute.xlu1 %12900  ;;  %v10915_v60 = vpack.c.bf16 %v5706_v27, %v5617_v57  ;;  %v12907_v25 = vunpack.i.l.bf16 %v12906_v4  ;;  %v12908_v41 = vunpack.i.h.bf16 %v12906_v4  ;;  %v10969_v53 = vpack.c.bf16 %v5707_v17, %v5618_v22 }
 0x60c   : > { %v12902_v52 = vunpack.i.l.bf16 %v17406_v16  ;;  %10914 = vmatpush1.bf16.msra.mxu0 %v20413_v19  ;;  %v5883_v29 = vsel %vm5874_vm12, %v20418_v3, %v12838_v46  ;;  %v5794_v37 = vsel %vm19760_vm6, %v20419_v30, %v12833_v12  ;;  %v12903_v2 = vunpack.i.h.bf16 %v17406_v16 }
 0x60d   : > { %10966 = vmatpush1.bf16.msra.mxu1 %v10965_v6  ;;  %10916 = vmatprep.subr.bf16.mxu0 %v10915_v60  ;;  %v5795_v20 = vsel %vm19760_vm6, %v12833_v12, %v12907_v25  ;;  %v10921_v39 = vpack.c.bf16 %v5883_v29, %v5794_v37  ;;  %v5796_v33 = vsel %vm19760_vm6, %v12907_v25, %v12908_v41  ;;  %vm7268_vm3 = vcmask 646144  }
 0x60e   : > { %v5784_v13 = vpop.permute.xlu0 %5783  ;;  %v5708_v51 = vsel %vm20417_vm13, %v12898_v5, %v12902_v52  ;;  %vm20427_vm5 = vcmask 941056   ;;  %vm7357_vm1 = vcmask 621568   ;;  %vm20429_vm7 = vcmask 596992  }
 0x60f   : > { %v12911_v1 = vpop.permute.xlu1 %12910  ;;  %v10967_v0 = vpack.c.bf16 %v5708_v51, %v5619_v54  ;;  %v5797_v9 = vsel %vm19760_vm6, %v12908_v41, %v5784_v13  ;;  %vm20428_vm9 = vmmov %vm20427_vm5  ;;  %vm7534_vm15 = vcmask 302080  }
 0x610   : > { %v12913_v47 = vunpack.i.h.bf16 %v12911_v1  ;;  %v12912_v36 = vunpack.i.l.bf16 %v12911_v1  ;;  %10918 = vmatpush1.bf16.msra.mxu0 %v10917_v23  ;;  %vm20430_vm11 = vmmov %vm20429_vm7 }
 0x611   : > { %10968 = vmatprep.subr.bf16.mxu1 %v10967_v0  ;;  %vm20432_vm13 = vmmov %vm20429_vm7 }
 0x612   : > { %10970 = vmatpush1.bf16.msra.mxu1 %v10969_v53  ;;  %v5884_v44 = vsel %vm5874_vm12, %v12838_v46, %v12912_v36  ;;  %v5885_v45 = vsel %vm5874_vm12, %v12912_v36, %v12913_v47 }
 0x613   : > { %v12916_v58 = vpop.permute.xlu0 %12915  ;;  %v5873_v62 = vpop.permute.xlu1 %5872  ;;  %v10919_v48 = vpack.c.bf16 %v5884_v44, %v5795_v20  ;;  %v10973_v63 = vpack.c.bf16 %v5885_v45, %v5796_v33 }
 0x614   : > { %v12918_v55 = vunpack.i.h.bf16 %v12916_v58  ;;  %v12917_v35 = vunpack.i.l.bf16 %v12916_v58  ;;  %v5886_v56 = vsel %vm5874_vm12, %v12913_v47, %v5873_v62  ;;  %vm20420_vm12 = vmmov %vm20415_vm2 }
 0x615   : > { %v10971_v28 = vpack.c.bf16 %v5886_v56, %v5797_v9  ;;  %10920 = vmatprep.subr.bf16.mxu0 %v10919_v48  ;;  %vm20431_vm2 = vmmov %vm20427_vm5 }
 0x616   : > { %v5973_v40 = vsel %vm5963_vm0, %v12917_v35, %v12918_v55  ;;  %10922 = vmatpush1.bf16.msra.mxu0 %v10921_v39  ;;  %v5972_v21 = vsel %vm5963_vm0, %v17231_v31, %v12917_v35 }
 0x617   : > { %v12921_v34 = vpop.permute.xlu1 %12920  ;;  %10972 = vmatprep.subr.bf16.mxu1 %v10971_v28  ;;  %6673 = vmatprep.subr.mxu0 %v5973_v40 }
 0x618   : > { %v12923_v26 = vunpack.i.h.bf16 %v12921_v34  ;;  %v12922_v50 = vunpack.i.l.bf16 %v12921_v34  ;;  %10974 = vmatpush1.bf16.msra.mxu1 %v10973_v63 }
 0x61a   : > { %6674 = vmatpush1.msra.mxu0 %v5972_v21  ;;  %v5975_v7 = vsel %vm5963_vm0, %v12922_v50, %v12923_v26  ;;  %v5974_v49 = vsel %vm5963_vm0, %v12918_v55, %v12922_v50  ;;  %vm7003_vm0 = vcmask 990208  }
 0x61b   : > { %6686 = vmatmul.mubr.f32.vlgmr.msra.gmra.mrb[10].mxu0 %v13693_v18  ;;  %6744 = vmatprep.subr.mxu1 %v5975_v7 }
 0x61c   : > { %6745 = vmatpush1.msra.mxu1 %v5974_v49 }
 0x61d   : > { %6757 = vmatmul.mubr.f32.vlgmr.msra.gmra.mrb[10].mxu1 %v13693_v18 }
 0x624   : > { %v17441_v24 = vpop.permute.xlu0 %6331 }
 0x628   : > { %v17443_v14 = vpop.permute.xlu0 %6881  ;;  %v17445_v11 = vpop.permute.xlu1 %6900 }
 0x62c   : > { %v17447_v31 = vpop.permute.xlu0 %12930  ;;  %v12926_v6 = vpop.permute.xlu1 %12925 }
 0x62d   : > { %v19675_v5 = vunpack.i.l.bf16 %v17447_v31  ;;  %v12928_v59 = vunpack.i.h.bf16 %v12926_v6  ;;  %v12927_v42 = vunpack.i.l.bf16 %v12926_v6 }
 0x62f   : > { %v7004_v60 = vsel %vm7003_vm0, %v12927_v42, %v12928_v59  ;;  %v7005_v38 = vsel %vm7003_vm0, %v12928_v59, %v19675_v5 }
 0x630   : > { %v17451_v4 = vpop.permute.xlu0 %12935  ;;  %v17499_v17 = vpop.permute.xlu1 %12940 }
 0x631   : > { %v19674_v57 = vunpack.i.h.bf16 %v17451_v4  ;;  %v12937_v27 = vunpack.i.l.bf16 %v17451_v4 }
 0x633   : > { %v7092_v32 = vsel %vm20420_vm12, %v12903_v2, %v12937_v27  ;;  %v7093_v52 = vsel %vm20421_vm4, %v12937_v27, %v19674_v57  ;;  %vm20484_vm12 = vmmov %vm20421_vm4 }
 0x634   : > { %v10975_v15 = vpack.c.bf16 %v7093_v52, %v7005_v38  ;;  %v10977_v16 = vpack.c.bf16 %v7092_v32, %v7004_v60  ;;  %v12946_v23 = vpop.permute.xlu0 %12945  ;;  %v17505_v43 = vpop.permute.xlu1 %12950 }
 0x635   : > { %v12947_v12 = vunpack.i.l.bf16 %v12946_v23  ;;  %v12948_v51 = vunpack.i.h.bf16 %v12946_v23  ;;  %v12952_v0 = vunpack.i.l.bf16 %v17505_v43 }
 0x636   : > { %10976 = vmatprep.subr.bf16.mxu0 %v10975_v15 }
 0x637   : > { %10978 = vmatpush1.bf16.msra.mxu0 %v10977_v16  ;;  %v7180_v1 = vsel %vm20427_vm5, %v12947_v12, %v12948_v51  ;;  %v7181_v58 = vsel %vm20428_vm9, %v12948_v51, %v12952_v0  ;;  %v19673_v12 = vunpack.i.h.bf16 %v17505_v43  ;;  %vm20490_vm5 = vmmov %vm20421_vm4 }
 0x638   : > { %v17509_v54 = vpop.permute.xlu0 %12960  ;;  %v12956_v25 = vpop.permute.xlu1 %12955  ;;  %vm20496_vm9 = vmmov %vm20431_vm2 }
 0x639   : > { %v12957_v13 = vunpack.i.l.bf16 %v12956_v25  ;;  %v12958_v22 = vunpack.i.h.bf16 %v12956_v25  ;;  %v12962_v41 = vunpack.i.l.bf16 %v17509_v54  ;;  %v19672_v25 = vunpack.i.h.bf16 %v17509_v54 }
 0x63b   : > { %v7269_v47 = vsel %vm7268_vm3, %v12957_v13, %v12958_v22  ;;  %v7270_v20 = vsel %vm7268_vm3, %v12958_v22, %v12962_v41  ;;  %v17570_v13 = vsel %vm20431_vm2, %v12952_v0, %v19673_v12  ;;  %v17577_v51 = vsel %vm7268_vm3, %v12962_v41, %v19672_v25 }
 0x63c   : > { %v17517_v36 = vpop.permute.xlu0 %12965  ;;  %v17519_v53 = vpop.permute.xlu1 %12970  ;;  %v10981_v44 = vpack.c.bf16 %v7269_v47, %v7180_v1  ;;  %v10979_v45 = vpack.c.bf16 %v7270_v20, %v7181_v58 }
 0x63d   : > { %v12968_v3 = vunpack.i.h.bf16 %v17517_v36  ;;  %v12967_v29 = vunpack.i.l.bf16 %v17517_v36  ;;  %v12973_v30 = vunpack.i.h.bf16 %v17519_v53  ;;  %v12972_v37 = vunpack.i.l.bf16 %v17519_v53 }
 0x63e   : > { %10980 = vmatprep.subr.bf16.mxu0 %v10979_v45 }
 0x63f   : > { %v7359_v55 = vsel %vm7357_vm1, %v12967_v29, %v12968_v3  ;;  %v7447_v35 = vsel %vm20429_vm7, %v12972_v37, %v12973_v30  ;;  %10982 = vmatpush1.bf16.msra.mxu0 %v10981_v44  ;;  %v20433_v44 = vld [vmem:[#allocation35_spill] sm:$0xff]  ;;  %vm20498_vm7 = vmmov %vm20431_vm2 }
 0x640   : > { %v10983_v62 = vpack.c.bf16 %v7447_v35, %v7359_v55  ;;  %v17545_v48 = vpop.permute.xlu0 %12975  ;;  %v17547_v9 = vpop.permute.xlu1 %12980  ;;  %v20434_v55 = vld [vmem:[#allocation33_spill] sm:$0xff]  ;;  %v20435_v35 = vld [vmem:[#allocation26_spill] sm:$0xff]  ;;  %vm20503_vm2 = vmmov %vm20430_vm11 }
 0x641   : > { %v12977_v56 = vunpack.i.l.bf16 %v17545_v48  ;;  %v12982_v39 = vunpack.i.l.bf16 %v17547_v9  ;;  %v19671_v1 = vunpack.i.h.bf16 %v17545_v48  ;;  %v19670_v47 = vunpack.i.h.bf16 %v17547_v9 }
 0x642   : > { %10984 = vmatprep.subr.bf16.mxu0 %v10983_v62 }
 0x643   : > { %v7358_v33 = vsel %vm7357_vm1, %v12977_v56, %v12967_v29  ;;  %v7446_v28 = vsel %vm20430_vm11, %v12982_v39, %v12972_v37  ;;  %v17586_v36 = vsel %vm7357_vm1, %v12968_v3, %v19671_v1  ;;  %v17591_v0 = vsel %vm20432_vm13, %v12973_v30, %v19670_v47 }
 0x644   : > { %v12986_v40 = vpop.permute.xlu0 %12985  ;;  %v12991_v63 = vpop.permute.xlu1 %12990  ;;  %v10985_v34 = vpack.c.bf16 %v7446_v28, %v7358_v33  ;;  %v20436_v28 = vld [vmem:[#allocation23_spill] sm:$0xff]  ;;  %vm7711_vm13 = vcmask 252928  }
 0x645   : > { %v12988_v26 = vunpack.i.h.bf16 %v12986_v40  ;;  %v12987_v50 = vunpack.i.l.bf16 %v12986_v40  ;;  %v12993_v21 = vunpack.i.h.bf16 %v12991_v63  ;;  %v12992_v7 = vunpack.i.l.bf16 %v12991_v63  ;;  %v20437_v63 = vld [vmem:[#allocation40_spill] sm:$0xff] }
 0x646   : > { %10986 = vmatpush1.bf16.msra.mxu0 %v10985_v34 }
 0x647   : > { %v7536_v18 = vsel %vm7534_vm15, %v12987_v50, %v12988_v26  ;;  %v7624_v6 = vsel %vm3892_vm10, %v12992_v7, %v12993_v21 }
 0x648   : > { %v17555_v42 = vpop.permute.xlu0 %12995  ;;  %v10987_v2 = vpack.c.bf16 %v7624_v6, %v7536_v18  ;;  %v17558_v60 = vpop.permute.xlu1 %13000 }
 0x649   : > { %v12997_v27 = vunpack.i.l.bf16 %v17555_v42  ;;  %v13002_v38 = vunpack.i.l.bf16 %v17558_v60  ;;  %v19669_v53 = vunpack.i.h.bf16 %v17555_v42  ;;  %v19668_v29 = vunpack.i.h.bf16 %v17558_v60 }
 0x64a   : > { %10988 = vmatprep.subr.bf16.mxu0 %v10987_v2  ;;  %v20439_v2 = vld [vmem:[#allocation50_spill] sm:$0xff] }
 0x64b   : > { %v7535_v52 = vsel %vm7534_vm15, %v12997_v27, %v12987_v50  ;;  %v7623_v16 = vsel %vm3892_vm10, %v13002_v38, %v12992_v7  ;;  %v17606_v30 = vsel %vm7534_vm15, %v12988_v26, %v19669_v53  ;;  %v17611_v20 = vsel %vm3892_vm10, %v12993_v21, %v19668_v29  ;;  %v20438_v7 = vld [vmem:[#allocation38_spill] sm:$0xff] }
 0x64c   : > { %v10989_v23 = vpack.c.bf16 %v7623_v16, %v7535_v52 }
 0x64e   : > { %10990 = vmatpush1.bf16.msra.mxu0 %v10989_v23 }
 0x660   : > { %v17487_v61 = vpop.f32.mrb[6].mxu0 }
 0x661   : > { %v17489_v19 = vpop.f32.mrb[7].mxu0  ;;  %v6404_v37 = vadd.f32 %v17487_v61, %v17441_v24 }
 0x662   : > { %v6406_v58 = vadd.f32 %v17489_v19, %v17441_v24 }
 0x663   : > { %v6787_v45 = vmul.f32 %v6404_v37, %v20433_v44 }
 0x664   : > { %v6788_v61 = vmul.f32 %v6406_v58, %v20434_v55 }
 0x665   : > { %v17491_v10 = vpop.f32.mrb[6].mxu1 }
 0x666   : > { %v17493_v46 = vpop.f32.mrb[7].mxu1  ;;  %v6475_v3 = vadd.f32 %v17491_v10, %v17441_v24  ;;  %v6799_v56 = vadd.f32 %v6788_v61, %v6787_v45 }
 0x667   : > { %v6477_v19 = vadd.f32 %v17493_v46, %v17441_v24 }
 0x668   : > { %v6789_v62 = vmul.f32 %v6475_v3, %v20435_v35 }
 0x669   : > { %v6790_v40 = vmul.f32 %v6477_v19, %v20436_v28 }
 0x66a   : > { %v6800_v33 = vadd.f32 %v6799_v56, %v6789_v62 }
 0x66c   : > { %v6801_v50 = vadd.f32 %v6800_v33, %v6790_v40  ;;  %v20441_v33 = vld [vmem:[#allocation39_spill] sm:$0xff] }
 0x6b0   : > { %v6545_v49 = vpop.f32.mrb[8].mxu0 }
 0x6b1   : > { %v6547_v59 = vpop.f32.mrb[9].mxu0  ;;  %v6546_v39 = vadd.f32 %v6545_v49, %v17441_v24  ;;  %v20440_v49 = vld [vmem:[#allocation49_spill] sm:$0xff] }
 0x6b2   : > { %v6548_v26 = vadd.f32 %v6547_v59, %v17441_v24 }
 0x6b3   : > { %v6791_v34 = vmul.f32 %v6546_v39, %v20437_v63 }
 0x6b4   : > { %v6616_v32 = vpop.f32.mrb[8].mxu1  ;;  %v6792_v18 = vmul.f32 %v6548_v26, %v20438_v7 }
 0x6b5   : > { %v6618_v15 = vpop.f32.mrb[9].mxu1  ;;  %v6802_v21 = vadd.f32 %v6801_v50, %v6791_v34  ;;  %v6617_v6 = vadd.f32 %v6616_v32, %v17441_v24  ;;  %v20442_v50 = vld [vmem:[#allocation34_spill] sm:$0xff] }
 0x6b6   : > { %v6619_v38 = vadd.f32 %v6618_v15, %v17441_v24 }
 0x6b7   : > { %v6803_v46 = vadd.f32 %v6802_v21, %v6792_v18  ;;  %v6793_v27 = vmul.f32 %v6617_v6, %v20439_v2 }
 0x6b8   : > { %v6794_v16 = vmul.f32 %v6619_v38, %v20440_v49 }
 0x6b9   : > { %v6804_v52 = vadd.f32 %v6803_v46, %v6793_v27  ;;  %v20443_v27 = vld [vmem:[#allocation56_spill] sm:$0xff] }
 0x6bb   : > { %v6805_v56 = vadd.f32 %v6804_v52, %v6794_v16  ;;  %v17643_v52 = vpop.permute.xlu1 %8613 }
 0x6bc   : > { %20445 = vst [vmem:[#allocation54_spill] sm:$0xff] %v17643_v52 }
 0x6ee   : > { %v6687_v23 = vpop.f32.mrb[10].mxu0 }
 0x6ef   : > { %v6688_v45 = vadd.f32 %v6687_v23, %v17441_v24  ;;  %v6689_v61 = vpop.f32.mrb[11].mxu0  ;;  %v20444_v23 = vld [vmem:[#allocation57_spill] sm:$0xff] }
 0x6f0   : > { %v6690_v59 = vadd.f32 %v6689_v61, %v17441_v24  ;;  %v6758_v62 = vpop.f32.mrb[10].mxu1 }
 0x6f1   : > { %v6795_v40 = vmul.f32 %v6688_v45, %v20441_v33  ;;  %v6759_v32 = vadd.f32 %v6758_v62, %v17441_v24  ;;  %v6760_v34 = vpop.f32.mrb[11].mxu1 }
 0x6f2   : > { %v6796_v21 = vmul.f32 %v6690_v59, %v20442_v50  ;;  %v6761_v15 = vadd.f32 %v6760_v34, %v17441_v24  ;;  %v17645_v24 = vpop.permute.xlu1 %8790 }
 0x6f3   : > { %v6806_v18 = vadd.f32 %v6805_v56, %v6795_v40  ;;  %v6797_v10 = vmul.f32 %v6759_v32, %v20443_v27  ;;  %20446 = vst [vmem:[#allocation55_spill] sm:$0xff] %v17645_v24 }
 0x6f4   : > { %v6798_v29 = vmul.f32 %v6761_v15, %v20444_v23 }
 0x6f5   : > { %v6807_v46 = vadd.f32 %v6806_v18, %v6796_v21 }
 0x6f6   : > { %v17647_v16 = vpop.permute.xlu1 %8967 }
 0x6f7   : > { %v6808_v41 = vadd.f32 %v6807_v46, %v6797_v10  ;;  %20447 = vst [vmem:[#allocation75_spill] sm:$0xff] %v17647_v16 }
 0x6f9   : > { %v6809_v53 = vadd.f32 %v6808_v41, %v6798_v29 }
 0x6fa   : > { %v17649_v10 = vpop.permute.xlu1 %9144 }
 0x6fb   : > { %6810 = vadd.xlane.f32.xlu1 %v6809_v53  ;;  %20448 = vst [vmem:[#allocation74_spill] sm:$0xff] %v17649_v10 }
 0x6fe   : > { %v17651_v61 = vpop.permute.xlu1 %8266 }
 0x6ff   : > { %20449 = vst [vmem:[#allocation73_spill] sm:$0xff] %v17651_v61 }
 0x702   : > { %v17653_v41 = vpop.permute.xlu1 %8444 }
 0x703   : > { %20450 = vst [vmem:[#allocation72_spill] sm:$0xff] %v17653_v41 }
 0x70c   : > { %13020 = vrot.lane.b32.xlu1 %v20094_v8, %s19687_s10 }
 0x710   : > { %13030 = vrot.lane.b32.xlu1 %v20094_v8, %s19687_s10  ;;  %s19693_s10 = smov 42  }
 0x714   : > { %13040 = vrot.lane.b32.xlu1 %v20094_v8, %s20423_s29 }
 0x788   : > { %v6811_v53 = vpop.xlane.xlu1 %6810 }
 0x789   : > { %v6812_v29 = vmul.f32 0.001953125, %v6811_v53 }
 0x78b   : > { %v17655_v62 = vsub.f32 %v6404_v37, %v6812_v29  ;;  %v17657_v56 = vsub.f32 %v6406_v58, %v6812_v29  ;;  %v17659_v40 = vsub.f32 %v6475_v3, %v6812_v29  ;;  %v17665_v18 = vsub.f32 %v6477_v19, %v6812_v29 }
 0x78c   : > { %v17667_v46 = vsub.f32 %v6546_v39, %v6812_v29  ;;  %v6818_v47 = vsub.f32 %v6548_v26, %v6812_v29  ;;  %v6819_v3 = vsub.f32 %v6617_v6, %v6812_v29  ;;  %v6820_v57 = vsub.f32 %v6619_v38, %v6812_v29 }
 0x78d   : > { %v6825_v34 = vmul.f32 %v17655_v62, %v20433_v44  ;;  %v6826_v21 = vmul.f32 %v17657_v56, %v20434_v55  ;;  %v6827_v22 = vmul.f32 %v17659_v40, %v20435_v35  ;;  %v6828_v58 = vmul.f32 %v17665_v18, %v20436_v28 }
 0x78e   : > { %v6829_v1 = vmul.f32 %v17667_v46, %v20437_v63  ;;  %v6830_v19 = vmul.f32 %v6818_v47, %v20438_v7  ;;  %v17676_v41 = vsub.f32 %v6688_v45, %v6812_v29  ;;  %v17679_v61 = vsub.f32 %v6690_v59, %v6812_v29 }
 0x78f   : > { %v6837_v53 = vmul.f32 %v6825_v34, %v6825_v34  ;;  %v6838_v37 = vmul.f32 %v6826_v21, %v6826_v21  ;;  %v6839_v25 = vmul.f32 %v6827_v22, %v6827_v22  ;;  %v6840_v39 = vmul.f32 %v6828_v58, %v6828_v58 }
 0x790   : > { %v6831_v34 = vmul.f32 %v6819_v3, %v20439_v2  ;;  %v6841_v21 = vmul.f32 %v6829_v1, %v6829_v1  ;;  %v6832_v6 = vmul.f32 %v6820_v57, %v20440_v49  ;;  %v6842_v10 = vmul.f32 %v6830_v19, %v6830_v19 }
 0x791   : > { %v6849_v12 = vadd.f32 %v6838_v37, %v6837_v53  ;;  %v17682_v24 = vsub.f32 %v6759_v32, %v6812_v29  ;;  %v6833_v22 = vmul.f32 %v17676_v41, %v20441_v33 }
 0x792   : > { %v6843_v38 = vmul.f32 %v6831_v34, %v6831_v34  ;;  %v6844_v1 = vmul.f32 %v6832_v6, %v6832_v6 }
 0x793   : > { %v6850_v5 = vadd.f32 %v6849_v12, %v6839_v25  ;;  %v17686_v12 = vsub.f32 %v6761_v15, %v6812_v29  ;;  %v6834_v25 = vmul.f32 %v17679_v61, %v20442_v50  ;;  %v6835_v45 = vmul.f32 %v17682_v24, %v20443_v27  ;;  %v17694_v29 = vpop.permute.xlu0 %13005 }
 0x794   : > { %v6845_v59 = vmul.f32 %v6833_v22, %v6833_v22 }
 0x795   : > { %v6851_v26 = vadd.f32 %v6850_v5, %v6840_v39  ;;  %v6836_v32 = vmul.f32 %v17686_v12, %v20444_v23  ;;  %v6846_v58 = vmul.f32 %v6834_v25, %v6834_v25  ;;  %v6847_v39 = vmul.f32 %v6835_v45, %v6835_v45 }
 0x797   : > { %v6852_v16 = vadd.f32 %v6851_v26, %v6841_v21  ;;  %v17696_v21 = vpop.permute.xlu0 %13010 }
 0x799   : > { %v6853_v53 = vadd.f32 %v6852_v16, %v6842_v10  ;;  %v6848_v16 = vmul.f32 %v6836_v32, %v6836_v32 }
 0x79b   : > { %v6854_v5 = vadd.f32 %v6853_v53, %v6843_v38  ;;  %v17698_v26 = vpop.permute.xlu0 %8524 }
 0x79c   : > { %20451 = vst [vmem:[#allocation63_spill] sm:$0xff] %v17698_v26 }
 0x79d   : > { %v6855_v37 = vadd.f32 %v6854_v5, %v6844_v1 }
 0x79f   : > { %v6856_v19 = vadd.f32 %v6855_v37, %v6845_v59  ;;  %v17700_v6 = vpop.permute.xlu0 %8701 }
 0x7a0   : > { %20452 = vst [vmem:[#allocation60_spill] sm:$0xff] %v17700_v6 }
 0x7a1   : > { %v6857_v34 = vadd.f32 %v6856_v19, %v6846_v58 }
 0x7a3   : > { %v6858_v15 = vadd.f32 %v6857_v34, %v6847_v39  ;;  %v17702_v22 = vpop.permute.xlu0 %8878 }
 0x7a4   : > { %20453 = vst [vmem:[#allocation80_spill] sm:$0xff] %v17702_v22 }
 0x7a5   : > { %v6859_v10 = vadd.f32 %v6858_v15, %v6848_v16 }
 0x7a7   : > { %6860 = vadd.xlane.f32.xlu0 %v6859_v10  ;;  %v17704_v38 = vpop.permute.xlu0 %9056 }
 0x7a8   : > { %20454 = vst [vmem:[#allocation81_spill] sm:$0xff] %v17704_v38  ;;  %v20499_v38 = vunpack.i.h.bf16 %v17509_v54  ;;  %v20501_v54 = vunpack.i.h.bf16 %v17545_v48 }
 0x7ab   : > { %v17706_v53 = vpop.permute.xlu0 %9232 }
 0x7ac   : > { %20455 = vst [vmem:[#allocation82_spill] sm:$0xff] %v17706_v53 }
 0x7af   : > { %v17708_v25 = vpop.permute.xlu0 %8177 }
 0x7b0   : > { %20456 = vst [vmem:[#allocation83_spill] sm:$0xff] %v17708_v25 }
 0x7b3   : > { %v17710_v1 = vpop.permute.xlu0 %8355 }
 0x7b4   : > { %20457 = vst [vmem:[#allocation85_spill] sm:$0xff] %v17710_v1 }
 0x7b7   : > { %v17712_v5 = vpop.permute.xlu0 %13015 }
 0x7b8   : > { %20458 = vst [vmem:[#allocation84_spill] sm:$0xff] %v17712_v5 }
 0x7bb   : > { %v17714_v45 = vpop.permute.xlu0 %13025 }
 0x7bc   : > { %20459 = vst [vmem:[#allocation20_spill] sm:$0xff] %v17714_v45 }
 0x7bf   : > { %v17716_v59 = vpop.permute.xlu0 %13035 }
 0x7c0   : > { %20460 = vst [vmem:[#allocation87_spill] sm:$0xff] %v17716_v59 }
 0x834   : > { %v6861_v37 = vpop.xlane.xlu0 %6860 }
 0x835   : > { %v6862_v32 = vmul.f32 0.001953125, %v6861_v37 }
 0x837   : > { %v6863_v58 = vadd.f32 1e-05, %v6862_v32 }
 0x839   : > { %13686 = vrsqrt.f32 %v6863_v58 }
 0x843   : > { %v17718_v19 = vpop.eup %13686 }
 0x844   : > { %v6866_v39 = vmul.f32 %v17718_v19, %v17657_v56  ;;  %v6867_v34 = vmul.f32 %v17718_v19, %v17659_v40  ;;  %v6865_v16 = vmul.f32 %v17718_v19, %v17655_v62  ;;  %v6870_v15 = vmul.f32 %v17718_v19, %v6818_v47 }
 0x845   : > { %v6871_v10 = vmul.f32 %v17718_v19, %v6819_v3  ;;  %v6868_v37 = vmul.f32 %v17718_v19, %v17665_v18  ;;  %v6869_v32 = vmul.f32 %v17718_v19, %v17667_v46  ;;  %v6872_v58 = vmul.f32 %v17718_v19, %v6820_v57 }
 0x846   : > { %v6885_v56 = vmul.f32 %v17443_v14, %v6866_v39  ;;  %v6886_v1 = vmul.f32 %v17443_v14, %v6867_v34  ;;  %v6884_v40 = vmul.f32 %v17443_v14, %v6865_v16  ;;  %v6889_v62 = vmul.f32 %v17443_v14, %v6870_v15 }
 0x847   : > { %v6890_v47 = vmul.f32 %v17443_v14, %v6871_v10  ;;  %v6887_v3 = vmul.f32 %v17443_v14, %v6868_v37  ;;  %v6888_v25 = vmul.f32 %v17443_v14, %v6869_v32  ;;  %v6891_v10 = vmul.f32 %v17443_v14, %v6872_v58 }
 0x848   : > { %v6904_v18 = vadd.f32 %v17445_v11, %v6885_v56  ;;  %v6905_v46 = vadd.f32 %v17445_v11, %v6886_v1  ;;  %v6903_v57 = vadd.f32 %v17445_v11, %v6884_v40  ;;  %v6908_v39 = vadd.f32 %v17445_v11, %v6889_v62 }
 0x849   : > { %v6909_v34 = vadd.f32 %v17445_v11, %v6890_v47  ;;  %v6906_v16 = vadd.f32 %v17445_v11, %v6887_v3  ;;  %v6907_v15 = vadd.f32 %v17445_v11, %v6888_v25  ;;  %v6910_v47 = vadd.f32 %v17445_v11, %v6891_v10 }
 0x84a   : > { %v6916_v59 = vmax.f32 %v6904_v18, 0.0  ;;  %v6917_v37 = vmax.f32 %v6905_v46, 0.0  ;;  %v6915_v45 = vmax.f32 %v6903_v57, 0.0  ;;  %v6920_v32 = vmax.f32 %v6908_v39, 0.0 }
 0x84b   : > { %v6921_v5 = vmax.f32 %v6909_v34, 0.0  ;;  %v6918_v56 = vmax.f32 %v6906_v16, 0.0  ;;  %v6919_v53 = vmax.f32 %v6907_v15, 0.0  ;;  %v6922_v57 = vmax.f32 %v6910_v47, 0.0 }
 0x84c   : > { %v17749_v1 = vmul.f32 %v6916_v59, %v20434_v55  ;;  %v17752_v40 = vmul.f32 %v6917_v37, %v20435_v35  ;;  %v17755_v62 = vmul.f32 %v6915_v45, %v20433_v44  ;;  %v17758_v25 = vmul.f32 %v6920_v32, %v20438_v7 }
 0x84d   : > { %v17761_v58 = vmul.f32 %v6921_v5, %v20439_v2  ;;  %v17771_v18 = vmul.f32 %v6918_v56, %v20436_v28  ;;  %v17774_v45 = vmul.f32 %v6919_v53, %v20437_v63  ;;  %v17794_v39 = vmul.f32 %v6922_v57, %v20440_v49 }
 0x84e   : > { %20461 = vst [vmem:[#allocation86_spill] sm:$0xff] %v17758_v25  ;;  %v17766_v3 = vpack.i.bf16 %v17752_v40, %v17749_v1  ;;  %v13044_v59 = vpack.i.bf16 %v17755_v62, %v20094_v8  ;;  %v13064_v53 = vpack.i.bf16 %v17749_v1, %v17755_v62  ;;  %v13159_v10 = vpack.i.bf16 %v17752_v40, %v20094_v8 }
 0x84f   : > { %20462 = vst [vmem:[#allocation79_spill] sm:$0xff] %v17761_v58  ;;  %20463 = vst [vmem:[#allocation42_spill] sm:$0xff] %v17774_v45  ;;  %v17781_v5 = vpack.i.bf16 %v17761_v58, %v17758_v25  ;;  %v17785_v46 = vpack.i.bf16 %v17774_v45, %v17771_v18  ;;  %v13074_v34 = vpack.i.bf16 %v17758_v25, %v17774_v45  ;;  %v20485_v63 = vunpack.i.h.bf16 %v17499_v17 }
 0x850   : > { %13050 = vrot.lane.b32.xlu0 %v17766_v3, %s13849_s16  ;;  %13045 = vrot.lane.b32.xlu1 %v13044_v59, %s13849_s16  ;;  %v13069_v16 = vpack.i.bf16 %v17771_v18, %v17752_v40  ;;  %v17807_v15 = vpack.i.bf16 %v17794_v39, %v17761_v58  ;;  %v13209_v37 = vpack.i.bf16 %v17771_v18, %v17755_v62 }
 0x851   : > { %v6873_v32 = vmul.f32 %v17718_v19, %v17676_v41  ;;  %v6874_v56 = vmul.f32 %v17718_v19, %v17679_v61 }
 0x853   : > { %v6892_v47 = vmul.f32 %v17443_v14, %v6873_v32 }
 0x854   : > { %13060 = vrot.lane.b32.xlu0 %v17781_v5, %s13849_s16  ;;  %13055 = vrot.lane.b32.xlu1 %v17785_v46, %s13849_s16 }
 0x855   : > { %v6911_v57 = vadd.f32 %v17445_v11, %v6892_v47 }
 0x857   : > { %v6923_v61 = vmax.f32 %v6911_v57, 0.0  ;;  %v20483_v57 = vunpack.i.h.bf16 %v17451_v4 }
 0x858   : > { %13065 = vrot.lane.b32.xlu0 %v13064_v53, %s20160_s14  ;;  %7001 = vrot.lane.b32.xlu1 %v17794_v39, %s13849_s16  ;;  %s20464_s16 = smov 76  }
 0x85c   : > { %13075 = vrot.lane.b32.xlu0 %v13074_v34, %s20160_s14  ;;  %13070 = vrot.lane.b32.xlu1 %v13069_v16, %s20160_s14  ;;  %v13269_v16 = vpack.i.bf16 %v17794_v39, %v17774_v45 }
 0x860   : > { %13085 = vrot.lane.b32.xlu0 %v13044_v59, %s20345_s19  ;;  %13080 = vrot.lane.b32.xlu1 %v17807_v15, %s20160_s14  ;;  %s20467_s14 = smov 31  }
 0x864   : > { %13095 = vrot.lane.b32.xlu0 %v17785_v46, %s20345_s19  ;;  %13090 = vrot.lane.b32.xlu1 %v17766_v3, %s20345_s19 }
 0x868   : > { %7178 = vrot.lane.b32.xlu0 %v17794_v39, %s20345_s19  ;;  %13100 = vrot.lane.b32.xlu1 %v17781_v5, %s20345_s19  ;;  %s19697_s19 = smov 3  }
 0x86c   : > { %13110 = vrot.lane.b32.xlu0 %v13044_v59, %s20464_s16  ;;  %13105 = vrot.lane.b32.xlu1 %v13044_v59, %s20465_s11 }
 0x870   : > { %13120 = vrot.lane.b32.xlu0 %v13044_v59, %s20466_s17  ;;  %13115 = vrot.lane.b32.xlu1 %v13044_v59, %s19870_s12 }
 0x874   : > { %13140 = vrot.lane.b32.xlu0 %v13044_v59, %s20467_s14  ;;  %13125 = vrot.lane.b32.xlu1 %v13044_v59, %s20422_s28  ;;  %v6893_v59 = vmul.f32 %v17443_v14, %v6874_v56 }
 0x876   : > { %v6912_v41 = vadd.f32 %v17445_v11, %v6893_v59  ;;  %v12933_v59 = vunpack.i.h.bf16 %v17447_v31 }
 0x878   : > { %13150 = vrot.lane.b32.xlu0 %v13064_v53, %s19693_s10  ;;  %13130 = vrot.lane.b32.xlu1 %v13064_v53, %s20468_s18 }
 0x87c   : > { %13160 = vrot.lane.b32.xlu0 %v13159_v10, %s19693_s10  ;;  %13135 = vrot.lane.b32.xlu1 %v13159_v10, %s20468_s18 }
 0x880   : > { %13170 = vrot.lane.b32.xlu0 %v17785_v46, %s19693_s10  ;;  %13145 = vrot.lane.b32.xlu1 %v17785_v46, %s20468_s18  ;;  %s20470_s10 = smov 125  }
 0x884   : > { %13180 = vrot.lane.b32.xlu0 %v13064_v53, %s19697_s19  ;;  %13155 = vrot.lane.b32.xlu1 %v13064_v53, %s19695_s13  ;;  %v6924_v53 = vmax.f32 %v6912_v41, 0.0  ;;  %v12942_v41 = vunpack.i.l.bf16 %v17499_v17 }
 0x886   : > { %v17877_v32 = vmul.f32 %v6924_v53, %v20442_v50  ;;  %v7094_v2 = vsel %vm20484_vm12, %v20483_v57, %v12942_v41  ;;  %v7095_v28 = vsel %vm20421_vm4, %v12942_v41, %v20485_v63  ;;  %vm20509_vm12 = vcmask 367616  }
 0x887   : > { %vm20511_vm4 = vmmov %vm20509_vm12 }
 0x888   : > { %13190 = vrot.lane.b32.xlu0 %v17785_v46, %s19697_s19  ;;  %13165 = vrot.lane.b32.xlu1 %v13159_v10, %s19695_s13  ;;  %20474 = vst [vmem:[#allocation88_spill] sm:$0xff] %v17877_v32 }
 0x88c   : > { %13200 = vrot.lane.b32.xlu0 %v17766_v3, %s20469_s0  ;;  %13175 = vrot.lane.b32.xlu1 %v17785_v46, %s19695_s13  ;;  %s20471_s13 = smov 86  }
 0x890   : > { %13210 = vrot.lane.b32.xlu0 %v13209_v37, %s20469_s0  ;;  %13185 = vrot.lane.b32.xlu1 %v13159_v10, %s19697_s19  ;;  %s20472_s19 = smov 94   ;;  %v17874_v10 = vmul.f32 %v6923_v61, %v20441_v33  ;;  %v20482_v33 = vunpack.i.l.bf16 %v17447_v31 }
 0x892   : > { %20473 = vst [vmem:[#allocation30_spill] sm:$0xff] %v17874_v10  ;;  %v17883_v56 = vpack.i.bf16 %v17877_v32, %v17874_v10  ;;  %v7006_v49 = vsel %vm7003_vm0, %v20482_v33, %v12933_v59 }
 0x893   : > { %v11029_v31 = vpack.c.bf16 %v7094_v2, %v7006_v49 }
 0x894   : > { %13220 = vrot.lane.b32.xlu0 %v13074_v34, %s20469_s0  ;;  %13195 = vrot.lane.b32.xlu1 %v17766_v3, %s20470_s10 }
 0x898   : > { %13230 = vrot.lane.b32.xlu0 %v17766_v3, %s20425_s7  ;;  %13205 = vrot.lane.b32.xlu1 %v13209_v37, %s20470_s10 }
 0x89c   : > { %13240 = vrot.lane.b32.xlu0 %v13209_v37, %s20425_s7  ;;  %13215 = vrot.lane.b32.xlu1 %v13074_v34, %s20470_s10 }
 0x8a0   : > { %13250 = vrot.lane.b32.xlu0 %v13074_v34, %s20425_s7  ;;  %13225 = vrot.lane.b32.xlu1 %v17766_v3, %s20471_s13 }
 0x8a4   : > { %13260 = vrot.lane.b32.xlu0 %v17781_v5, %s20472_s19  ;;  %13235 = vrot.lane.b32.xlu1 %v13209_v37, %s20471_s13  ;;  %v17892_v37 = vpop.permute.xlu1 %13020 }
 0x8a5   : > { %20476 = vst [vmem:[#allocation48_spill] sm:$0xff] %v17892_v37 }
 0x8a8   : > { %13270 = vrot.lane.b32.xlu0 %v13269_v16, %s20472_s19  ;;  %13245 = vrot.lane.b32.xlu1 %v13074_v34, %s20471_s13  ;;  %v17897_v34 = vpop.permute.xlu1 %13030 }
 0x8a9   : > { %20477 = vst [vmem:[#allocation52_spill] sm:$0xff] %v17897_v34 }
 0x8ac   : > { %13280 = vrot.lane.b32.xlu0 %v17883_v56, %s20472_s19  ;;  %13255 = vrot.lane.b32.xlu1 %v17781_v5, %s20475_s1  ;;  %v17906_v47 = vpop.permute.xlu1 %13040 }
 0x8ad   : > { %20480 = vst [vmem:[#allocation37_spill] sm:$0xff] %v17906_v47 }
 0x8b0   : > { %13290 = vrot.lane.b32.xlu0 %v17781_v5, %s20423_s29  ;;  %13265 = vrot.lane.b32.xlu1 %v13269_v16, %s20475_s1 }
 0x8b4   : > { %13300 = vrot.lane.b32.xlu0 %v13269_v16, %s20423_s29  ;;  %13275 = vrot.lane.b32.xlu1 %v17883_v56, %s20475_s1 }
 0x8b8   : > { %13310 = vrot.lane.b32.xlu0 %v17883_v56, %s20423_s29  ;;  %13285 = vrot.lane.b32.xlu1 %v17781_v5, %s20478_s30 }
 0x8bc   : > { %13320 = vrot.lane.b32.xlu0 %v17781_v5, %s20479_s23  ;;  %13295 = vrot.lane.b32.xlu1 %v13269_v16, %s20478_s30 }
 0x8c0   : > { %13330 = vrot.lane.b32.xlu0 %v13269_v16, %s20479_s23  ;;  %13305 = vrot.lane.b32.xlu1 %v17883_v56, %s20478_s30 }
 0x8c2   : > { %v17914_v61 = vpop.permute.xlu0 %13050  ;;  %v17916_v53 = vpop.permute.xlu1 %13045 }
 0x8c3   : > { %v19711_v50 = vunpack.i.l.bf16 %v17916_v53 }
 0x8c4   : > { %13340 = vrot.lane.b32.xlu0 %v17883_v56, %s20479_s23  ;;  %13315 = vrot.lane.b32.xlu1 %v17781_v5, %s20481_s22 }
 0x8c5   : > { %v7007_v7 = vsel %vm7003_vm0, %v12933_v59, %v19711_v50 }
 0x8c6   : > { %v17935_v35 = vpop.permute.xlu0 %13060  ;;  %v17937_v55 = vpop.permute.xlu1 %13055  ;;  %v11027_v44 = vpack.c.bf16 %v7095_v28, %v7007_v7 }
 0x8c7   : > { %20486 = vst [vmem:[#allocation22_spill] sm:$0xff] %v17935_v35  ;;  %v19716_v63 = vunpack.i.h.bf16 %v17937_v55  ;;  %v19717_v28 = vunpack.i.l.bf16 %v17937_v55 }
 0x8c8   : > { %13350 = vrot.lane.b32.xlu0 %v17781_v5, %s20424_s26  ;;  %13325 = vrot.lane.b32.xlu1 %v13269_v16, %s20481_s22 }
 0x8c9   : > { %11028 = vmatprep.subr.bf16.mxu1 %v11027_v44  ;;  %v17966_v49 = vsel %vm7003_vm0, %v19717_v28, %v19716_v63  ;;  %v10338_v63 = vld [vmem:[%s19330_s2 + $0x28] sm:$0xff] }
 0x8ca   : > { %11030 = vmatpush1.bf16.msra.mxu1 %v11029_v31  ;;  %v17942_v4 = vpop.permute.xlu0 %13065  ;;  %v17944_v33 = vpop.permute.xlu1 %7001  ;;  %20489 = vst [vmem:[#allocation19_spill] sm:$0xff] %v17966_v49  ;;  %10340 = vmatprep.mubr.msk.f32.mxu0 %vm2984_vm8, %v10338_v63 }
 0x8cb   : > { %20487 = vst [vmem:[#allocation31_spill] sm:$0xff] %v17944_v33  ;;  %10341 = vmatprep.mubr.msk.f32.mxu1 %vm2984_vm8, %v10338_v63 }
 0x8cc   : > { %13360 = vrot.lane.b32.xlu0 %v13269_v16, %s20424_s26  ;;  %13335 = vrot.lane.b32.xlu1 %v17883_v56, %s20481_s22 }
 0x8ce   : > { %v17951_v7 = vpop.permute.xlu0 %13075  ;;  %v17953_v59 = vpop.permute.xlu1 %13070 }
 0x8cf   : > { %20488 = vst [vmem:[#allocation21_spill] sm:$0xff] %v17951_v7  ;;  %v19718_v44 = vunpack.i.l.bf16 %v17951_v7  ;;  %v19719_v2 = vunpack.i.h.bf16 %v17953_v59 }
 0x8d0   : > { %13370 = vrot.lane.b32.xlu0 %v17883_v56, %s20424_s26  ;;  %13345 = vrot.lane.b32.xlu1 %v17781_v5, %s20426_s15 }
 0x8d1   : > { %v17973_v57 = vsel %vm20490_vm5, %v19719_v2, %v19718_v44  ;;  %vm19803_vm5 = vcmask 343040  }
 0x8d2   : > { %20491 = vst [vmem:[#allocation27_spill] sm:$0xff] %v17973_v57  ;;  %v17975_v41 = vpop.permute.xlu0 %13085  ;;  %v17977_v31 = vpop.permute.xlu1 %13080  ;;  %v20497_v57 = vunpack.i.h.bf16 %v17505_v43 }
 0x8d3   : > { %20492 = vst [vmem:[#allocation58_spill] sm:$0xff] %v17977_v31  ;;  %v19733_v2 = vunpack.i.h.bf16 %v17975_v41  ;;  %v13087_v63 = vunpack.i.l.bf16 %v17975_v41 }
 0x8d4   : > { %9220 = vrot.lane.b32.xlu0 %v17761_v58, %s20493_s27  ;;  %13355 = vrot.lane.b32.xlu1 %v13269_v16, %s20426_s15 }
 0x8d5   : > { %v18022_v33 = vsel %vm20496_vm9, %v13087_v63, %v19733_v2  ;;  %v7183_v31 = vsel %vm20498_vm7, %v20497_v57, %v13087_v63  ;;  %v20502_v63 = vunpack.i.h.bf16 %v17547_v9  ;;  %v20504_v2 = vpack.c.bf16 %v17577_v51, %v17570_v13  ;;  %vm20514_vm9 = vmmov %vm20511_vm4 }
 0x8d6   : > { %v17987_v28 = vpop.permute.xlu0 %13095  ;;  %v17989_v44 = vpop.permute.xlu1 %13090  ;;  %v13008_v9 = vunpack.i.h.bf16 %v17694_v29  ;;  %vm20515_vm7 = vmmov %vm20511_vm4 }
 0x8d8   : > { %13375 = vrot.lane.b32.xlu0 %v17766_v3, %s20465_s11  ;;  %13365 = vrot.lane.b32.xlu1 %v17883_v56, %s20426_s15 }
 0x8da   : > { %v17997_v50 = vpop.permute.xlu0 %7178  ;;  %v17999_v16 = vpop.permute.xlu1 %13100 }
 0x8db   : > { %20494 = vst [vmem:[#allocation41_spill] sm:$0xff] %v17997_v50  ;;  %20495 = vst [vmem:[#allocation43_spill] sm:$0xff] %v17999_v16 }
 0x8dc   : > { %9224 = vrot.lane.b32.xlu0 %v17874_v10, %s20493_s27  ;;  %9218 = vrot.lane.b32.xlu1 %v17758_v25, %s20493_s27 }
 0x8de   : > { %v18007_v47 = vpop.permute.xlu0 %13110  ;;  %v18009_v34 = vpop.permute.xlu1 %13105 }
 0x8df   : > { %v19735_v37 = vunpack.i.h.bf16 %v18009_v34  ;;  %v13107_v49 = vunpack.i.l.bf16 %v18009_v34  ;;  %v13112_v50 = vunpack.i.l.bf16 %v18007_v47  ;;  %v20500_v43 = vunpack.i.h.bf16 %v18007_v47 }
 0x8e0   : > { %13385 = vrot.lane.b32.xlu0 %v17766_v3, %s20464_s16  ;;  %9216 = vrot.lane.b32.xlu1 %v17774_v45, %s20493_s27 }
 0x8e1   : > { %v18027_v16 = vsel %vm7268_vm3, %v13107_v49, %v19735_v37  ;;  %v7272_v35 = vsel %vm7268_vm3, %v20499_v38, %v13107_v49  ;;  %v18046_v57 = vsel %vm7357_vm1, %v13112_v50, %v20500_v43  ;;  %v20508_v38 = vpack.c.bf16 %v17591_v0, %v17586_v36 }
 0x8e2   : > { %v18035_v22 = vpop.permute.xlu0 %13120  ;;  %v18037_v7 = vpop.permute.xlu1 %13115  ;;  %v11031_v6 = vpack.c.bf16 %v7272_v35, %v7183_v31  ;;  %v7361_v35 = vsel %vm7357_vm1, %v20501_v54, %v13112_v50  ;;  %v20510_v0 = vpack.c.bf16 %v17611_v20, %v17606_v30 }
 0x8e3   : > { %v19736_v52 = vunpack.i.h.bf16 %v18037_v7  ;;  %v13117_v37 = vunpack.i.l.bf16 %v18037_v7  ;;  %v13122_v49 = vunpack.i.l.bf16 %v18035_v22  ;;  %v20505_v13 = vunpack.i.h.bf16 %v18035_v22 }
 0x8e4   : > { %13395 = vrot.lane.b32.xlu0 %v17785_v46, %s20464_s16  ;;  %9222 = vrot.lane.b32.xlu1 %v17794_v39, %s20493_s27 }
 0x8e5   : > { %v18060_v31 = vsel %vm20430_vm11, %v13117_v37, %v19736_v52  ;;  %11032 = vmatprep.subr.bf16.mxu1 %v11031_v6  ;;  %v7449_v43 = vsel %vm20503_vm2, %v20502_v63, %v13117_v37  ;;  %v13007_v37 = vunpack.i.l.bf16 %v17694_v29  ;;  %v18085_v51 = vsel %vm7534_vm15, %v13122_v49, %v20505_v13  ;;  %vm20517_vm11 = vmmov %vm20511_vm4 }
 0x8e6   : > { %11034 = vmatpush1.bf16.msra.mxu1 %v20504_v2  ;;  %v18068_v48 = vpop.permute.xlu0 %13140  ;;  %v18070_v50 = vpop.permute.xlu1 %13125  ;;  %v11035_v54 = vpack.c.bf16 %v7449_v43, %v7361_v35  ;;  %v20506_v29 = vunpack.i.h.bf16 %v17555_v42  ;;  %v20507_v63 = vunpack.i.h.bf16 %v17558_v60  ;;  %v13012_v42 = vunpack.i.l.bf16 %v17696_v21 }
 0x8e7   : > { %v19739_v52 = vunpack.i.h.bf16 %v18070_v50  ;;  %v13127_v6 = vunpack.i.l.bf16 %v18070_v50  ;;  %v7713_v60 = vsel %vm7711_vm13, %v13007_v37, %v13008_v9  ;;  %vm19798_vm2 = vcmask 318464  }
 0x8e8   : > { %13405 = vrot.lane.b32.xlu0 %v17766_v3, %s20466_s17  ;;  %13380 = vrot.lane.b32.xlu1 %v17785_v46, %s20465_s11  ;;  %v7538_v35 = vsel %vm7534_vm15, %v20506_v29, %v13122_v49  ;;  %v19742_v29 = vunpack.i.h.bf16 %v18068_v48 }
 0x8e9   : > { %v18090_v2 = vsel %vm3892_vm10, %v13127_v6, %v19739_v52  ;;  %11036 = vmatprep.subr.bf16.mxu1 %v11035_v54  ;;  %v7626_v43 = vsel %vm3892_vm10, %v20507_v63, %v13127_v6 }
 0x8ea   : > { %11038 = vmatpush1.bf16.msra.mxu1 %v20508_v38  ;;  %v18101_v13 = vpop.permute.xlu0 %13150  ;;  %v13131_v26 = vpop.permute.xlu1 %13130  ;;  %v11039_v58 = vpack.c.bf16 %v7626_v43, %v7538_v35  ;;  %v13142_v35 = vunpack.i.l.bf16 %v18068_v48 }
 0x8eb   : > { %v13133_v54 = vunpack.i.h.bf16 %v13131_v26  ;;  %v13132_v45 = vunpack.i.l.bf16 %v13131_v26 }
 0x8ec   : > { %13415 = vrot.lane.b32.xlu0 %v17785_v46, %s20466_s17  ;;  %13390 = vrot.lane.b32.xlu1 %v17766_v3, %s19870_s12  ;;  %v18135_v25 = vsel %vm7711_vm13, %v13142_v35, %v19742_v29 }
 0x8ed   : > { %11040 = vmatprep.subr.bf16.mxu1 %v11039_v58  ;;  %v7801_v36 = vsel %vm20509_vm12, %v13132_v45, %v13133_v54  ;;  %v7712_v58 = vsel %vm7711_vm13, %v13012_v42, %v13007_v37  ;;  %20513 = vst [vmem:[#allocation36_spill] sm:$0xff] %v18135_v25  ;;  %vm19797_vm12 = vcmask 23552  }
 0x8ee   : > { %11042 = vmatpush1.bf16.msra.mxu1 %v20510_v0  ;;  %v18115_v38 = vpop.permute.xlu0 %13160  ;;  %v13136_v26 = vpop.permute.xlu1 %13135  ;;  %v10991_v49 = vpack.c.bf16 %v7801_v36, %v7713_v60  ;;  %v13013_v36 = vunpack.i.h.bf16 %v17696_v21 }
 0x8ef   : > { %v13137_v6 = vunpack.i.l.bf16 %v13136_v26  ;;  %v13138_v63 = vunpack.i.h.bf16 %v13136_v26  ;;  %v13163_v25 = vunpack.i.h.bf16 %v18115_v38 }
 0x8f0   : > { %13425 = vrot.lane.b32.xlu0 %v17766_v3, %s20467_s14  ;;  %13400 = vrot.lane.b32.xlu1 %v17785_v46, %s19870_s12  ;;  %v7715_v26 = vsel %vm7711_vm13, %v13013_v36, %v13142_v35 }
 0x8f1   : > { %v7800_v30 = vsel %vm20511_vm4, %v13137_v6, %v13132_v45  ;;  %10992 = vmatprep.subr.bf16.mxu0 %v10991_v49  ;;  %v13152_v45 = vunpack.i.l.bf16 %v18101_v13  ;;  %v7802_v21 = vsel %vm20514_vm9, %v13133_v54, %v13138_v63  ;;  %v7714_v54 = vsel %vm7711_vm13, %v13008_v9, %v13013_v36 }
 0x8f2   : > { %v18125_v20 = vpop.permute.xlu0 %13170  ;;  %v18127_v43 = vpop.permute.xlu1 %13145  ;;  %v10993_v60 = vpack.c.bf16 %v7800_v30, %v7712_v58  ;;  %v11045_v35 = vpack.c.bf16 %v7802_v21, %v7714_v54  ;;  %vm19750_vm4 = vcmask 728064   ;;  %vm19767_vm9 = vcmask 1022976  }
 0x8f3   : > { %20512 = vst [vmem:[#allocation24_spill] sm:$0xff] %v18127_v43  ;;  %v19743_v0 = vunpack.i.h.bf16 %v18127_v43  ;;  %v13147_v52 = vunpack.i.l.bf16 %v18127_v43 }
 0x8f4   : > { %13435 = vrot.lane.b32.xlu0 %v17785_v46, %s20467_s14  ;;  %13410 = vrot.lane.b32.xlu1 %v17766_v3, %s20422_s28 }
 0x8f5   : > { %v18147_v42 = vsel %vm20515_vm7, %v13147_v52, %v19743_v0  ;;  %10994 = vmatpush1.bf16.msra.mxu0 %v10993_v60  ;;  %v7803_v49 = vsel %vm20517_vm11, %v13138_v63, %v13147_v52  ;;  %v20519_v52 = vunpack.i.h.bf16 %v18101_v13  ;;  %v13162_v60 = vunpack.i.l.bf16 %v18115_v38 }
 0x8f6   : > { %20516 = vst [vmem:[#allocation46_spill] sm:$0xff] %v18147_v42  ;;  %v18151_v6 = vpop.permute.xlu0 %13180  ;;  %v13156_v58 = vpop.permute.xlu1 %13155  ;;  %v11043_v30 = vpack.c.bf16 %v7803_v49, %v7715_v26  ;;  %vm19762_vm7 = vcmask 703488   ;;  %vm20526_vm11 = vcmask 678912  }
 0x8f7   : > { %v13158_v29 = vunpack.i.h.bf16 %v13156_v58  ;;  %v13157_v37 = vunpack.i.l.bf16 %v13156_v58  ;;  %v7890_v63 = vsel %vm19803_vm5, %v13152_v45, %v20519_v52  ;;  %v13183_v26 = vunpack.i.h.bf16 %v18151_v6 }
 0x8f8   : > { %13445 = vrot.lane.b32.xlu0 %v17781_v5, %s20518_s24  ;;  %13420 = vrot.lane.b32.xlu1 %v17785_v46, %s20422_s28  ;;  %v13182_v49 = vunpack.i.l.bf16 %v18151_v6  ;;  %v18171_v46 = vpack.i.bf16 %v17874_v10, %v17794_v39  ;;  %v6875_v52 = vmul.f32 %v17718_v19, %v17682_v24  ;;  %v13172_v6 = vunpack.i.l.bf16 %v18125_v20 }
 0x8f9   : > { %11044 = vmatprep.subr.bf16.mxu1 %v11043_v30  ;;  %v7979_v9 = vsel %vm19798_vm2, %v13157_v37, %v13158_v29  ;;  %v6876_v30 = vmul.f32 %v17718_v19, %v17686_v12  ;;  %v20520_v19 = vunpack.i.h.bf16 %v18125_v20 }
 0x8fa   : > { %11046 = vmatpush1.bf16.msra.mxu1 %v11045_v35  ;;  %v18167_v36 = vpop.permute.xlu0 %13190  ;;  %v13166_v58 = vpop.permute.xlu1 %13165  ;;  %v10995_v21 = vpack.c.bf16 %v7979_v9, %v7890_v63  ;;  %v7889_v35 = vsel %vm19803_vm5, %v13162_v60, %v13152_v45  ;;  %v8068_v24 = vsel %vm19797_vm12, %v13182_v49, %v13183_v26  ;;  %v6894_v12 = vmul.f32 %v17443_v14, %v6875_v52 }
 0x8fb   : > { %v13167_v54 = vunpack.i.l.bf16 %v13166_v58  ;;  %v13168_v63 = vunpack.i.h.bf16 %v13166_v58  ;;  %v10999_v45 = vpack.c.bf16 %v17749_v1, %v8068_v24  ;;  %v6895_v38 = vmul.f32 %v17443_v14, %v6876_v30 }
 0x8fc   : > { %13455 = vrot.lane.b32.xlu0 %v18171_v46, %s20518_s24  ;;  %13430 = vrot.lane.b32.xlu1 %v17781_v5, %s20468_s18  ;;  %v20522_v1 = vunpack.i.h.bf16 %v18101_v13 }
 0x8fd   : > { %v7978_v9 = vsel %vm19798_vm2, %v13167_v54, %v13157_v37  ;;  %10996 = vmatprep.subr.bf16.mxu0 %v10995_v21  ;;  %v18197_v37 = vsel %vm19803_vm5, %v13172_v6, %v20520_v19  ;;  %v7980_v60 = vsel %vm19798_vm2, %v13158_v29, %v13168_v63  ;;  %v7892_v21 = vsel %vm19803_vm5, %v13163_v25, %v13172_v6 }
 0x8fe   : > { %v18186_v0 = vpop.permute.xlu0 %13200  ;;  %v18188_v3 = vpop.permute.xlu1 %13175  ;;  %v10997_v10 = vpack.c.bf16 %v7978_v9, %v7889_v35  ;;  %v7891_v29 = vsel %vm19803_vm5, %v20522_v1, %v13163_v25  ;;  %v6913_v6 = vadd.f32 %v17445_v11, %v6894_v12 }
 0x8ff   : > { %v19755_v42 = vunpack.i.h.bf16 %v18188_v3  ;;  %v13177_v43 = vunpack.i.l.bf16 %v18188_v3  ;;  %v13203_v19 = vunpack.i.h.bf16 %v18186_v0  ;;  %v13202_v13 = vunpack.i.l.bf16 %v18186_v0 }
 0x900   : > { %13465 = vrot.lane.b32.xlu0 %v17781_v5, %s20521_s9  ;;  %13440 = vrot.lane.b32.xlu1 %v18171_v46, %s20468_s18 }
 0x901   : > { %v18209_v58 = vsel %vm19798_vm2, %v13177_v43, %v19755_v42  ;;  %10998 = vmatpush1.bf16.msra.mxu0 %v10997_v10  ;;  %v7981_v54 = vsel %vm19798_vm2, %v13168_v63, %v13177_v43  ;;  %v19752_v10 = vunpack.i.l.bf16 %v18167_v36  ;;  %v11049_v43 = vpack.c.bf16 %v7980_v60, %v7891_v29 }
 0x902   : > { %11000 = vmatprep.subr.bf16.mxu0 %v10999_v45  ;;  %v18213_v52 = vpop.permute.xlu0 %13210  ;;  %v13186_v35 = vpop.permute.xlu1 %13185  ;;  %v11047_v9 = vpack.c.bf16 %v7981_v54, %v7892_v21  ;;  %v6914_v63 = vadd.f32 %v17445_v11, %v6895_v38 }
 0x903   : > { %v13188_v30 = vunpack.i.h.bf16 %v13186_v35  ;;  %v13187_v24 = vunpack.i.l.bf16 %v13186_v35 }
 0x904   : > { %13475 = vrot.lane.b32.xlu0 %v17807_v15, %s20470_s10  ;;  %13450 = vrot.lane.b32.xlu1 %v17781_v5, %s20523_s21 }
 0x905   : > { %v8069_v25 = vsel %vm19797_vm12, %v13183_v26, %v13188_v30  ;;  %v8067_v45 = vsel %vm19797_vm12, %v13187_v24, %v13182_v49  ;;  %11048 = vmatprep.subr.bf16.mxu1 %v11047_v9  ;;  %v8070_v11 = vsel %vm19797_vm12, %v13188_v30, %v19752_v10  ;;  %v13212_v49 = vunpack.i.l.bf16 %v18213_v52 }
 0x906   : > { %11050 = vmatpush1.bf16.msra.mxu1 %v11049_v43  ;;  %v18231_v21 = vpop.permute.xlu0 %13220  ;;  %v13196_v54 = vpop.permute.xlu1 %13195  ;;  %v11001_v60 = vpack.c.bf16 %v17755_v62, %v8067_v45  ;;  %v11053_v35 = vpack.c.bf16 %v17752_v40, %v8069_v25  ;;  %v11051_v26 = vpack.c.bf16 %v17771_v18, %v8070_v11  ;;  %v8270_v9 = vsel %vm19750_vm4, %v13202_v13, %v13203_v19 }
 0x907   : > { %v13198_v12 = vunpack.i.h.bf16 %v13196_v54  ;;  %v13197_v38 = vunpack.i.l.bf16 %v13196_v54  ;;  %v6925_v30 = vmax.f32 %v6913_v6, 0.0  ;;  %v6926_v24 = vmax.f32 %v6914_v63, 0.0 }
 0x908   : > { %13485 = vrot.lane.b32.xlu0 %v17883_v56, %s20470_s10  ;;  %13460 = vrot.lane.b32.xlu1 %v18171_v46, %s20523_s21  ;;  %v19749_v18 = vunpack.i.h.bf16 %v18231_v21  ;;  %v13222_v25 = vunpack.i.l.bf16 %v18231_v21  ;;  %v8269_v45 = vsel %vm19750_vm4, %v13212_v49, %v13202_v13  ;;  %v13213_v6 = vunpack.i.h.bf16 %v18213_v52 }
 0x909   : > { %11002 = vmatpush1.bf16.msra.mxu0 %v11001_v60  ;;  %v8181_v62 = vsel %vm19767_vm9, %v13197_v38, %v13198_v12  ;;  %11052 = vmatprep.subr.bf16.mxu1 %v11051_v26  ;;  %v18264_v26 = vmul.f32 %v6925_v30, %v20443_v27 }
 0x90a   : > { %v18248_v1 = vpop.permute.xlu0 %13230  ;;  %v13206_v40 = vpop.permute.xlu1 %13205  ;;  %v11003_v29 = vpack.c.bf16 %v8270_v9, %v8181_v62  ;;  %11054 = vmatpush1.bf16.msra.mxu1 %v11053_v35  ;;  %v18267_v62 = vmul.f32 %v6926_v24, %v20444_v23  ;;  %v8272_v49 = vsel %vm19750_vm4, %v13213_v6, %v13222_v25 }
 0x90b   : > { %v13207_v43 = vunpack.i.l.bf16 %v13206_v40  ;;  %v13208_v54 = vunpack.i.h.bf16 %v13206_v40  ;;  %20524 = vst [vmem:[#allocation45_spill] sm:$0xff] %v18264_v26  ;;  %v13233_v52 = vunpack.i.h.bf16 %v18248_v1  ;;  %v13232_v9 = vunpack.i.l.bf16 %v18248_v1 }
 0x90c   : > { %13495 = vrot.lane.b32.xlu0 %v17807_v15, %s20471_s13  ;;  %13470 = vrot.lane.b32.xlu1 %v18171_v46, %s20521_s9  ;;  %20525 = vst [vmem:[#allocation61_spill] sm:$0xff] %v18267_v62  ;;  %v8271_v1 = vsel %vm19750_vm4, %v13203_v19, %v13213_v6 }
 0x90d   : > { %v8180_v60 = vsel %vm19767_vm9, %v13207_v43, %v13197_v38  ;;  %11004 = vmatprep.subr.bf16.mxu0 %v11003_v29  ;;  %v18274_v38 = vsel %vm19750_vm4, %v13222_v25, %v19749_v18  ;;  %v8182_v40 = vsel %vm19767_vm9, %v13198_v12, %v13208_v54  ;;  %vm20527_vm4 = vmmov %vm20526_vm11 }
 0x90e   : > { %v18259_v63 = vpop.permute.xlu0 %13240  ;;  %v18261_v11 = vpop.permute.xlu1 %13215  ;;  %v11005_v35 = vpack.c.bf16 %v8269_v45, %v8180_v60  ;;  %v18294_v45 = vpack.i.bf16 %v18267_v62, %v18264_v26 }
 0x90f   : > { %v19751_v46 = vunpack.i.h.bf16 %v18261_v11  ;;  %v13217_v13 = vunpack.i.l.bf16 %v18261_v11 }
 0x910   : > { %13505 = vrot.lane.b32.xlu0 %v17883_v56, %s20471_s13  ;;  %13480 = vrot.lane.b32.xlu1 %v17807_v15, %s20469_s0 }
 0x911   : > { %v18287_v29 = vsel %vm19767_vm9, %v13217_v13, %v19751_v46  ;;  %11006 = vmatpush1.bf16.msra.mxu0 %v11005_v35  ;;  %v8183_v30 = vsel %vm19767_vm9, %v13208_v54, %v13217_v13  ;;  %v11057_v54 = vpack.c.bf16 %v8271_v1, %v8182_v40  ;;  %v13242_v13 = vunpack.i.l.bf16 %v18259_v63 }
 0x912   : > { %v18290_v24 = vpop.permute.xlu0 %13250  ;;  %v13226_v43 = vpop.permute.xlu1 %13225  ;;  %v11055_v25 = vpack.c.bf16 %v8272_v49, %v8183_v30  ;;  %v8447_v30 = vsel %vm20526_vm11, %v13232_v9, %v13233_v52  ;;  %vm20528_vm11 = vmmov %vm20527_vm4  ;;  %vm19781_vm9 = vcmask 424960  }
 0x913   : > { %v13228_v60 = vunpack.i.h.bf16 %v13226_v43  ;;  %v13227_v35 = vunpack.i.l.bf16 %v13226_v43  ;;  %v19753_v12 = vunpack.i.h.bf16 %v18290_v24  ;;  %v13252_v18 = vunpack.i.l.bf16 %v18290_v24 }
 0x914   : > { %13515 = vrot.lane.b32.xlu0 %v18294_v45, %s20475_s1  ;;  %13490 = vrot.lane.b32.xlu1 %v17883_v56, %s20469_s0  ;;  %v8446_v40 = vsel %vm20527_vm4, %v13242_v13, %v13232_v9 }
 0x915   : > { %11056 = vmatprep.subr.bf16.mxu1 %v11055_v25  ;;  %v8359_v49 = vsel %vm19762_vm7, %v13227_v35, %v13228_v60 }
 0x916   : > { %11058 = vmatpush1.bf16.msra.mxu1 %v11057_v54  ;;  %v18308_v0 = vpop.permute.xlu0 %13260  ;;  %v13236_v19 = vpop.permute.xlu1 %13235  ;;  %v11007_v6 = vpack.c.bf16 %v8447_v30, %v8359_v49  ;;  %v13243_v54 = vunpack.i.h.bf16 %v18259_v63 }
 0x917   : > { %v13237_v43 = vunpack.i.l.bf16 %v13236_v19  ;;  %v13238_v25 = vunpack.i.h.bf16 %v13236_v19  ;;  %v13263_v9 = vunpack.i.h.bf16 %v18308_v0 }
 0x918   : > { %13525 = vrot.lane.b32.xlu0 %v18294_v45, %s20478_s30  ;;  %13500 = vrot.lane.b32.xlu1 %v17807_v15, %s20425_s7  ;;  %v18326_v15 = vsel %vm20528_vm11, %v13252_v18, %v19753_v12  ;;  %v8449_v63 = vsel %vm20527_vm4, %v13243_v54, %v13252_v18  ;;  %vm20530_vm11 = vmmov %vm20527_vm4  ;;  %vm19761_vm4 = vcmask 793600  }
 0x919   : > { %v8358_v1 = vsel %vm19762_vm7, %v13237_v43, %v13227_v35  ;;  %11008 = vmatprep.subr.bf16.mxu0 %v11007_v6  ;;  %v13262_v35 = vunpack.i.l.bf16 %v18308_v0  ;;  %v8360_v13 = vsel %vm19762_vm7, %v13228_v60, %v13238_v25  ;;  %v8448_v18 = vsel %vm20530_vm11, %v13233_v52, %v13243_v54 }
 0x91a   : > { %v13271_v49 = vpop.permute.xlu0 %13270  ;;  %v18319_v30 = vpop.permute.xlu1 %13245  ;;  %v11009_v46 = vpack.c.bf16 %v8446_v40, %v8358_v1  ;;  %vm8711_vm11 = vcmask 744448  }
 0x91b   : > { %v19754_v14 = vunpack.i.h.bf16 %v18319_v30  ;;  %v13247_v10 = vunpack.i.l.bf16 %v18319_v30 }
 0x91c   : > { %13535 = vrot.lane.b32.xlu0 %v18294_v45, %s20481_s22  ;;  %13510 = vrot.lane.b32.xlu1 %v17883_v56, %s20425_s7 }
 0x91d   : > { %v18339_v19 = vsel %vm19762_vm7, %v13247_v10, %v19754_v14  ;;  %11010 = vmatpush1.bf16.msra.mxu0 %v11009_v46  ;;  %v8361_v6 = vsel %vm19762_vm7, %v13238_v25, %v13247_v10  ;;  %v11061_v46 = vpack.c.bf16 %v8448_v18, %v8360_v13  ;;  %v13272_v10 = vunpack.i.l.bf16 %v13271_v49 }
 0x91e   : > { %v18342_v43 = vpop.permute.xlu0 %13280  ;;  %v13256_v40 = vpop.permute.xlu1 %13255  ;;  %v11059_v1 = vpack.c.bf16 %v8449_v63, %v8361_v6  ;;  %v8624_v25 = vsel %vm19760_vm6, %v13262_v35, %v13263_v9 }
 0x91f   : > { %20529 = vst [vmem:[#allocation77_spill] sm:$0xff] %v18342_v43  ;;  %v13258_v0 = vunpack.i.h.bf16 %v13256_v40  ;;  %v13257_v12 = vunpack.i.l.bf16 %v13256_v40  ;;  %v13282_v56 = vunpack.i.l.bf16 %v18342_v43  ;;  %v8623_v13 = vsel %vm19760_vm6, %v13272_v10, %v13262_v35 }
 0x920   : > { %13545 = vrot.lane.b32.xlu0 %v18294_v45, %s20426_s15  ;;  %13520 = vrot.lane.b32.xlu1 %v18294_v45, %s20472_s19  ;;  %v20532_v23 = vunpack.i.h.bf16 %v18342_v43  ;;  %s13865_s19 = smov [#allocation9]  }
 0x921   : > { %11060 = vmatprep.subr.bf16.mxu1 %v11059_v1  ;;  %v8536_v60 = vsel %vm19761_vm4, %v13257_v12, %v13258_v0 }
 0x922   : > { %11062 = vmatpush1.bf16.msra.mxu1 %v11061_v46  ;;  %v18353_v63 = vpop.permute.xlu0 %13290  ;;  %v13266_v52 = vpop.permute.xlu1 %13265  ;;  %v11011_v54 = vpack.c.bf16 %v8624_v25, %v8536_v60  ;;  %v13273_v46 = vunpack.i.h.bf16 %v13271_v49  ;;  %v18370_v27 = vsel %vm19760_vm6, %v13282_v56, %v20532_v23 }
 0x923   : > { %v13267_v6 = vunpack.i.l.bf16 %v13266_v52  ;;  %v13268_v1 = vunpack.i.h.bf16 %v13266_v52  ;;  %20533 = vst [vmem:[#allocation76_spill] sm:$0xff] %v18370_v27  ;;  %v13293_v35 = vunpack.i.h.bf16 %v18353_v63  ;;  %v13292_v49 = vunpack.i.l.bf16 %v18353_v63 }
 0x924   : > { %9226 = vrot.lane.b32.xlu0 %v17877_v32, %s20493_s27  ;;  %13530 = vrot.lane.b32.xlu1 %v18294_v45, %s20423_s29 }
 0x925   : > { %v8535_v18 = vsel %vm19761_vm4, %v13267_v6, %v13257_v12  ;;  %11012 = vmatprep.subr.bf16.mxu0 %v11011_v54  ;;  %v8626_v12 = vsel %vm19760_vm6, %v13273_v46, %v13282_v56  ;;  %v8537_v10 = vsel %vm19761_vm4, %v13258_v0, %v13268_v1  ;;  %v8625_v54 = vsel %vm19760_vm6, %v13263_v9, %v13273_v46 }
 0x926   : > { %v13301_v14 = vpop.permute.xlu0 %13300  ;;  %v18363_v60 = vpop.permute.xlu1 %13275  ;;  %v11013_v25 = vpack.c.bf16 %v8623_v13, %v8535_v18  ;;  %v11065_v9 = vpack.c.bf16 %v8625_v54, %v8537_v10  ;;  %vm20536_vm6 = vcmask 449536  }
 0x927   : > { %20531 = vst [vmem:[#allocation67_spill] sm:$0xff] %v18363_v60  ;;  %v19764_v42 = vunpack.i.h.bf16 %v18363_v60  ;;  %v13277_v40 = vunpack.i.l.bf16 %v18363_v60 }
 0x928   : > { %13555 = vrot.lane.b32.xlu0 %v17781_v5, %s20465_s11  ;;  %13540 = vrot.lane.b32.xlu1 %v18294_v45, %s20479_s23 }
 0x929   : > { %v18383_v52 = vsel %vm19761_vm4, %v13277_v40, %v19764_v42  ;;  %11014 = vmatpush1.bf16.msra.mxu0 %v11013_v25  ;;  %v8538_v23 = vsel %vm19761_vm4, %v13268_v1, %v13277_v40  ;;  %v13302_v40 = vunpack.i.l.bf16 %v13301_v14  ;;  %vm20538_vm4 = vmmov %vm20536_vm6 }
 0x92a   : > { %20534 = vst [vmem:[#allocation59_spill] sm:$0xff] %v18383_v52  ;;  %v18387_v6 = vpop.permute.xlu0 %13310  ;;  %v13286_v13 = vpop.permute.xlu1 %13285  ;;  %v11063_v18 = vpack.c.bf16 %v8626_v12, %v8538_v23  ;;  %v8801_v25 = vsel %vm20538_vm4, %v13292_v49, %v13293_v35  ;;  %vm20539_vm7 = vmmov %vm20538_vm4 }
 0x92b   : > { %20535 = vst [vmem:[#allocation62_spill] sm:$0xff] %v18387_v6  ;;  %v19763_v63 = vunpack.i.h.bf16 %v18387_v6  ;;  %v13312_v0 = vunpack.i.l.bf16 %v18387_v6  ;;  %v13288_v43 = vunpack.i.h.bf16 %v13286_v13  ;;  %v13287_v60 = vunpack.i.l.bf16 %v13286_v13 }
 0x92c   : > { %13560 = vrot.lane.b32.xlu0 %v17781_v5, %s20464_s16  ;;  %13550 = vrot.lane.b32.xlu1 %v18294_v45, %s20424_s26  ;;  %v8800_v10 = vsel %vm20539_vm7, %v13302_v40, %v13292_v49  ;;  %vm20540_vm7 = vmmov %vm20538_vm4 }
 0x92d   : > { %v18400_v1 = vsel %vm20536_vm6, %v13312_v0, %v19763_v63  ;;  %11064 = vmatprep.subr.bf16.mxu1 %v11063_v18  ;;  %v8713_v46 = vsel %vm8711_vm11, %v13287_v60, %v13288_v43  ;;  %v13303_v63 = vunpack.i.h.bf16 %v13301_v14  ;;  %vm19782_vm6 = vcmask 400384  }
 0x92e   : > { %20537 = vst [vmem:[#allocation69_spill] sm:$0xff] %v18400_v1  ;;  %11066 = vmatpush1.bf16.msra.mxu1 %v11065_v9  ;;  %v18404_v12 = vpop.permute.xlu0 %13320  ;;  %v13296_v23 = vpop.permute.xlu1 %13295  ;;  %v11015_v13 = vpack.c.bf16 %v8801_v25, %v8713_v46 }
 0x92f   : > { %v13297_v56 = vunpack.i.l.bf16 %v13296_v23  ;;  %v13298_v54 = vunpack.i.h.bf16 %v13296_v23  ;;  %v13323_v52 = vunpack.i.h.bf16 %v18404_v12  ;;  %v13322_v14 = vunpack.i.l.bf16 %v18404_v12 }
 0x930   : > { %7355 = vrot.lane.b32.xlu0 %v17794_v39, %s20464_s16  ;;  %9228 = vrot.lane.b32.xlu1 %v18264_v26, %s20493_s27  ;;  %v8802_v23 = vsel %vm20538_vm4, %v13293_v35, %v13303_v63  ;;  %s10231_s16 = scalar_lea.sflag [#allocation8], %s14000_s20 }
 0x931   : > { %v8712_v18 = vsel %vm8711_vm11, %v13297_v56, %v13287_v60  ;;  %11016 = vmatprep.subr.bf16.mxu0 %v11015_v13  ;;  %v8803_v60 = vsel %vm20540_vm7, %v13303_v63, %v13312_v0  ;;  %v8714_v49 = vsel %vm8711_vm11, %v13288_v43, %v13298_v54  ;;  %vm20546_vm7 = vcmask 105472  }
 0x932   : > { %v13331_v42 = vpop.permute.xlu0 %13330  ;;  %v18412_v9 = vpop.permute.xlu1 %13305  ;;  %v11017_v6 = vpack.c.bf16 %v8800_v10, %v8712_v18  ;;  %v11069_v35 = vpack.c.bf16 %v8802_v23, %v8714_v49  ;;  %vm20547_vm4 = vmmov %vm20546_vm7 }
 0x933   : > { %v19769_v46 = vunpack.i.h.bf16 %v18412_v9  ;;  %v13307_v25 = vunpack.i.l.bf16 %v18412_v9 }
 0x934   : > { %13570 = vrot.lane.b32.xlu0 %v17781_v5, %s20466_s17  ;;  %9230 = vrot.lane.b32.xlu1 %v18267_v62, %s20493_s27 }
 0x935   : > { %v18427_v56 = vsel %vm8711_vm11, %v13307_v25, %v19769_v46  ;;  %11018 = vmatpush1.bf16.msra.mxu0 %v11017_v6  ;;  %v8715_v40 = vsel %vm8711_vm11, %v13298_v54, %v13307_v25  ;;  %v13332_v6 = vunpack.i.l.bf16 %v13331_v42  ;;  %v8979_v25 = vsel %vm19782_vm6, %v13322_v14, %v13323_v52 }
 0x936   : > { %20541 = vst [vmem:[#allocation68_spill] sm:$0xff] %v18427_v56  ;;  %v18431_v13 = vpop.permute.xlu0 %13340  ;;  %v13316_v10 = vpop.permute.xlu1 %13315  ;;  %v11067_v18 = vpack.c.bf16 %v8803_v60, %v8715_v40 }
 0x937   : > { %20542 = vst [vmem:[#allocation65_spill] sm:$0xff] %v18431_v13  ;;  %v19770_v43 = vunpack.i.h.bf16 %v18431_v13  ;;  %v13342_v12 = vunpack.i.l.bf16 %v18431_v13  ;;  %v13318_v27 = vunpack.i.h.bf16 %v13316_v10  ;;  %v13317_v46 = vunpack.i.l.bf16 %v13316_v10 }
 0x938   : > { %7532 = vrot.lane.b32.xlu0 %v17794_v39, %s20466_s17  ;;  %7266 = vrot.lane.b32.xlu1 %v17794_v39, %s20465_s11  ;;  %v8978_v49 = vsel %vm19782_vm6, %v13332_v6, %v13322_v14 }
 0x939   : > { %v18444_v63 = vsel %vm19782_vm6, %v13342_v12, %v19770_v43  ;;  %11068 = vmatprep.subr.bf16.mxu1 %v11067_v18  ;;  %v8890_v54 = vsel %vm19781_vm9, %v13317_v46, %v13318_v27  ;;  %v13333_v43 = vunpack.i.h.bf16 %v13331_v42 }
 0x93a   : > { %11070 = vmatpush1.bf16.msra.mxu1 %v11069_v35  ;;  %v18448_v60 = vpop.permute.xlu0 %13350  ;;  %v13326_v40 = vpop.permute.xlu1 %13325  ;;  %v11019_v10 = vpack.c.bf16 %v8979_v25, %v8890_v54 }
 0x93b   : > { %v13327_v0 = vunpack.i.l.bf16 %v13326_v40  ;;  %v13328_v23 = vunpack.i.h.bf16 %v13326_v40  ;;  %v13353_v1 = vunpack.i.h.bf16 %v18448_v60  ;;  %v13352_v42 = vunpack.i.l.bf16 %v18448_v60 }
 0x93c   : > { %13580 = vrot.lane.b32.xlu0 %v17781_v5, %s20467_s14  ;;  %13565 = vrot.lane.b32.xlu1 %v17781_v5, %s19870_s12  ;;  %v8980_v40 = vsel %vm19782_vm6, %v13323_v52, %v13333_v43  ;;  %v18483_v60 = vpack.i.bf16 %v18264_v26, %v17877_v32 }
 0x93d   : > { %v8889_v18 = vsel %vm19781_vm9, %v13327_v0, %v13317_v46  ;;  %11020 = vmatprep.subr.bf16.mxu0 %v11019_v10  ;;  %v8981_v46 = vsel %vm19782_vm6, %v13333_v43, %v13342_v12  ;;  %v8891_v14 = vsel %vm19781_vm9, %v13318_v27, %v13328_v23  ;;  %vm20549_vm6 = vmmov %vm20547_vm4 }
 0x93e   : > { %v11021_v13 = vpack.c.bf16 %v8978_v49, %v8889_v18  ;;  %v18456_v35 = vpop.permute.xlu0 %13360  ;;  %v18458_v56 = vpop.permute.xlu1 %13335 }
 0x93f   : > { %20543 = vst [vmem:[#allocation53_spill] sm:$0xff] %v18458_v56  ;;  %v19774_v54 = vunpack.i.h.bf16 %v18458_v56  ;;  %v13337_v25 = vunpack.i.l.bf16 %v18458_v56  ;;  %v13362_v52 = vunpack.i.l.bf16 %v18456_v35 }
 0x940   : > { %7709 = vrot.lane.b32.xlu0 %v17794_v39, %s20467_s14  ;;  %7444 = vrot.lane.b32.xlu1 %v17794_v39, %s19870_s12 }
 0x941   : > { %v18473_v0 = vsel %vm19781_vm9, %v13337_v25, %v19774_v54  ;;  %11022 = vmatpush1.bf16.msra.mxu0 %v11021_v13  ;;  %v8892_v6 = vsel %vm19781_vm9, %v13328_v23, %v13337_v25  ;;  %v11073_v23 = vpack.c.bf16 %v8980_v40, %v8891_v14  ;;  %vm20548_vm9 = vmmov %vm20547_vm4 }
 0x942   : > { %20544 = vst [vmem:[#allocation70_spill] sm:$0xff] %v18473_v0  ;;  %v18479_v49 = vpop.permute.xlu0 %13370  ;;  %v13346_v12 = vpop.permute.xlu1 %13345  ;;  %v11071_v27 = vpack.c.bf16 %v8981_v46, %v8892_v6  ;;  %v9155_v46 = vsel %vm3981_vm14, %v13352_v42, %v13353_v1  ;;  %v13067_v0 = vunpack.i.l.bf16 %v17942_v4 }
 0x943   : > { %20545 = vst [vmem:[#allocation71_spill] sm:$0xff] %v18479_v49  ;;  %v19776_v18 = vunpack.i.h.bf16 %v18479_v49  ;;  %v13372_v54 = vunpack.i.l.bf16 %v18479_v49  ;;  %v13348_v13 = vunpack.i.h.bf16 %v13346_v12  ;;  %v13347_v56 = vunpack.i.l.bf16 %v13346_v12 }
 0x944   : > { %13590 = vrot.lane.b32.xlu0 %v18483_v60, %s20518_s24  ;;  %13575 = vrot.lane.b32.xlu1 %v17781_v5, %s20422_s28  ;;  %v9154_v5 = vsel %vm3981_vm14, %v13362_v52, %v13352_v42  ;;  %v13068_v49 = vunpack.i.h.bf16 %v17942_v4  ;;  %v13052_v4 = vunpack.i.l.bf16 %v17914_v61 }
 0x945   : > { %v18495_v43 = vsel %vm3981_vm14, %v13372_v54, %v19776_v18  ;;  %11072 = vmatprep.subr.bf16.mxu1 %v11071_v27  ;;  %v9067_v25 = vsel %vm20546_vm7, %v13347_v56, %v13348_v13  ;;  %vm9242_vm7 = vcmask 56320  }
 0x946   : > { %11074 = vmatpush1.bf16.msra.mxu1 %v11073_v23  ;;  %v18499_v14 = vpop.permute.xlu0 %9220  ;;  %v13356_v6 = vpop.permute.xlu1 %13355  ;;  %v11023_v40 = vpack.c.bf16 %v9155_v46, %v9067_v25  ;;  %v13363_v25 = vunpack.i.h.bf16 %v18456_v35 }
 0x947   : > { %v13357_v12 = vunpack.i.l.bf16 %v13356_v6  ;;  %v13358_v18 = vunpack.i.h.bf16 %v13356_v6  ;;  %v18554_v6 = vld [vmem:[%s19330_s2 + $0x20] sm:$0xff] }
 0x948   : > { %7886 = vrot.lane.b32.xlu0 %v18267_v62, %s20518_s24  ;;  %7621 = vrot.lane.b32.xlu1 %v17794_v39, %s20422_s28  ;;  %v9157_v52 = vsel %vm3981_vm14, %v13363_v25, %v13372_v54  ;;  %v13092_v54 = vunpack.i.l.bf16 %v17989_v44  ;;  %s11290_s28 = smul.u32 2816, %s13922_s25  ;;  %s13730_s24 = sshll.u32 %s13865_s19, 4  ;;  %s13731_s24 = int_to_ptr.vmem [resolvable:$false] %s13730_s24 }
 0x949   : > { %v9066_v27 = vsel %vm20547_vm4, %v13357_v12, %v13347_v56  ;;  %11024 = vmatprep.subr.bf16.mxu0 %v11023_v40  ;;  %v9068_v56 = vsel %vm20547_vm4, %v13348_v13, %v13358_v18  ;;  %v13048_v13 = vunpack.i.h.bf16 %v17916_v53  ;;  %vm20556_vm4 = vcmask 941056  }
 0x94a   : > { %v11025_v10 = vpack.c.bf16 %v9154_v5, %v9066_v27  ;;  %v18507_v26 = vpop.permute.xlu0 %13375  ;;  %v18509_v23 = vpop.permute.xlu1 %13365  ;;  %v9156_v27 = vsel %vm3981_vm14, %v13353_v1, %v13363_v25  ;;  %v20551_v1 = vunpack.i.h.bf16 %v17499_v17 }
 0x94b   : > { %v19783_v46 = vunpack.i.h.bf16 %v18509_v23  ;;  %v13367_v32 = vunpack.i.l.bf16 %v18509_v23 }
 0x94c   : > { %13600 = vrot.lane.b32.xlu0 %v18483_v60, %s20521_s9  ;;  %13585 = vrot.lane.b32.xlu1 %v18483_v60, %s20468_s18 }
 0x94d   : > { %v18524_v35 = vsel %vm20548_vm9, %v13367_v32, %v19783_v46  ;;  %11026 = vmatpush1.bf16.msra.mxu0 %v11025_v10  ;;  %v9069_v42 = vsel %vm20549_vm6, %v13358_v18, %v13367_v32  ;;  %v13377_v46 = vunpack.i.l.bf16 %v18507_v26  ;;  %v11077_v10 = vpack.c.bf16 %v9156_v27, %v9068_v56 }
 0x94e   : > { %v18531_v40 = vpop.permute.xlu0 %9224  ;;  %v9219_v12 = vpop.permute.xlu1 %9218  ;;  %v11075_v5 = vpack.c.bf16 %v9157_v52, %v9069_v42  ;;  %vm20550_vm9 = vcmask 965632   ;;  %v13072_v42 = vunpack.i.l.bf16 %v17953_v59 }
 0x94f   : > { %v9244_v32 = vsel %vm9242_vm7, %v9219_v12, %v18499_v14  ;;  %v7097_v18 = vsel %vm20550_vm9, %v13067_v0, %v13068_v49  ;;  %vm20552_vm6 = vmmov %vm20550_vm9 }
 0x950   : > { %13605 = vrot.lane.b32.xlu0 %v18294_v45, %s20470_s10  ;;  %7798 = vrot.lane.b32.xlu1 %v18267_v62, %s20468_s18  ;;  %v7096_v25 = vsel %vm20552_vm6, %v20551_v1, %v13067_v0  ;;  %v20554_v0 = vunpack.i.l.bf16 %v17916_v53  ;;  %vm20557_vm9 = vmmov %vm20552_vm6 }
 0x951   : > { %9668 = vmatprep.subr.mxu0 %v9244_v32  ;;  %11076 = vmatprep.subr.bf16.mxu1 %v11075_v5  ;;  %v7009_v5 = vsel %vm7003_vm0, %v13048_v13, %v13052_v4  ;;  %v20553_v32 = vunpack.i.h.bf16 %v18009_v34  ;;  %v7098_v53 = vsel %vm20557_vm9, %v13068_v49, %v13072_v42  ;;  %vm20561_vm9 = vmmov %vm20556_vm4 }
 0x952   : > { %11078 = vmatpush1.bf16.msra.mxu1 %v11077_v10  ;;  %v18548_v56 = vpop.permute.xlu0 %13385  ;;  %v9217_v52 = vpop.permute.xlu1 %9216  ;;  %v7008_v10 = vsel %vm7003_vm0, %v20554_v0, %v13048_v13 }
 0x953   : > { %v9243_v27 = vsel %vm9242_vm7, %v9217_v52, %v9219_v12  ;;  %v7274_v17 = vsel %vm7268_vm3, %v20553_v32, %v13377_v46  ;;  %v11079_v12 = vpack.c.bf16 %v7097_v18, %v7009_v5  ;;  %v11081_v1 = vpack.c.bf16 %v7096_v25, %v7008_v10  ;;  %v18589_v5 = vld [vmem:[%s19330_s2 + $0x28] sm:$0xff] }
 0x954   : > { %13615 = vrot.lane.b32.xlu0 %v18294_v45, %s20471_s13  ;;  %13595 = vrot.lane.b32.xlu1 %v18483_v60, %s20523_s21  ;;  %v20555_v52 = vunpack.i.h.bf16 %v17975_v41  ;;  %v13053_v32 = vunpack.i.h.bf16 %v17914_v61  ;;  %v20558_v18 = vunpack.i.h.bf16 %v17953_v59  ;;  %v19789_v59 = vunpack.i.h.bf16 %v17987_v28 }
 0x955   : > { %9669 = vmatpush1.msra.mxu0 %v9243_v27 }
 0x956   : > { %v7185_v34 = vsel %vm20556_vm4, %v20555_v52, %v13092_v54  ;;  %9681 = vmatmul.mubr.f32.vlgmr.msra.gmra.mrb[12].mxu0 %v18554_v6  ;;  %11080 = vmatprep.subr.bf16.mxu0 %v11079_v12  ;;  %v18575_v13 = vpop.permute.xlu0 %13395  ;;  %v9223_v0 = vpop.permute.xlu1 %9222  ;;  %v7099_v25 = vsel %vm20552_vm6, %v13072_v42, %v20558_v18  ;;  %v13097_v42 = vunpack.i.l.bf16 %v17987_v28  ;;  %v20559_v12 = vunpack.i.l.bf16 %v17937_v55  ;;  %vm20562_vm6 = vmmov %vm20556_vm4 }
 0x957   : > { %v11083_v60 = vpack.c.bf16 %v7274_v17, %v7185_v34  ;;  %v19784_v27 = vunpack.i.h.bf16 %v18575_v13  ;;  %v13397_v41 = vunpack.i.l.bf16 %v18575_v13  ;;  %v9245_v61 = vsel %vm9242_vm7, %v18499_v14, %v9223_v0  ;;  %11082 = vmatpush1.bf16.msra.mxu0 %v11081_v1  ;;  %10342 = vmatprep.mubr.msk.f32.mxu0 %vm2984_vm8, %v18589_v5 }
 0x958   : > { %v9246_v49 = vsel %vm9242_vm7, %v9223_v0, %v18531_v40  ;;  %v13378_v17 = vunpack.i.h.bf16 %v18507_v26  ;;  %13620 = vrot.lane.b32.xlu0 %v20094_v8, %s20478_s30  ;;  %v13093_v14 = vunpack.i.h.bf16 %v17989_v44  ;;  %7975 = vrot.lane.b32.xlu1 %v18267_v62, %s20523_s21  ;;  %v7011_v26 = vsel %vm7003_vm0, %v13053_v32, %v20559_v12 }
 0x959   : > { %11084 = vmatprep.subr.bf16.mxu0 %v11083_v60  ;;  %v18604_v10 = vsel %vm7357_vm1, %v13397_v41, %v19784_v27  ;;  %9739 = vmatprep.subr.mxu1 %v9246_v49  ;;  %v7010_v1 = vsel %vm7003_vm0, %v13052_v4, %v13053_v32  ;;  %v11131_v0 = vpack.c.bf16 %v7099_v25, %v7011_v26  ;;  %v13387_v25 = vunpack.i.l.bf16 %v18548_v56 }
 0x95a   : > { %9740 = vmatpush1.msra.mxu1 %v9245_v61  ;;  %v18612_v52 = vpop.permute.xlu0 %13405  ;;  %v18614_v34 = vpop.permute.xlu1 %13380  ;;  %v20560_v49 = vpack.c.bf16 %v18027_v16, %v18022_v33  ;;  %v11133_v27 = vpack.c.bf16 %v7098_v53, %v7010_v1  ;;  %v18625_v4 = vsel %vm20556_vm4, %v13097_v42, %v19789_v59  ;;  %v7275_v32 = vsel %vm7268_vm3, %v13377_v46, %v13378_v17 }
 0x95b   : > { %v19792_v60 = vunpack.i.h.bf16 %v18614_v34  ;;  %v13382_v18 = vunpack.i.l.bf16 %v18614_v34  ;;  %9752 = vmatmul.mubr.f32.vlgmr.msra.gmra.mrb[12].mxu1 %v18554_v6  ;;  %11132 = vmatprep.subr.bf16.mxu1 %v11131_v0  ;;  %v7187_v33 = vsel %vm20561_vm9, %v13093_v14, %v13097_v42  ;;  %v7186_v46 = vsel %vm20562_vm6, %v13092_v54, %v13093_v14 }
 0x95c   : > { %11086 = vmatpush1.bf16.msra.mxu0 %v20560_v49  ;;  %13635 = vrot.lane.b32.xlu0 %v20094_v8, %s20481_s22  ;;  %v20563_v54 = vunpack.i.h.bf16 %v18007_v47  ;;  %v20564_v49 = vunpack.i.h.bf16 %v18037_v7  ;;  %vm20565_vm4 = vcmask 596992   ;;  %v13407_v47 = vunpack.i.l.bf16 %v18612_v52 }
 0x95d   : > { %v18634_v61 = vsel %vm7268_vm3, %v13382_v18, %v19792_v60  ;;  %11134 = vmatpush1.bf16.msra.mxu1 %v11133_v27  ;;  %8064 = vrot.lane.b32.xlu1 %v18267_v62, %s20521_s9  ;;  %v7276_v16 = vsel %vm7268_vm3, %v13378_v17, %v13382_v18  ;;  %v11137_v27 = vpack.c.bf16 %v7275_v32, %v7186_v46  ;;  %vm20566_vm9 = vmmov %vm20565_vm4  ;;  %s13732_s9 = scalar_lea.vmem %s13731_s24, 5632 }
 0x95e   : > { %v18645_v12 = vpop.permute.xlu0 %13415  ;;  %v13391_v26 = vpop.permute.xlu1 %13390  ;;  %v11135_v1 = vpack.c.bf16 %v7276_v16, %v7187_v33  ;;  %10343 = vmatprep.mubr.msk.f32.mxu1 %vm2984_vm8, %v18589_v5  ;;  %v7363_v14 = vsel %vm7357_vm1, %v20563_v54, %v13387_v25  ;;  %v13388_v33 = vunpack.i.h.bf16 %v18548_v56  ;;  %vm20567_vm6 = vmmov %vm20565_vm4  ;;  %v20568_v56 = vpack.c.bf16 %v18060_v31, %v18046_v57 }
 0x95f   : > { %v19785_v0 = vunpack.i.h.bf16 %v18645_v12  ;;  %v13417_v42 = vunpack.i.l.bf16 %v18645_v12  ;;  %v13392_v17 = vunpack.i.l.bf16 %v13391_v26  ;;  %v13393_v18 = vunpack.i.h.bf16 %v13391_v26 }
 0x960   : > { %13645 = vrot.lane.b32.xlu0 %v20094_v8, %s20481_s22  ;;  %11136 = vmatprep.subr.bf16.mxu1 %v11135_v1 }
 0x961   : > { %v18656_v44 = vsel %vm7534_vm15, %v13417_v42, %v19785_v0  ;;  %13610 = vrot.lane.b32.xlu1 %v18294_v45, %s20469_s0  ;;  %11138 = vmatpush1.bf16.msra.mxu1 %v11137_v27  ;;  %v7451_v32 = vsel %vm20565_vm4, %v20564_v49, %v13392_v17  ;;  %v7452_v27 = vsel %vm20566_vm9, %v13392_v17, %v13393_v18  ;;  %vm20576_vm9 = vcmask 367616  }
 0x962   : > { %v18667_v16 = vpop.permute.xlu0 %13425  ;;  %v18669_v46 = vpop.permute.xlu1 %13400  ;;  %v11087_v26 = vpack.c.bf16 %v7451_v32, %v7363_v14  ;;  %v7365_v17 = vsel %vm7357_vm1, %v13388_v33, %v13397_v41  ;;  %v7364_v14 = vsel %vm7357_vm1, %v13387_v25, %v13388_v33  ;;  %v20569_v25 = vunpack.i.h.bf16 %v18035_v22 }
 0x963   : > { %v19786_v1 = vunpack.i.h.bf16 %v18669_v46  ;;  %v13402_v0 = vunpack.i.l.bf16 %v18669_v46  ;;  %v13427_v22 = vunpack.i.l.bf16 %v18667_v16 }
 0x964   : > { %13655 = vrot.lane.b32.xlu0 %v20094_v8, %s20426_s15  ;;  %11088 = vmatprep.subr.bf16.mxu0 %v11087_v26 }
 0x965   : > { %v18680_v7 = vsel %vm20567_vm6, %v13402_v0, %v19786_v1  ;;  %13625 = vrot.lane.b32.xlu1 %v18294_v45, %s20425_s7  ;;  %11090 = vmatpush1.bf16.msra.mxu0 %v20568_v56  ;;  %v7453_v54 = vsel %vm20565_vm4, %v13393_v18, %v13402_v0  ;;  %v11141_v45 = vpack.c.bf16 %v7452_v27, %v7364_v14  ;;  %v20570_v18 = vunpack.i.h.bf16 %v18070_v50  ;;  %vm20578_vm6 = vmmov %vm20576_vm9  ;;  %s19284_s7 = scalar_lea.hbm %s19334_s6, %s11290_s28 }
 0x966   : > { %v18694_v32 = vpop.permute.xlu0 %13435  ;;  %v13411_v26 = vpop.permute.xlu1 %13410  ;;  %v11139_v1 = vpack.c.bf16 %v7453_v54, %v7365_v17  ;;  %v7540_v0 = vsel %vm7534_vm15, %v20569_v25, %v13407_v47  ;;  %v13408_v27 = vunpack.i.h.bf16 %v18612_v52  ;;  %v20571_v52 = vpack.c.bf16 %v18090_v2, %v18085_v51  ;;  %vm20579_vm4 = vmmov %vm20578_vm6 }
 0x967   : > { %v19787_v53 = vunpack.i.h.bf16 %v18694_v32  ;;  %v13437_v57 = vunpack.i.l.bf16 %v18694_v32  ;;  %v13412_v31 = vunpack.i.l.bf16 %v13411_v26  ;;  %v13413_v56 = vunpack.i.h.bf16 %v13411_v26 }
 0x968   : > { %13665 = vrot.lane.b32.xlu0 %v20094_v8, %s20426_s15  ;;  %11140 = vmatprep.subr.bf16.mxu1 %v11139_v1  ;;  %v7542_v25 = vsel %vm7534_vm15, %v13408_v27, %v13417_v42 }
 0x969   : > { %v18703_v41 = vsel %vm7711_vm13, %v13437_v57, %v19787_v53  ;;  %13630 = vrot.lane.b32.xlu1 %v20094_v8, %s20423_s29  ;;  %11142 = vmatpush1.bf16.msra.mxu1 %v11141_v45  ;;  %v7628_v33 = vsel %vm3892_vm10, %v20570_v18, %v13412_v31  ;;  %v7629_v45 = vsel %vm3892_vm10, %v13412_v31, %v13413_v56  ;;  %v10339_v31 = vld [vmem:[%s19331_s3 + $0x10] sm:$0xff]  ;;  %s20789_s29 = smul.u32 176, %s14000_s20 }
 0x96a   : > { %v18714_v1 = vpop.permute.xlu0 %13445  ;;  %v18716_v17 = vpop.permute.xlu1 %13420  ;;  %v11091_v54 = vpack.c.bf16 %v7628_v33, %v7540_v0  ;;  %v7541_v18 = vsel %vm7534_vm15, %v13407_v47, %v13408_v27  ;;  %v20573_v47 = vunpack.i.h.bf16 %v18068_v48  ;;  %v20574_v27 = vld [vmem:[#allocation24_spill] sm:$0xff] }
 0x96b   : > { %v19788_v14 = vunpack.i.h.bf16 %v18716_v17  ;;  %v13422_v26 = vunpack.i.l.bf16 %v18716_v17  ;;  %v11145_v49 = vpack.c.bf16 %v7629_v45, %v7541_v18  ;;  %s267_s17 = scalar_lea.vmem [#allocation9], %s20789_s29 }
 0x96c   : > { %13675 = vrot.lane.b32.xlu0 %v20094_v8, %s20493_s27  ;;  %11092 = vmatprep.subr.bf16.mxu0 %v11091_v54 }
 0x96d   : > { %v18727_v50 = vsel %vm3892_vm10, %v13422_v26, %v19788_v14  ;;  %13640 = vrot.lane.b32.xlu1 %v20094_v8, %s20479_s23  ;;  %11094 = vmatpush1.bf16.msra.mxu0 %v20571_v52  ;;  %v7630_v0 = vsel %vm3892_vm10, %v13413_v56, %v13422_v26  ;;  %v7717_v56 = vsel %vm7711_vm13, %v20573_v47, %v13427_v22  ;;  %v20575_v26 = vunpack.i.h.bf16 %v20574_v27 }
 0x96e   : > { %v18742_v54 = vpop.permute.xlu0 %13455  ;;  %v13431_v53 = vpop.permute.xlu1 %13430  ;;  %v11143_v14 = vpack.c.bf16 %v7630_v0, %v7542_v25  ;;  %v13447_v47 = vunpack.i.l.bf16 %v18714_v1 }
 0x96f   : > { %20572 = vst [vmem:[#allocation66_spill] sm:$0xff] %v18742_v54  ;;  %v19790_v51 = vunpack.i.h.bf16 %v18742_v54  ;;  %v13457_v2 = vunpack.i.l.bf16 %v18742_v54  ;;  %v13432_v52 = vunpack.i.l.bf16 %v13431_v53  ;;  %v13433_v59 = vunpack.i.h.bf16 %v13431_v53 }
 0x970   : > { %9610 = vperm.xlu0 %12157, %v10339_v31   ;;  %11144 = vmatprep.subr.bf16.mxu1 %v11143_v14  ;;  %v13428_v53 = vunpack.i.h.bf16 %v18667_v16 }
 0x971   : > { %v18749_v42 = vsel %vm19803_vm5, %v13457_v2, %v19790_v51  ;;  %13650 = vrot.lane.b32.xlu1 %v20094_v8, %s20479_s23  ;;  %11146 = vmatpush1.bf16.msra.mxu1 %v11145_v49  ;;  %v7805_v45 = vsel %vm20576_vm9, %v20575_v26, %v13432_v52  ;;  %v7806_v49 = vsel %vm20578_vm6, %v13432_v52, %v13433_v59  ;;  %v20581_v26 = vld [vmem:[#allocation36_spill] sm:$0xff]  ;;  %vm20583_vm9 = vmmov %vm20579_vm4  ;;  %vm20588_vm6 = vcmask 1022976  }
 0x972   : > { %v18760_v14 = vpop.permute.xlu0 %13465  ;;  %v18762_v31 = vpop.permute.xlu1 %13440  ;;  %v11095_v25 = vpack.c.bf16 %v7805_v45, %v7717_v56  ;;  %v7719_v48 = vsel %vm7711_vm13, %v13428_v53, %v13437_v57  ;;  %v20580_v56 = vld [vmem:[#allocation46_spill] sm:$0xff]  ;;  %v13193_v57 = vunpack.i.h.bf16 %v18167_v36 }
 0x973   : > { %20577 = vst [vmem:[#allocation78_spill] sm:$0xff] %v18762_v31  ;;  %v19791_v0 = vunpack.i.h.bf16 %v18762_v31  ;;  %v13442_v18 = vunpack.i.l.bf16 %v18762_v31  ;;  %v13467_v27 = vunpack.i.l.bf16 %v18760_v14  ;;  %v20582_v45 = vpack.c.bf16 %v20580_v56, %v20581_v26 }
 0x974   : > { %11096 = vmatprep.subr.bf16.mxu0 %v11095_v25  ;;  %v7718_v25 = vsel %vm7711_vm13, %v13427_v22, %v13428_v53  ;;  %v20585_v22 = vunpack.i.h.bf16 %v18188_v3 }
 0x975   : > { %v18773_v16 = vsel %vm20579_vm4, %v13442_v18, %v19791_v0  ;;  %13660 = vrot.lane.b32.xlu1 %v20094_v8, %s20424_s26  ;;  %11098 = vmatpush1.bf16.msra.mxu0 %v20582_v45  ;;  %v7807_v52 = vsel %vm20583_vm9, %v13433_v59, %v13442_v18  ;;  %v11149_v62 = vpack.c.bf16 %v7806_v49, %v7718_v25  ;;  %v20584_v59 = vunpack.i.h.bf16 %v18125_v20  ;;  %vm20595_vm9 = vmmov %vm20588_vm6 }
 0x976   : > { %v18785_v33 = vpop.permute.xlu0 %13475  ;;  %v13451_v0 = vpop.permute.xlu1 %13450  ;;  %v11147_v60 = vpack.c.bf16 %v7807_v52, %v7719_v48  ;;  %v8072_v56 = vsel %vm19797_vm12, %v13193_v57, %v13467_v27  ;;  %v20586_v48 = vunpack.i.l.bf16 %v18167_v36  ;;  %v13468_v25 = vunpack.i.h.bf16 %v18760_v14 }
 0x977   : > { %v13452_v54 = vunpack.i.l.bf16 %v13451_v0  ;;  %v13453_v31 = vunpack.i.h.bf16 %v13451_v0  ;;  %v7894_v18 = vsel %vm19803_vm5, %v20584_v59, %v13447_v47  ;;  %vm20592_vm4 = vcmask 703488  }
 0x978   : > { %11148 = vmatprep.subr.bf16.mxu1 %v11147_v60  ;;  %v8071_v49 = vsel %vm19797_vm12, %v20586_v48, %v13193_v57  ;;  %v13448_v60 = vunpack.i.h.bf16 %v18714_v1  ;;  %v20587_v57 = vld [vmem:[#allocation86_spill] sm:$0xff] }
 0x979   : > { %13670 = vrot.lane.b32.xlu1 %v20094_v8, %s20424_s26  ;;  %11150 = vmatpush1.bf16.msra.mxu1 %v11149_v62  ;;  %v7983_v53 = vsel %vm19798_vm2, %v20585_v22, %v13452_v54  ;;  %v7984_v36 = vsel %vm19798_vm2, %v13452_v54, %v13453_v31  ;;  %v11103_v1 = vpack.c.bf16 %v20587_v57, %v8072_v56  ;;  %s10245_s26 = sshll.u32 %s267_s17, 4  ;;  %s19286_s26 = int_to_ptr.vmem [resolvable:$true] %s10245_s26 }
 0x97a   : > { %v18800_v0 = vpop.permute.xlu0 %13485  ;;  %v18802_v26 = vpop.permute.xlu1 %13460  ;;  %v11099_v62 = vpack.c.bf16 %v7983_v53, %v7894_v18  ;;  %v7896_v59 = vsel %vm19803_vm5, %v13448_v60, %v13457_v2  ;;  %v20589_v54 = vpack.c.bf16 %v18209_v58, %v18197_v37  ;;  %v7895_v2 = vsel %vm19803_vm5, %v13447_v47, %v13448_v60  ;;  %v20590_v37 = vld [vmem:[#allocation42_spill] sm:$0xff]  ;;  %s13726_s14 = scalar_lea.vmem %s19286_s26, 2816  ;;  %p13733_p5 = scmp.lt.s32.totalorder %s19286_s26, %s13731_s24 }
 0x97b   : > { %v19796_v20 = vunpack.i.h.bf16 %v18800_v0  ;;  %v13487_v45 = vunpack.i.l.bf16 %v18800_v0  ;;  %v19804_v3 = vunpack.i.h.bf16 %v18802_v26  ;;  %v13462_v52 = vunpack.i.l.bf16 %v18802_v26  ;;  %p13727_p6 = scmp.ne.s32.totalorder %s19286_s26, %s13726_s14  ;;  %p13734_p10 = scmp.lt.s32.totalorder %s13732_s9, %s13726_s14 }
 0x97c   : > { %11100 = vmatprep.subr.bf16.mxu0 %v11099_v62  ;;  %v11153_v57 = vpack.c.bf16 %v7984_v36, %v7895_v2  ;;  %v11105_v58 = vpack.c.bf16 %v20590_v37, %v8071_v49  ;;  %v13477_v47 = vunpack.i.l.bf16 %v18785_v33  ;;  %v20591_v49 = vld [vmem:[#allocation79_spill] sm:$0xff] }
 0x97d   : > { %v18815_v18 = vsel %vm20588_vm6, %v13487_v45, %v19796_v20  ;;  %v18820_v22 = vsel %vm19798_vm2, %v13462_v52, %v19804_v3  ;;  %13680 = vrot.lane.b32.xlu1 %v20094_v8, %s20493_s27  ;;  %11102 = vmatpush1.bf16.msra.mxu0 %v20589_v54  ;;  %v7985_v14 = vsel %vm19798_vm2, %v13453_v31, %v13462_v52  ;;  %vm20597_vm6 = vcmask 728064   ;;  %p13728_p12 = pnand %p13727_p6, %p20790_p11  ;;  %p13735_p2 = por %p13734_p10, %p13733_p5 }
 0x97e   : > { %v18831_v56 = vpop.permute.xlu0 %13495  ;;  %v18833_v48 = vpop.permute.xlu1 %13470  ;;  %11104 = vmatprep.subr.bf16.mxu0 %v11103_v1  ;;  %v11151_v62 = vpack.c.bf16 %v7985_v14, %v7896_v59  ;;  %v8073_v31 = vsel %vm19797_vm12, %v13467_v27, %v13468_v25 }
 0x97f   : > { %v19800_v8 = vunpack.i.h.bf16 %v18833_v48  ;;  %v13472_v20 = vunpack.i.l.bf16 %v18833_v48  ;;  %v11157_v54 = vpack.c.bf16 %v20591_v49, %v8073_v31  ;;  %p13729_p13 = pneg %p13728_p12 }
 0x980   : > { %11152 = vmatprep.subr.bf16.mxu1 %v11151_v62 }
 0x981   : > { %v18843_v60 = vsel %vm19797_vm12, %v13472_v20, %v19800_v8  ;;  %11106 = vmatpush1.bf16.msra.mxu0 %v11105_v58  ;;  %11154 = vmatpush1.bf16.msra.mxu1 %v11153_v57  ;;  %v8074_v52 = vsel %vm19797_vm12, %v13468_v25, %v13472_v20  ;;  %v20594_v20 = vunpack.i.h.bf16 %v18261_v11  ;;  %v13478_v58 = vunpack.i.h.bf16 %v18785_v33  ;;  %p13736_p4 = pnand %p13735_p2, %p13729_p13 }
 0x982   : > { %v18846_v36 = vpop.permute.xlu0 %13505  ;;  %v13481_v1 = vpop.permute.xlu1 %13480  ;;  %v11155_v59 = vpack.c.bf16 %v17794_v39, %v8074_v52  ;;  %v20596_v39 = vunpack.i.h.bf16 %v18231_v21  ;;  %v13497_v11 = vunpack.i.l.bf16 %v18831_v56  ;;  %v20600_v33 = vpack.c.bf16 %v18274_v38, %v18287_v29 }
 0x983   : > { %v19799_v27 = vunpack.i.h.bf16 %v18846_v36  ;;  %v13507_v14 = vunpack.i.l.bf16 %v18846_v36  ;;  %v13482_v2 = vunpack.i.l.bf16 %v13481_v1  ;;  %v13483_v62 = vunpack.i.h.bf16 %v13481_v1 }
 0x984   : > { %11156 = vmatprep.subr.bf16.mxu1 %v11155_v59  ;;  %v8185_v25 = vsel %vm20595_vm9, %v20594_v20, %v13477_v47  ;;  %v20604_v38 = vunpack.i.h.bf16 %v18319_v30 }
 0x985   : > { %v18855_v57 = vsel %vm20592_vm4, %v13507_v14, %v19799_v27  ;;  %11158 = vmatpush1.bf16.msra.mxu1 %v11157_v54  ;;  %v8274_v37 = vsel %vm20597_vm6, %v20596_v39, %v13482_v2  ;;  %vm20598_vm4 = vmmov %vm20597_vm6  ;;  %vm20601_vm6 = vcmask 1022976  }
 0x986   : > { %20593 = vst [vmem:[#allocation64_spill] sm:$0xff] %v18855_v57  ;;  %v13516_v31 = vpop.permute.xlu0 %13515  ;;  %v18864_v52 = vpop.permute.xlu1 %13490  ;;  %v11107_v1 = vpack.c.bf16 %v8274_v37, %v8185_v25  ;;  %v8275_v54 = vsel %vm20598_vm4, %v13482_v2, %v13483_v62  ;;  %vm20599_vm9 = vmmov %vm20598_vm4  ;;  %v8187_v20 = vsel %vm20601_vm6, %v13478_v58, %v13487_v45  ;;  %v20606_v45 = vunpack.i.h.bf16 %v18290_v24 }
 0x987   : > { %v19801_v59 = vunpack.i.h.bf16 %v18864_v52  ;;  %v13492_v49 = vunpack.i.l.bf16 %v18864_v52  ;;  %vm20602_vm12 = vmmov %vm20598_vm4  ;;  %vm20605_vm4 = vcmask 703488  }
 0x988   : > { %11108 = vmatprep.subr.bf16.mxu0 %v11107_v1  ;;  %vm20603_vm2 = vmmov %vm20601_vm6  ;;  %v8363_v29 = vsel %vm20605_vm4, %v20604_v38, %v13497_v11 }
 0x989   : > { %v18873_v21 = vsel %vm20599_vm9, %v13492_v49, %v19801_v59  ;;  %11110 = vmatpush1.bf16.msra.mxu0 %v20600_v33  ;;  %v8276_v25 = vsel %vm20602_vm12, %v13483_v62, %v13492_v49  ;;  %v8186_v39 = vsel %vm20603_vm2, %v13477_v47, %v13478_v58  ;;  %vm20607_vm12 = vcmask 678912   ;;  %vm20612_vm6 = vmmov %vm20605_vm4 }
 0x98a   : > { %v13526_v37 = vpop.permute.xlu0 %13525  ;;  %v13501_v1 = vpop.permute.xlu1 %13500  ;;  %v11159_v27 = vpack.c.bf16 %v8276_v25, %v8187_v20  ;;  %v11161_v53 = vpack.c.bf16 %v8275_v54, %v8186_v39  ;;  %v13498_v47 = vunpack.i.h.bf16 %v18831_v56  ;;  %v13517_v20 = vunpack.i.l.bf16 %v13516_v31  ;;  %vm20608_vm2 = vmmov %vm20607_vm12 }
 0x98b   : > { %v13502_v8 = vunpack.i.l.bf16 %v13501_v1  ;;  %v13503_v59 = vunpack.i.h.bf16 %v13501_v1  ;;  %vm20609_vm9 = vmmov %vm20608_vm2  ;;  %v20611_v56 = vpack.c.bf16 %v18326_v15, %v18339_v19  ;;  %v13528_v15 = vunpack.i.h.bf16 %v13526_v37 }
 0x98c   : > { %11160 = vmatprep.subr.bf16.mxu1 %v11159_v27  ;;  %v8365_v25 = vsel %vm20612_vm6, %v13498_v47, %v13507_v14  ;;  %vm20613_vm4 = vmmov %vm20608_vm2  ;;  %v13527_v19 = vunpack.i.l.bf16 %v13526_v37  ;;  %v20616_v14 = vld [vmem:[#allocation67_spill] sm:$0xff] }
 0x98d   : > { %11162 = vmatpush1.bf16.msra.mxu1 %v11161_v53  ;;  %v8451_v62 = vsel %vm20607_vm12, %v20606_v45, %v13502_v8  ;;  %v13518_v53 = vunpack.i.h.bf16 %v13516_v31  ;;  %v8452_v30 = vsel %vm20608_vm2, %v13502_v8, %v13503_v59  ;;  %vm20614_vm12 = vmmov %vm20612_vm6  ;;  %vm20615_vm2 = vcmask 793600  }
 0x98e   : > { %v18890_v58 = vpop.permute.xlu0 %13535  ;;  %v18892_v49 = vpop.permute.xlu1 %13510  ;;  %v11111_v33 = vpack.c.bf16 %v8451_v62, %v8363_v29  ;;  %v8364_v1 = vsel %vm20614_vm12, %v13497_v11, %v13498_v47  ;;  %vm20619_vm6 = vcmask 769024   ;;  %v20620_v47 = vld [vmem:[#allocation77_spill] sm:$0xff]  ;;  %vm20624_vm12 = vmmov %vm20615_vm2 }
 0x98f   : > { %v19802_v54 = vunpack.i.h.bf16 %v18892_v49  ;;  %v13512_v27 = vunpack.i.l.bf16 %v18892_v49  ;;  %v11165_v45 = vpack.c.bf16 %v8452_v30, %v8364_v1 }
 0x990   : > { %11112 = vmatprep.subr.bf16.mxu0 %v11111_v33 }
 0x991   : > { %v18900_v24 = vsel %vm20609_vm9, %v13512_v27, %v19802_v54  ;;  %11114 = vmatpush1.bf16.msra.mxu0 %v20611_v56  ;;  %v8453_v39 = vsel %vm20613_vm4, %v13503_v59, %v13512_v27  ;;  %v8541_v54 = vsel %vm20615_vm2, %v13517_v20, %v13518_v53  ;;  %v20617_v56 = vunpack.i.h.bf16 %v20616_v14  ;;  %vm20618_vm9 = vmmov %vm20615_vm2 }
 0x992   : > { %20610 = vst [vmem:[#allocation32_spill] sm:$0xff] %v18900_v24  ;;  %v18910_v8 = vpop.permute.xlu0 %13545  ;;  %v13521_v38 = vpop.permute.xlu1 %13520  ;;  %v11163_v29 = vpack.c.bf16 %v8453_v39, %v8365_v25  ;;  %v20621_v27 = vunpack.i.h.bf16 %v20620_v47  ;;  %vm20622_vm4 = vmmov %vm20619_vm6  ;;  %v20623_v25 = vld [vmem:[#allocation63_spill] sm:$0xff]  ;;  %v20625_v39 = vld [vmem:[#allocation54_spill] sm:$0xff] }
 0x993   : > { %v13523_v62 = vunpack.i.h.bf16 %v13521_v38  ;;  %v13522_v33 = vunpack.i.l.bf16 %v13521_v38  ;;  %v8540_v59 = vsel %vm20618_vm9, %v20617_v56, %v13517_v20  ;;  %v8542_v30 = vsel %vm20624_vm12, %v13518_v53, %v20623_v25  ;;  %vm20626_vm5 = vmmov %vm20622_vm4  ;;  %v20628_v53 = vld [vmem:[#allocation60_spill] sm:$0xff] }
 0x994   : > { %11164 = vmatprep.subr.bf16.mxu1 %v11163_v29 }
 0x995   : > { %v8629_v11 = vsel %vm20619_vm6, %v13522_v33, %v13523_v62  ;;  %11166 = vmatpush1.bf16.msra.mxu1 %v11165_v45  ;;  %v8628_v31 = vsel %vm20622_vm4, %v20621_v27, %v13522_v33  ;;  %v8630_v1 = vsel %vm20626_vm5, %v13523_v62, %v20625_v39  ;;  %v8718_v45 = vsel %vm8711_vm11, %v13527_v19, %v13528_v15 }
 0x996   : > { %v11169_v38 = vpack.c.bf16 %v8629_v11, %v8541_v54  ;;  %v18924_v37 = vpop.permute.xlu0 %9226  ;;  %v13531_v29 = vpop.permute.xlu1 %13530  ;;  %v11115_v14 = vpack.c.bf16 %v8628_v31, %v8540_v59  ;;  %v11167_v2 = vpack.c.bf16 %v8630_v1, %v8542_v30  ;;  %v20627_v33 = vunpack.i.h.bf16 %v18412_v9  ;;  %v20630_v11 = vld [vmem:[#allocation76_spill] sm:$0xff]  ;;  %v20631_v31 = vld [vmem:[#allocation59_spill] sm:$0xff]  ;;  %v20633_v30 = vld [vmem:[#allocation62_spill] sm:$0xff] }
 0x997   : > { %v13533_v20 = vunpack.i.h.bf16 %v13531_v29  ;;  %v13532_v56 = vunpack.i.l.bf16 %v13531_v29  ;;  %v8719_v27 = vsel %vm8711_vm11, %v13528_v15, %v20628_v53  ;;  %v13537_v54 = vunpack.i.l.bf16 %v18890_v58  ;;  %v20636_v29 = vld [vmem:[#allocation55_spill] sm:$0xff] }
 0x998   : > { %11116 = vmatprep.subr.bf16.mxu0 %v11115_v14  ;;  %11168 = vmatprep.subr.bf16.mxu1 %v11167_v2  ;;  %v8717_v47 = vsel %vm8711_vm11, %v20627_v33, %v13527_v19  ;;  %vm20629_vm5 = vcmask 449536   ;;  %v20632_v59 = vpack.c.bf16 %v20630_v11, %v20631_v31  ;;  %v20634_v1 = vunpack.i.h.bf16 %v20633_v30  ;;  %v20639_v31 = vld [vmem:[#allocation69_spill] sm:$0xff] }
 0x999   : > { %v8806_v62 = vsel %vm20629_vm5, %v13532_v56, %v13533_v20  ;;  %11170 = vmatpush1.bf16.msra.mxu1 %v11169_v38  ;;  %vm20635_vm2 = vmmov %vm20629_vm5  ;;  %v13538_v19 = vunpack.i.h.bf16 %v18890_v58  ;;  %v13547_v11 = vunpack.i.l.bf16 %v18910_v8  ;;  %v13548_v38 = vunpack.i.h.bf16 %v18910_v8  ;;  %v20642_v58 = vld [vmem:[#allocation53_spill] sm:$0xff] }
 0x99a   : > { %11118 = vmatpush1.bf16.msra.mxu0 %v20632_v59  ;;  %v8805_v2 = vsel %vm20635_vm2, %v20634_v1, %v13532_v56  ;;  %vm20637_vm9 = vmmov %vm20635_vm2  ;;  %v11173_v14 = vpack.c.bf16 %v8806_v62, %v8718_v45  ;;  %v18943_v15 = vpop.permute.xlu0 %13555  ;;  %v13541_v33 = vpop.permute.xlu1 %13540  ;;  %vm20638_vm6 = vcmask 400384   ;;  %v20643_v45 = vunpack.i.h.bf16 %v20642_v58  ;;  %v20648_v1 = vld [vmem:[#allocation21_spill] sm:$0xff]  ;;  %v20652_v58 = vld [vmem:[#allocation80_spill] sm:$0xff] }
 0x99b   : > { %v8807_v9 = vsel %vm20637_vm9, %v13533_v20, %v20636_v29  ;;  %v11119_v3 = vpack.c.bf16 %v8805_v2, %v8717_v47  ;;  %v13543_v57 = vunpack.i.h.bf16 %v13541_v33  ;;  %v13542_v24 = vunpack.i.l.bf16 %v13541_v33  ;;  %v20640_v20 = vld [vmem:[#allocation68_spill] sm:$0xff]  ;;  %vm20647_vm12 = vmmov %vm20638_vm6  ;;  %v20650_v33 = vld [vmem:[#allocation75_spill] sm:$0xff] }
 0x99c   : > { %v11171_v51 = vpack.c.bf16 %v8807_v9, %v8719_v27  ;;  %v20641_v59 = vpack.c.bf16 %v20639_v31, %v20640_v20  ;;  %vm20644_vm4 = vcmask 424960   ;;  %v20645_v27 = vld [vmem:[#allocation65_spill] sm:$0xff]  ;;  %vm20651_vm2 = vmmov %vm20638_vm6 }
 0x99d   : > { %11120 = vmatprep.subr.bf16.mxu0 %v11119_v3  ;;  %v8984_v56 = vsel %vm20638_vm6, %v13542_v24, %v13543_v57  ;;  %v8894_v47 = vsel %vm20644_vm4, %v20643_v45, %v13537_v54  ;;  %v20646_v62 = vunpack.i.h.bf16 %v20645_v27  ;;  %v13078_v3 = vunpack.i.h.bf16 %v20648_v1  ;;  %vm20649_vm5 = vmmov %vm20644_vm4  ;;  %v20654_v27 = vld [vmem:[#allocation22_spill] sm:$0xff] }
 0x99e   : > { %11172 = vmatprep.subr.bf16.mxu1 %v11171_v51  ;;  %11122 = vmatpush1.bf16.msra.mxu0 %v20641_v59  ;;  %v8895_v51 = vsel %vm20649_vm5, %v13537_v54, %v13538_v19  ;;  %v18959_v8 = vpop.permute.xlu0 %13560  ;;  %v13551_v2 = vpop.permute.xlu1 %13550  ;;  %v8985_v31 = vsel %vm20651_vm2, %v13543_v57, %v20650_v33  ;;  %vm20653_vm9 = vmmov %vm20644_vm4  ;;  %v13062_v29 = vunpack.i.l.bf16 %v20654_v27  ;;  %vm20656_vm6 = vcmask 105472   ;;  %v20659_v57 = vld [vmem:[#allocation71_spill] sm:$0xff] }
 0x99f   : > { %11174 = vmatpush1.bf16.msra.mxu1 %v11173_v14  ;;  %v8983_v30 = vsel %vm20647_vm12, %v20646_v62, %v13542_v24  ;;  %v11177_v14 = vpack.c.bf16 %v8984_v56, %v8895_v51  ;;  %v13553_v20 = vunpack.i.h.bf16 %v13551_v2  ;;  %v13552_v59 = vunpack.i.l.bf16 %v13551_v2  ;;  %v20661_v2 = vld [vmem:[#allocation81_spill] sm:$0xff]  ;;  %vm20662_vm4 = vmmov %vm20656_vm6 }
 0x9a0   : > { %v11123_v9 = vpack.c.bf16 %v8983_v30, %v8894_v47  ;;  %v8896_v45 = vsel %vm20653_vm9, %v13538_v19, %v20652_v58  ;;  %v20655_v62 = vunpack.i.h.bf16 %v18509_v23  ;;  %v20657_v47 = vld [vmem:[#allocation70_spill] sm:$0xff]  ;;  %v20660_v56 = vunpack.i.h.bf16 %v20659_v57  ;;  %vm20664_vm12 = vmmov %vm20662_vm4 }
 0x9a1   : > { %v11175_v24 = vpack.c.bf16 %v8985_v31, %v8896_v45  ;;  %v9160_v53 = vsel %vm3981_vm14, %v13552_v59, %v13553_v20  ;;  %v20658_v30 = vpack.c.bf16 %v18444_v63, %v20657_v47  ;;  %v9073_v19 = vsel %vm20662_vm4, %v13548_v38, %v20661_v2  ;;  %v20663_v58 = vld [vmem:[#allocation74_spill] sm:$0xff] }
 0x9a2   : > { %11124 = vmatprep.subr.bf16.mxu0 %v11123_v9  ;;  %v9071_v54 = vsel %vm20656_vm6, %v20655_v62, %v13547_v11  ;;  %v9159_v51 = vsel %vm3981_vm14, %v20660_v56, %v13552_v59  ;;  %v9161_v9 = vsel %vm3981_vm14, %v13553_v20, %v20663_v58  ;;  %v9072_v23 = vsel %vm20664_vm12, %v13547_v11, %v13548_v38  ;;  %v18981_v31 = vpop.permute.xlu0 %7355  ;;  %v9229_v45 = vpop.permute.xlu1 %9228  ;;  %v20665_v63 = vld [vmem:[#allocation58_spill] sm:$0xff] }
 0x9a3   : > { %11126 = vmatpush1.bf16.msra.mxu0 %v20658_v30  ;;  %11176 = vmatprep.subr.bf16.mxu1 %v11175_v24  ;;  %v11127_v62 = vpack.c.bf16 %v9159_v51, %v9071_v54  ;;  %v11179_v33 = vpack.c.bf16 %v9161_v9, %v9073_v19  ;;  %v13083_v47 = vunpack.i.h.bf16 %v20665_v63  ;;  %v13082_v30 = vunpack.i.l.bf16 %v20665_v63 }
 0x9a4   : > { %v11181_v57 = vpack.c.bf16 %v9160_v53, %v9072_v23  ;;  %11178 = vmatpush1.bf16.msra.mxu1 %v11177_v14  ;;  %v20666_v59 = vunpack.i.l.bf16 %v20648_v1  ;;  %vm20667_vm5 = vcmask 965632   ;;  %v13557_v20 = vunpack.i.l.bf16 %v18943_v15  ;;  %v20670_v1 = vld [vmem:[#allocation43_spill] sm:$0xff] }
 0x9a5   : > { %11128 = vmatprep.subr.bf16.mxu0 %v11127_v62  ;;  %11180 = vmatprep.subr.bf16.mxu1 %v11179_v33  ;;  %v13063_v11 = vunpack.i.h.bf16 %v20654_v27  ;;  %v20668_v38 = vpack.c.bf16 %v18495_v43, %v18524_v35  ;;  %v9248_v24 = vsel %vm9242_vm7, %v18924_v37, %v9229_v45  ;;  %v20669_v53 = vunpack.i.h.bf16 %v17937_v55  ;;  %vm20671_vm2 = vmmov %vm20667_vm5  ;;  %v20672_v43 = vld [vmem:[#allocation82_spill] sm:$0xff] }
 0x9a6   : > { %v7101_v56 = vsel %vm20667_vm5, %v20666_v59, %v13078_v3  ;;  %v13102_v54 = vunpack.i.l.bf16 %v20670_v1  ;;  %v18999_v51 = vpop.permute.xlu0 %13570  ;;  %v9231_v19 = vpop.permute.xlu1 %9230  ;;  %v7102_v27 = vsel %vm20671_vm2, %v13078_v3, %v13082_v30  ;;  %v13103_v9 = vunpack.i.h.bf16 %v20670_v1  ;;  %vm20673_vm9 = vmmov %vm20671_vm2 }
 0x9a7   : > { %11130 = vmatpush1.bf16.msra.mxu0 %v20668_v38  ;;  %v7013_v14 = vsel %vm7003_vm0, %v20669_v53, %v13062_v29  ;;  %v9250_v35 = vsel %vm9242_vm7, %v9231_v19, %v20672_v43  ;;  %v7103_v23 = vsel %vm20673_vm9, %v13082_v30, %v13083_v47  ;;  %v9247_v55 = vsel %vm9242_vm7, %v18531_v40, %v18924_v37  ;;  %v20680_v53 = vld [vmem:[#allocation27_spill] sm:$0xff] }
 0x9a8   : > { %9810 = vmatprep.subr.mxu0 %v9248_v24  ;;  %v11183_v33 = vpack.c.bf16 %v7101_v56, %v7013_v14  ;;  %11182 = vmatpush1.bf16.msra.mxu1 %v11181_v57  ;;  %v13558_v62 = vunpack.i.h.bf16 %v18943_v15  ;;  %v9249_v63 = vsel %vm9242_vm7, %v9229_v45, %v9231_v19  ;;  %v20674_v59 = vunpack.i.h.bf16 %v18614_v34  ;;  %v20675_v56 = vld [vmem:[#allocation31_spill] sm:$0xff]  ;;  %v20678_v34 = vld [vmem:[#allocation41_spill] sm:$0xff] }
 0x9a9   : > { %9881 = vmatprep.subr.mxu1 %v9250_v35  ;;  %v7014_v57 = vsel %vm7003_vm0, %v13062_v29, %v13063_v11  ;;  %v7015_v38 = vsel %vm7003_vm0, %v13063_v11, %v20675_v56  ;;  %v20676_v15 = vunpack.i.h.bf16 %v17987_v28  ;;  %vm20677_vm6 = vcmask 941056   ;;  %v20681_v11 = vld [vmem:[#allocation19_spill] sm:$0xff] }
 0x9aa   : > { %v7278_v3 = vsel %vm7268_vm3, %v20674_v59, %v13557_v20  ;;  %v7533_v47 = vpop.permute.xlu0 %7532  ;;  %v7267_v30 = vpop.permute.xlu1 %7266  ;;  %v11235_v40 = vpack.c.bf16 %v7103_v23, %v7015_v38  ;;  %v11237_v37 = vpack.c.bf16 %v7102_v27, %v7014_v57  ;;  %vm20679_vm4 = vmmov %vm20677_vm6  ;;  %v20682_v14 = vpack.c.bf16 %v20680_v53, %v20681_v11 }
 0x9ab   : > { %9811 = vmatpush1.msra.mxu0 %v9247_v55  ;;  %v7189_v45 = vsel %vm20677_vm6, %v20676_v15, %v13102_v54  ;;  %v7191_v24 = vsel %vm20679_vm4, %v13103_v9, %v20678_v34  ;;  %v7280_v29 = vsel %vm7268_vm3, %v13558_v62, %v7267_v30  ;;  %v7279_v19 = vsel %vm7268_vm3, %v13557_v20, %v13558_v62  ;;  %vm20683_vm0 = vmmov %vm20679_vm4 }
 0x9ac   : > { %9823 = vmatmul.mubr.f32.vlgmr.msra.gmra.mrb[14].mxu0 %v18554_v6  ;;  %11184 = vmatprep.subr.bf16.mxu0 %v11183_v33  ;;  %v11187_v1 = vpack.c.bf16 %v7278_v3, %v7189_v45  ;;  %v11239_v33 = vpack.c.bf16 %v7280_v29, %v7191_v24  ;;  %v13562_v28 = vunpack.i.l.bf16 %v18959_v8  ;;  %v7190_v27 = vsel %vm20683_vm0, %v13102_v54, %v13103_v9 }
 0x9ad   : > { %9882 = vmatpush1.msra.mxu1 %v9249_v63  ;;  %11186 = vmatpush1.bf16.msra.mxu0 %v20682_v14  ;;  %v11241_v55 = vpack.c.bf16 %v7279_v19, %v7190_v27  ;;  %v13563_v62 = vunpack.i.h.bf16 %v18959_v8  ;;  %v20685_v54 = vunpack.i.h.bf16 %v18575_v13  ;;  %v20686_v59 = vunpack.i.h.bf16 %v18669_v46 }
 0x9ae   : > { %9894 = vmatmul.mubr.f32.vlgmr.msra.gmra.mrb[14].mxu1 %v18554_v6  ;;  %11236 = vmatprep.subr.bf16.mxu1 %v11235_v40  ;;  %v19031_v35 = vpop.permute.xlu0 %13580  ;;  %v13566_v23 = vpop.permute.xlu1 %13565  ;;  %v20684_v6 = vpack.c.bf16 %v18634_v61, %v18625_v4  ;;  %vm20687_vm3 = vcmask 596992   ;;  %v13572_v13 = vunpack.i.l.bf16 %v18999_v51  ;;  %v20690_v46 = vpack.c.bf16 %v18680_v7, %v18604_v10 }
 0x9af   : > { %11238 = vmatpush1.bf16.msra.mxu1 %v11237_v37  ;;  %11188 = vmatprep.subr.bf16.mxu0 %v11187_v1  ;;  %v13568_v63 = vunpack.i.h.bf16 %v13566_v23  ;;  %v13567_v20 = vunpack.i.l.bf16 %v13566_v23  ;;  %v7367_v9 = vsel %vm7357_vm1, %v20685_v54, %v13562_v28  ;;  %vm20688_vm12 = vmmov %vm20687_vm3  ;;  %v7369_v61 = vsel %vm7357_vm1, %v13563_v62, %v18981_v31  ;;  %v20695_v54 = vld [vmem:[#allocation78_spill] sm:$0xff] }
 0x9b0   : > { %11240 = vmatprep.subr.bf16.mxu1 %v11239_v33  ;;  %10344 = vmatprep.mubr.msk.f32.mxu0 %vm2984_vm8, %v18589_v5  ;;  %v7368_v8 = vsel %vm7357_vm1, %v13562_v28, %v13563_v62  ;;  %v13573_v31 = vunpack.i.h.bf16 %v18999_v51  ;;  %v20691_v24 = vunpack.i.h.bf16 %v18645_v12  ;;  %v20692_v53 = vunpack.i.h.bf16 %v18716_v17 }
 0x9b1   : > { %11190 = vmatpush1.bf16.msra.mxu0 %v20684_v6  ;;  %10345 = vmatprep.mubr.msk.f32.mxu1 %vm2984_vm8, %v18589_v5  ;;  %v7455_v3 = vsel %vm20687_vm3, %v20686_v59, %v13567_v20  ;;  %v7456_v57 = vsel %vm20688_vm12, %v13567_v20, %v13568_v63  ;;  %vm20689_vm8 = vmmov %vm20687_vm3  ;;  %v13582_v12 = vunpack.i.l.bf16 %v19031_v35  ;;  %v20693_v17 = vpack.c.bf16 %v18727_v50, %v18656_v44 }
 0x9b2   : > { %v7710_v56 = vpop.permute.xlu0 %7709  ;;  %v7445_v38 = vpop.permute.xlu1 %7444  ;;  %v11191_v4 = vpack.c.bf16 %v7455_v3, %v7367_v9  ;;  %v11245_v40 = vpack.c.bf16 %v7456_v57, %v7368_v8  ;;  %v7544_v29 = vsel %vm7534_vm15, %v20691_v24, %v13572_v13  ;;  %v7546_v19 = vsel %vm7534_vm15, %v13573_v31, %v7533_v47 }
 0x9b3   : > { %11242 = vmatpush1.bf16.msra.mxu1 %v11241_v55  ;;  %v7457_v5 = vsel %vm20689_vm8, %v13568_v63, %v7445_v38  ;;  %v7545_v28 = vsel %vm7534_vm15, %v13572_v13, %v13573_v31  ;;  %v13583_v47 = vunpack.i.h.bf16 %v19031_v35  ;;  %v20694_v6 = vunpack.i.h.bf16 %v18694_v32 }
 0x9b4   : > { %v11243_v30 = vpack.c.bf16 %v7457_v5, %v7369_v61  ;;  %11192 = vmatprep.subr.bf16.mxu0 %v11191_v4  ;;  %v20696_v9 = vunpack.i.h.bf16 %v20695_v54  ;;  %v20704_v24 = vunpack.i.h.bf16 %v18802_v26  ;;  %vm20705_vm5 = vcmask 318464  }
 0x9b5   : > { %11194 = vmatpush1.bf16.msra.mxu0 %v20690_v46  ;;  %v7721_v62 = vsel %vm7711_vm13, %v20694_v6, %v13582_v12  ;;  %v7723_v38 = vsel %vm7711_vm13, %v13583_v47, %v7710_v56  ;;  %v7722_v35 = vsel %vm7711_vm13, %v13582_v12, %v13583_v47  ;;  %vm20703_vm13 = vcmask 343040   ;;  %vm20708_vm9 = vmmov %vm20705_vm5  ;;  %v20714_v12 = vld [vmem:[#allocation84_spill] sm:$0xff] }
 0x9b6   : > { %v19056_v37 = vpop.permute.xlu0 %13590  ;;  %v13576_v15 = vpop.permute.xlu1 %13575  ;;  %11244 = vmatprep.subr.bf16.mxu1 %v11243_v30  ;;  %v20700_v30 = vpack.c.bf16 %v18773_v16, %v18703_v41  ;;  %v20706_v41 = vunpack.i.h.bf16 %v18833_v48  ;;  %vm20707_vm2 = vcmask 23552   ;;  %vm20709_vm6 = vmmov %vm20703_vm13  ;;  %v20713_v48 = vpack.c.bf16 %v18820_v22, %v18749_v42 }
 0x9b7   : > { %v13578_v45 = vunpack.i.h.bf16 %v13576_v15  ;;  %v13577_v34 = vunpack.i.l.bf16 %v13576_v15  ;;  %11246 = vmatpush1.bf16.msra.mxu1 %v11245_v40  ;;  %v13592_v32 = vunpack.i.l.bf16 %v19056_v37  ;;  %v13593_v15 = vunpack.i.h.bf16 %v19056_v37  ;;  %vm20710_vm4 = vmmov %vm20705_vm5 }
 0x9b8   : > { %vm20712_vm0 = vmmov %vm20709_vm6  ;;  %vm20720_vm8 = vcmask 793600  }
 0x9b9   : > { %v7632_v11 = vsel %vm3892_vm10, %v20692_v53, %v13577_v34  ;;  %v7633_v10 = vsel %vm3892_vm10, %v13577_v34, %v13578_v45  ;;  %vm20717_vm3 = vmmov %vm20707_vm2 }
 0x9ba   : > { %v7887_v7 = vpop.permute.xlu0 %7886  ;;  %v7622_v14 = vpop.permute.xlu1 %7621  ;;  %v11195_v1 = vpack.c.bf16 %v7632_v11, %v7544_v29  ;;  %v11249_v27 = vpack.c.bf16 %v7633_v10, %v7545_v28  ;;  %v7899_v28 = vsel %vm20712_vm0, %v13592_v32, %v13593_v15  ;;  %vm20718_vm12 = vmmov %vm20707_vm2 }
 0x9bb   : > { %v7634_v33 = vsel %vm3892_vm10, %v13578_v45, %v7622_v14  ;;  %vm20697_vm10 = vcmask 367616   ;;  %v20701_v45 = vld [vmem:[#allocation66_spill] sm:$0xff]  ;;  %v7900_v37 = vsel %vm20709_vm6, %v13593_v15, %v7887_v7  ;;  %vm20737_vm6 = vmmov %vm20720_vm8 }
 0x9bc   : > { %v11247_v51 = vpack.c.bf16 %v7634_v33, %v7546_v19  ;;  %11196 = vmatprep.subr.bf16.mxu0 %v11195_v1  ;;  %vm20698_vm1 = vmmov %vm20697_vm10  ;;  %v20702_v34 = vunpack.i.h.bf16 %v20701_v45  ;;  %v20711_v33 = vld [vmem:[#allocation88_spill] sm:$0xff] }
 0x9bd   : > { %11198 = vmatpush1.bf16.msra.mxu0 %v20693_v17  ;;  %vm20699_vm15 = vmmov %vm20698_vm1 }
 0x9be   : > { %v13601_v23 = vpop.permute.xlu0 %13600  ;;  %v13586_v55 = vpop.permute.xlu1 %13585  ;;  %11248 = vmatprep.subr.bf16.mxu1 %v11247_v51  ;;  %v7898_v31 = vsel %vm20703_vm13, %v20702_v34, %v13592_v32 }
 0x9bf   : > { %v13588_v63 = vunpack.i.h.bf16 %v13586_v55  ;;  %v13587_v20 = vunpack.i.l.bf16 %v13586_v55  ;;  %11250 = vmatpush1.bf16.msra.mxu1 %v11249_v27  ;;  %v13602_v5 = vunpack.i.l.bf16 %v13601_v23  ;;  %v13603_v10 = vunpack.i.h.bf16 %v13601_v23  ;;  %v20715_v55 = vld [vmem:[#allocation20_spill] sm:$0xff] }
 0x9c0   : > { %v13017_v27 = vunpack.i.l.bf16 %v20714_v12  ;;  %v13018_v23 = vunpack.i.h.bf16 %v20714_v12  ;;  %v13027_v7 = vunpack.i.l.bf16 %v20715_v55 }
 0x9c1   : > { %v7809_v59 = vsel %vm20697_vm10, %v20696_v9, %v13587_v20  ;;  %v7810_v3 = vsel %vm20698_vm1, %v13587_v20, %v13588_v63  ;;  %v8076_v16 = vsel %vm20707_vm2, %v20706_v41, %v13602_v5  ;;  %v8077_v47 = vsel %vm20717_vm3, %v13602_v5, %v13603_v10  ;;  %v20719_v9 = vld [vmem:[#allocation61_spill] sm:$0xff]  ;;  %vm20723_vm10 = vmmov %vm20720_vm8 }
 0x9c2   : > { %v19081_v44 = vpop.permute.xlu0 %13605  ;;  %v7799_v50 = vpop.permute.xlu1 %7798  ;;  %v11199_v57 = vpack.c.bf16 %v7809_v59, %v7721_v62  ;;  %v11253_v8 = vpack.c.bf16 %v7810_v3, %v7722_v35  ;;  %v11207_v26 = vpack.c.bf16 %v20711_v33, %v8076_v16  ;;  %v19126_v3 = vsel %vm20720_vm8, %v20623_v25, %v13017_v27 }
 0x9c3   : > { %v7811_v4 = vsel %vm20699_vm15, %v13588_v63, %v7799_v50  ;;  %v20716_v63 = vld [vmem:[#allocation30_spill] sm:$0xff]  ;;  %v13608_v22 = vunpack.i.h.bf16 %v19081_v44  ;;  %v13607_v54 = vunpack.i.l.bf16 %v19081_v44  ;;  %v20721_v50 = vld [vmem:[#allocation45_spill] sm:$0xff]  ;;  %v19132_v35 = vsel %vm20723_vm10, %v13018_v23, %v13027_v7 }
 0x9c4   : > { %v11251_v61 = vpack.c.bf16 %v7811_v4, %v7723_v38  ;;  %11200 = vmatprep.subr.bf16.mxu0 %v11199_v57  ;;  %v11209_v20 = vpack.c.bf16 %v20716_v63, %v18843_v60  ;;  %v13028_v60 = vunpack.i.h.bf16 %v20715_v55  ;;  %v11261_v57 = vpack.c.bf16 %v20721_v50, %v8077_v47  ;;  %v20722_v38 = vld [vmem:[#allocation48_spill] sm:$0xff] }
 0x9c5   : > { %11202 = vmatpush1.bf16.msra.mxu0 %v20700_v30  ;;  %v13023_v4 = vunpack.i.h.bf16 %v20722_v38  ;;  %v20725_v30 = vld [vmem:[#allocation52_spill] sm:$0xff]  ;;  %vm20726_vm1 = vcmask 1022976   ;;  %vm20727_vm15 = vcmask 728064   ;;  %v20730_v16 = vunpack.i.h.bf16 %v18864_v52 }
 0x9c6   : > { %v19090_v13 = vpop.permute.xlu0 %13615  ;;  %v13596_v40 = vpop.permute.xlu1 %13595  ;;  %11252 = vmatprep.subr.bf16.mxu1 %v11251_v61  ;;  %v20724_v61 = vld [vmem:[#allocation87_spill] sm:$0xff]  ;;  %v13033_v25 = vunpack.i.h.bf16 %v20725_v30  ;;  %v8190_v15 = vsel %vm20726_vm1, %v13607_v54, %v13608_v22  ;;  %vm20729_vm13 = vmmov %vm20726_vm1  ;;  %v8544_v12 = vsel %vm20737_vm6, %v13017_v27, %v13018_v23  ;;  %vm20741_vm3 = vcmask 769024  }
 0x9c7   : > { %v13598_v46 = vunpack.i.h.bf16 %v13596_v40  ;;  %v13597_v56 = vunpack.i.l.bf16 %v13596_v40  ;;  %11254 = vmatpush1.bf16.msra.mxu1 %v11253_v8  ;;  %v13038_v32 = vunpack.i.h.bf16 %v20724_v61  ;;  %v13037_v44 = vunpack.i.l.bf16 %v20724_v61 }
 0x9c8   : > { %v13022_v8 = vunpack.i.l.bf16 %v20722_v38  ;;  %v13618_v45 = vunpack.i.h.bf16 %v19090_v13  ;;  %v13617_v34 = vunpack.i.l.bf16 %v19090_v13  ;;  %vm20743_vm8 = vcmask 678912  }
 0x9c9   : > { %v7987_v29 = vsel %vm20705_vm5, %v20704_v24, %v13597_v56  ;;  %v7988_v14 = vsel %vm20708_vm9, %v13597_v56, %v13598_v46  ;;  %v13032_v56 = vunpack.i.l.bf16 %v20725_v30  ;;  %vm20731_vm5 = vmmov %vm20727_vm15  ;;  %v20745_v27 = vunpack.i.h.bf16 %v18892_v49  ;;  %v20754_v30 = vld [vmem:[#allocation60_spill] sm:$0xff] }
 0x9ca   : > { %v19102_v53 = vpop.permute.xlu0 %13620  ;;  %v11203_v11 = vpack.c.bf16 %v7987_v29, %v7898_v31  ;;  %v7976_v1 = vpop.permute.xlu1 %7975  ;;  %v11257_v17 = vpack.c.bf16 %v7988_v14, %v7899_v28  ;;  %v20728_v29 = vunpack.i.h.bf16 %v18800_v0  ;;  %vm20733_vm2 = vmmov %vm20731_vm5  ;;  %v8632_v63 = vsel %vm20741_vm3, %v13022_v8, %v13023_v4 }
 0x9cb   : > { %v7989_v19 = vsel %vm20710_vm4, %v13598_v46, %v7976_v1  ;;  %v20734_v1 = vld [vmem:[#allocation37_spill] sm:$0xff]  ;;  %vm20736_vm9 = vmmov %vm20726_vm1  ;;  %vm20738_vm4 = vcmask 703488  }
 0x9cc   : > { %11204 = vmatprep.subr.bf16.mxu0 %v11203_v11  ;;  %v11255_v51 = vpack.c.bf16 %v7989_v19, %v7900_v37  ;;  %v8189_v41 = vsel %vm20729_vm13, %v20728_v29, %v13607_v54  ;;  %v13043_v37 = vunpack.i.h.bf16 %v20734_v1  ;;  %v8368_v52 = vsel %vm20738_vm4, %v13617_v34, %v13618_v45  ;;  %vm20740_vm0 = vmmov %vm20738_vm4 }
 0x9cd   : > { %11206 = vmatpush1.bf16.msra.mxu0 %v20713_v48  ;;  %v13042_v47 = vunpack.i.l.bf16 %v20734_v1  ;;  %vm20746_vm10 = vmmov %vm20743_vm8  ;;  %v13622_v29 = vunpack.i.l.bf16 %v19102_v53 }
 0x9ce   : > { %11208 = vmatprep.subr.bf16.mxu0 %v11207_v26  ;;  %v19118_v6 = vpop.permute.xlu0 %13635  ;;  %11256 = vmatprep.subr.bf16.mxu1 %v11255_v51  ;;  %v20735_v26 = vld [vmem:[#allocation83_spill] sm:$0xff]  ;;  %vm20748_vm1 = vmmov %vm20743_vm8 }
 0x9cf   : > { %v8065_v62 = vpop.permute.xlu1 %8064  ;;  %11258 = vmatpush1.bf16.msra.mxu1 %v11257_v17  ;;  %v8191_v28 = vsel %vm20736_vm9, %v13608_v22, %v20735_v26  ;;  %v20739_v17 = vunpack.i.h.bf16 %v18846_v36  ;;  %v20747_v36 = vld [vmem:[#allocation72_spill] sm:$0xff]  ;;  %vm20751_vm13 = vmmov %vm20741_vm3  ;;  %vm20758_vm9 = vcmask 449536  }
 0x9d0   : > { %v8078_v42 = vsel %vm20718_vm12, %v13603_v10, %v8065_v62  ;;  %v20732_v10 = vld [vmem:[#allocation73_spill] sm:$0xff]  ;;  %vm20742_vm12 = vmmov %vm20737_vm6 }
 0x9d1   : > { %v11259_v59 = vpack.c.bf16 %v20719_v9, %v8078_v42  ;;  %11210 = vmatpush1.bf16.msra.mxu0 %v11209_v20  ;;  %v8367_v55 = vsel %vm20740_vm0, %v20739_v17, %v13617_v34  ;;  %v8546_v20 = vsel %vm20742_vm12, %v13027_v7, %v13028_v60  ;;  %v20744_v42 = vpack.c.bf16 %v18873_v21, %v18815_v18  ;;  %v20749_v60 = vld [vmem:[#allocation85_spill] sm:$0xff]  ;;  %v20755_v34 = vld [vmem:[#allocation32_spill] sm:$0xff]  ;;  %vm20760_vm6 = vmmov %vm20758_vm9 }
 0x9d2   : > { %v19142_v31 = vpop.permute.xlu0 %13645  ;;  %vm20761_vm4 = vmmov %vm20760_vm6  ;;  %vm20764_vm12 = vcmask 424960  }
 0x9d3   : > { %v13611_v5 = vpop.permute.xlu1 %13610  ;;  %11260 = vmatprep.subr.bf16.mxu1 %v11259_v59 }
 0x9d4   : > { %v13613_v40 = vunpack.i.h.bf16 %v13611_v5  ;;  %v13612_v46 = vunpack.i.l.bf16 %v13611_v5  ;;  %11262 = vmatpush1.bf16.msra.mxu1 %v11261_v57  ;;  %v8634_v57 = vsel %vm20751_vm13, %v13032_v56, %v13033_v25 }
 0x9d5   : > { %v11271_v25 = vpack.c.bf16 %v8634_v57, %v8546_v20 }
 0x9d6   : > { %v8279_v24 = vsel %vm20727_vm15, %v13612_v46, %v13613_v40  ;;  %v8278_v11 = vsel %vm20731_vm5, %v20730_v16, %v13612_v46  ;;  %v8280_v14 = vsel %vm20733_vm2, %v13613_v40, %v20732_v10  ;;  %v19173_v54 = vpop.permute.xlu0 %13655  ;;  %vm20750_vm15 = vmmov %vm20740_vm0  ;;  %v8720_v40 = vsel %vm8711_vm11, %v20754_v30, %v13037_v44 }
 0x9d7   : > { %v11265_v19 = vpack.c.bf16 %v8279_v24, %v8190_v15  ;;  %v13626_v33 = vpop.permute.xlu1 %13625  ;;  %v11211_v13 = vpack.c.bf16 %v8278_v11, %v8189_v41  ;;  %v11263_v0 = vpack.c.bf16 %v8280_v14, %v8191_v28  ;;  %v8369_v50 = vsel %vm20750_vm15, %v13618_v45, %v20749_v60  ;;  %vm20752_vm5 = vmmov %vm20741_vm3  ;;  %v20756_v45 = vld [vmem:[#allocation64_spill] sm:$0xff] }
 0x9d8   : > { %v13628_v51 = vunpack.i.h.bf16 %v13626_v33  ;;  %v13627_v48 = vunpack.i.l.bf16 %v13626_v33  ;;  %v8631_v18 = vsel %vm20752_vm5, %v20625_v39, %v13022_v8  ;;  %vm20753_vm2 = vmmov %vm20741_vm3  ;;  %v13623_v46 = vunpack.i.h.bf16 %v19102_v53 }
 0x9d9   : > { %11212 = vmatprep.subr.bf16.mxu0 %v11211_v13  ;;  %11264 = vmatprep.subr.bf16.mxu1 %v11263_v0  ;;  %v8633_v5 = vsel %vm20753_vm2, %v13023_v4, %v13032_v56  ;;  %v11219_v15 = vpack.c.bf16 %v8632_v63, %v8544_v12  ;;  %v20757_v24 = vpack.c.bf16 %v20755_v34, %v20756_v45  ;;  %v20759_v4 = vld [vmem:[#allocation55_spill] sm:$0xff]  ;;  %v13638_v10 = vunpack.i.h.bf16 %v19118_v6  ;;  %vm20762_vm0 = vmmov %vm20761_vm4 }
 0x9da   : > { %v8456_v62 = vsel %vm20743_vm8, %v13627_v48, %v13628_v51  ;;  %11214 = vmatpush1.bf16.msra.mxu0 %v20744_v42  ;;  %v8455_v23 = vsel %vm20746_vm10, %v20745_v27, %v13627_v48  ;;  %v8457_v22 = vsel %vm20748_vm1, %v13628_v51, %v20747_v36  ;;  %11266 = vmatpush1.bf16.msra.mxu1 %v11265_v19  ;;  %v13637_v19 = vunpack.i.l.bf16 %v19118_v6  ;;  %v13666_v13 = vpop.permute.xlu0 %13665  ;;  %v20765_v63 = vld [vmem:[#allocation75_spill] sm:$0xff]  ;;  %vm20767_vm10 = vmmov %vm20764_vm12  ;;  %v20771_v27 = vld [vmem:[#allocation80_spill] sm:$0xff] }
 0x9db   : > { %v11269_v9 = vpack.c.bf16 %v8456_v62, %v8368_v52  ;;  %v13631_v7 = vpop.permute.xlu1 %13630  ;;  %v11215_v59 = vpack.c.bf16 %v8455_v23, %v8367_v55  ;;  %v11267_v38 = vpack.c.bf16 %v8457_v22, %v8369_v50  ;;  %v8721_v39 = vsel %vm8711_vm11, %v13037_v44, %v13038_v32  ;;  %vm20769_vm1 = vmmov %vm20767_vm10 }
 0x9dc   : > { %v13633_v21 = vunpack.i.h.bf16 %v13631_v7  ;;  %v13632_v49 = vunpack.i.l.bf16 %v13631_v7  ;;  %v8809_v8 = vsel %vm20758_vm9, %v13042_v47, %v13043_v37  ;;  %v8808_v56 = vsel %vm20760_vm6, %v20759_v4, %v13042_v47  ;;  %vm20772_vm13 = vmmov %vm20769_vm1 }
 0x9dd   : > { %11216 = vmatprep.subr.bf16.mxu0 %v11215_v59  ;;  %11268 = vmatprep.subr.bf16.mxu1 %v11267_v38  ;;  %v11221_v16 = vpack.c.bf16 %v8631_v18, %v19126_v3  ;;  %v11273_v44 = vpack.c.bf16 %v8633_v5, %v19132_v35  ;;  %v13648_v33 = vunpack.i.h.bf16 %v19142_v31  ;;  %v11223_v53 = vpack.c.bf16 %v8809_v8, %v8721_v39 }
 0x9de   : > { %11218 = vmatpush1.bf16.msra.mxu0 %v20757_v24  ;;  %11270 = vmatpush1.bf16.msra.mxu1 %v11269_v9  ;;  %v8811_v11 = vsel %vm20761_vm4, %v13632_v49, %v13633_v21  ;;  %v8723_v26 = vsel %vm8711_vm11, %v13622_v29, %v13623_v46  ;;  %v13647_v28 = vunpack.i.l.bf16 %v19142_v31  ;;  %v8810_v3 = vsel %vm20762_vm0, %v13043_v37, %v13632_v49  ;;  %v13676_v36 = vpop.permute.xlu0 %13675 }
 0x9df   : > { %v13641_v41 = vpop.permute.xlu1 %13640  ;;  %11220 = vmatprep.subr.bf16.mxu0 %v11219_v15  ;;  %11272 = vmatprep.subr.bf16.mxu1 %v11271_v25  ;;  %v11275_v51 = vpack.c.bf16 %v8811_v11, %v8723_v26  ;;  %vm20763_vm3 = vcmask 400384   ;;  %v8722_v35 = vsel %vm8711_vm11, %v13038_v32, %v13622_v29  ;;  %v11225_v0 = vpack.c.bf16 %v8808_v56, %v8720_v40 }
 0x9e0   : > { %v13643_v14 = vunpack.i.h.bf16 %v13641_v41  ;;  %v13642_v1 = vunpack.i.l.bf16 %v13641_v41  ;;  %v13658_v12 = vunpack.i.h.bf16 %v19173_v54  ;;  %v8898_v31 = vsel %vm20764_vm12, %v13637_v19, %v13638_v10  ;;  %vm20766_vm8 = vmmov %vm20763_vm3 }
 0x9e1   : > { %v13657_v37 = vunpack.i.l.bf16 %v19173_v54  ;;  %v11277_v55 = vpack.c.bf16 %v8810_v3, %v8722_v35  ;;  %v8899_v32 = vsel %vm20767_vm10, %v13638_v10, %v13647_v28  ;;  %vm20768_vm11 = vmmov %vm20763_vm3  ;;  %v8900_v62 = vsel %vm20769_vm1, %v13647_v28, %v13648_v33  ;;  %v13695_v10 = vld [vmem:[%s19330_s2 + $0x20] sm:$0xff] }
 0x9e2   : > { %11222 = vmatpush1.bf16.msra.mxu0 %v11221_v16  ;;  %v8987_v48 = vsel %vm20763_vm3, %v13642_v1, %v13643_v14  ;;  %11274 = vmatpush1.bf16.msra.mxu1 %v11273_v44  ;;  %v8986_v20 = vsel %vm20766_vm8, %v20765_v63, %v13642_v1  ;;  %vm20770_vm15 = vmmov %vm20763_vm3  ;;  %v8897_v23 = vsel %vm20772_vm13, %v20771_v27, %v13637_v19  ;;  %v13678_v7 = vunpack.i.h.bf16 %v13676_v36  ;;  %v20777_v35 = vld [vmem:[#allocation35_spill] sm:$0xff] }
 0x9e3   : > { %v13651_v6 = vpop.permute.xlu1 %13650  ;;  %11224 = vmatprep.subr.bf16.mxu0 %v11223_v53  ;;  %11276 = vmatprep.subr.bf16.mxu1 %v11275_v51  ;;  %v11227_v61 = vpack.c.bf16 %v8987_v48, %v8898_v31  ;;  %v11229_v59 = vpack.c.bf16 %v8986_v20, %v8897_v23  ;;  %vm20773_vm5 = vcmask 105472   ;;  %v13668_v18 = vunpack.i.h.bf16 %v13666_v13  ;;  %v20780_v20 = vld [vmem:[#allocation23_spill] sm:$0xff]  ;;  %v20782_v23 = vld [vmem:[#allocation38_spill] sm:$0xff] }
 0x9e4   : > { %v13653_v52 = vunpack.i.h.bf16 %v13651_v6  ;;  %v13652_v17 = vunpack.i.l.bf16 %v13651_v6  ;;  %v9074_v57 = vsel %vm20773_vm5, %v20661_v2, %v13657_v37  ;;  %vm20774_vm2 = vmmov %vm20773_vm5  ;;  %v13667_v49 = vunpack.i.l.bf16 %v13666_v13 }
 0x9e5   : > { %v9075_v21 = vsel %vm20774_vm2, %v13657_v37, %v13658_v12  ;;  %v13677_v38 = vunpack.i.l.bf16 %v13676_v36  ;;  %vm20775_vm9 = vmmov %vm20774_vm2 }
 0x9e6   : > { %v8988_v47 = vsel %vm20768_vm11, %v13643_v14, %v13652_v17  ;;  %11226 = vmatpush1.bf16.msra.mxu0 %v11225_v0  ;;  %v8989_v42 = vsel %vm20770_vm15, %v13652_v17, %v13653_v52  ;;  %11278 = vmatpush1.bf16.msra.mxu1 %v11277_v55  ;;  %v9076_v24 = vsel %vm20775_vm9, %v13658_v12, %v13667_v49  ;;  %vm20776_vm6 = vmmov %vm20774_vm2  ;;  %v20778_v0 = vld [vmem:[#allocation33_spill] sm:$0xff]  ;;  %v20779_v52 = vld [vmem:[#allocation26_spill] sm:$0xff] }
 0x9e7   : > { %v11281_v22 = vpack.c.bf16 %v8988_v47, %v8899_v32  ;;  %v13661_v54 = vpop.permute.xlu1 %13660  ;;  %11228 = vmatprep.subr.bf16.mxu0 %v11227_v61  ;;  %v11279_v9 = vpack.c.bf16 %v8989_v42, %v8900_v62  ;;  %v9252_v2 = vsel %vm9242_vm7, %v13677_v38, %v13678_v7  ;;  %v9077_v39 = vsel %vm20776_vm6, %v13667_v49, %v13668_v18  ;;  %v20781_v32 = vld [vmem:[#allocation40_spill] sm:$0xff] }
 0x9e8   : > { %v13663_v60 = vunpack.i.h.bf16 %v13661_v54  ;;  %v13662_v50 = vunpack.i.l.bf16 %v13661_v54  ;;  %v9251_v16 = vsel %vm9242_vm7, %v20672_v43, %v13677_v38 }
 0x9e9   : > { %11280 = vmatprep.subr.bf16.mxu1 %v11279_v9  ;;  %v20783_v9 = vld [vmem:[#allocation50_spill] sm:$0xff] }
 0x9ea   : > { %v9162_v5 = vsel %vm3981_vm14, %v20663_v58, %v13662_v50  ;;  %11230 = vmatpush1.bf16.msra.mxu0 %v11229_v59  ;;  %v9163_v30 = vsel %vm3981_vm14, %v13662_v50, %v13663_v60  ;;  %11282 = vmatpush1.bf16.msra.mxu1 %v11281_v22 }
 0x9eb   : > { %v11233_v40 = vpack.c.bf16 %v9162_v5, %v9074_v57  ;;  %v13671_v46 = vpop.permute.xlu1 %13670  ;;  %v11231_v15 = vpack.c.bf16 %v9163_v30, %v9075_v21  ;;  %v20784_v57 = vld [vmem:[#allocation49_spill] sm:$0xff]  ;;  %v20785_v30 = vld [vmem:[#allocation39_spill] sm:$0xff] }
 0x9ec   : > { %v13673_v34 = vunpack.i.h.bf16 %v13671_v46  ;;  %v13672_v45 = vunpack.i.l.bf16 %v13671_v46  ;;  %v20786_v46 = vld [vmem:[#allocation34_spill] sm:$0xff] }
 0x9ed   : > { %11232 = vmatprep.subr.bf16.mxu0 %v11231_v15 }
 0x9ee   : > { %v9164_v25 = vsel %vm3981_vm14, %v13663_v60, %v13672_v45  ;;  %11234 = vmatpush1.bf16.msra.mxu0 %v11233_v40  ;;  %v9165_v58 = vsel %vm3981_vm14, %v13672_v45, %v13673_v34 }
 0x9ef   : > { %v11285_v8 = vpack.c.bf16 %v9164_v25, %v9076_v24  ;;  %v13681_v4 = vpop.permute.xlu1 %13680  ;;  %9952 = vmatprep.subr.mxu0 %v9252_v2  ;;  %v11283_v56 = vpack.c.bf16 %v9165_v58, %v9077_v39  ;;  %v9611_v28 = vpop.permute.xlu0 %9610  ;;  %v20787_v58 = vld [vmem:[#allocation56_spill] sm:$0xff] }
 0x9f0   : > { %v13683_v29 = vunpack.i.h.bf16 %v13681_v4  ;;  %v13682_v41 = vunpack.i.l.bf16 %v13681_v4  ;;  %v20788_v4 = vld [vmem:[#allocation57_spill] sm:$0xff] }
 0x9f1   : > { %11284 = vmatprep.subr.bf16.mxu1 %v11283_v56 }
 0x9f2   : > { %9953 = vmatpush1.msra.mxu0 %v9251_v16  ;;  %11286 = vmatpush1.bf16.msra.mxu1 %v11285_v8  ;;  %v9254_v11 = vsel %vm9242_vm7, %v13682_v41, %v13683_v29  ;;  %v9253_v14 = vsel %vm9242_vm7, %v13678_v7, %v13682_v41  ;;  %v10347_v16 = vld [vmem:[%s19333_s5 + $0x10] sm:$0xff] }
 0x9f3   : > { %9965 = vmatmul.mubr.f32.vlgmr.msra.gmra.mrb[16].mxu0 %v13695_v10  ;;  %10023 = vmatprep.subr.mxu1 %v9254_v11 }
 0x9f6   : > { %10024 = vmatpush1.msra.mxu1 %v9253_v14 }
 0x9f7   : > { %10036 = vmatmul.mubr.f32.vlgmr.msra.gmra.mrb[16].mxu1 %v13695_v10 }
 0xa29   : > { %v9682_v1 = vpop.f32.mrb[12].mxu0 }
 0xa2a   : > { %v9684_v44 = vpop.f32.mrb[13].mxu0  ;;  %v9683_v3 = vadd.f32 %v9682_v1, %v9611_v28 }
 0xa2b   : > { %v9685_v51 = vadd.f32 %v9684_v44, %v9611_v28 }
 0xa2c   : > { %v10066_v6 = vmul.f32 %v9683_v3, %v20777_v35 }
 0xa2d   : > { %v10067_v12 = vmul.f32 %v9685_v51, %v20778_v0 }
 0xa2e   : > { %v9753_v19 = vpop.f32.mrb[12].mxu1 }
 0xa2f   : > { %v9755_v33 = vpop.f32.mrb[13].mxu1  ;;  %v9754_v48 = vadd.f32 %v9753_v19, %v9611_v28  ;;  %v10078_v37 = vadd.f32 %v10067_v12, %v10066_v6 }
 0xa30   : > { %v9756_v31 = vadd.f32 %v9755_v33, %v9611_v28 }
 0xa31   : > { %v10068_v17 = vmul.f32 %v9754_v48, %v20779_v52 }
 0xa32   : > { %v10069_v61 = vmul.f32 %v9756_v31, %v20780_v20 }
 0xa33   : > { %v10079_v63 = vadd.f32 %v10078_v37, %v10068_v17 }
 0xa35   : > { %v10080_v42 = vadd.f32 %v10079_v63, %v10069_v61 }
 0xa7f   : > { %v9824_v13 = vpop.f32.mrb[14].mxu0 }
 0xa80   : > { %v9826_v43 = vpop.f32.mrb[15].mxu0  ;;  %v9825_v55 = vadd.f32 %v9824_v13, %v9611_v28 }
 0xa81   : > { %v9895_v53 = vpop.f32.mrb[14].mxu1  ;;  %v9827_v62 = vadd.f32 %v9826_v43, %v9611_v28 }
 0xa82   : > { %v9897_v26 = vpop.f32.mrb[15].mxu1  ;;  %v10070_v47 = vmul.f32 %v9825_v55, %v20781_v32  ;;  %v9896_v22 = vadd.f32 %v9895_v53, %v9611_v28 }
 0xa83   : > { %v10071_v36 = vmul.f32 %v9827_v62, %v20782_v23  ;;  %v9898_v59 = vadd.f32 %v9897_v26, %v9611_v28 }
 0xa84   : > { %v10081_v27 = vadd.f32 %v10080_v42, %v10070_v47  ;;  %v10072_v7 = vmul.f32 %v9896_v22, %v20783_v9 }
 0xa85   : > { %v10073_v18 = vmul.f32 %v9898_v59, %v20784_v57 }
 0xa86   : > { %v10082_v54 = vadd.f32 %v10081_v27, %v10071_v36 }
 0xa88   : > { %v10083_v60 = vadd.f32 %v10082_v54, %v10072_v7 }
 0xa8a   : > { %v10084_v5 = vadd.f32 %v10083_v60, %v10073_v18 }
 0xac6   : > { %v9966_v50 = vpop.f32.mrb[16].mxu0 }
 0xac7   : > { %v9967_v21 = vadd.f32 %v9966_v50, %v9611_v28  ;;  %v9968_v49 = vpop.f32.mrb[17].mxu0 }
 0xac8   : > { %v9969_v38 = vadd.f32 %v9968_v49, %v9611_v28 }
 0xac9   : > { %v10074_v40 = vmul.f32 %v9967_v21, %v20785_v30 }
 0xaca   : > { %v10075_v15 = vmul.f32 %v9969_v38, %v20786_v46  ;;  %v10037_v34 = vpop.f32.mrb[16].mxu1 }
 0xacb   : > { %v10085_v45 = vadd.f32 %v10084_v5, %v10074_v40  ;;  %v10038_v2 = vadd.f32 %v10037_v34, %v9611_v28  ;;  %v10039_v24 = vpop.f32.mrb[17].mxu1 }
 0xacc   : > { %v10040_v25 = vadd.f32 %v10039_v24, %v9611_v28 }
 0xacd   : > { %v10086_v39 = vadd.f32 %v10085_v45, %v10075_v15  ;;  %v10076_v8 = vmul.f32 %v10038_v2, %v20787_v58 }
 0xace   : > { %v10077_v56 = vmul.f32 %v10040_v25, %v20788_v4 }
 0xacf   : > { %v10087_v29 = vadd.f32 %v10086_v39, %v10076_v8 }
 0xad1   : > { %v10088_v41 = vadd.f32 %v10087_v29, %v10077_v56 }
 0xad3   : > { %10089 = vadd.xlane.f32.xlu1 %v10088_v41 }
 0xae4   : > { %10179 = vperm.xlu1 %12158, %v10347_v16  }
 0xb60   : > { %v10090_v11 = vpop.xlane.xlu1 %10089 }
 0xb61   : > { %v10091_v10 = vmul.f32 0.001953125, %v10090_v11 }
 0xb63   : > { %v10092_v14 = vsub.f32 %v9683_v3, %v10091_v10  ;;  %v10093_v1 = vsub.f32 %v9685_v51, %v10091_v10  ;;  %v10094_v44 = vsub.f32 %v9754_v48, %v10091_v10  ;;  %v10095_v19 = vsub.f32 %v9756_v31, %v10091_v10 }
 0xb64   : > { %v10096_v43 = vsub.f32 %v9825_v55, %v10091_v10  ;;  %v10097_v6 = vsub.f32 %v9827_v62, %v10091_v10  ;;  %v10098_v17 = vsub.f32 %v9896_v22, %v10091_v10  ;;  %v10099_v51 = vsub.f32 %v9898_v59, %v10091_v10 }
 0xb65   : > { %v10104_v33 = vmul.f32 %v10092_v14, %v20777_v35  ;;  %v10105_v13 = vmul.f32 %v10093_v1, %v20778_v0  ;;  %v10106_v53 = vmul.f32 %v10094_v44, %v20779_v52  ;;  %v10107_v12 = vmul.f32 %v10095_v19, %v20780_v20 }
 0xb66   : > { %v10108_v37 = vmul.f32 %v10096_v43, %v20781_v32  ;;  %v10109_v48 = vmul.f32 %v10097_v6, %v20782_v23  ;;  %v10100_v47 = vsub.f32 %v9967_v21, %v10091_v10  ;;  %v10110_v55 = vmul.f32 %v10098_v17, %v20783_v9 }
 0xb67   : > { %v10116_v26 = vmul.f32 %v10104_v33, %v10104_v33  ;;  %v10117_v28 = vmul.f32 %v10105_v13, %v10105_v13  ;;  %v10118_v63 = vmul.f32 %v10106_v53, %v10106_v53  ;;  %v10119_v31 = vmul.f32 %v10107_v12, %v10107_v12 }
 0xb68   : > { %v10120_v42 = vmul.f32 %v10108_v37, %v10108_v37  ;;  %v10101_v36 = vsub.f32 %v9969_v38, %v10091_v10  ;;  %v10111_v62 = vmul.f32 %v10099_v51, %v20784_v57  ;;  %v10121_v54 = vmul.f32 %v10109_v48, %v10109_v48 }
 0xb69   : > { %v10128_v3 = vadd.f32 %v10117_v28, %v10116_v26  ;;  %v10102_v22 = vsub.f32 %v10038_v2, %v10091_v10  ;;  %v10112_v60 = vmul.f32 %v10100_v47, %v20785_v30  ;;  %v10122_v50 = vmul.f32 %v10110_v55, %v10110_v55 }
 0xb6a   : > { %v10103_v59 = vsub.f32 %v10040_v25, %v10091_v10  ;;  %v10113_v49 = vmul.f32 %v10101_v36, %v20786_v46  ;;  %v10123_v5 = vmul.f32 %v10111_v62, %v10111_v62  ;;  %v10346_v25 = vld [vmem:[%s19332_s4 + $0x10] sm:$0xff] }
 0xb6b   : > { %v10129_v61 = vadd.f32 %v10128_v3, %v10118_v63  ;;  %v10114_v21 = vmul.f32 %v10102_v22, %v20787_v58  ;;  %v10124_v15 = vmul.f32 %v10112_v60, %v10112_v60 }
 0xb6c   : > { %v10115_v38 = vmul.f32 %v10103_v59, %v20788_v4  ;;  %v10125_v45 = vmul.f32 %v10113_v49, %v10113_v49 }
 0xb6d   : > { %v10130_v27 = vadd.f32 %v10129_v61, %v10119_v31  ;;  %v10126_v39 = vmul.f32 %v10114_v21, %v10114_v21 }
 0xb6e   : > { %v10127_v2 = vmul.f32 %v10115_v38, %v10115_v38 }
 0xb6f   : > { %v10131_v7 = vadd.f32 %v10130_v27, %v10120_v42 }
 0xb71   : > { %v10132_v18 = vadd.f32 %v10131_v7, %v10121_v54 }
 0xb73   : > { %v10133_v40 = vadd.f32 %v10132_v18, %v10122_v50 }
 0xb75   : > { %v10134_v34 = vadd.f32 %v10133_v40, %v10123_v5 }
 0xb77   : > { %v10135_v24 = vadd.f32 %v10134_v34, %v10124_v15 }
 0xb79   : > { %v10136_v8 = vadd.f32 %v10135_v24, %v10125_v45 }
 0xb7b   : > { %v10137_v56 = vadd.f32 %v10136_v8, %v10126_v39 }
 0xb7d   : > { %v10138_v29 = vadd.f32 %v10137_v56, %v10127_v2 }
 0xb7f   : > { %10139 = vadd.xlane.f32.xlu0 %v10138_v29 }
 0xb95   : > { %10160 = vperm.xlu0 %12157, %v10346_v25  }
 0xc0c   : > { %v10140_v41 = vpop.xlane.xlu0 %10139 }
 0xc0d   : > { %v10141_v16 = vmul.f32 0.001953125, %v10140_v41 }
 0xc0f   : > { %v10142_v11 = vadd.f32 1e-05, %v10141_v16 }
 0xc11   : > { %13688 = vrsqrt.f32 %v10142_v11 }
 0xc14   : > { %v10161_v55 = vpop.permute.xlu0 %10160 }
 0xc1b   : > { %v13689_v10 = vpop.eup %13688 }
 0xc1c   : > { %v10144_v33 = vmul.f32 %v13689_v10, %v10092_v14  ;;  %v10145_v13 = vmul.f32 %v13689_v10, %v10093_v1  ;;  %v10146_v53 = vmul.f32 %v13689_v10, %v10094_v44  ;;  %v10147_v26 = vmul.f32 %v13689_v10, %v10095_v19  ;;  %v10180_v1 = vpop.permute.xlu1 %10179 }
 0xc1d   : > { %v10148_v28 = vmul.f32 %v13689_v10, %v10096_v43  ;;  %v10149_v12 = vmul.f32 %v13689_v10, %v10097_v6  ;;  %v10150_v37 = vmul.f32 %v13689_v10, %v10098_v17  ;;  %v10151_v63 = vmul.f32 %v13689_v10, %v10099_v51 }
 0xc1e   : > { %v10152_v3 = vmul.f32 %v13689_v10, %v10100_v47  ;;  %v10153_v48 = vmul.f32 %v13689_v10, %v10101_v36  ;;  %v10154_v31 = vmul.f32 %v13689_v10, %v10102_v22  ;;  %v10155_v61 = vmul.f32 %v13689_v10, %v10103_v59 }
 0xc1f   : > { %v10163_v42 = vmul.f32 %v10161_v55, %v10144_v33  ;;  %v10164_v27 = vmul.f32 %v10161_v55, %v10145_v13  ;;  %v10165_v62 = vmul.f32 %v10161_v55, %v10146_v53  ;;  %v10166_v54 = vmul.f32 %v10161_v55, %v10147_v26 }
 0xc20   : > { %v10167_v7 = vmul.f32 %v10161_v55, %v10148_v28  ;;  %v10168_v60 = vmul.f32 %v10161_v55, %v10149_v12  ;;  %v10169_v50 = vmul.f32 %v10161_v55, %v10150_v37  ;;  %v10170_v14 = vmul.f32 %v10161_v55, %v10151_v63 }
 0xc21   : > { %v10171_v44 = vmul.f32 %v10161_v55, %v10152_v3  ;;  %v10172_v19 = vmul.f32 %v10161_v55, %v10153_v48  ;;  %v10173_v43 = vmul.f32 %v10161_v55, %v10154_v31  ;;  %v10174_v6 = vmul.f32 %v10161_v55, %v10155_v61 }
 0xc22   : > { %v10182_v17 = vadd.f32 %v10180_v1, %v10163_v42  ;;  %v10183_v51 = vadd.f32 %v10180_v1, %v10164_v27  ;;  %v10184_v47 = vadd.f32 %v10180_v1, %v10165_v62  ;;  %v10185_v36 = vadd.f32 %v10180_v1, %v10166_v54 }
 0xc23   : > { %v10186_v22 = vadd.f32 %v10180_v1, %v10167_v7  ;;  %v10187_v18 = vadd.f32 %v10180_v1, %v10168_v60  ;;  %v10188_v59 = vadd.f32 %v10180_v1, %v10169_v50  ;;  %v10189_v49 = vadd.f32 %v10180_v1, %v10170_v14 }
 0xc24   : > { %v10190_v5 = vadd.f32 %v10180_v1, %v10171_v44  ;;  %v10191_v40 = vadd.f32 %v10180_v1, %v10172_v19  ;;  %v10192_v21 = vadd.f32 %v10180_v1, %v10173_v43  ;;  %v10193_v15 = vadd.f32 %v10180_v1, %v10174_v6 }
 0xc25   : > { %v10194_v34 = vmax.f32 %v10182_v17, 0.0  ;;  %v10195_v38 = vmax.f32 %v10183_v51, 0.0  ;;  %v10196_v45 = vmax.f32 %v10184_v47, 0.0  ;;  %v10197_v24 = vmax.f32 %v10185_v36, 0.0 }
 0xc26   : > { %v10198_v39 = vmax.f32 %v10186_v22, 0.0  ;;  %v10199_v8 = vmax.f32 %v10187_v18, 0.0  ;;  %v10200_v2 = vmax.f32 %v10188_v59, 0.0  ;;  %v10201_v56 = vmax.f32 %v10189_v49, 0.0 }
 0xc27   : > { %v10202_v29 = vmax.f32 %v10190_v5, 0.0  ;;  %v10203_v25 = vmax.f32 %v10191_v40, 0.0  ;;  %v10204_v41 = vmax.f32 %v10192_v21, 0.0  ;;  %v10205_v16 = vmax.f32 %v10193_v15, 0.0 }
 0xc28   : > { %v10206_v11 = vmul.f32 %v10194_v34, %v20777_v35  ;;  %v10207_v10 = vmul.f32 %v10195_v38, %v20778_v0  ;;  %v10208_v33 = vmul.f32 %v10196_v45, %v20779_v52  ;;  %v10209_v13 = vmul.f32 %v10197_v24, %v20780_v20 }
 0xc29   : > { %v10210_v53 = vmul.f32 %v10198_v39, %v20781_v32  ;;  %v10211_v26 = vmul.f32 %v10199_v8, %v20782_v23  ;;  %v10212_v28 = vmul.f32 %v10200_v2, %v20783_v9  ;;  %v10213_v12 = vmul.f32 %v10201_v56, %v20784_v57 }
 0xc2a   : > { %v10214_v37 = vmul.f32 %v10202_v29, %v20785_v30  ;;  %v10215_v63 = vmul.f32 %v10203_v25, %v20786_v46  ;;  %v10216_v35 = vmul.f32 %v10204_v41, %v20787_v58  ;;  %v10217_v0 = vmul.f32 %v10205_v16, %v20788_v4  ;;  %10218 = vst [vmem:[%s267_s17 + $0x28] sm:$0xff] %v10206_v11 }
 0xc2b   : > { %10219 = vst [vmem:[%s267_s17 + $0x30] sm:$0xff] %v10207_v10  ;;  %10220 = vst [vmem:[%s267_s17 + $0x38] sm:$0xff] %v10208_v33 }
 0xc2c   : > { %10221 = vst [vmem:[%s267_s17 + $0x40] sm:$0xff] %v10209_v13  ;;  %10222 = vst [vmem:[%s267_s17 + $0x48] sm:$0xff] %v10210_v53 }
 0xc2d   : > { %10223 = vst [vmem:[%s267_s17 + $0x50] sm:$0xff] %v10211_v26  ;;  %10224 = vst [vmem:[%s267_s17 + $0x58] sm:$0xff] %v10212_v28 }
 0xc2e   : > { %10225 = vst [vmem:[%s267_s17 + $0x60] sm:$0xff] %v10213_v12  ;;  %10226 = vst [vmem:[%s267_s17 + $0x68] sm:$0xff] %v10214_v37 }
 0xc2f   : > { %10227 = vst [vmem:[%s267_s17 + $0x70] sm:$0xff] %v10215_v63  ;;  %10228 = vst [vmem:[%s267_s17 + $0x78] sm:$0xff] %v10216_v35 }
 0xc30   : > { %10229 = vst [vmem:[%s267_s17 + $0x80] sm:$0xff] %v10217_v0 }
 0xc31   : > { %13739 = shalt.err (!%p13736_p4)
}
 0xc32   : > { %s13740_s20 = scalar_lea.hbm %s19284_s7, 2816  ;;  %s13744_s10 = scalar_lea.hbm %s19334_s6, 5632 }
 0xc33   : > { %p13741_p7 = scmp.ne.s32.totalorder %s19284_s7, %s13740_s20  ;;  %p13745_p0 = scmp.lt.u32.totalorder %s19284_s7, %s19334_s6 }
 0xc34   : > { %p13746_p1 = scmp.lt.u32.totalorder %s13744_s10, %s13740_s20  ;;  %p13748_p6 = scmp.lt.u32.totalorder %s13740_s20, %s19284_s7 }
 0xc35   : > { %p13742_p8 = pnand %p13741_p7, %p20790_p11 }
 0xc36   : > { %p13747_p3 = por %p13746_p1, %p13745_p0 }
 0xc37   : > { %p13743_p9 = pneg %p13742_p8 }
 0xc38   : > { %p13749_p12 = por %p13748_p6, %p13747_p3 }
 0xc3a   : > { %p13750_p13 = pnand %p13749_p12, %p13743_p9 }
 0xc3c   : > { %13753 = shalt.err (!%p13750_p13)
}
 0xc3d   : > { %11293 = dma.vmem_to_hbm [thread:$0]  (%p20790_p11), %s19286_s26, 2816, %s19284_s7, %s10231_s16  }
 0xc3e PF: > { %s20791_s21 = sld [smem:[#allocation12_spill]]  ;;  %s20792_s22 = sld [smem:[#allocation18_spill]] }
 0xc3f   : > { %s20793_s23 = sld [smem:[#allocation15_spill]] }
 0xc44   : > { %s10257_s27 = sand.u32 1, %s20791_s21   ;;  %p20794_p5 = scmp.ne.s32.totalorder %s20792_s22, 0 }
 0xc45   : > { %p20795_p10 = scmp.ge.s32.totalorder %s20793_s23, 2  ;;  %s10258_s30 = scalar_lea.sflag [#allocation8], %s10257_s27 }
 0xc47   : > { %p11300_p2 = pnand %p20795_p10, %p20794_p5 }
 0xc49   : > { %13775 = dma.done.wait (!%p11300_p2), %s10258_s30, 2816  }
 0xc4a   : > { %13777 = vsyncadd (!%p11300_p2), %s10258_s30, 4294964480  ;;  %s20796_s24 = sld [smem:[#allocation16_spill]]  ;;  %s20797_s21 = sld [smem:[#allocation13_spill]] }
 0xc4b   : > { %s20798_s22 = sld [smem:[#allocation14_spill]]  ;;  %s20799_s23 = sld [smem:[#allocation17_spill]] }
 0xc50   : > { %p19_p4 = scmp.ge.s32.totalorder %s20796_s24, 4  }
 0xc52   :  { %21 = sbr.rel (!%p19_p4) target bundleno = 8 (0x8), region = 97 }
 0xc59   :  { %10263 = vsyncpa [#allocation7], 1 }
 0xc5a   :  { %10265 = vsyncpa [#allocation7 + $0x1], 1 }
 0xc5b   :  { %10266 = vsyncpa [#allocation8], 1 }
 0xc5c   :  { %10268 = vsyncpa [#allocation8 + $0x1], 1 }

</bundles_post_ra>
